<compile_context>
chip_gen: v7x
topology: tpu7x:2x2x1
jax: 0.10.0
libtpu: 0.0.40
codegen_flags: <defaults>
</compile_context>

<pallas_src>
import functools
import math

import jax
import jax.numpy as jnp
from jax.experimental import pallas as pl
from jax.experimental.pallas import tpu as pltpu

NUM_CLASSES = 10
BASE_WIDTH = 16                       # torchvision ResNet50 uses 64
LAYERS_CFG = [                        # (planes, num_blocks, first_stride)
    (BASE_WIDTH * 1, 3, 1),
    (BASE_WIDTH * 2, 4, 2),
    (BASE_WIDTH * 4, 6, 2),
    (BASE_WIDTH * 8, 3, 2),
]
EXPANSION = 4
TM = 128                              # max M tile for the matmul grid
TN = 128                              # N (output-channel) tile -- lane-dense
LANE = 128                            # channel alignment for conv outputs
SUBLANE = 8


def _round_up(x, m):
    return ((x + m - 1) // m) * m


# ----------------------------- Pallas kernels -----------------------------

def _fake_quant_kernel(x_ref, o_ref):
    # QuantStub: symmetric per-tensor int8 fake quantization.
    x = x_ref[...]
    scale = jnp.maximum(jnp.max(jnp.abs(x)) / 127.0, 1e-8)
    q = jnp.clip(jnp.round(x / scale), -128.0, 127.0)
    o_ref[...] = (q * scale).astype(o_ref.dtype)


def _matmul_fused_kernel(*refs, relu, has_residual):
    # bf16 (TM, K) @ (K, TN) on the MXU, f32 accumulate, fused bias
    # (+ residual add) (+ ReLU) epilogue.  BN scale is pre-folded into b.
    if has_residual:
        a_ref, b_ref, bias_ref, res_ref, o_ref = refs
    else:
        a_ref, b_ref, bias_ref, o_ref = refs
    acc = jnp.dot(a_ref[...], b_ref[...], preferred_element_type=jnp.float32)
    y = acc + bias_ref[...]
    if has_residual:
        y = y + res_ref[...].astype(jnp.float32)
    if relu:
        y = jnp.maximum(y, 0.0)
    o_ref[...] = y.astype(o_ref.dtype)


def _maxpool3x3_dense_kernel(x_ref, o_ref):
    # Dense (stride-1) 3x3 window max over the zero-padded NHWC input.
    # The stride-2 subsample is a trivial slice outside the kernel.
    x = x_ref[...]
    ho, wo = o_ref.shape[1], o_ref.shape[2]
    m = x[:, 0:ho, 0:wo, :]
    for ky in range(3):
        for kx in range(3):
            if ky == 0 and kx == 0:
                continue
            m = jnp.maximum(m, x[:, ky:ky + ho, kx:kx + wo, :])
    o_ref[...] = m


def _gap_fc_kernel(x_ref, w_ref, b_ref, o_ref):
    # Fused global-average-pool (mean over spatial) + FC matmul + bias.
    pooled = jnp.mean(x_ref[...].astype(jnp.float32), axis=1)
    y = jnp.dot(pooled.astype(jnp.bfloat16), w_ref[...],
                preferred_element_type=jnp.float32) + b_ref[...]
    o_ref[...] = y


# ----------------------------- kernel wrappers -----------------------------

def fake_quant(x):
    """Elementwise fake quantization; reshaped to a lane-dense 2-D view."""
    shape = x.shape
    total = x.size
    if total % LANE == 0:
        x2 = x.reshape(total // LANE, LANE)
    else:
        x2 = x.reshape(-1, shape[-1])
    out = pl.pallas_call(
        _fake_quant_kernel,
        out_shape=jax.ShapeDtypeStruct(x2.shape, jnp.bfloat16),
    )(x2.astype(jnp.float32))
    return out.reshape(shape)


def matmul_fused(a, b, bias, *, relu, residual=None):
    """a: (M, K); b: (K, N) bf16 (BN-scale folded); bias: (N,) f32.

    N must be a multiple of 128 (lane-dense output).  Optional residual
    (M, N) is added before the ReLU inside the epilogue.
    """
    M, K = a.shape
    N = b.shape[1]
    assert N % TN == 0, N

    tm = min(TM, _round_up(M, SUBLANE))
    Mp = _round_up(M, tm)

    a = a.astype(jnp.bfloat16)
    if Mp != M:
        a = jnp.pad(a, ((0, Mp - M), (0, 0)))
    if residual is not None:
        residual = residual.astype(jnp.bfloat16)
        if Mp != M:
            residual = jnp.pad(residual, ((0, Mp - M), (0, 0)))
    bias2 = bias.reshape(1, N).astype(jnp.float32)

    in_specs = [
        pl.BlockSpec((tm, K), lambda i, j: (i, 0)),
        pl.BlockSpec((K, TN), lambda i, j: (0, j)),
        pl.BlockSpec((1, TN), lambda i, j: (0, j)),
    ]
    inputs = [a, b.astype(jnp.bfloat16), bias2]
    if residual is not None:
        in_specs.append(pl.BlockSpec((tm, TN), lambda i, j: (i, j)))
        inputs.append(residual)

    # NOTE: at this reduced width the full (K, TN) weight tile fits easily in
    # VMEM; at real ResNet50 widths K would additionally be tiled with a VMEM
    # accumulator and an "arbitrary" reduction axis.
    out = pl.pallas_call(
        functools.partial(_matmul_fused_kernel, relu=relu,
                          has_residual=residual is not None),
        out_shape=jax.ShapeDtypeStruct((Mp, N), jnp.bfloat16),
        grid=(Mp // tm, N // TN),
        in_specs=in_specs,
        out_specs=pl.BlockSpec((tm, TN), lambda i, j: (i, j)),
        compiler_params=pltpu.CompilerParams(
            dimension_semantics=("parallel", "parallel")),
    )(*inputs)
    return out if Mp == M else out[:M]


def _im2col(x, ksize, stride, padding):
    # TODO(synk): im2col is plain-JAX patch materialization; in-kernel tap
    # accumulation (grid axis over the k*k taps) would avoid the k*k read
    # amplification for 3x3 convs.
    N, H, W, Cin = x.shape
    Ho = (H + 2 * padding - ksize) // stride + 1
    Wo = (W + 2 * padding - ksize) // stride + 1
    if ksize == 1 and padding == 0:
        patches = x[:, ::stride, ::stride, :].reshape(N * Ho * Wo, Cin)
    else:
        xp = jnp.pad(x, ((0, 0), (padding, padding), (padding, padding), (0, 0)))
        cols = []
        for ky in range(ksize):
            for kx in range(ksize):
                cols.append(xp[:, ky:ky + (Ho - 1) * stride + 1:stride,
                                  kx:kx + (Wo - 1) * stride + 1:stride, :])
        patches = jnp.concatenate(cols, axis=-1)
        patches = patches.reshape(N * Ho * Wo, ksize * ksize * Cin)
    return patches, Ho, Wo


def conv_fused(x, p, *, ksize, stride, padding, relu, residual=None):
    """x: (N, H, W, Cin) NHWC bf16; p: {'w': (k*k*Cin, Cout_pad) bf16, 'bias'}."""
    N = x.shape[0]
    patches, Ho, Wo = _im2col(x.astype(jnp.bfloat16), ksize, stride, padding)
    res2 = None
    if residual is not None:
        res2 = residual.reshape(N * Ho * Wo, residual.shape[-1])
    y = matmul_fused(patches, p["w"], p["bias"], relu=relu, residual=res2)
    return y.reshape(N, Ho, Wo, p["w"].shape[1])


def maxpool_3x3_s2(x):
    # x is post-ReLU (>= 0), so zero padding is equivalent to -inf padding.
    N, H, W, C = x.shape
    xp = jnp.pad(x, ((0, 0), (1, 1), (1, 1), (0, 0)))
    dense = pl.pallas_call(
        _maxpool3x3_dense_kernel,
        out_shape=jax.ShapeDtypeStruct((N, H, W, C), x.dtype),
    )(xp)
    return dense[:, ::2, ::2, :]


def gap_fc(x, fc):
    """Fused global average pool + fully-connected head."""
    N, H, W, C = x.shape
    x3 = x.reshape(N, H * W, C).astype(jnp.bfloat16)
    ncls_pad = fc["w"].shape[1]
    out = pl.pallas_call(
        _gap_fc_kernel,
        out_shape=jax.ShapeDtypeStruct((N, ncls_pad), jnp.float32),
    )(x3, fc["w"], fc["b"].reshape(1, ncls_pad))
    return out[:, :NUM_CLASSES]


# ----------------------------- parameters -----------------------------

def build_params(key, base=BASE_WIDTH, num_classes=NUM_CLASSES, in_ch=3):
    def next_key():
        nonlocal key
        key, sub = jax.random.split(key)
        return sub

    def conv_p(cin_real, cin_pad, cout_real, k):
        cout_pad = _round_up(cout_real, LANE)
        fan_in = cin_real * k * k
        w = jax.random.normal(next_key(), (k * k * cin_pad, cout_real),
                              jnp.float32) * math.sqrt(2.0 / fan_in)
        # Folded eval-mode BatchNorm (gamma=1, beta=0, mean=0, var=1): fold the
        # per-channel scale into the weight columns; keep the bias in f32.
        scale = jnp.ones((cout_real,), jnp.float32)
        bias = jnp.zeros((cout_real,), jnp.float32)
        w = w * scale[None, :]
        # Lane-dense padding of output channels (zero columns / zero bias keep
        # the padded channels exactly 0 through ReLU and residual adds).
        w = jnp.pad(w, ((0, 0), (0, cout_pad - cout_real)))
        bias = jnp.pad(bias, (0, cout_pad - cout_real))
        return {"w": w.astype(jnp.bfloat16), "bias": bias}

    in_ch_pad = _round_up(in_ch, SUBLANE)
    params = {"conv1": conv_p(in_ch, in_ch_pad, base, 7)}
    in_real = base
    in_pad = _round_up(base, LANE)

    layers = []
    for planes, nblocks, stride in LAYERS_CFG:
        planes_pad = _round_up(planes, LANE)
        out_real = planes * EXPANSION
        blocks = []
        for b in range(nblocks):
            s = stride if b == 0 else 1
            blk = {
                "c1": conv_p(in_real, in_pad, planes, 1),
                "c2": conv_p(planes, planes_pad, planes, 3),
                "c3": conv_p(planes, planes_pad, out_real, 1),
            }
            if s != 1 or in_real != out_real:
                blk["ds"] = conv_p(in_real, in_pad, out_real, 1)
            blocks.append(blk)
            in_real = out_real
            in_pad = _round_up(out_real, LANE)
        layers.append(blocks)
    params["layers"] = layers

    ncls_pad = _round_up(num_classes, LANE)
    fc_w = jax.random.normal(next_key(), (in_pad, num_classes),
                             jnp.float32) * math.sqrt(1.0 / in_real)
    fc_w = jnp.pad(fc_w, ((0, 0), (0, ncls_pad - num_classes)))
    params["fc"] = {"w": fc_w.astype(jnp.bfloat16),
                    "b": jnp.zeros((ncls_pad,), jnp.float32)}
    return params


# ----------------------------- forward -----------------------------

def bottleneck(x, blk, stride):
    if "ds" in blk:
        identity = conv_fused(x, blk["ds"], ksize=1, stride=stride, padding=0,
                              relu=False)
    else:
        identity = x
    out = conv_fused(x, blk["c1"], ksize=1, stride=1, padding=0, relu=True)
    out = conv_fused(out, blk["c2"], ksize=3, stride=stride, padding=1,
                     relu=True)
    # Residual add + ReLU fused into the c3 matmul epilogue.
    out = conv_fused(out, blk["c3"], ksize=1, stride=1, padding=0, relu=True,
                     residual=identity)
    return out


def quantized_resnet50_forward(x_nchw, params):
    # NCHW (PyTorch) -> NHWC (kernel layout).
    x = jnp.transpose(x_nchw, (0, 2, 3, 1)).astype(jnp.float32)
    N, H, W, C = x.shape

    # Pad input channels to a sublane-aligned count (zeros survive the
    # symmetric fake quant unchanged and hit zero contributions downstream).
    c_pad = _round_up(C, SUBLANE)
    if c_pad != C:
        x = jnp.pad(x, ((0, 0), (0, 0), (0, 0), (0, c_pad - C)))

    # QuantStub: symmetric int8 fake quantization (Pallas kernel).
    x = fake_quant(x)

    # Stem: conv7x7/s2 + folded-BN + ReLU, maxpool 3x3/s2.
    out = conv_fused(x, params["conv1"], ksize=7, stride=2, padding=3,
                     relu=True)
    out = maxpool_3x3_s2(out)

    # Bottleneck stages [3, 4, 6, 3].
    for li, (_, nblocks, stride) in enumerate(LAYERS_CFG):
        for b in range(nblocks):
            s = stride if b == 0 else 1
            out = bottleneck(out, params["layers"][li][b], s)

    # Global average pool + FC, fused into a single Pallas kernel.
    logits = gap_fc(out, params["fc"])

    # DeQuantStub: identity in the float (fake-quant) simulation.
    return logits


if __name__ == "__main__":
    root = jax.random.PRNGKey(0)
    kx, kp = jax.random.split(root)
    x = jax.random.normal(kx, (2, 3, 32, 32), jnp.float32)   # NCHW like PyTorch
    params = build_params(kp)

    fwd = jax.jit(quantized_resnet50_forward)
    logits = jax.block_until_ready(fwd(x, params))

    assert logits.shape == (2, NUM_CLASSES), logits.shape
    assert bool(jnp.all(jnp.isfinite(logits)))
    print("KERNEL_OK")
</pallas_src>

<mosaic_0001>
module attributes {stable_mosaic.version = 11 : i64} {
  func.func @_fake_quant_kernel(%arg0: memref<128x128xf32, #tpu.memory_space<vmem>>, %arg1: memref<128x128xbf16, #tpu.memory_space<vmem>>) attributes {dimension_semantics = [], scalar_prefetch = 0 : i64, scratch_operands = 0 : i64, tpu.core_type = #tpu.core_type<tc>} {
    %c0 = arith.constant 0 : index
    %c0_0 = arith.constant 0 : index
    %0 = vector.load %arg0[%c0, %c0_0] : memref<128x128xf32, #tpu.memory_space<vmem>>, vector<128x128xf32>
    %1 = math.absf %0 : vector<128x128xf32>
    %2 = vector.shape_cast %1 : vector<128x128xf32> to vector<1x128x128xf32>
    %cst = arith.constant dense<0xFF800000> : vector<1xf32>
    %3 = vector.multi_reduction <maximumf>, %2, %cst [1, 2] : vector<1x128x128xf32> to vector<1xf32>
    %4 = vector.shape_cast %3 : vector<1xf32> to vector<1x1x1xf32>
    %5 = vector.extract %4[0, 0, 0] : f32 from vector<1x1x1xf32>
    %cst_1 = arith.constant 1.270000e+02 : f32
    %6 = arith.divf %5, %cst_1 : f32
    %cst_2 = arith.constant 9.99999993E-9 : f32
    %7 = arith.maximumf %6, %cst_2 : f32
    %8 = vector.broadcast %7 : f32 to vector<128x128xf32>
    %9 = arith.divf %0, %8 : vector<128x128xf32>
    %10 = math.roundeven %9 : vector<128x128xf32>
    %cst_3 = arith.constant -1.280000e+02 : f32
    %cst_4 = arith.constant 1.270000e+02 : f32
    %11 = vector.broadcast %cst_3 : f32 to vector<128x128xf32>
    %12 = arith.maximumf %11, %10 : vector<128x128xf32>
    %13 = vector.broadcast %cst_4 : f32 to vector<128x128xf32>
    %14 = arith.minimumf %13, %12 : vector<128x128xf32>
    %15 = vector.broadcast %7 : f32 to vector<128x128xf32>
    %16 = arith.mulf %14, %15 : vector<128x128xf32>
    %17 = arith.truncf %16 : vector<128x128xf32> to vector<128x128xbf16>
    %c0_5 = arith.constant 0 : index
    %c0_6 = arith.constant 0 : index
    %18 = vector.load %arg1[%c0_5, %c0_6] : memref<128x128xbf16, #tpu.memory_space<vmem>>, vector<128x128xbf16>
    tpu.vector_store %arg1[%c0_5, %c0_6], %17 {strides = array<i32>} : memref<128x128xbf16, #tpu.memory_space<vmem>>, vector<128x128xbf16>,
    return
  }
}

module attributes {stable_mosaic.version = 11 : i64} {
  func.func @_matmul_fused_kernel(%arg0: i32, %arg1: i32, %arg2: memref<128x392xbf16, #tpu.memory_space<vmem>>, %arg3: memref<392x128xbf16, #tpu.memory_space<vmem>>, %arg4: memref<1x128xf32, #tpu.memory_space<vmem>>, %arg5: memref<128x128xbf16, #tpu.memory_space<vmem>>) attributes {dimension_semantics = [#tpu.dimension_semantics<parallel>, #tpu.dimension_semantics<parallel>], iteration_bounds = array<i64: 4, 1>, scalar_prefetch = 0 : i64, scratch_operands = 0 : i64, tpu.core_type = #tpu.core_type<tc>, window_params = [{transform_indices = @transform_0, window_bounds = array<i64: 128, 392>}, {transform_indices = @transform_1, window_bounds = array<i64: 392, 128>}, {transform_indices = @transform_2, window_bounds = array<i64: 1, 128>}, {transform_indices = @transform_3, window_bounds = array<i64: 128, 128>}]} {
    %c0 = arith.constant 0 : index
    %c0_0 = arith.constant 0 : index
    %0 = vector.load %arg2[%c0, %c0_0] : memref<128x392xbf16, #tpu.memory_space<vmem>>, vector<128x392xbf16>
    %c0_1 = arith.constant 0 : index
    %c0_2 = arith.constant 0 : index
    %1 = vector.load %arg3[%c0_1, %c0_2] : memref<392x128xbf16, #tpu.memory_space<vmem>>, vector<392x128xbf16>
    %cst = arith.constant dense<0.000000e+00> : vector<128x128xf32>
    %2 = tpu.matmul %0, %1, %cst {dimension_numbers = #tpu.dot_dimension_numbers<[1], [0], [0], [1], [0, 0, 1, 1], [], []>} : vector<128x392xbf16>, vector<392x128xbf16>, vector<128x128xf32> -> vector<128x128xf32>
    %c0_3 = arith.constant 0 : index
    %c0_4 = arith.constant 0 : index
    %3 = vector.load %arg4[%c0_3, %c0_4] : memref<1x128xf32, #tpu.memory_space<vmem>>, vector<1x128xf32>
    %4 = vector.broadcast %3 : vector<1x128xf32> to vector<128x128xf32>
    %5 = arith.addf %2, %4 : vector<128x128xf32>
    %cst_5 = arith.constant 0.000000e+00 : f32
    %6 = vector.broadcast %cst_5 : f32 to vector<128x128xf32>
    %7 = arith.maximumf %5, %6 : vector<128x128xf32>
    %8 = arith.truncf %7 : vector<128x128xf32> to vector<128x128xbf16>
    %c0_6 = arith.constant 0 : index
    %c0_7 = arith.constant 0 : index
    %9 = vector.load %arg5[%c0_6, %c0_7] : memref<128x128xbf16, #tpu.memory_space<vmem>>, vector<128x128xbf16>
    tpu.vector_store %arg5[%c0_6, %c0_7], %8 {strides = array<i32>} : memref<128x128xbf16, #tpu.memory_space<vmem>>, vector<128x128xbf16>,
    return
  }
  func.func @transform_0(%arg0: i32, %arg1: i32) -> (i32, i32) {
    %c0_i32 = arith.constant 0 : i32
    %c0_i32_0 = arith.constant 0 : i32
    return %arg0, %c0_i32 : i32, i32
  }
  func.func @transform_1(%arg0: i32, %arg1: i32) -> (i32, i32) {
    %c0_i32 = arith.constant 0 : i32
    %c0_i32_0 = arith.constant 0 : i32
    return %c0_i32, %arg1 : i32, i32
  }
  func.func @transform_2(%arg0: i32, %arg1: i32) -> (i32, i32) {
    %c0_i32 = arith.constant 0 : i32
    %c0_i32_0 = arith.constant 0 : i32
    return %c0_i32, %arg1 : i32, i32
  }
  func.func @transform_3(%arg0: i32, %arg1: i32) -> (i32, i32) {
    %c0_i32 = arith.constant 0 : i32
    return %arg0, %arg1 : i32, i32
  }
}

module attributes {stable_mosaic.version = 11 : i64} {
  func.func @_maxpool3x3_dense_kernel(%arg0: memref<2x18x18x128xbf16, #tpu.memory_space<vmem>>, %arg1: memref<2x16x16x128xbf16, #tpu.memory_space<vmem>>) attributes {dimension_semantics = [], scalar_prefetch = 0 : i64, scratch_operands = 0 : i64, tpu.core_type = #tpu.core_type<tc>} {
    %c0 = arith.constant 0 : index
    %c0_0 = arith.constant 0 : index
    %c0_1 = arith.constant 0 : index
    %c0_2 = arith.constant 0 : index
    %0 = vector.load %arg0[%c0, %c0_0, %c0_1, %c0_2] : memref<2x18x18x128xbf16, #tpu.memory_space<vmem>>, vector<2x18x18x128xbf16>
    %1 = vector.extract_strided_slice %0 {offsets = [0, 0, 0, 0], sizes = [2, 16, 16, 128], strides = [1, 1, 1, 1]} : vector<2x18x18x128xbf16> to vector<2x16x16x128xbf16>
    %2 = vector.extract_strided_slice %0 {offsets = [0, 0, 1, 0], sizes = [2, 16, 16, 128], strides = [1, 1, 1, 1]} : vector<2x18x18x128xbf16> to vector<2x16x16x128xbf16>
    %3 = arith.maximumf %1, %2 : vector<2x16x16x128xbf16>
    %4 = vector.extract_strided_slice %0 {offsets = [0, 0, 2, 0], sizes = [2, 16, 16, 128], strides = [1, 1, 1, 1]} : vector<2x18x18x128xbf16> to vector<2x16x16x128xbf16>
    %5 = arith.maximumf %3, %4 : vector<2x16x16x128xbf16>
    %6 = vector.extract_strided_slice %0 {offsets = [0, 1, 0, 0], sizes = [2, 16, 16, 128], strides = [1, 1, 1, 1]} : vector<2x18x18x128xbf16> to vector<2x16x16x128xbf16>
    %7 = arith.maximumf %5, %6 : vector<2x16x16x128xbf16>
    %8 = vector.extract_strided_slice %0 {offsets = [0, 1, 1, 0], sizes = [2, 16, 16, 128], strides = [1, 1, 1, 1]} : vector<2x18x18x128xbf16> to vector<2x16x16x128xbf16>
    %9 = arith.maximumf %7, %8 : vector<2x16x16x128xbf16>
    %10 = vector.extract_strided_slice %0 {offsets = [0, 1, 2, 0], sizes = [2, 16, 16, 128], strides = [1, 1, 1, 1]} : vector<2x18x18x128xbf16> to vector<2x16x16x128xbf16>
    %11 = arith.maximumf %9, %10 : vector<2x16x16x128xbf16>
    %12 = vector.extract_strided_slice %0 {offsets = [0, 2, 0, 0], sizes = [2, 16, 16, 128], strides = [1, 1, 1, 1]} : vector<2x18x18x128xbf16> to vector<2x16x16x128xbf16>
    %13 = arith.maximumf %11, %12 : vector<2x16x16x128xbf16>
    %14 = vector.extract_strided_slice %0 {offsets = [0, 2, 1, 0], sizes = [2, 16, 16, 128], strides = [1, 1, 1, 1]} : vector<2x18x18x128xbf16> to vector<2x16x16x128xbf16>
    %15 = arith.maximumf %13, %14 : vector<2x16x16x128xbf16>
    %16 = vector.extract_strided_slice %0 {offsets = [0, 2, 2, 0], sizes = [2, 16, 16, 128], strides = [1, 1, 1, 1]} : vector<2x18x18x128xbf16> to vector<2x16x16x128xbf16>
    %17 = arith.maximumf %15, %16 : vector<2x16x16x128xbf16>
    %c0_3 = arith.constant 0 : index
    %c0_4 = arith.constant 0 : index
    %c0_5 = arith.constant 0 : index
    %c0_6 = arith.constant 0 : index
    %18 = vector.load %arg1[%c0_3, %c0_4, %c0_5, %c0_6] : memref<2x16x16x128xbf16, #tpu.memory_space<vmem>>, vector<2x16x16x128xbf16>
    tpu.vector_store %arg1[%c0_3, %c0_4, %c0_5, %c0_6], %17 {strides = array<i32>} : memref<2x16x16x128xbf16, #tpu.memory_space<vmem>>, vector<2x16x16x128xbf16>,
    return
  }
}

module attributes {stable_mosaic.version = 11 : i64} {
  func.func @_matmul_fused_kernel(%arg0: i32, %arg1: i32, %arg2: memref<128x128xbf16, #tpu.memory_space<vmem>>, %arg3: memref<128x128xbf16, #tpu.memory_space<vmem>>, %arg4: memref<1x128xf32, #tpu.memory_space<vmem>>, %arg5: memref<128x128xbf16, #tpu.memory_space<vmem>>) attributes {dimension_semantics = [#tpu.dimension_semantics<parallel>, #tpu.dimension_semantics<parallel>], iteration_bounds = array<i64: 1, 1>, scalar_prefetch = 0 : i64, scratch_operands = 0 : i64, tpu.core_type = #tpu.core_type<tc>, window_params = [{transform_indices = @transform_0, window_bounds = array<i64: 128, 128>}, {transform_indices = @transform_1, window_bounds = array<i64: 128, 128>}, {transform_indices = @transform_2, window_bounds = array<i64: 1, 128>}, {transform_indices = @transform_3, window_bounds = array<i64: 128, 128>}]} {
    %c0 = arith.constant 0 : index
    %c0_0 = arith.constant 0 : index
    %0 = vector.load %arg2[%c0, %c0_0] : memref<128x128xbf16, #tpu.memory_space<vmem>>, vector<128x128xbf16>
    %c0_1 = arith.constant 0 : index
    %c0_2 = arith.constant 0 : index
    %1 = vector.load %arg3[%c0_1, %c0_2] : memref<128x128xbf16, #tpu.memory_space<vmem>>, vector<128x128xbf16>
    %cst = arith.constant dense<0.000000e+00> : vector<128x128xf32>
    %2 = tpu.matmul %0, %1, %cst {dimension_numbers = #tpu.dot_dimension_numbers<[1], [0], [0], [1], [0, 0, 1, 1], [], []>} : vector<128x128xbf16>, vector<128x128xbf16>, vector<128x128xf32> -> vector<128x128xf32>
    %c0_3 = arith.constant 0 : index
    %c0_4 = arith.constant 0 : index
    %3 = vector.load %arg4[%c0_3, %c0_4] : memref<1x128xf32, #tpu.memory_space<vmem>>, vector<1x128xf32>
    %4 = vector.broadcast %3 : vector<1x128xf32> to vector<128x128xf32>
    %5 = arith.addf %2, %4 : vector<128x128xf32>
    %cst_5 = arith.constant 0.000000e+00 : f32
    %6 = vector.broadcast %cst_5 : f32 to vector<128x128xf32>
    %7 = arith.maximumf %5, %6 : vector<128x128xf32>
    %8 = arith.truncf %7 : vector<128x128xf32> to vector<128x128xbf16>
    %c0_6 = arith.constant 0 : index
    %c0_7 = arith.constant 0 : index
    %9 = vector.load %arg5[%c0_6, %c0_7] : memref<128x128xbf16, #tpu.memory_space<vmem>>, vector<128x128xbf16>
    tpu.vector_store %arg5[%c0_6, %c0_7], %8 {strides = array<i32>} : memref<128x128xbf16, #tpu.memory_space<vmem>>, vector<128x128xbf16>,
    return
  }
  func.func @transform_0(%arg0: i32, %arg1: i32) -> (i32, i32) {
    %c0_i32 = arith.constant 0 : i32
    %c0_i32_0 = arith.constant 0 : i32
    return %arg0, %c0_i32 : i32, i32
  }
  func.func @transform_1(%arg0: i32, %arg1: i32) -> (i32, i32) {
    %c0_i32 = arith.constant 0 : i32
    %c0_i32_0 = arith.constant 0 : i32
    return %c0_i32, %arg1 : i32, i32
  }
  func.func @transform_2(%arg0: i32, %arg1: i32) -> (i32, i32) {
    %c0_i32 = arith.constant 0 : i32
    %c0_i32_0 = arith.constant 0 : i32
    return %c0_i32, %arg1 : i32, i32
  }
  func.func @transform_3(%arg0: i32, %arg1: i32) -> (i32, i32) {
    %c0_i32 = arith.constant 0 : i32
    return %arg0, %arg1 : i32, i32
  }
}

module attributes {stable_mosaic.version = 11 : i64} {
  func.func @_matmul_fused_kernel(%arg0: i32, %arg1: i32, %arg2: memref<128x128xbf16, #tpu.memory_space<vmem>>, %arg3: memref<128x128xbf16, #tpu.memory_space<vmem>>, %arg4: memref<1x128xf32, #tpu.memory_space<vmem>>, %arg5: memref<128x128xbf16, #tpu.memory_space<vmem>>) attributes {dimension_semantics = [#tpu.dimension_semantics<parallel>, #tpu.dimension_semantics<parallel>], iteration_bounds = array<i64: 1, 1>, scalar_prefetch = 0 : i64, scratch_operands = 0 : i64, tpu.core_type = #tpu.core_type<tc>, window_params = [{transform_indices = @transform_0, window_bounds = array<i64: 128, 128>}, {transform_indices = @transform_1, window_bounds = array<i64: 128, 128>}, {transform_indices = @transform_2, window_bounds = array<i64: 1, 128>}, {transform_indices = @transform_3, window_bounds = array<i64: 128, 128>}]} {
    %c0 = arith.constant 0 : index
    %c0_0 = arith.constant 0 : index
    %0 = vector.load %arg2[%c0, %c0_0] : memref<128x128xbf16, #tpu.memory_space<vmem>>, vector<128x128xbf16>
    %c0_1 = arith.constant 0 : index
    %c0_2 = arith.constant 0 : index
    %1 = vector.load %arg3[%c0_1, %c0_2] : memref<128x128xbf16, #tpu.memory_space<vmem>>, vector<128x128xbf16>
    %cst = arith.constant dense<0.000000e+00> : vector<128x128xf32>
    %2 = tpu.matmul %0, %1, %cst {dimension_numbers = #tpu.dot_dimension_numbers<[1], [0], [0], [1], [0, 0, 1, 1], [], []>} : vector<128x128xbf16>, vector<128x128xbf16>, vector<128x128xf32> -> vector<128x128xf32>
    %c0_3 = arith.constant 0 : index
    %c0_4 = arith.constant 0 : index
    %3 = vector.load %arg4[%c0_3, %c0_4] : memref<1x128xf32, #tpu.memory_space<vmem>>, vector<1x128xf32>
    %4 = vector.broadcast %3 : vector<1x128xf32> to vector<128x128xf32>
    %5 = arith.addf %2, %4 : vector<128x128xf32>
    %6 = arith.truncf %5 : vector<128x128xf32> to vector<128x128xbf16>
    %c0_5 = arith.constant 0 : index
    %c0_6 = arith.constant 0 : index
    %7 = vector.load %arg5[%c0_5, %c0_6] : memref<128x128xbf16, #tpu.memory_space<vmem>>, vector<128x128xbf16>
    tpu.vector_store %arg5[%c0_5, %c0_6], %6 {strides = array<i32>} : memref<128x128xbf16, #tpu.memory_space<vmem>>, vector<128x128xbf16>,
    return
  }
  func.func @transform_0(%arg0: i32, %arg1: i32) -> (i32, i32) {
    %c0_i32 = arith.constant 0 : i32
    %c0_i32_0 = arith.constant 0 : i32
    return %arg0, %c0_i32 : i32, i32
  }
  func.func @transform_1(%arg0: i32, %arg1: i32) -> (i32, i32) {
    %c0_i32 = arith.constant 0 : i32
    %c0_i32_0 = arith.constant 0 : i32
    return %c0_i32, %arg1 : i32, i32
  }
  func.func @transform_2(%arg0: i32, %arg1: i32) -> (i32, i32) {
    %c0_i32 = arith.constant 0 : i32
    %c0_i32_0 = arith.constant 0 : i32
    return %c0_i32, %arg1 : i32, i32
  }
  func.func @transform_3(%arg0: i32, %arg1: i32) -> (i32, i32) {
    %c0_i32 = arith.constant 0 : i32
    return %arg0, %arg1 : i32, i32
  }
}

module attributes {stable_mosaic.version = 11 : i64} {
  func.func @_matmul_fused_kernel(%arg0: i32, %arg1: i32, %arg2: memref<128x1152xbf16, #tpu.memory_space<vmem>>, %arg3: memref<1152x128xbf16, #tpu.memory_space<vmem>>, %arg4: memref<1x128xf32, #tpu.memory_space<vmem>>, %arg5: memref<128x128xbf16, #tpu.memory_space<vmem>>) attributes {dimension_semantics = [#tpu.dimension_semantics<parallel>, #tpu.dimension_semantics<parallel>], iteration_bounds = array<i64: 1, 1>, scalar_prefetch = 0 : i64, scratch_operands = 0 : i64, tpu.core_type = #tpu.core_type<tc>, window_params = [{transform_indices = @transform_0, window_bounds = array<i64: 128, 1152>}, {transform_indices = @transform_1, window_bounds = array<i64: 1152, 128>}, {transform_indices = @transform_2, window_bounds = array<i64: 1, 128>}, {transform_indices = @transform_3, window_bounds = array<i64: 128, 128>}]} {
    %c0 = arith.constant 0 : index
    %c0_0 = arith.constant 0 : index
    %0 = vector.load %arg2[%c0, %c0_0] : memref<128x1152xbf16, #tpu.memory_space<vmem>>, vector<128x1152xbf16>
    %c0_1 = arith.constant 0 : index
    %c0_2 = arith.constant 0 : index
    %1 = vector.load %arg3[%c0_1, %c0_2] : memref<1152x128xbf16, #tpu.memory_space<vmem>>, vector<1152x128xbf16>
    %cst = arith.constant dense<0.000000e+00> : vector<128x128xf32>
    %2 = tpu.matmul %0, %1, %cst {dimension_numbers = #tpu.dot_dimension_numbers<[1], [0], [0], [1], [0, 0, 1, 1], [], []>} : vector<128x1152xbf16>, vector<1152x128xbf16>, vector<128x128xf32> -> vector<128x128xf32>
    %c0_3 = arith.constant 0 : index
    %c0_4 = arith.constant 0 : index
    %3 = vector.load %arg4[%c0_3, %c0_4] : memref<1x128xf32, #tpu.memory_space<vmem>>, vector<1x128xf32>
    %4 = vector.broadcast %3 : vector<1x128xf32> to vector<128x128xf32>
    %5 = arith.addf %2, %4 : vector<128x128xf32>
    %cst_5 = arith.constant 0.000000e+00 : f32
    %6 = vector.broadcast %cst_5 : f32 to vector<128x128xf32>
    %7 = arith.maximumf %5, %6 : vector<128x128xf32>
    %8 = arith.truncf %7 : vector<128x128xf32> to vector<128x128xbf16>
    %c0_6 = arith.constant 0 : index
    %c0_7 = arith.constant 0 : index
    %9 = vector.load %arg5[%c0_6, %c0_7] : memref<128x128xbf16, #tpu.memory_space<vmem>>, vector<128x128xbf16>
    tpu.vector_store %arg5[%c0_6, %c0_7], %8 {strides = array<i32>} : memref<128x128xbf16, #tpu.memory_space<vmem>>, vector<128x128xbf16>,
    return
  }
  func.func @transform_0(%arg0: i32, %arg1: i32) -> (i32, i32) {
    %c0_i32 = arith.constant 0 : i32
    %c0_i32_0 = arith.constant 0 : i32
    return %arg0, %c0_i32 : i32, i32
  }
  func.func @transform_1(%arg0: i32, %arg1: i32) -> (i32, i32) {
    %c0_i32 = arith.constant 0 : i32
    %c0_i32_0 = arith.constant 0 : i32
    return %c0_i32, %arg1 : i32, i32
  }
  func.func @transform_2(%arg0: i32, %arg1: i32) -> (i32, i32) {
    %c0_i32 = arith.constant 0 : i32
    %c0_i32_0 = arith.constant 0 : i32
    return %c0_i32, %arg1 : i32, i32
  }
  func.func @transform_3(%arg0: i32, %arg1: i32) -> (i32, i32) {
    %c0_i32 = arith.constant 0 : i32
    return %arg0, %arg1 : i32, i32
  }
}

module attributes {stable_mosaic.version = 11 : i64} {
  func.func @_matmul_fused_kernel(%arg0: i32, %arg1: i32, %arg2: memref<128x128xbf16, #tpu.memory_space<vmem>>, %arg3: memref<128x128xbf16, #tpu.memory_space<vmem>>, %arg4: memref<1x128xf32, #tpu.memory_space<vmem>>, %arg5: memref<128x128xbf16, #tpu.memory_space<vmem>>, %arg6: memref<128x128xbf16, #tpu.memory_space<vmem>>) attributes {dimension_semantics = [#tpu.dimension_semantics<parallel>, #tpu.dimension_semantics<parallel>], iteration_bounds = array<i64: 1, 1>, scalar_prefetch = 0 : i64, scratch_operands = 0 : i64, tpu.core_type = #tpu.core_type<tc>, window_params = [{transform_indices = @transform_0, window_bounds = array<i64: 128, 128>}, {transform_indices = @transform_1, window_bounds = array<i64: 128, 128>}, {transform_indices = @transform_2, window_bounds = array<i64: 1, 128>}, {transform_indices = @transform_3, window_bounds = array<i64: 128, 128>}, {transform_indices = @transform_4, window_bounds = array<i64: 128, 128>}]} {
    %c0 = arith.constant 0 : index
    %c0_0 = arith.constant 0 : index
    %0 = vector.load %arg2[%c0, %c0_0] : memref<128x128xbf16, #tpu.memory_space<vmem>>, vector<128x128xbf16>
    %c0_1 = arith.constant 0 : index
    %c0_2 = arith.constant 0 : index
    %1 = vector.load %arg3[%c0_1, %c0_2] : memref<128x128xbf16, #tpu.memory_space<vmem>>, vector<128x128xbf16>
    %cst = arith.constant dense<0.000000e+00> : vector<128x128xf32>
    %2 = tpu.matmul %0, %1, %cst {dimension_numbers = #tpu.dot_dimension_numbers<[1], [0], [0], [1], [0, 0, 1, 1], [], []>} : vector<128x128xbf16>, vector<128x128xbf16>, vector<128x128xf32> -> vector<128x128xf32>
    %c0_3 = arith.constant 0 : index
    %c0_4 = arith.constant 0 : index
    %3 = vector.load %arg4[%c0_3, %c0_4] : memref<1x128xf32, #tpu.memory_space<vmem>>, vector<1x128xf32>
    %4 = vector.broadcast %3 : vector<1x128xf32> to vector<128x128xf32>
    %5 = arith.addf %2, %4 : vector<128x128xf32>
    %c0_5 = arith.constant 0 : index
    %c0_6 = arith.constant 0 : index
    %6 = vector.load %arg5[%c0_5, %c0_6] : memref<128x128xbf16, #tpu.memory_space<vmem>>, vector<128x128xbf16>
    %7 = arith.extf %6 : vector<128x128xbf16> to vector<128x128xf32>
    %8 = arith.addf %5, %7 : vector<128x128xf32>
    %cst_7 = arith.constant 0.000000e+00 : f32
    %9 = vector.broadcast %cst_7 : f32 to vector<128x128xf32>
    %10 = arith.maximumf %8, %9 : vector<128x128xf32>
    %11 = arith.truncf %10 : vector<128x128xf32> to vector<128x128xbf16>
    %c0_8 = arith.constant 0 : index
    %c0_9 = arith.constant 0 : index
    %12 = vector.load %arg6[%c0_8, %c0_9] : memref<128x128xbf16, #tpu.memory_space<vmem>>, vector<128x128xbf16>
    tpu.vector_store %arg6[%c0_8, %c0_9], %11 {strides = array<i32>} : memref<128x128xbf16, #tpu.memory_space<vmem>>, vector<128x128xbf16>,
    return
  }
  func.func @transform_0(%arg0: i32, %arg1: i32) -> (i32, i32) {
    %c0_i32 = arith.constant 0 : i32
    %c0_i32_0 = arith.constant 0 : i32
    return %arg0, %c0_i32 : i32, i32
  }
  func.func @transform_1(%arg0: i32, %arg1: i32) -> (i32, i32) {
    %c0_i32 = arith.constant 0 : i32
    %c0_i32_0 = arith.constant 0 : i32
    return %c0_i32, %arg1 : i32, i32
  }
  func.func @transform_2(%arg0: i32, %arg1: i32) -> (i32, i32) {
    %c0_i32 = arith.constant 0 : i32
    %c0_i32_0 = arith.constant 0 : i32
    return %c0_i32, %arg1 : i32, i32
  }
  func.func @transform_3(%arg0: i32, %arg1: i32) -> (i32, i32) {
    %c0_i32 = arith.constant 0 : i32
    return %arg0, %arg1 : i32, i32
  }
  func.func @transform_4(%arg0: i32, %arg1: i32) -> (i32, i32) {
    %c0_i32 = arith.constant 0 : i32
    return %arg0, %arg1 : i32, i32
  }
}

module attributes {stable_mosaic.version = 11 : i64} {
  func.func @_matmul_fused_kernel(%arg0: i32, %arg1: i32, %arg2: memref<32x1152xbf16, #tpu.memory_space<vmem>>, %arg3: memref<1152x128xbf16, #tpu.memory_space<vmem>>, %arg4: memref<1x128xf32, #tpu.memory_space<vmem>>, %arg5: memref<32x128xbf16, #tpu.memory_space<vmem>>) attributes {dimension_semantics = [#tpu.dimension_semantics<parallel>, #tpu.dimension_semantics<parallel>], iteration_bounds = array<i64: 1, 1>, scalar_prefetch = 0 : i64, scratch_operands = 0 : i64, tpu.core_type = #tpu.core_type<tc>, window_params = [{transform_indices = @transform_0, window_bounds = array<i64: 32, 1152>}, {transform_indices = @transform_1, window_bounds = array<i64: 1152, 128>}, {transform_indices = @transform_2, window_bounds = array<i64: 1, 128>}, {transform_indices = @transform_3, window_bounds = array<i64: 32, 128>}]} {
    %c0 = arith.constant 0 : index
    %c0_0 = arith.constant 0 : index
    %0 = vector.load %arg2[%c0, %c0_0] : memref<32x1152xbf16, #tpu.memory_space<vmem>>, vector<32x1152xbf16>
    %c0_1 = arith.constant 0 : index
    %c0_2 = arith.constant 0 : index
    %1 = vector.load %arg3[%c0_1, %c0_2] : memref<1152x128xbf16, #tpu.memory_space<vmem>>, vector<1152x128xbf16>
    %cst = arith.constant dense<0.000000e+00> : vector<32x128xf32>
    %2 = tpu.matmul %0, %1, %cst {dimension_numbers = #tpu.dot_dimension_numbers<[1], [0], [0], [1], [0, 0, 1, 1], [], []>} : vector<32x1152xbf16>, vector<1152x128xbf16>, vector<32x128xf32> -> vector<32x128xf32>
    %c0_3 = arith.constant 0 : index
    %c0_4 = arith.constant 0 : index
    %3 = vector.load %arg4[%c0_3, %c0_4] : memref<1x128xf32, #tpu.memory_space<vmem>>, vector<1x128xf32>
    %4 = vector.broadcast %3 : vector<1x128xf32> to vector<32x128xf32>
    %5 = arith.addf %2, %4 : vector<32x128xf32>
    %cst_5 = arith.constant 0.000000e+00 : f32
    %6 = vector.broadcast %cst_5 : f32 to vector<32x128xf32>
    %7 = arith.maximumf %5, %6 : vector<32x128xf32>
    %8 = arith.truncf %7 : vector<32x128xf32> to vector<32x128xbf16>
    %c0_6 = arith.constant 0 : index
    %c0_7 = arith.constant 0 : index
    %9 = vector.load %arg5[%c0_6, %c0_7] : memref<32x128xbf16, #tpu.memory_space<vmem>>, vector<32x128xbf16>
    tpu.vector_store %arg5[%c0_6, %c0_7], %8 {strides = array<i32>} : memref<32x128xbf16, #tpu.memory_space<vmem>>, vector<32x128xbf16>,
    return
  }
  func.func @transform_0(%arg0: i32, %arg1: i32) -> (i32, i32) {
    %c0_i32 = arith.constant 0 : i32
    %c0_i32_0 = arith.constant 0 : i32
    return %arg0, %c0_i32 : i32, i32
  }
  func.func @transform_1(%arg0: i32, %arg1: i32) -> (i32, i32) {
    %c0_i32 = arith.constant 0 : i32
    %c0_i32_0 = arith.constant 0 : i32
    return %c0_i32, %arg1 : i32, i32
  }
  func.func @transform_2(%arg0: i32, %arg1: i32) -> (i32, i32) {
    %c0_i32 = arith.constant 0 : i32
    %c0_i32_0 = arith.constant 0 : i32
    return %c0_i32, %arg1 : i32, i32
  }
  func.func @transform_3(%arg0: i32, %arg1: i32) -> (i32, i32) {
    %c0_i32 = arith.constant 0 : i32
    return %arg0, %arg1 : i32, i32
  }
}

module attributes {stable_mosaic.version = 11 : i64} {
  func.func @_matmul_fused_kernel(%arg0: i32, %arg1: i32, %arg2: memref<32x128xbf16, #tpu.memory_space<vmem>>, %arg3: memref<128x128xbf16, #tpu.memory_space<vmem>>, %arg4: memref<1x128xf32, #tpu.memory_space<vmem>>, %arg5: memref<32x128xbf16, #tpu.memory_space<vmem>>) attributes {dimension_semantics = [#tpu.dimension_semantics<parallel>, #tpu.dimension_semantics<parallel>], iteration_bounds = array<i64: 1, 1>, scalar_prefetch = 0 : i64, scratch_operands = 0 : i64, tpu.core_type = #tpu.core_type<tc>, window_params = [{transform_indices = @transform_0, window_bounds = array<i64: 32, 128>}, {transform_indices = @transform_1, window_bounds = array<i64: 128, 128>}, {transform_indices = @transform_2, window_bounds = array<i64: 1, 128>}, {transform_indices = @transform_3, window_bounds = array<i64: 32, 128>}]} {
    %c0 = arith.constant 0 : index
    %c0_0 = arith.constant 0 : index
    %0 = vector.load %arg2[%c0, %c0_0] : memref<32x128xbf16, #tpu.memory_space<vmem>>, vector<32x128xbf16>
    %c0_1 = arith.constant 0 : index
    %c0_2 = arith.constant 0 : index
    %1 = vector.load %arg3[%c0_1, %c0_2] : memref<128x128xbf16, #tpu.memory_space<vmem>>, vector<128x128xbf16>
    %cst = arith.constant dense<0.000000e+00> : vector<32x128xf32>
    %2 = tpu.matmul %0, %1, %cst {dimension_numbers = #tpu.dot_dimension_numbers<[1], [0], [0], [1], [0, 0, 1, 1], [], []>} : vector<32x128xbf16>, vector<128x128xbf16>, vector<32x128xf32> -> vector<32x128xf32>
    %c0_3 = arith.constant 0 : index
    %c0_4 = arith.constant 0 : index
    %3 = vector.load %arg4[%c0_3, %c0_4] : memref<1x128xf32, #tpu.memory_space<vmem>>, vector<1x128xf32>
    %4 = vector.broadcast %3 : vector<1x128xf32> to vector<32x128xf32>
    %5 = arith.addf %2, %4 : vector<32x128xf32>
    %6 = arith.truncf %5 : vector<32x128xf32> to vector<32x128xbf16>
    %c0_5 = arith.constant 0 : index
    %c0_6 = arith.constant 0 : index
    %7 = vector.load %arg5[%c0_5, %c0_6] : memref<32x128xbf16, #tpu.memory_space<vmem>>, vector<32x128xbf16>
    tpu.vector_store %arg5[%c0_5, %c0_6], %6 {strides = array<i32>} : memref<32x128xbf16, #tpu.memory_space<vmem>>, vector<32x128xbf16>,
    return
  }
  func.func @transform_0(%arg0: i32, %arg1: i32) -> (i32, i32) {
    %c0_i32 = arith.constant 0 : i32
    %c0_i32_0 = arith.constant 0 : i32
    return %arg0, %c0_i32 : i32, i32
  }
  func.func @transform_1(%arg0: i32, %arg1: i32) -> (i32, i32) {
    %c0_i32 = arith.constant 0 : i32
    %c0_i32_0 = arith.constant 0 : i32
    return %c0_i32, %arg1 : i32, i32
  }
  func.func @transform_2(%arg0: i32, %arg1: i32) -> (i32, i32) {
    %c0_i32 = arith.constant 0 : i32
    %c0_i32_0 = arith.constant 0 : i32
    return %c0_i32, %arg1 : i32, i32
  }
  func.func @transform_3(%arg0: i32, %arg1: i32) -> (i32, i32) {
    %c0_i32 = arith.constant 0 : i32
    return %arg0, %arg1 : i32, i32
  }
}

module attributes {stable_mosaic.version = 11 : i64} {
  func.func @_matmul_fused_kernel(%arg0: i32, %arg1: i32, %arg2: memref<32x128xbf16, #tpu.memory_space<vmem>>, %arg3: memref<128x128xbf16, #tpu.memory_space<vmem>>, %arg4: memref<1x128xf32, #tpu.memory_space<vmem>>, %arg5: memref<32x128xbf16, #tpu.memory_space<vmem>>, %arg6: memref<32x128xbf16, #tpu.memory_space<vmem>>) attributes {dimension_semantics = [#tpu.dimension_semantics<parallel>, #tpu.dimension_semantics<parallel>], iteration_bounds = array<i64: 1, 1>, scalar_prefetch = 0 : i64, scratch_operands = 0 : i64, tpu.core_type = #tpu.core_type<tc>, window_params = [{transform_indices = @transform_0, window_bounds = array<i64: 32, 128>}, {transform_indices = @transform_1, window_bounds = array<i64: 128, 128>}, {transform_indices = @transform_2, window_bounds = array<i64: 1, 128>}, {transform_indices = @transform_3, window_bounds = array<i64: 32, 128>}, {transform_indices = @transform_4, window_bounds = array<i64: 32, 128>}]} {
    %c0 = arith.constant 0 : index
    %c0_0 = arith.constant 0 : index
    %0 = vector.load %arg2[%c0, %c0_0] : memref<32x128xbf16, #tpu.memory_space<vmem>>, vector<32x128xbf16>
    %c0_1 = arith.constant 0 : index
    %c0_2 = arith.constant 0 : index
    %1 = vector.load %arg3[%c0_1, %c0_2] : memref<128x128xbf16, #tpu.memory_space<vmem>>, vector<128x128xbf16>
    %cst = arith.constant dense<0.000000e+00> : vector<32x128xf32>
    %2 = tpu.matmul %0, %1, %cst {dimension_numbers = #tpu.dot_dimension_numbers<[1], [0], [0], [1], [0, 0, 1, 1], [], []>} : vector<32x128xbf16>, vector<128x128xbf16>, vector<32x128xf32> -> vector<32x128xf32>
    %c0_3 = arith.constant 0 : index
    %c0_4 = arith.constant 0 : index
    %3 = vector.load %arg4[%c0_3, %c0_4] : memref<1x128xf32, #tpu.memory_space<vmem>>, vector<1x128xf32>
    %4 = vector.broadcast %3 : vector<1x128xf32> to vector<32x128xf32>
    %5 = arith.addf %2, %4 : vector<32x128xf32>
    %c0_5 = arith.constant 0 : index
    %c0_6 = arith.constant 0 : index
    %6 = vector.load %arg5[%c0_5, %c0_6] : memref<32x128xbf16, #tpu.memory_space<vmem>>, vector<32x128xbf16>
    %7 = arith.extf %6 : vector<32x128xbf16> to vector<32x128xf32>
    %8 = arith.addf %5, %7 : vector<32x128xf32>
    %cst_7 = arith.constant 0.000000e+00 : f32
    %9 = vector.broadcast %cst_7 : f32 to vector<32x128xf32>
    %10 = arith.maximumf %8, %9 : vector<32x128xf32>
    %11 = arith.truncf %10 : vector<32x128xf32> to vector<32x128xbf16>
    %c0_8 = arith.constant 0 : index
    %c0_9 = arith.constant 0 : index
    %12 = vector.load %arg6[%c0_8, %c0_9] : memref<32x128xbf16, #tpu.memory_space<vmem>>, vector<32x128xbf16>
    tpu.vector_store %arg6[%c0_8, %c0_9], %11 {strides = array<i32>} : memref<32x128xbf16, #tpu.memory_space<vmem>>, vector<32x128xbf16>,
    return
  }
  func.func @transform_0(%arg0: i32, %arg1: i32) -> (i32, i32) {
    %c0_i32 = arith.constant 0 : i32
    %c0_i32_0 = arith.constant 0 : i32
    return %arg0, %c0_i32 : i32, i32
  }
  func.func @transform_1(%arg0: i32, %arg1: i32) -> (i32, i32) {
    %c0_i32 = arith.constant 0 : i32
    %c0_i32_0 = arith.constant 0 : i32
    return %c0_i32, %arg1 : i32, i32
  }
  func.func @transform_2(%arg0: i32, %arg1: i32) -> (i32, i32) {
    %c0_i32 = arith.constant 0 : i32
    %c0_i32_0 = arith.constant 0 : i32
    return %c0_i32, %arg1 : i32, i32
  }
  func.func @transform_3(%arg0: i32, %arg1: i32) -> (i32, i32) {
    %c0_i32 = arith.constant 0 : i32
    return %arg0, %arg1 : i32, i32
  }
  func.func @transform_4(%arg0: i32, %arg1: i32) -> (i32, i32) {
    %c0_i32 = arith.constant 0 : i32
    return %arg0, %arg1 : i32, i32
  }
}

module attributes {stable_mosaic.version = 11 : i64} {
  func.func @_matmul_fused_kernel(%arg0: i32, %arg1: i32, %arg2: memref<32x128xbf16, #tpu.memory_space<vmem>>, %arg3: memref<128x128xbf16, #tpu.memory_space<vmem>>, %arg4: memref<1x128xf32, #tpu.memory_space<vmem>>, %arg5: memref<32x128xbf16, #tpu.memory_space<vmem>>) attributes {dimension_semantics = [#tpu.dimension_semantics<parallel>, #tpu.dimension_semantics<parallel>], iteration_bounds = array<i64: 1, 1>, scalar_prefetch = 0 : i64, scratch_operands = 0 : i64, tpu.core_type = #tpu.core_type<tc>, window_params = [{transform_indices = @transform_0, window_bounds = array<i64: 32, 128>}, {transform_indices = @transform_1, window_bounds = array<i64: 128, 128>}, {transform_indices = @transform_2, window_bounds = array<i64: 1, 128>}, {transform_indices = @transform_3, window_bounds = array<i64: 32, 128>}]} {
    %c0 = arith.constant 0 : index
    %c0_0 = arith.constant 0 : index
    %0 = vector.load %arg2[%c0, %c0_0] : memref<32x128xbf16, #tpu.memory_space<vmem>>, vector<32x128xbf16>
    %c0_1 = arith.constant 0 : index
    %c0_2 = arith.constant 0 : index
    %1 = vector.load %arg3[%c0_1, %c0_2] : memref<128x128xbf16, #tpu.memory_space<vmem>>, vector<128x128xbf16>
    %cst = arith.constant dense<0.000000e+00> : vector<32x128xf32>
    %2 = tpu.matmul %0, %1, %cst {dimension_numbers = #tpu.dot_dimension_numbers<[1], [0], [0], [1], [0, 0, 1, 1], [], []>} : vector<32x128xbf16>, vector<128x128xbf16>, vector<32x128xf32> -> vector<32x128xf32>
    %c0_3 = arith.constant 0 : index
    %c0_4 = arith.constant 0 : index
    %3 = vector.load %arg4[%c0_3, %c0_4] : memref<1x128xf32, #tpu.memory_space<vmem>>, vector<1x128xf32>
    %4 = vector.broadcast %3 : vector<1x128xf32> to vector<32x128xf32>
    %5 = arith.addf %2, %4 : vector<32x128xf32>
    %cst_5 = arith.constant 0.000000e+00 : f32
    %6 = vector.broadcast %cst_5 : f32 to vector<32x128xf32>
    %7 = arith.maximumf %5, %6 : vector<32x128xf32>
    %8 = arith.truncf %7 : vector<32x128xf32> to vector<32x128xbf16>
    %c0_6 = arith.constant 0 : index
    %c0_7 = arith.constant 0 : index
    %9 = vector.load %arg5[%c0_6, %c0_7] : memref<32x128xbf16, #tpu.memory_space<vmem>>, vector<32x128xbf16>
    tpu.vector_store %arg5[%c0_6, %c0_7], %8 {strides = array<i32>} : memref<32x128xbf16, #tpu.memory_space<vmem>>, vector<32x128xbf16>,
    return
  }
  func.func @transform_0(%arg0: i32, %arg1: i32) -> (i32, i32) {
    %c0_i32 = arith.constant 0 : i32
    %c0_i32_0 = arith.constant 0 : i32
    return %arg0, %c0_i32 : i32, i32
  }
  func.func @transform_1(%arg0: i32, %arg1: i32) -> (i32, i32) {
    %c0_i32 = arith.constant 0 : i32
    %c0_i32_0 = arith.constant 0 : i32
    return %c0_i32, %arg1 : i32, i32
  }
  func.func @transform_2(%arg0: i32, %arg1: i32) -> (i32, i32) {
    %c0_i32 = arith.constant 0 : i32
    %c0_i32_0 = arith.constant 0 : i32
    return %c0_i32, %arg1 : i32, i32
  }
  func.func @transform_3(%arg0: i32, %arg1: i32) -> (i32, i32) {
    %c0_i32 = arith.constant 0 : i32
    return %arg0, %arg1 : i32, i32
  }
}

module attributes {stable_mosaic.version = 11 : i64} {
  func.func @_matmul_fused_kernel(%arg0: i32, %arg1: i32, %arg2: memref<8x128xbf16, #tpu.memory_space<vmem>>, %arg3: memref<128x128xbf16, #tpu.memory_space<vmem>>, %arg4: memref<1x128xf32, #tpu.memory_space<vmem>>, %arg5: memref<8x128xbf16, #tpu.memory_space<vmem>>) attributes {dimension_semantics = [#tpu.dimension_semantics<parallel>, #tpu.dimension_semantics<parallel>], iteration_bounds = array<i64: 1, 2>, scalar_prefetch = 0 : i64, scratch_operands = 0 : i64, tpu.core_type = #tpu.core_type<tc>, window_params = [{transform_indices = @transform_0, window_bounds = array<i64: 8, 128>}, {transform_indices = @transform_1, window_bounds = array<i64: 128, 128>}, {transform_indices = @transform_2, window_bounds = array<i64: 1, 128>}, {transform_indices = @transform_3, window_bounds = array<i64: 8, 128>}]} {
    %c0 = arith.constant 0 : index
    %c0_0 = arith.constant 0 : index
    %0 = vector.load %arg2[%c0, %c0_0] : memref<8x128xbf16, #tpu.memory_space<vmem>>, vector<8x128xbf16>
    %c0_1 = arith.constant 0 : index
    %c0_2 = arith.constant 0 : index
    %1 = vector.load %arg3[%c0_1, %c0_2] : memref<128x128xbf16, #tpu.memory_space<vmem>>, vector<128x128xbf16>
    %cst = arith.constant dense<0.000000e+00> : vector<8x128xf32>
    %2 = tpu.matmul %0, %1, %cst {dimension_numbers = #tpu.dot_dimension_numbers<[1], [0], [0], [1], [0, 0, 1, 1], [], []>} : vector<8x128xbf16>, vector<128x128xbf16>, vector<8x128xf32> -> vector<8x128xf32>
    %c0_3 = arith.constant 0 : index
    %c0_4 = arith.constant 0 : index
    %3 = vector.load %arg4[%c0_3, %c0_4] : memref<1x128xf32, #tpu.memory_space<vmem>>, vector<1x128xf32>
    %4 = vector.broadcast %3 : vector<1x128xf32> to vector<8x128xf32>
    %5 = arith.addf %2, %4 : vector<8x128xf32>
    %6 = arith.truncf %5 : vector<8x128xf32> to vector<8x128xbf16>
    %c0_5 = arith.constant 0 : index
    %c0_6 = arith.constant 0 : index
    %7 = vector.load %arg5[%c0_5, %c0_6] : memref<8x128xbf16, #tpu.memory_space<vmem>>, vector<8x128xbf16>
    tpu.vector_store %arg5[%c0_5, %c0_6], %6 {strides = array<i32>} : memref<8x128xbf16, #tpu.memory_space<vmem>>, vector<8x128xbf16>,
    return
  }
  func.func @transform_0(%arg0: i32, %arg1: i32) -> (i32, i32) {
    %c0_i32 = arith.constant 0 : i32
    %c0_i32_0 = arith.constant 0 : i32
    return %arg0, %c0_i32 : i32, i32
  }
  func.func @transform_1(%arg0: i32, %arg1: i32) -> (i32, i32) {
    %c0_i32 = arith.constant 0 : i32
    %c0_i32_0 = arith.constant 0 : i32
    return %c0_i32, %arg1 : i32, i32
  }
  func.func @transform_2(%arg0: i32, %arg1: i32) -> (i32, i32) {
    %c0_i32 = arith.constant 0 : i32
    %c0_i32_0 = arith.constant 0 : i32
    return %c0_i32, %arg1 : i32, i32
  }
  func.func @transform_3(%arg0: i32, %arg1: i32) -> (i32, i32) {
    %c0_i32 = arith.constant 0 : i32
    return %arg0, %arg1 : i32, i32
  }
}

module attributes {stable_mosaic.version = 11 : i64} {
  func.func @_matmul_fused_kernel(%arg0: i32, %arg1: i32, %arg2: memref<8x1152xbf16, #tpu.memory_space<vmem>>, %arg3: memref<1152x128xbf16, #tpu.memory_space<vmem>>, %arg4: memref<1x128xf32, #tpu.memory_space<vmem>>, %arg5: memref<8x128xbf16, #tpu.memory_space<vmem>>) attributes {dimension_semantics = [#tpu.dimension_semantics<parallel>, #tpu.dimension_semantics<parallel>], iteration_bounds = array<i64: 1, 1>, scalar_prefetch = 0 : i64, scratch_operands = 0 : i64, tpu.core_type = #tpu.core_type<tc>, window_params = [{transform_indices = @transform_0, window_bounds = array<i64: 8, 1152>}, {transform_indices = @transform_1, window_bounds = array<i64: 1152, 128>}, {transform_indices = @transform_2, window_bounds = array<i64: 1, 128>}, {transform_indices = @transform_3, window_bounds = array<i64: 8, 128>}]} {
    %c0 = arith.constant 0 : index
    %c0_0 = arith.constant 0 : index
    %0 = vector.load %arg2[%c0, %c0_0] : memref<8x1152xbf16, #tpu.memory_space<vmem>>, vector<8x1152xbf16>
    %c0_1 = arith.constant 0 : index
    %c0_2 = arith.constant 0 : index
    %1 = vector.load %arg3[%c0_1, %c0_2] : memref<1152x128xbf16, #tpu.memory_space<vmem>>, vector<1152x128xbf16>
    %cst = arith.constant dense<0.000000e+00> : vector<8x128xf32>
    %2 = tpu.matmul %0, %1, %cst {dimension_numbers = #tpu.dot_dimension_numbers<[1], [0], [0], [1], [0, 0, 1, 1], [], []>} : vector<8x1152xbf16>, vector<1152x128xbf16>, vector<8x128xf32> -> vector<8x128xf32>
    %c0_3 = arith.constant 0 : index
    %c0_4 = arith.constant 0 : index
    %3 = vector.load %arg4[%c0_3, %c0_4] : memref<1x128xf32, #tpu.memory_space<vmem>>, vector<1x128xf32>
    %4 = vector.broadcast %3 : vector<1x128xf32> to vector<8x128xf32>
    %5 = arith.addf %2, %4 : vector<8x128xf32>
    %cst_5 = arith.constant 0.000000e+00 : f32
    %6 = vector.broadcast %cst_5 : f32 to vector<8x128xf32>
    %7 = arith.maximumf %5, %6 : vector<8x128xf32>
    %8 = arith.truncf %7 : vector<8x128xf32> to vector<8x128xbf16>
    %c0_6 = arith.constant 0 : index
    %c0_7 = arith.constant 0 : index
    %9 = vector.load %arg5[%c0_6, %c0_7] : memref<8x128xbf16, #tpu.memory_space<vmem>>, vector<8x128xbf16>
    tpu.vector_store %arg5[%c0_6, %c0_7], %8 {strides = array<i32>} : memref<8x128xbf16, #tpu.memory_space<vmem>>, vector<8x128xbf16>,
    return
  }
  func.func @transform_0(%arg0: i32, %arg1: i32) -> (i32, i32) {
    %c0_i32 = arith.constant 0 : i32
    %c0_i32_0 = arith.constant 0 : i32
    return %arg0, %c0_i32 : i32, i32
  }
  func.func @transform_1(%arg0: i32, %arg1: i32) -> (i32, i32) {
    %c0_i32 = arith.constant 0 : i32
    %c0_i32_0 = arith.constant 0 : i32
    return %c0_i32, %arg1 : i32, i32
  }
  func.func @transform_2(%arg0: i32, %arg1: i32) -> (i32, i32) {
    %c0_i32 = arith.constant 0 : i32
    %c0_i32_0 = arith.constant 0 : i32
    return %c0_i32, %arg1 : i32, i32
  }
  func.func @transform_3(%arg0: i32, %arg1: i32) -> (i32, i32) {
    %c0_i32 = arith.constant 0 : i32
    return %arg0, %arg1 : i32, i32
  }
}

module attributes {stable_mosaic.version = 11 : i64} {
  func.func @_matmul_fused_kernel(%arg0: i32, %arg1: i32, %arg2: memref<8x256xbf16, #tpu.memory_space<vmem>>, %arg3: memref<256x128xbf16, #tpu.memory_space<vmem>>, %arg4: memref<1x128xf32, #tpu.memory_space<vmem>>, %arg5: memref<8x128xbf16, #tpu.memory_space<vmem>>) attributes {dimension_semantics = [#tpu.dimension_semantics<parallel>, #tpu.dimension_semantics<parallel>], iteration_bounds = array<i64: 1, 1>, scalar_prefetch = 0 : i64, scratch_operands = 0 : i64, tpu.core_type = #tpu.core_type<tc>, window_params = [{transform_indices = @transform_0, window_bounds = array<i64: 8, 256>}, {transform_indices = @transform_1, window_bounds = array<i64: 256, 128>}, {transform_indices = @transform_2, window_bounds = array<i64: 1, 128>}, {transform_indices = @transform_3, window_bounds = array<i64: 8, 128>}]} {
    %c0 = arith.constant 0 : index
    %c0_0 = arith.constant 0 : index
    %0 = vector.load %arg2[%c0, %c0_0] : memref<8x256xbf16, #tpu.memory_space<vmem>>, vector<8x256xbf16>
    %c0_1 = arith.constant 0 : index
    %c0_2 = arith.constant 0 : index
    %1 = vector.load %arg3[%c0_1, %c0_2] : memref<256x128xbf16, #tpu.memory_space<vmem>>, vector<256x128xbf16>
    %cst = arith.constant dense<0.000000e+00> : vector<8x128xf32>
    %2 = tpu.matmul %0, %1, %cst {dimension_numbers = #tpu.dot_dimension_numbers<[1], [0], [0], [1], [0, 0, 1, 1], [], []>} : vector<8x256xbf16>, vector<256x128xbf16>, vector<8x128xf32> -> vector<8x128xf32>
    %c0_3 = arith.constant 0 : index
    %c0_4 = arith.constant 0 : index
    %3 = vector.load %arg4[%c0_3, %c0_4] : memref<1x128xf32, #tpu.memory_space<vmem>>, vector<1x128xf32>
    %4 = vector.broadcast %3 : vector<1x128xf32> to vector<8x128xf32>
    %5 = arith.addf %2, %4 : vector<8x128xf32>
    %cst_5 = arith.constant 0.000000e+00 : f32
    %6 = vector.broadcast %cst_5 : f32 to vector<8x128xf32>
    %7 = arith.maximumf %5, %6 : vector<8x128xf32>
    %8 = arith.truncf %7 : vector<8x128xf32> to vector<8x128xbf16>
    %c0_6 = arith.constant 0 : index
    %c0_7 = arith.constant 0 : index
    %9 = vector.load %arg5[%c0_6, %c0_7] : memref<8x128xbf16, #tpu.memory_space<vmem>>, vector<8x128xbf16>
    tpu.vector_store %arg5[%c0_6, %c0_7], %8 {strides = array<i32>} : memref<8x128xbf16, #tpu.memory_space<vmem>>, vector<8x128xbf16>,
    return
  }
  func.func @transform_0(%arg0: i32, %arg1: i32) -> (i32, i32) {
    %c0_i32 = arith.constant 0 : i32
    %c0_i32_0 = arith.constant 0 : i32
    return %arg0, %c0_i32 : i32, i32
  }
  func.func @transform_1(%arg0: i32, %arg1: i32) -> (i32, i32) {
    %c0_i32 = arith.constant 0 : i32
    %c0_i32_0 = arith.constant 0 : i32
    return %c0_i32, %arg1 : i32, i32
  }
  func.func @transform_2(%arg0: i32, %arg1: i32) -> (i32, i32) {
    %c0_i32 = arith.constant 0 : i32
    %c0_i32_0 = arith.constant 0 : i32
    return %c0_i32, %arg1 : i32, i32
  }
  func.func @transform_3(%arg0: i32, %arg1: i32) -> (i32, i32) {
    %c0_i32 = arith.constant 0 : i32
    return %arg0, %arg1 : i32, i32
  }
}

module attributes {stable_mosaic.version = 11 : i64} {
  func.func @_matmul_fused_kernel(%arg0: i32, %arg1: i32, %arg2: memref<8x128xbf16, #tpu.memory_space<vmem>>, %arg3: memref<128x128xbf16, #tpu.memory_space<vmem>>, %arg4: memref<1x128xf32, #tpu.memory_space<vmem>>, %arg5: memref<8x128xbf16, #tpu.memory_space<vmem>>, %arg6: memref<8x128xbf16, #tpu.memory_space<vmem>>) attributes {dimension_semantics = [#tpu.dimension_semantics<parallel>, #tpu.dimension_semantics<parallel>], iteration_bounds = array<i64: 1, 2>, scalar_prefetch = 0 : i64, scratch_operands = 0 : i64, tpu.core_type = #tpu.core_type<tc>, window_params = [{transform_indices = @transform_0, window_bounds = array<i64: 8, 128>}, {transform_indices = @transform_1, window_bounds = array<i64: 128, 128>}, {transform_indices = @transform_2, window_bounds = array<i64: 1, 128>}, {transform_indices = @transform_3, window_bounds = array<i64: 8, 128>}, {transform_indices = @transform_4, window_bounds = array<i64: 8, 128>}]} {
    %c0 = arith.constant 0 : index
    %c0_0 = arith.constant 0 : index
    %0 = vector.load %arg2[%c0, %c0_0] : memref<8x128xbf16, #tpu.memory_space<vmem>>, vector<8x128xbf16>
    %c0_1 = arith.constant 0 : index
    %c0_2 = arith.constant 0 : index
    %1 = vector.load %arg3[%c0_1, %c0_2] : memref<128x128xbf16, #tpu.memory_space<vmem>>, vector<128x128xbf16>
    %cst = arith.constant dense<0.000000e+00> : vector<8x128xf32>
    %2 = tpu.matmul %0, %1, %cst {dimension_numbers = #tpu.dot_dimension_numbers<[1], [0], [0], [1], [0, 0, 1, 1], [], []>} : vector<8x128xbf16>, vector<128x128xbf16>, vector<8x128xf32> -> vector<8x128xf32>
    %c0_3 = arith.constant 0 : index
    %c0_4 = arith.constant 0 : index
    %3 = vector.load %arg4[%c0_3, %c0_4] : memref<1x128xf32, #tpu.memory_space<vmem>>, vector<1x128xf32>
    %4 = vector.broadcast %3 : vector<1x128xf32> to vector<8x128xf32>
    %5 = arith.addf %2, %4 : vector<8x128xf32>
    %c0_5 = arith.constant 0 : index
    %c0_6 = arith.constant 0 : index
    %6 = vector.load %arg5[%c0_5, %c0_6] : memref<8x128xbf16, #tpu.memory_space<vmem>>, vector<8x128xbf16>
    %7 = arith.extf %6 : vector<8x128xbf16> to vector<8x128xf32>
    %8 = arith.addf %5, %7 : vector<8x128xf32>
    %cst_7 = arith.constant 0.000000e+00 : f32
    %9 = vector.broadcast %cst_7 : f32 to vector<8x128xf32>
    %10 = arith.maximumf %8, %9 : vector<8x128xf32>
    %11 = arith.truncf %10 : vector<8x128xf32> to vector<8x128xbf16>
    %c0_8 = arith.constant 0 : index
    %c0_9 = arith.constant 0 : index
    %12 = vector.load %arg6[%c0_8, %c0_9] : memref<8x128xbf16, #tpu.memory_space<vmem>>, vector<8x128xbf16>
    tpu.vector_store %arg6[%c0_8, %c0_9], %11 {strides = array<i32>} : memref<8x128xbf16, #tpu.memory_space<vmem>>, vector<8x128xbf16>,
    return
  }
  func.func @transform_0(%arg0: i32, %arg1: i32) -> (i32, i32) {
    %c0_i32 = arith.constant 0 : i32
    %c0_i32_0 = arith.constant 0 : i32
    return %arg0, %c0_i32 : i32, i32
  }
  func.func @transform_1(%arg0: i32, %arg1: i32) -> (i32, i32) {
    %c0_i32 = arith.constant 0 : i32
    %c0_i32_0 = arith.constant 0 : i32
    return %c0_i32, %arg1 : i32, i32
  }
  func.func @transform_2(%arg0: i32, %arg1: i32) -> (i32, i32) {
    %c0_i32 = arith.constant 0 : i32
    %c0_i32_0 = arith.constant 0 : i32
    return %c0_i32, %arg1 : i32, i32
  }
  func.func @transform_3(%arg0: i32, %arg1: i32) -> (i32, i32) {
    %c0_i32 = arith.constant 0 : i32
    return %arg0, %arg1 : i32, i32
  }
  func.func @transform_4(%arg0: i32, %arg1: i32) -> (i32, i32) {
    %c0_i32 = arith.constant 0 : i32
    return %arg0, %arg1 : i32, i32
  }
}

module attributes {stable_mosaic.version = 11 : i64} {
  func.func @_matmul_fused_kernel(%arg0: i32, %arg1: i32, %arg2: memref<8x256xbf16, #tpu.memory_space<vmem>>, %arg3: memref<256x128xbf16, #tpu.memory_space<vmem>>, %arg4: memref<1x128xf32, #tpu.memory_space<vmem>>, %arg5: memref<8x128xbf16, #tpu.memory_space<vmem>>) attributes {dimension_semantics = [#tpu.dimension_semantics<parallel>, #tpu.dimension_semantics<parallel>], iteration_bounds = array<i64: 1, 4>, scalar_prefetch = 0 : i64, scratch_operands = 0 : i64, tpu.core_type = #tpu.core_type<tc>, window_params = [{transform_indices = @transform_0, window_bounds = array<i64: 8, 256>}, {transform_indices = @transform_1, window_bounds = array<i64: 256, 128>}, {transform_indices = @transform_2, window_bounds = array<i64: 1, 128>}, {transform_indices = @transform_3, window_bounds = array<i64: 8, 128>}]} {
    %c0 = arith.constant 0 : index
    %c0_0 = arith.constant 0 : index
    %0 = vector.load %arg2[%c0, %c0_0] : memref<8x256xbf16, #tpu.memory_space<vmem>>, vector<8x256xbf16>
    %c0_1 = arith.constant 0 : index
    %c0_2 = arith.constant 0 : index
    %1 = vector.load %arg3[%c0_1, %c0_2] : memref<256x128xbf16, #tpu.memory_space<vmem>>, vector<256x128xbf16>
    %cst = arith.constant dense<0.000000e+00> : vector<8x128xf32>
    %2 = tpu.matmul %0, %1, %cst {dimension_numbers = #tpu.dot_dimension_numbers<[1], [0], [0], [1], [0, 0, 1, 1], [], []>} : vector<8x256xbf16>, vector<256x128xbf16>, vector<8x128xf32> -> vector<8x128xf32>
    %c0_3 = arith.constant 0 : index
    %c0_4 = arith.constant 0 : index
    %3 = vector.load %arg4[%c0_3, %c0_4] : memref<1x128xf32, #tpu.memory_space<vmem>>, vector<1x128xf32>
    %4 = vector.broadcast %3 : vector<1x128xf32> to vector<8x128xf32>
    %5 = arith.addf %2, %4 : vector<8x128xf32>
    %6 = arith.truncf %5 : vector<8x128xf32> to vector<8x128xbf16>
    %c0_5 = arith.constant 0 : index
    %c0_6 = arith.constant 0 : index
    %7 = vector.load %arg5[%c0_5, %c0_6] : memref<8x128xbf16, #tpu.memory_space<vmem>>, vector<8x128xbf16>
    tpu.vector_store %arg5[%c0_5, %c0_6], %6 {strides = array<i32>} : memref<8x128xbf16, #tpu.memory_space<vmem>>, vector<8x128xbf16>,
    return
  }
  func.func @transform_0(%arg0: i32, %arg1: i32) -> (i32, i32) {
    %c0_i32 = arith.constant 0 : i32
    %c0_i32_0 = arith.constant 0 : i32
    return %arg0, %c0_i32 : i32, i32
  }
  func.func @transform_1(%arg0: i32, %arg1: i32) -> (i32, i32) {
    %c0_i32 = arith.constant 0 : i32
    %c0_i32_0 = arith.constant 0 : i32
    return %c0_i32, %arg1 : i32, i32
  }
  func.func @transform_2(%arg0: i32, %arg1: i32) -> (i32, i32) {
    %c0_i32 = arith.constant 0 : i32
    %c0_i32_0 = arith.constant 0 : i32
    return %c0_i32, %arg1 : i32, i32
  }
  func.func @transform_3(%arg0: i32, %arg1: i32) -> (i32, i32) {
    %c0_i32 = arith.constant 0 : i32
    return %arg0, %arg1 : i32, i32
  }
}

module attributes {stable_mosaic.version = 11 : i64} {
  func.func @_matmul_fused_kernel(%arg0: i32, %arg1: i32, %arg2: memref<8x128xbf16, #tpu.memory_space<vmem>>, %arg3: memref<128x128xbf16, #tpu.memory_space<vmem>>, %arg4: memref<1x128xf32, #tpu.memory_space<vmem>>, %arg5: memref<8x128xbf16, #tpu.memory_space<vmem>>, %arg6: memref<8x128xbf16, #tpu.memory_space<vmem>>) attributes {dimension_semantics = [#tpu.dimension_semantics<parallel>, #tpu.dimension_semantics<parallel>], iteration_bounds = array<i64: 1, 4>, scalar_prefetch = 0 : i64, scratch_operands = 0 : i64, tpu.core_type = #tpu.core_type<tc>, window_params = [{transform_indices = @transform_0, window_bounds = array<i64: 8, 128>}, {transform_indices = @transform_1, window_bounds = array<i64: 128, 128>}, {transform_indices = @transform_2, window_bounds = array<i64: 1, 128>}, {transform_indices = @transform_3, window_bounds = array<i64: 8, 128>}, {transform_indices = @transform_4, window_bounds = array<i64: 8, 128>}]} {
    %c0 = arith.constant 0 : index
    %c0_0 = arith.constant 0 : index
    %0 = vector.load %arg2[%c0, %c0_0] : memref<8x128xbf16, #tpu.memory_space<vmem>>, vector<8x128xbf16>
    %c0_1 = arith.constant 0 : index
    %c0_2 = arith.constant 0 : index
    %1 = vector.load %arg3[%c0_1, %c0_2] : memref<128x128xbf16, #tpu.memory_space<vmem>>, vector<128x128xbf16>
    %cst = arith.constant dense<0.000000e+00> : vector<8x128xf32>
    %2 = tpu.matmul %0, %1, %cst {dimension_numbers = #tpu.dot_dimension_numbers<[1], [0], [0], [1], [0, 0, 1, 1], [], []>} : vector<8x128xbf16>, vector<128x128xbf16>, vector<8x128xf32> -> vector<8x128xf32>
    %c0_3 = arith.constant 0 : index
    %c0_4 = arith.constant 0 : index
    %3 = vector.load %arg4[%c0_3, %c0_4] : memref<1x128xf32, #tpu.memory_space<vmem>>, vector<1x128xf32>
    %4 = vector.broadcast %3 : vector<1x128xf32> to vector<8x128xf32>
    %5 = arith.addf %2, %4 : vector<8x128xf32>
    %c0_5 = arith.constant 0 : index
    %c0_6 = arith.constant 0 : index
    %6 = vector.load %arg5[%c0_5, %c0_6] : memref<8x128xbf16, #tpu.memory_space<vmem>>, vector<8x128xbf16>
    %7 = arith.extf %6 : vector<8x128xbf16> to vector<8x128xf32>
    %8 = arith.addf %5, %7 : vector<8x128xf32>
    %cst_7 = arith.constant 0.000000e+00 : f32
    %9 = vector.broadcast %cst_7 : f32 to vector<8x128xf32>
    %10 = arith.maximumf %8, %9 : vector<8x128xf32>
    %11 = arith.truncf %10 : vector<8x128xf32> to vector<8x128xbf16>
    %c0_8 = arith.constant 0 : index
    %c0_9 = arith.constant 0 : index
    %12 = vector.load %arg6[%c0_8, %c0_9] : memref<8x128xbf16, #tpu.memory_space<vmem>>, vector<8x128xbf16>
    tpu.vector_store %arg6[%c0_8, %c0_9], %11 {strides = array<i32>} : memref<8x128xbf16, #tpu.memory_space<vmem>>, vector<8x128xbf16>,
    return
  }
  func.func @transform_0(%arg0: i32, %arg1: i32) -> (i32, i32) {
    %c0_i32 = arith.constant 0 : i32
    %c0_i32_0 = arith.constant 0 : i32
    return %arg0, %c0_i32 : i32, i32
  }
  func.func @transform_1(%arg0: i32, %arg1: i32) -> (i32, i32) {
    %c0_i32 = arith.constant 0 : i32
    %c0_i32_0 = arith.constant 0 : i32
    return %c0_i32, %arg1 : i32, i32
  }
  func.func @transform_2(%arg0: i32, %arg1: i32) -> (i32, i32) {
    %c0_i32 = arith.constant 0 : i32
    %c0_i32_0 = arith.constant 0 : i32
    return %c0_i32, %arg1 : i32, i32
  }
  func.func @transform_3(%arg0: i32, %arg1: i32) -> (i32, i32) {
    %c0_i32 = arith.constant 0 : i32
    return %arg0, %arg1 : i32, i32
  }
  func.func @transform_4(%arg0: i32, %arg1: i32) -> (i32, i32) {
    %c0_i32 = arith.constant 0 : i32
    return %arg0, %arg1 : i32, i32
  }
}

module attributes {stable_mosaic.version = 11 : i64} {
  func.func @_matmul_fused_kernel(%arg0: i32, %arg1: i32, %arg2: memref<8x512xbf16, #tpu.memory_space<vmem>>, %arg3: memref<512x128xbf16, #tpu.memory_space<vmem>>, %arg4: memref<1x128xf32, #tpu.memory_space<vmem>>, %arg5: memref<8x128xbf16, #tpu.memory_space<vmem>>) attributes {dimension_semantics = [#tpu.dimension_semantics<parallel>, #tpu.dimension_semantics<parallel>], iteration_bounds = array<i64: 1, 1>, scalar_prefetch = 0 : i64, scratch_operands = 0 : i64, tpu.core_type = #tpu.core_type<tc>, window_params = [{transform_indices = @transform_0, window_bounds = array<i64: 8, 512>}, {transform_indices = @transform_1, window_bounds = array<i64: 512, 128>}, {transform_indices = @transform_2, window_bounds = array<i64: 1, 128>}, {transform_indices = @transform_3, window_bounds = array<i64: 8, 128>}]} {
    %c0 = arith.constant 0 : index
    %c0_0 = arith.constant 0 : index
    %0 = vector.load %arg2[%c0, %c0_0] : memref<8x512xbf16, #tpu.memory_space<vmem>>, vector<8x512xbf16>
    %c0_1 = arith.constant 0 : index
    %c0_2 = arith.constant 0 : index
    %1 = vector.load %arg3[%c0_1, %c0_2] : memref<512x128xbf16, #tpu.memory_space<vmem>>, vector<512x128xbf16>
    %cst = arith.constant dense<0.000000e+00> : vector<8x128xf32>
    %2 = tpu.matmul %0, %1, %cst {dimension_numbers = #tpu.dot_dimension_numbers<[1], [0], [0], [1], [0, 0, 1, 1], [], []>} : vector<8x512xbf16>, vector<512x128xbf16>, vector<8x128xf32> -> vector<8x128xf32>
    %c0_3 = arith.constant 0 : index
    %c0_4 = arith.constant 0 : index
    %3 = vector.load %arg4[%c0_3, %c0_4] : memref<1x128xf32, #tpu.memory_space<vmem>>, vector<1x128xf32>
    %4 = vector.broadcast %3 : vector<1x128xf32> to vector<8x128xf32>
    %5 = arith.addf %2, %4 : vector<8x128xf32>
    %cst_5 = arith.constant 0.000000e+00 : f32
    %6 = vector.broadcast %cst_5 : f32 to vector<8x128xf32>
    %7 = arith.maximumf %5, %6 : vector<8x128xf32>
    %8 = arith.truncf %7 : vector<8x128xf32> to vector<8x128xbf16>
    %c0_6 = arith.constant 0 : index
    %c0_7 = arith.constant 0 : index
    %9 = vector.load %arg5[%c0_6, %c0_7] : memref<8x128xbf16, #tpu.memory_space<vmem>>, vector<8x128xbf16>
    tpu.vector_store %arg5[%c0_6, %c0_7], %8 {strides = array<i32>} : memref<8x128xbf16, #tpu.memory_space<vmem>>, vector<8x128xbf16>,
    return
  }
  func.func @transform_0(%arg0: i32, %arg1: i32) -> (i32, i32) {
    %c0_i32 = arith.constant 0 : i32
    %c0_i32_0 = arith.constant 0 : i32
    return %arg0, %c0_i32 : i32, i32
  }
  func.func @transform_1(%arg0: i32, %arg1: i32) -> (i32, i32) {
    %c0_i32 = arith.constant 0 : i32
    %c0_i32_0 = arith.constant 0 : i32
    return %c0_i32, %arg1 : i32, i32
  }
  func.func @transform_2(%arg0: i32, %arg1: i32) -> (i32, i32) {
    %c0_i32 = arith.constant 0 : i32
    %c0_i32_0 = arith.constant 0 : i32
    return %c0_i32, %arg1 : i32, i32
  }
  func.func @transform_3(%arg0: i32, %arg1: i32) -> (i32, i32) {
    %c0_i32 = arith.constant 0 : i32
    return %arg0, %arg1 : i32, i32
  }
}

module attributes {stable_mosaic.version = 11 : i64} {
  func.func @_gap_fc_kernel(%arg0: memref<2x1x512xbf16, #tpu.memory_space<vmem>>, %arg1: memref<512x128xbf16, #tpu.memory_space<vmem>>, %arg2: memref<1x128xf32, #tpu.memory_space<vmem>>, %arg3: memref<2x128xf32, #tpu.memory_space<vmem>>) attributes {dimension_semantics = [], scalar_prefetch = 0 : i64, scratch_operands = 0 : i64, tpu.core_type = #tpu.core_type<tc>} {
    %c0 = arith.constant 0 : index
    %c0_0 = arith.constant 0 : index
    %c0_1 = arith.constant 0 : index
    %0 = vector.load %arg0[%c0, %c0_0, %c0_1] : memref<2x1x512xbf16, #tpu.memory_space<vmem>>, vector<2x1x512xbf16>
    %1 = arith.extf %0 : vector<2x1x512xbf16> to vector<2x1x512xf32>
    %cst = arith.constant dense<0.000000e+00> : vector<2x512xf32>
    %2 = vector.multi_reduction <add>, %1, %cst [1] : vector<2x1x512xf32> to vector<2x512xf32>
    %cst_2 = arith.constant 1.000000e+00 : f32
    %3 = vector.broadcast %cst_2 : f32 to vector<2x512xf32>
    %4 = arith.divf %2, %3 : vector<2x512xf32>
    %5 = arith.truncf %4 : vector<2x512xf32> to vector<2x512xbf16>
    %c0_3 = arith.constant 0 : index
    %c0_4 = arith.constant 0 : index
    %6 = vector.load %arg1[%c0_3, %c0_4] : memref<512x128xbf16, #tpu.memory_space<vmem>>, vector<512x128xbf16>
    %cst_5 = arith.constant dense<0.000000e+00> : vector<2x128xf32>
    %7 = tpu.matmul %5, %6, %cst_5 {dimension_numbers = #tpu.dot_dimension_numbers<[1], [0], [0], [1], [0, 0, 1, 1], [], []>} : vector<2x512xbf16>, vector<512x128xbf16>, vector<2x128xf32> -> vector<2x128xf32>
    %c0_6 = arith.constant 0 : index
    %c0_7 = arith.constant 0 : index
    %8 = vector.load %arg2[%c0_6, %c0_7] : memref<1x128xf32, #tpu.memory_space<vmem>>, vector<1x128xf32>
    %9 = vector.broadcast %8 : vector<1x128xf32> to vector<2x128xf32>
    %10 = arith.addf %7, %9 : vector<2x128xf32>
    %c0_8 = arith.constant 0 : index
    %c0_9 = arith.constant 0 : index
    %11 = vector.load %arg3[%c0_8, %c0_9] : memref<2x128xf32, #tpu.memory_space<vmem>>, vector<2x128xf32>
    tpu.vector_store %arg3[%c0_8, %c0_9], %10 {strides = array<i32>} : memref<2x128xf32, #tpu.memory_space<vmem>>, vector<2x128xf32>,
    return
  }
}

</mosaic_0001>

<bundles_post_ra>
// kernel: quantized_resnet50_forward.56
= control target key start
LH: loop header
LB: loop body
LE: loop exit
PB: predicated region body
PF: predicated region fallthrough
CT: control target
= control target key end

     0   :  { %s343_s10 = smov 1e-08   ;;  %s445_s0 = inlined_call_operand.vmem [shape: f32[128,128], index: 0, kind: input, shape index: {}]   ;;  %s446_s1 = inlined_call_operand.vmem [shape: bf16[128,128], index: 1, kind: output, shape index: {}]  }
   0x1   :  { %v8_v0 = vld [vmem:[%s445_s0] sm:$0xff]  ;;  %v9_v1 = vld [vmem:[%s445_s0 + $0x8] sm:$0xff]  ;;  %v10_v2 = vld [vmem:[%s445_s0 + $0x10] sm:$0xff] }
   0x2   :  { %v11_v3 = vld [vmem:[%s445_s0 + $0x18] sm:$0xff]  ;;  %v12_v4 = vld [vmem:[%s445_s0 + $0x20] sm:$0xff]  ;;  %v13_v5 = vld [vmem:[%s445_s0 + $0x28] sm:$0xff] }
   0x3   :  { %v14_v6 = vld [vmem:[%s445_s0 + $0x30] sm:$0xff]  ;;  %v15_v7 = vld [vmem:[%s445_s0 + $0x38] sm:$0xff]  ;;  %v16_v8 = vld [vmem:[%s445_s0 + $0x40] sm:$0xff]  ;;  %334 = vmaxabs.init.f32.vacc0 %v8_v0, %v12_v4 }
   0x4   :  { %v17_v9 = vld [vmem:[%s445_s0 + $0x48] sm:$0xff]  ;;  %v18_v10 = vld [vmem:[%s445_s0 + $0x50] sm:$0xff]  ;;  %v19_v11 = vld [vmem:[%s445_s0 + $0x58] sm:$0xff] }
   0x5   :  { %v20_v12 = vld [vmem:[%s445_s0 + $0x60] sm:$0xff]  ;;  %v21_v13 = vld [vmem:[%s445_s0 + $0x68] sm:$0xff]  ;;  %v22_v14 = vld [vmem:[%s445_s0 + $0x70] sm:$0xff]  ;;  %335 = vmaxabs.f32.vacc0 %v9_v1, %v13_v5 }
   0x6   :  { %v23_v15 = vld [vmem:[%s445_s0 + $0x78] sm:$0xff] }
   0x7   :  { %336 = vmaxabs.f32.vacc0 %v10_v2, %v14_v6 }
   0x9   :  { %337 = vmaxabs.f32.vacc0 %v11_v3, %v15_v7 }
   0xb   :  { %338 = vmaxabs.f32.vacc0 %v16_v8, %v17_v9 }
   0xd   :  { %339 = vmaxabs.f32.vacc0 %v18_v10, %v19_v11 }
   0xf   :  { %340 = vmaxabs.f32.vacc0 %v20_v12, %v21_v13 }
  0x11   :  { %341 = vmaxabs.f32.vacc0 %v22_v14, %v23_v15 }
  0x13   :  { %v342_v16 = vmovacc.low.even.vacc0 }
  0x15   :  { %55 = vmax.xlane.f32.xlu0 %v342_v16 }
  0xa2   :  { %v56_v17 = vpop.xlane.xlu0 %55 }
  0xa3   :  { %v57_v18 = vrot.slane %v56_v17, 4 }
  0xa5   :  { %v58_v19 = vmax.f32 %v56_v17, %v57_v18 }
  0xa7   :  { %v59_v20 = vrot.slane %v58_v19, 2 }
  0xa9   :  { %v60_v21 = vmax.f32 %v58_v19, %v59_v20 }
  0xab   :  { %v61_v22 = vrot.slane %v60_v21, 1 }
  0xad   :  { %v62_v23 = vmax.f32 %v60_v21, %v61_v22 }
  0xaf   :  { %313 = vpush %v62_v23 }
  0xe0   :  { %s314_s9 = spop %313 }
  0xe1   :  { %s66_s0 = smul.f32 0.007874016, %s314_s9 }
  0xe3   :  { %s67_s11 = smax.f32 %s343_s10, %s66_s0 }
  0xe4   :  { %v402_v24 = vstv %s67_s11 }
  0xe5   :  { %332 = vrcp.f32 %v402_v24 }
  0xef   :  { %v333_v25 = vpop.eup %332 }
  0xf0   :  { %v70_v26 = vmul.f32 %v333_v25, %v8_v0  ;;  %v71_v27 = vmul.f32 %v333_v25, %v9_v1  ;;  %v72_v28 = vmul.f32 %v333_v25, %v10_v2  ;;  %v73_v29 = vmul.f32 %v333_v25, %v11_v3 }
  0xf1   :  { %v74_v30 = vmul.f32 %v333_v25, %v12_v4  ;;  %v75_v31 = vmul.f32 %v333_v25, %v13_v5  ;;  %v76_v32 = vmul.f32 %v333_v25, %v14_v6  ;;  %v77_v33 = vmul.f32 %v333_v25, %v15_v7 }
  0xf2   :  { %v78_v34 = vmul.f32 %v333_v25, %v16_v8  ;;  %v79_v35 = vmul.f32 %v333_v25, %v17_v9  ;;  %v80_v36 = vmul.f32 %v333_v25, %v18_v10  ;;  %v81_v37 = vmul.f32 %v333_v25, %v19_v11 }
  0xf3   :  { %v82_v38 = vmul.f32 %v333_v25, %v20_v12  ;;  %v83_v39 = vmul.f32 %v333_v25, %v21_v13  ;;  %v84_v40 = vmul.f32 %v333_v25, %v22_v14  ;;  %v85_v41 = vmul.f32 %v333_v25, %v23_v15 }
  0xf4   :  { %v315_v42 = vround.rtne.f32 %v70_v26  ;;  %v316_v43 = vround.rtne.f32 %v71_v27  ;;  %v317_v44 = vround.rtne.f32 %v72_v28  ;;  %v318_v45 = vround.rtne.f32 %v73_v29 }
  0xf5   :  { %v319_v46 = vround.rtne.f32 %v74_v30  ;;  %v320_v47 = vround.rtne.f32 %v75_v31  ;;  %v321_v48 = vround.rtne.f32 %v76_v32  ;;  %v322_v49 = vround.rtne.f32 %v77_v33 }
  0xf6   :  { %v323_v50 = vround.rtne.f32 %v78_v34  ;;  %v324_v51 = vround.rtne.f32 %v79_v35  ;;  %v325_v52 = vround.rtne.f32 %v80_v36  ;;  %v326_v53 = vround.rtne.f32 %v81_v37 }
  0xf7   :  { %v327_v54 = vround.rtne.f32 %v82_v38  ;;  %v328_v55 = vround.rtne.f32 %v83_v39  ;;  %v329_v56 = vround.rtne.f32 %v84_v40  ;;  %v330_v57 = vround.rtne.f32 %v85_v41 }
  0xf8   :  { %v102_v58 = vmax.f32 %v315_v42, -128.0  ;;  %v103_v59 = vmax.f32 %v316_v43, -128.0  ;;  %v104_v60 = vmax.f32 %v317_v44, -128.0  ;;  %v105_v61 = vmax.f32 %v318_v45, -128.0 }
  0xf9   :  { %v106_v62 = vmax.f32 %v319_v46, -128.0  ;;  %v107_v63 = vmax.f32 %v320_v47, -128.0  ;;  %v108_v0 = vmax.f32 %v321_v48, -128.0  ;;  %v109_v1 = vmax.f32 %v322_v49, -128.0 }
  0xfa   :  { %v110_v2 = vmax.f32 %v323_v50, -128.0  ;;  %v111_v3 = vmax.f32 %v324_v51, -128.0  ;;  %v112_v4 = vmax.f32 %v325_v52, -128.0  ;;  %v113_v5 = vmax.f32 %v326_v53, -128.0 }
  0xfb   :  { %v114_v6 = vmax.f32 %v327_v54, -128.0  ;;  %v115_v7 = vmax.f32 %v328_v55, -128.0  ;;  %v116_v8 = vmax.f32 %v329_v56, -128.0  ;;  %v117_v9 = vmax.f32 %v330_v57, -128.0 }
  0xfc   :  { %v118_v10 = vmin.f32 %v102_v58, 127.0  ;;  %v119_v11 = vmin.f32 %v103_v59, 127.0  ;;  %v120_v12 = vmin.f32 %v104_v60, 127.0  ;;  %v121_v13 = vmin.f32 %v105_v61, 127.0 }
  0xfd   :  { %v122_v14 = vmin.f32 %v106_v62, 127.0  ;;  %v123_v15 = vmin.f32 %v107_v63, 127.0  ;;  %v124_v16 = vmin.f32 %v108_v0, 127.0  ;;  %v125_v17 = vmin.f32 %v109_v1, 127.0 }
  0xfe   :  { %v126_v18 = vmin.f32 %v110_v2, 127.0  ;;  %v127_v19 = vmin.f32 %v111_v3, 127.0  ;;  %v128_v20 = vmin.f32 %v112_v4, 127.0  ;;  %v129_v21 = vmin.f32 %v113_v5, 127.0 }
  0xff   :  { %v130_v22 = vmin.f32 %v114_v6, 127.0  ;;  %v131_v23 = vmin.f32 %v115_v7, 127.0  ;;  %v132_v25 = vmin.f32 %v116_v8, 127.0  ;;  %v133_v26 = vmin.f32 %v117_v9, 127.0 }
 0x100   :  { %v134_v27 = vmul.f32 %v118_v10, %v402_v24  ;;  %v135_v28 = vmul.f32 %v119_v11, %v402_v24  ;;  %v136_v29 = vmul.f32 %v120_v12, %v402_v24  ;;  %v137_v30 = vmul.f32 %v121_v13, %v402_v24 }
 0x101   :  { %v138_v31 = vmul.f32 %v122_v14, %v402_v24  ;;  %v139_v32 = vmul.f32 %v123_v15, %v402_v24  ;;  %v140_v33 = vmul.f32 %v124_v16, %v402_v24  ;;  %v141_v34 = vmul.f32 %v125_v17, %v402_v24 }
 0x102   :  { %v142_v35 = vmul.f32 %v126_v18, %v402_v24  ;;  %v143_v36 = vmul.f32 %v127_v19, %v402_v24  ;;  %v144_v37 = vmul.f32 %v128_v20, %v402_v24  ;;  %v145_v38 = vmul.f32 %v129_v21, %v402_v24 }
 0x103   :  { %v146_v39 = vmul.f32 %v130_v22, %v402_v24  ;;  %v147_v40 = vmul.f32 %v131_v23, %v402_v24  ;;  %v148_v41 = vmul.f32 %v132_v25, %v402_v24  ;;  %v149_v42 = vmul.f32 %v133_v26, %v402_v24 }
 0x104   :  { %v269_v43 = vpack.c.bf16 %v135_v28, %v134_v27  ;;  %v274_v44 = vpack.c.bf16 %v137_v30, %v136_v29  ;;  %v279_v45 = vpack.c.bf16 %v139_v32, %v138_v31  ;;  %v284_v46 = vpack.c.bf16 %v141_v34, %v140_v33 }
 0x105   :  { %v289_v47 = vpack.c.bf16 %v143_v36, %v142_v35  ;;  %v294_v48 = vpack.c.bf16 %v145_v38, %v144_v37  ;;  %v299_v49 = vpack.c.bf16 %v147_v40, %v146_v39  ;;  %v304_v50 = vpack.c.bf16 %v149_v42, %v148_v41 }
 0x106   :  { %270 = vst [vmem:[%s446_s1] sm:$0xff] %v269_v43   ;;  %306 = vst [vmem:[%s446_s1 + $0x8] sm:$0xff] %v274_v44  }
 0x107   :  { %307 = vst [vmem:[%s446_s1 + $0x10] sm:$0xff] %v279_v45   ;;  %308 = vst [vmem:[%s446_s1 + $0x18] sm:$0xff] %v284_v46  }
 0x108   :  { %309 = vst [vmem:[%s446_s1 + $0x20] sm:$0xff] %v289_v47   ;;  %310 = vst [vmem:[%s446_s1 + $0x28] sm:$0xff] %v294_v48  }
 0x109   :  { %311 = vst [vmem:[%s446_s1 + $0x30] sm:$0xff] %v299_v49   ;;  %312 = vst [vmem:[%s446_s1 + $0x38] sm:$0xff] %v304_v50  }

// kernel: quantized_resnet50_forward.57
= control target key start
LH: loop header
LB: loop body
LE: loop exit
PB: predicated region body
PF: predicated region fallthrough
CT: control target
= control target key end

     0   :  { %s1404_s12 = smov 0   ;;  %s1406_s13 = smov 0   ;;  %s1601_s0 = inlined_call_operand.vmem [shape: bf16[512,392], index: 0, kind: input, shape index: {}]   ;;  %s1602_s1 = inlined_call_operand.vmem [shape: bf16[392,128], index: 1, kind: input, shape index: {}]   ;;  %s1603_s2 = inlined_call_operand.vmem [shape: f32[1,128], index: 2, kind: input, shape index: {}]   ;;  %s1604_s3 = inlined_call_operand.vmem [shape: bf16[512,128], index: 3, kind: output, shape index: {}]  }
   0x1   :  { %s1408_s14 = smov 0  }
   0x2 LB: > { %s25_s15 = sadd.s32 1, %s1377_s13  ;;  %p1043_p0 = scmp.ge.s32.totalorder %s1381_s14, 1  ;;  %s1381_s14 = sphi %s1408_s14, %s13_s14   ;;  %s1377_s13 = sphi %s1406_s13, %s1606_s13   ;;  %s1373_s12 = sphi %s1404_s12, %s1605_s12  }
   0x3   : > { %p27_p1 = scmp.ge.s32.totalorder %s25_s15, 4  ;;  %p170_p2 = scmp.lt.s32.totalorder %s1381_s14, 5 }
   0x5   : > { %s1608_s15 = smov (%p27_p1, %s25_s15), 0  ;;  %p171_p3 = pnand %p1043_p0, %p170_p2 }
   0x6   : > { %v1286_v0 = vld [vmem:[%s1602_s1 + $0x40] sm:$0xff] (!%p171_p3)   ;;  %v1383_v1 = vmov (!%p171_p3), 0   ;;  %v1289_v4 = vld [vmem:[%s1602_s1 + $0x48] sm:$0xff] (!%p171_p3)   ;;  %v1292_v7 = vld [vmem:[%s1602_s1 + $0x50] sm:$0xff] (!%p171_p3)   ;;  %s1044_s7 = sshll.u32 (!%p171_p3), %s1373_s12, 4  ;;  %vm616_vm0 = vcmask (!%p171_p3), 64512  }
   0x7   : > { %174 = sbr.rel (%p171_p3) target bundleno = 322 (0x142), region = 32  ;;  %742 = vmatprep.subr.bf16.mxu1 (!%p171_p3), %v1383_v1  ;;  %v1287_v2 = vld [vmem:[%s1602_s1 + $0x80] sm:$0xff] (!%p171_p3)   ;;  %1197 = vmatprep.subr.bf16.mxu0 (!%p171_p3), %v1286_v0  ;;  %v1290_v5 = vld [vmem:[%s1602_s1 + $0x88] sm:$0xff] (!%p171_p3)   ;;  %v1293_v8 = vld [vmem:[%s1602_s1 + $0x90] sm:$0xff] (!%p171_p3)   ;;  %p206_p4 = scmp.lt.s32.totalorder (!%p171_p3), %s1044_s7, 63  ;;  %vm641_vm1 = vcmask (!%p171_p3), 1043456  }
   0x8   : > { %v1288_v3 = vld [vmem:[%s1602_s1] sm:$0xff] (!%p171_p3)   ;;  %743 = vmatpush1.bf16.msra.mxu1 (!%p171_p3), %v1287_v2  ;;  %v1291_v6 = vld [vmem:[%s1602_s1 + $0x8] sm:$0xff] (!%p171_p3)   ;;  %v1294_v9 = vld [vmem:[%s1602_s1 + $0x10] sm:$0xff] (!%p171_p3)  }
   0x9   : > { %1198 = vmatpush3.bf16.msra.mxu0 (!%p171_p3), %v1288_v3  ;;  %744 = vmatprep.subr.bf16.mxu1 (!%p171_p3), %v1383_v1  ;;  %v1295_v10 = vld [vmem:[%s1602_s1 + $0x58] sm:$0xff] (!%p171_p3)   ;;  %v1298_v13 = vld [vmem:[%s1602_s1 + $0x60] sm:$0xff] (!%p171_p3)   ;;  %v1301_v16 = vld [vmem:[%s1602_s1 + $0x68] sm:$0xff] (!%p171_p3)  }
   0xa   : > { %1199 = vmatprep.subr.bf16.mxu0 (!%p171_p3), %v1289_v4  ;;  %v1296_v11 = vld [vmem:[%s1602_s1 + $0x98] sm:$0xff] (!%p171_p3)   ;;  %v1299_v14 = vld [vmem:[%s1602_s1 + $0xa0] sm:$0xff] (!%p171_p3)   ;;  %v1302_v17 = vld [vmem:[%s1602_s1 + $0xa8] sm:$0xff] (!%p171_p3)  }
   0xb   : > { %v1297_v12 = vld [vmem:[%s1602_s1 + $0x18] sm:$0xff] (!%p171_p3)   ;;  %v1300_v15 = vld [vmem:[%s1602_s1 + $0x20] sm:$0xff] (!%p171_p3)   ;;  %v1303_v18 = vld [vmem:[%s1602_s1 + $0x28] sm:$0xff] (!%p171_p3)  }
   0xc   : > { %745 = vmatpush1.bf16.msra.mxu1 (!%p171_p3), %v1290_v5  ;;  %v1304_v19 = vld [vmem:[%s1602_s1 + $0x70] sm:$0xff] (!%p171_p3)   ;;  %v1307_v22 = vld [vmem:[%s1602_s1 + $0x78] sm:$0xff] (!%p171_p3)   ;;  %v1313_v27 = vld [vmem:[%s1602_s1 + $0xc0] ss:$0 sps:$4 sm:$0xff] (!%p171_p3)  }
   0xd   : > { %1200 = vmatpush3.bf16.msra.mxu0 (!%p171_p3), %v1291_v6  ;;  %746 = vmatprep.subr.bf16.mxu1 (!%p171_p3), %v1383_v1  ;;  %v1305_v20 = vld [vmem:[%s1602_s1 + $0xb0] sm:$0xff] (!%p171_p3)   ;;  %v1308_v24 = vld [vmem:[%s1602_s1 + $0xb8] sm:$0xff] (!%p171_p3)   ;;  %v643_v29 = vsel (!%p171_p3), %vm641_vm1, %v1313_v27, 0  ;;  %v1560_v61 = vld [vmem:[%s1603_s2] ss:$0 sm:$0xff] (!%p171_p3) }
   0xe   : > { %1201 = vmatprep.subr.bf16.mxu0 %v1292_v7  ;;  %s1610_s7 = smov (!%p206_p4, %s1044_s7), 63  ;;  %v1306_v21 = vld [vmem:[%s1602_s1 + $0x30] sm:$0xff]   ;;  %v1309_v26 = vld [vmem:[%s1602_s1 + $0x38] sm:$0xff]  }
   0xf   : > { %s1133_s27 = sshll.u32 %s1610_s7, 4  ;;  %s1048_s26 = sshll.u32 %s1610_s7, 2 }
  0x10   : > { %747 = vmatpush1.bf16.msra.mxu1 %v1293_v8  ;;  %s1494_s8 = scalar_lea.vmem %s1601_s0, %s1133_s27  ;;  %s1568_s29 = scalar_lea.vmem %s1604_s3, %s1048_s26 }
  0x11   : > { %1202 = vmatpush3.bf16.msra.mxu0 %v1294_v9  ;;  %748 = vmatprep.subr.bf16.mxu1 %v1383_v1  ;;  %v1312_v23 = vld [vmem:[%s1494_s8 + $0x4] ss:$16 sps:$4 sm:$0xff]   ;;  %v1316_v25 = vld [vmem:[%s1494_s8 + $0xc] ss:$16 sps:$4 sm:$0xff]   ;;  %v1310_v28 = vld [vmem:[%s1494_s8] ss:$16 sps:$4 sm:$0xff]  }
  0x12   : > { %1203 = vmatprep.subr.bf16.mxu0 %v1295_v10  ;;  %677 = vmatprep.mubr.bf16.mxu0 %v1312_v23  ;;  %v1317_v30 = vld [vmem:[%s1494_s8 + $0x24] ss:$16 sps:$4 sm:$0xff]   ;;  %v1314_v31 = vld [vmem:[%s1494_s8 + $0x8] ss:$16 sps:$4 sm:$0xff]   ;;  %v1320_v32 = vld [vmem:[%s1494_s8 + $0x2c] ss:$16 sps:$4 sm:$0xff]  }
  0x13   : > { %1107 = vmatprep.mubr.msk.bf16.mxu1 %vm616_vm0, %v1316_v25  ;;  %v1319_v33 = vld [vmem:[%s1494_s8 + $0x20] ss:$16 sps:$4 sm:$0xff]   ;;  %v1323_v34 = vld [vmem:[%s1494_s8 + $0x44] ss:$16 sps:$4 sm:$0xff]   ;;  %v1322_v35 = vld [vmem:[%s1494_s8 + $0x28] ss:$16 sps:$4 sm:$0xff]  }
  0x14   : > { %749 = vmatpush1.bf16.msra.mxu1 %v1296_v11  ;;  %v1326_v36 = vld [vmem:[%s1494_s8 + $0x4c] ss:$16 sps:$4 sm:$0xff]   ;;  %v1325_v37 = vld [vmem:[%s1494_s8 + $0x40] ss:$16 sps:$4 sm:$0xff]   ;;  %v1329_v38 = vld [vmem:[%s1494_s8 + $0x64] ss:$16 sps:$4 sm:$0xff]  }
  0x15   : > { %1204 = vmatpush3.bf16.msra.mxu0 %v1297_v12  ;;  %750 = vmatprep.subr.bf16.mxu1 %v1383_v1  ;;  %v1328_v39 = vld [vmem:[%s1494_s8 + $0x48] ss:$16 sps:$4 sm:$0xff]   ;;  %v1332_v40 = vld [vmem:[%s1494_s8 + $0x6c] ss:$16 sps:$4 sm:$0xff]   ;;  %v1331_v41 = vld [vmem:[%s1494_s8 + $0x60] ss:$16 sps:$4 sm:$0xff]  }
  0x16   : > { %1205 = vmatprep.subr.bf16.mxu0 %v1298_v13  ;;  %v1335_v42 = vld [vmem:[%s1494_s8 + $0x84] ss:$16 sps:$4 sm:$0xff]   ;;  %v1334_v43 = vld [vmem:[%s1494_s8 + $0x68] ss:$16 sps:$4 sm:$0xff]   ;;  %v1338_v44 = vld [vmem:[%s1494_s8 + $0x8c] ss:$16 sps:$4 sm:$0xff]  }
  0x17   : > { %v1337_v45 = vld [vmem:[%s1494_s8 + $0x80] ss:$16 sps:$4 sm:$0xff]   ;;  %v1341_v46 = vld [vmem:[%s1494_s8 + $0xa4] ss:$16 sps:$4 sm:$0xff]   ;;  %v1340_v47 = vld [vmem:[%s1494_s8 + $0x88] ss:$16 sps:$4 sm:$0xff]  }
  0x18   : > { %751 = vmatpush1.bf16.msra.mxu1 %v1299_v14  ;;  %v1344_v48 = vld [vmem:[%s1494_s8 + $0xac] ss:$16 sps:$4 sm:$0xff]   ;;  %v1343_v49 = vld [vmem:[%s1494_s8 + $0xa0] ss:$16 sps:$4 sm:$0xff]   ;;  %v1347_v50 = vld [vmem:[%s1494_s8 + $0xc4] ss:$16 sps:$4 sm:$0xff]  }
  0x19   : > { %1206 = vmatpush3.bf16.msra.mxu0 %v1300_v15  ;;  %752 = vmatprep.subr.bf16.mxu1 %v1383_v1  ;;  %v1346_v51 = vld [vmem:[%s1494_s8 + $0xa8] ss:$16 sps:$4 sm:$0xff]   ;;  %v1350_v52 = vld [vmem:[%s1494_s8 + $0xcc] ss:$16 sps:$4 sm:$0xff]   ;;  %v1349_v53 = vld [vmem:[%s1494_s8 + $0xc0] ss:$16 sps:$4 sm:$0xff]  }
  0x1a   : > { %1207 = vmatprep.subr.bf16.mxu0 %v1301_v16  ;;  %v1353_v54 = vld [vmem:[%s1494_s8 + $0xe4] ss:$16 sps:$4 sm:$0xff]   ;;  %v1352_v55 = vld [vmem:[%s1494_s8 + $0xc8] ss:$16 sps:$4 sm:$0xff]   ;;  %v1356_v56 = vld [vmem:[%s1494_s8 + $0xec] ss:$16 sps:$4 sm:$0xff]  }
  0x1b   : > { %v1355_v57 = vld [vmem:[%s1494_s8 + $0xe0] ss:$16 sps:$4 sm:$0xff]   ;;  %v1358_v58 = vld [vmem:[%s1494_s8 + $0xe8] ss:$16 sps:$4 sm:$0xff]  }
  0x1c   : > { %753 = vmatpush1.bf16.msra.mxu1 %v1302_v17 }
  0x1d   : > { %1208 = vmatpush3.bf16.msra.mxu0 %v1303_v18  ;;  %754 = vmatprep.subr.bf16.mxu1 %v1383_v1 }
  0x1e   : > { %1209 = vmatprep.subr.bf16.mxu0 %v1304_v19 }
  0x20   : > { %755 = vmatpush1.bf16.msra.mxu1 %v1305_v20 }
  0x21   : > { %1210 = vmatpush3.bf16.msra.mxu0 %v1306_v21  ;;  %756 = vmatprep.subr.bf16.mxu1 %v1383_v1 }
  0x22   : > { %1211 = vmatprep.subr.bf16.mxu0 %v1307_v22 }
  0x24   : > { %757 = vmatpush1.bf16.msra.mxu1 %v1308_v24 }
  0x25   : > { %1212 = vmatpush3.bf16.msra.mxu0 %v1309_v26  ;;  %758 = vmatprep.subr.bf16.mxu1 %v1383_v1 }
  0x28   : > { %678 = vmatmul.mubr.bf16.vlgmr.msra.gmra.mrb[0].mxu0 %v1310_v28  ;;  %759 = vmatpush1.bf16.msra.mxu1 %v643_v29 }
  0x29   : > { %685 = vmatprep.mubr.bf16.mxu0 %v1317_v30 }
  0x2b   : > { %775 = vmatmul.mubr.bf16.vlgmr.msra.gmra.mrb[0].mxu1 %v1314_v31 }
  0x2c   : > { %1108 = vmatprep.mubr.msk.bf16.mxu1 %vm616_vm0, %v1320_v32 }
  0x30   : > { %686 = vmatmul.mubr.bf16.gmra.mrb[4].mxu0 %v1319_v33 }
  0x31   : > { %693 = vmatprep.mubr.bf16.mxu0 %v1323_v34 }
  0x33   : > { %783 = vmatmul.mubr.bf16.gmra.mrb[4].mxu1 %v1322_v35 }
  0x34   : > { %1109 = vmatprep.mubr.msk.bf16.mxu1 %vm616_vm0, %v1326_v36 }
  0x38   : > { %694 = vmatmul.mubr.bf16.gmra.mrb[8].mxu0 %v1325_v37 }
  0x39   : > { %701 = vmatprep.mubr.bf16.mxu0 %v1329_v38 }
  0x3b   : > { %791 = vmatmul.mubr.bf16.gmra.mrb[8].mxu1 %v1328_v39 }
  0x3c   : > { %1110 = vmatprep.mubr.msk.bf16.mxu1 %vm616_vm0, %v1332_v40 }
  0x40   : > { %702 = vmatmul.mubr.bf16.gmra.mrb[12].mxu0 %v1331_v41 }
  0x41   : > { %709 = vmatprep.mubr.bf16.mxu0 %v1335_v42 }
  0x43   : > { %799 = vmatmul.mubr.bf16.gmra.mrb[12].mxu1 %v1334_v43 }
  0x44   : > { %1111 = vmatprep.mubr.msk.bf16.mxu1 %vm616_vm0, %v1338_v44 }
  0x48   : > { %710 = vmatmul.mubr.bf16.gmra.mrb[16].mxu0 %v1337_v45 }
  0x49   : > { %717 = vmatprep.mubr.bf16.mxu0 %v1341_v46 }
  0x4b   : > { %807 = vmatmul.mubr.bf16.gmra.mrb[16].mxu1 %v1340_v47 }
  0x4c   : > { %1112 = vmatprep.mubr.msk.bf16.mxu1 %vm616_vm0, %v1344_v48 }
  0x50   : > { %718 = vmatmul.mubr.bf16.gmra.mrb[20].mxu0 %v1343_v49 }
  0x51   : > { %725 = vmatprep.mubr.bf16.mxu0 %v1347_v50 }
  0x53   : > { %815 = vmatmul.mubr.bf16.gmra.mrb[20].mxu1 %v1346_v51 }
  0x54   : > { %1113 = vmatprep.mubr.msk.bf16.mxu1 %vm616_vm0, %v1350_v52 }
  0x58   : > { %726 = vmatmul.mubr.bf16.gmra.mrb[24].mxu0 %v1349_v53 }
  0x59   : > { %733 = vmatprep.mubr.bf16.mxu0 %v1353_v54 }
  0x5b   : > { %823 = vmatmul.mubr.bf16.gmra.mrb[24].mxu1 %v1352_v55 }
  0x5c   : > { %1114 = vmatprep.mubr.msk.bf16.mxu1 %vm616_vm0, %v1356_v56 }
  0x60   : > { %734 = vmatmul.mubr.bf16.gmra.mrb[28].mxu0 %v1355_v57 }
  0x63   : > { %831 = vmatmul.mubr.bf16.gmra.mrb[28].mxu1 %v1358_v58 }
  0xfb   : > { %v1213_v59 = vpop.f32.mrb[0].mxu0 }
  0xfc   : > { %v1214_v60 = vpop.f32.mrb[1].mxu0 }
  0xfd   : > { %v1215_v62 = vadd.f32 %v1214_v60, %v1213_v59  ;;  %v1216_v63 = vpop.f32.mrb[2].mxu0 }
  0xfe   : > { %v1217_v0 = vpop.f32.mrb[3].mxu0  ;;  %v776_v1 = vpop.f32.mrb[0].mxu1 }
  0xff   : > { %v1218_v2 = vadd.f32 %v1217_v0, %v1216_v63  ;;  %v680_v3 = vadd.f32 %v1215_v62, %v1560_v61  ;;  %v778_v4 = vpop.f32.mrb[1].mxu1 }
 0x100   : > { %v779_v5 = vpop.f32.mrb[2].mxu1 }
 0x101   : > { %v777_v6 = vadd.f32 %v776_v1, %v680_v3  ;;  %v683_v7 = vadd.f32 %v1218_v2, %v1560_v61  ;;  %v781_v8 = vpop.f32.mrb[3].mxu1 }
 0x103   : > { %v780_v9 = vadd.f32 %v779_v5, %v683_v7  ;;  %v1219_v10 = vpop.f32.mrb[4].mxu0  ;;  %v839_v12 = vmax.f32 %v777_v6, 0.0 }
 0x104   : > { %v1220_v11 = vpop.f32.mrb[5].mxu0 }
 0x105   : > { %v840_v13 = vmax.f32 %v780_v9, 0.0  ;;  %v1221_v14 = vadd.f32 %v1220_v11, %v1219_v10  ;;  %v1222_v15 = vpop.f32.mrb[6].mxu0 }
 0x106   : > { %v1223_v16 = vpop.f32.mrb[7].mxu0  ;;  %v784_v17 = vpop.f32.mrb[4].mxu1 }
 0x107   : > { %v1153_v18 = vpack.c.bf16 %v840_v13, %v839_v12  ;;  %v1224_v19 = vadd.f32 %v1223_v16, %v1222_v15  ;;  %v688_v20 = vadd.f32 %v1221_v14, %v1560_v61  ;;  %v786_v21 = vpop.f32.mrb[5].mxu1 }
 0x108   : > { %v787_v22 = vpop.f32.mrb[6].mxu1 }
 0x109   : > { %1154 = vst [vmem:[%s1568_s29] sm:$0xff] %v1153_v18   ;;  %v785_v23 = vadd.f32 %v784_v17, %v688_v20  ;;  %v691_v24 = vadd.f32 %v1224_v19, %v1560_v61  ;;  %v789_v25 = vpop.f32.mrb[7].mxu1 }
 0x10b   : > { %v788_v26 = vadd.f32 %v787_v22, %v691_v24  ;;  %v1225_v27 = vpop.f32.mrb[8].mxu0  ;;  %v841_v29 = vmax.f32 %v785_v23, 0.0 }
 0x10c   : > { %v1226_v28 = vpop.f32.mrb[9].mxu0 }
 0x10d   : > { %v842_v30 = vmax.f32 %v788_v26, 0.0  ;;  %v1227_v31 = vadd.f32 %v1226_v28, %v1225_v27  ;;  %v1228_v32 = vpop.f32.mrb[10].mxu0 }
 0x10e   : > { %v1229_v33 = vpop.f32.mrb[11].mxu0  ;;  %v792_v34 = vpop.f32.mrb[8].mxu1 }
 0x10f   : > { %v1158_v35 = vpack.c.bf16 %v842_v30, %v841_v29  ;;  %v1230_v36 = vadd.f32 %v1229_v33, %v1228_v32  ;;  %v696_v37 = vadd.f32 %v1227_v31, %v1560_v61  ;;  %v794_v38 = vpop.f32.mrb[9].mxu1 }
 0x110   : > { %v795_v39 = vpop.f32.mrb[10].mxu1 }
 0x111   : > { %1190 = vst [vmem:[%s1568_s29 + $0x8] sm:$0xff] %v1158_v35   ;;  %v793_v40 = vadd.f32 %v792_v34, %v696_v37  ;;  %v699_v41 = vadd.f32 %v1230_v36, %v1560_v61  ;;  %v797_v42 = vpop.f32.mrb[11].mxu1 }
 0x113   : > { %v796_v43 = vadd.f32 %v795_v39, %v699_v41  ;;  %v1231_v44 = vpop.f32.mrb[12].mxu0  ;;  %v843_v46 = vmax.f32 %v793_v40, 0.0 }
 0x114   : > { %v1232_v45 = vpop.f32.mrb[13].mxu0 }
 0x115   : > { %v844_v47 = vmax.f32 %v796_v43, 0.0  ;;  %v1233_v48 = vadd.f32 %v1232_v45, %v1231_v44  ;;  %v1234_v49 = vpop.f32.mrb[14].mxu0 }
 0x116   : > { %v1235_v50 = vpop.f32.mrb[15].mxu0  ;;  %v800_v51 = vpop.f32.mrb[12].mxu1 }
 0x117   : > { %v1163_v52 = vpack.c.bf16 %v844_v47, %v843_v46  ;;  %v1236_v53 = vadd.f32 %v1235_v50, %v1234_v49  ;;  %v704_v54 = vadd.f32 %v1233_v48, %v1560_v61  ;;  %v802_v55 = vpop.f32.mrb[13].mxu1 }
 0x118   : > { %v803_v56 = vpop.f32.mrb[14].mxu1 }
 0x119   : > { %1191 = vst [vmem:[%s1568_s29 + $0x10] sm:$0xff] %v1163_v52   ;;  %v801_v57 = vadd.f32 %v800_v51, %v704_v54  ;;  %v707_v58 = vadd.f32 %v1236_v53, %v1560_v61  ;;  %v805_v59 = vpop.f32.mrb[15].mxu1 }
 0x11b   : > { %v804_v60 = vadd.f32 %v803_v56, %v707_v58  ;;  %v1237_v62 = vpop.f32.mrb[16].mxu0  ;;  %v845_v0 = vmax.f32 %v801_v57, 0.0 }
 0x11c   : > { %v1238_v63 = vpop.f32.mrb[17].mxu0 }
 0x11d   : > { %v846_v1 = vmax.f32 %v804_v60, 0.0  ;;  %v1239_v2 = vadd.f32 %v1238_v63, %v1237_v62  ;;  %v1240_v3 = vpop.f32.mrb[18].mxu0 }
 0x11e   : > { %v1241_v4 = vpop.f32.mrb[19].mxu0  ;;  %v808_v5 = vpop.f32.mrb[16].mxu1 }
 0x11f   : > { %v1168_v6 = vpack.c.bf16 %v846_v1, %v845_v0  ;;  %v1242_v7 = vadd.f32 %v1241_v4, %v1240_v3  ;;  %v712_v8 = vadd.f32 %v1239_v2, %v1560_v61  ;;  %v810_v9 = vpop.f32.mrb[17].mxu1 }
 0x120   : > { %v811_v10 = vpop.f32.mrb[18].mxu1 }
 0x121   : > { %1192 = vst [vmem:[%s1568_s29 + $0x18] sm:$0xff] %v1168_v6   ;;  %v809_v11 = vadd.f32 %v808_v5, %v712_v8  ;;  %v715_v12 = vadd.f32 %v1242_v7, %v1560_v61  ;;  %v813_v13 = vpop.f32.mrb[19].mxu1 }
 0x123   : > { %v812_v14 = vadd.f32 %v811_v10, %v715_v12  ;;  %v1243_v15 = vpop.f32.mrb[20].mxu0  ;;  %v847_v17 = vmax.f32 %v809_v11, 0.0 }
 0x124   : > { %v1244_v16 = vpop.f32.mrb[21].mxu0 }
 0x125   : > { %v848_v18 = vmax.f32 %v812_v14, 0.0  ;;  %v1245_v19 = vadd.f32 %v1244_v16, %v1243_v15  ;;  %v1246_v20 = vpop.f32.mrb[22].mxu0 }
 0x126   : > { %v1247_v21 = vpop.f32.mrb[23].mxu0  ;;  %v816_v22 = vpop.f32.mrb[20].mxu1 }
 0x127   : > { %v1173_v23 = vpack.c.bf16 %v848_v18, %v847_v17  ;;  %v1248_v24 = vadd.f32 %v1247_v21, %v1246_v20  ;;  %v720_v25 = vadd.f32 %v1245_v19, %v1560_v61  ;;  %v818_v26 = vpop.f32.mrb[21].mxu1 }
 0x128   : > { %v819_v27 = vpop.f32.mrb[22].mxu1 }
 0x129   : > { %1193 = vst [vmem:[%s1568_s29 + $0x20] sm:$0xff] %v1173_v23   ;;  %v817_v28 = vadd.f32 %v816_v22, %v720_v25  ;;  %v723_v29 = vadd.f32 %v1248_v24, %v1560_v61  ;;  %v821_v30 = vpop.f32.mrb[23].mxu1 }
 0x12b   : > { %v820_v31 = vadd.f32 %v819_v27, %v723_v29  ;;  %v1249_v32 = vpop.f32.mrb[24].mxu0  ;;  %v849_v34 = vmax.f32 %v817_v28, 0.0 }
 0x12c   : > { %v1250_v33 = vpop.f32.mrb[25].mxu0 }
 0x12d   : > { %v850_v35 = vmax.f32 %v820_v31, 0.0  ;;  %v1251_v36 = vadd.f32 %v1250_v33, %v1249_v32  ;;  %v1252_v37 = vpop.f32.mrb[26].mxu0 }
 0x12e   : > { %v1253_v38 = vpop.f32.mrb[27].mxu0  ;;  %v824_v39 = vpop.f32.mrb[24].mxu1 }
 0x12f   : > { %v1178_v40 = vpack.c.bf16 %v850_v35, %v849_v34  ;;  %v1254_v41 = vadd.f32 %v1253_v38, %v1252_v37  ;;  %v728_v42 = vadd.f32 %v1251_v36, %v1560_v61  ;;  %v826_v43 = vpop.f32.mrb[25].mxu1 }
 0x130   : > { %v827_v44 = vpop.f32.mrb[26].mxu1 }
 0x131   : > { %1194 = vst [vmem:[%s1568_s29 + $0x28] sm:$0xff] %v1178_v40   ;;  %v825_v45 = vadd.f32 %v824_v39, %v728_v42  ;;  %v731_v46 = vadd.f32 %v1254_v41, %v1560_v61  ;;  %v829_v47 = vpop.f32.mrb[27].mxu1 }
 0x133   : > { %v828_v48 = vadd.f32 %v827_v44, %v731_v46  ;;  %v1255_v49 = vpop.f32.mrb[28].mxu0  ;;  %v851_v51 = vmax.f32 %v825_v45, 0.0 }
 0x134   : > { %v1256_v50 = vpop.f32.mrb[29].mxu0 }
 0x135   : > { %v852_v52 = vmax.f32 %v828_v48, 0.0  ;;  %v1257_v53 = vadd.f32 %v1256_v50, %v1255_v49  ;;  %v1258_v54 = vpop.f32.mrb[30].mxu0 }
 0x136   : > { %v1259_v55 = vpop.f32.mrb[31].mxu0  ;;  %v832_v56 = vpop.f32.mrb[28].mxu1 }
 0x137   : > { %v1183_v57 = vpack.c.bf16 %v852_v52, %v851_v51  ;;  %v1260_v58 = vadd.f32 %v1259_v55, %v1258_v54  ;;  %v736_v59 = vadd.f32 %v1257_v53, %v1560_v61  ;;  %v834_v60 = vpop.f32.mrb[29].mxu1 }
 0x138   : > { %v835_v62 = vpop.f32.mrb[30].mxu1 }
 0x139   : > { %1195 = vst [vmem:[%s1568_s29 + $0x30] sm:$0xff] %v1183_v57   ;;  %v833_v63 = vadd.f32 %v832_v56, %v736_v59  ;;  %v739_v0 = vadd.f32 %v1260_v58, %v1560_v61  ;;  %v837_v1 = vpop.f32.mrb[31].mxu1 }
 0x13b   : > { %v836_v2 = vadd.f32 %v835_v62, %v739_v0  ;;  %v853_v3 = vmax.f32 %v833_v63, 0.0 }
 0x13d   : > { %v854_v4 = vmax.f32 %v836_v2, 0.0 }
 0x13f   : > { %v1188_v5 = vpack.c.bf16 %v854_v4, %v853_v3 }
 0x141   : > { %1196 = vst [vmem:[%s1568_s29 + $0x38] sm:$0xff] %v1188_v5  }
 0x142 PF: > { %s13_s14 = sadd.s32 1, %s1381_s14   ;;  %s1605_s12 = smov %s1377_s13 }
 0x143   : > { %p10_p5 = scmp.ge.s32.totalorder %s13_s14, 6   ;;  %s1606_s13 = smov %s1608_s15 }
 0x145   :  { %12 = sbr.rel (!%p10_p5) target bundleno = 2 (0x2), region = 68 }

// kernel: quantized_resnet50_forward.60
= control target key start
LH: loop header
LB: loop body
LE: loop exit
PB: predicated region body
PF: predicated region fallthrough
CT: control target
= control target key end

     0   :  { %s618_s1 = inlined_call_operand.vmem [shape: bf16[128,128], index: 1, kind: input, shape index: {}]   ;;  %s619_s0 = inlined_call_operand.vmem [shape: bf16[128,128], index: 0, kind: input, shape index: {}]   ;;  %s620_s2 = inlined_call_operand.vmem [shape: f32[1,128], index: 2, kind: input, shape index: {}]   ;;  %s621_s3 = inlined_call_operand.vmem [shape: bf16[128,128], index: 3, kind: output, shape index: {}]  }
   0x1   :  { %v507_v0 = vld [vmem:[%s618_s1] sm:$0xff]   ;;  %v508_v1 = vld [vmem:[%s618_s1 + $0x8] sm:$0xff]   ;;  %v509_v2 = vld [vmem:[%s618_s1 + $0x10] sm:$0xff]  }
   0x2   :  { %459 = vmatprep.subr.bf16.mxu0 %v507_v0  ;;  %491 = vmatprep.subr.bf16.mxu1 %v507_v0  ;;  %v510_v3 = vld [vmem:[%s618_s1 + $0x18] sm:$0xff]   ;;  %v515_v4 = vld [vmem:[%s619_s0] sm:$0xff]   ;;  %v512_v7 = vld [vmem:[%s618_s1 + $0x28] sm:$0xff]  }
   0x3   :  { %460 = vmatpush3.bf16.msra.mxu0 %v507_v0  ;;  %499 = vmatpush3.bf16.msra.mxu1 %v507_v0  ;;  %v516_v5 = vld [vmem:[%s619_s0 + $0x20] sm:$0xff]   ;;  %v513_v8 = vld [vmem:[%s618_s1 + $0x30] sm:$0xff]   ;;  %v514_v9 = vld [vmem:[%s618_s1 + $0x38] sm:$0xff]  }
   0x4   :  { %461 = vmatprep.subr.bf16.mxu0 %v508_v1  ;;  %492 = vmatprep.subr.bf16.mxu1 %v508_v1  ;;  %v511_v6 = vld [vmem:[%s618_s1 + $0x20] sm:$0xff]   ;;  %v517_v10 = vld [vmem:[%s619_s0 + $0x8] sm:$0xff]   ;;  %v519_v12 = vld [vmem:[%s619_s0 + $0x10] sm:$0xff]  }
   0x5   :  { %475 = vmatprep.mubr.bf16.mxu0 %v515_v4  ;;  %483 = vmatprep.mubr.bf16.mxu1 %v516_v5  ;;  %v518_v11 = vld [vmem:[%s619_s0 + $0x28] sm:$0xff]   ;;  %v520_v13 = vld [vmem:[%s619_s0 + $0x30] sm:$0xff]   ;;  %v521_v14 = vld [vmem:[%s619_s0 + $0x18] sm:$0xff]  }
   0x6   :  { %v522_v15 = vld [vmem:[%s619_s0 + $0x38] sm:$0xff]   ;;  %v347_v16 = vld [vmem:[%s620_s2] ss:$0 sm:$0xff] }
   0x7   :  { %462 = vmatpush3.bf16.msra.mxu0 %v508_v1  ;;  %500 = vmatpush3.bf16.msra.mxu1 %v508_v1 }
   0x8   :  { %463 = vmatprep.subr.bf16.mxu0 %v509_v2  ;;  %493 = vmatprep.subr.bf16.mxu1 %v509_v2 }
   0xb   :  { %464 = vmatpush3.bf16.msra.mxu0 %v509_v2  ;;  %501 = vmatpush3.bf16.msra.mxu1 %v509_v2 }
   0xc   :  { %465 = vmatprep.subr.bf16.mxu0 %v510_v3  ;;  %494 = vmatprep.subr.bf16.mxu1 %v510_v3 }
   0xf   :  { %466 = vmatpush3.bf16.msra.mxu0 %v510_v3  ;;  %502 = vmatpush3.bf16.msra.mxu1 %v510_v3 }
  0x10   :  { %467 = vmatprep.subr.bf16.mxu0 %v511_v6  ;;  %495 = vmatprep.subr.bf16.mxu1 %v511_v6 }
  0x13   :  { %468 = vmatpush3.bf16.msra.mxu0 %v511_v6  ;;  %503 = vmatpush3.bf16.msra.mxu1 %v511_v6 }
  0x14   :  { %469 = vmatprep.subr.bf16.mxu0 %v512_v7  ;;  %496 = vmatprep.subr.bf16.mxu1 %v512_v7 }
  0x17   :  { %470 = vmatpush3.bf16.msra.mxu0 %v512_v7  ;;  %504 = vmatpush3.bf16.msra.mxu1 %v512_v7 }
  0x18   :  { %471 = vmatprep.subr.bf16.mxu0 %v513_v8  ;;  %497 = vmatprep.subr.bf16.mxu1 %v513_v8 }
  0x1b   :  { %472 = vmatpush3.bf16.msra.mxu0 %v513_v8  ;;  %505 = vmatpush3.bf16.msra.mxu1 %v513_v8 }
  0x1c   :  { %473 = vmatprep.subr.bf16.mxu0 %v514_v9  ;;  %498 = vmatprep.subr.bf16.mxu1 %v514_v9 }
  0x1f   :  { %474 = vmatpush3.bf16.msra.mxu0 %v514_v9  ;;  %506 = vmatpush3.bf16.msra.mxu1 %v514_v9 }
  0x22   :  { %476 = vmatmul.mubr.bf16.vlgmr.msra.gmra.mrb[0].mxu0 %v517_v10  ;;  %484 = vmatmul.mubr.bf16.vlgmr.msra.gmra.mrb[0].mxu1 %v518_v11 }
  0x23   :  { %479 = vmatprep.mubr.bf16.mxu0 %v519_v12  ;;  %487 = vmatprep.mubr.bf16.mxu1 %v520_v13 }
  0x2a   :  { %480 = vmatmul.mubr.bf16.gmra.mrb[4].mxu0 %v521_v14  ;;  %488 = vmatmul.mubr.bf16.gmra.mrb[4].mxu1 %v522_v15 }
  0xf5   :  { %v477_v17 = vpop.f32.mrb[0].mxu0  ;;  %v485_v18 = vpop.f32.mrb[0].mxu1 }
  0xf6   :  { %v193_v19 = vadd.f32 %v477_v17, %v347_v16  ;;  %v225_v20 = vadd.f32 %v485_v18, %v347_v16  ;;  %v184_v21 = vpop.f32.mrb[1].mxu0  ;;  %v216_v22 = vpop.f32.mrb[1].mxu1 }
  0xf7   :  { %v185_v23 = vadd.f32 %v347_v16, %v184_v21  ;;  %v217_v24 = vadd.f32 %v347_v16, %v216_v22  ;;  %v478_v25 = vpop.f32.mrb[2].mxu0  ;;  %v486_v26 = vpop.f32.mrb[2].mxu1 }
  0xf8   :  { %v196_v27 = vadd.f32 %v478_v25, %v347_v16  ;;  %v228_v28 = vadd.f32 %v486_v26, %v347_v16  ;;  %v187_v29 = vpop.f32.mrb[3].mxu0  ;;  %v219_v30 = vpop.f32.mrb[3].mxu1  ;;  %v249_v33 = vmax.f32 %v193_v19, 0.0  ;;  %v257_v34 = vmax.f32 %v225_v20, 0.0 }
  0xf9   :  { %v188_v31 = vadd.f32 %v347_v16, %v187_v29  ;;  %v220_v32 = vadd.f32 %v347_v16, %v219_v30  ;;  %v247_v37 = vmax.f32 %v185_v23, 0.0  ;;  %v255_v38 = vmax.f32 %v217_v24, 0.0 }
  0xfa   :  { %v250_v35 = vmax.f32 %v196_v27, 0.0  ;;  %v258_v36 = vmax.f32 %v228_v28, 0.0 }
  0xfb   :  { %v248_v39 = vmax.f32 %v188_v31, 0.0  ;;  %v256_v40 = vmax.f32 %v220_v32, 0.0 }
  0xfc   :  { %v404_v41 = vpack.c.bf16 %v250_v35, %v249_v33  ;;  %v424_v42 = vpack.c.bf16 %v258_v36, %v257_v34 }
  0xfd   :  { %v399_v43 = vpack.c.bf16 %v248_v39, %v247_v37  ;;  %v419_v44 = vpack.c.bf16 %v256_v40, %v255_v38  ;;  %v481_v45 = vpop.f32.mrb[4].mxu0  ;;  %v489_v46 = vpop.f32.mrb[4].mxu1 }
  0xfe   :  { %436 = vst [vmem:[%s621_s3 + $0x8] sm:$0xff] %v404_v41   ;;  %440 = vst [vmem:[%s621_s3 + $0x28] sm:$0xff] %v424_v42   ;;  %v209_v47 = vadd.f32 %v481_v45, %v347_v16  ;;  %v241_v48 = vadd.f32 %v489_v46, %v347_v16  ;;  %v200_v49 = vpop.f32.mrb[5].mxu0  ;;  %v232_v50 = vpop.f32.mrb[5].mxu1 }
  0xff   :  { %400 = vst [vmem:[%s621_s3] sm:$0xff] %v399_v43   ;;  %439 = vst [vmem:[%s621_s3 + $0x20] sm:$0xff] %v419_v44   ;;  %v201_v51 = vadd.f32 %v347_v16, %v200_v49  ;;  %v233_v52 = vadd.f32 %v347_v16, %v232_v50  ;;  %v482_v53 = vpop.f32.mrb[6].mxu0  ;;  %v490_v54 = vpop.f32.mrb[6].mxu1 }
 0x100   :  { %v212_v55 = vadd.f32 %v482_v53, %v347_v16  ;;  %v244_v56 = vadd.f32 %v490_v54, %v347_v16  ;;  %v203_v57 = vpop.f32.mrb[7].mxu0  ;;  %v235_v58 = vpop.f32.mrb[7].mxu1  ;;  %v253_v61 = vmax.f32 %v209_v47, 0.0  ;;  %v261_v62 = vmax.f32 %v241_v48, 0.0 }
 0x101   :  { %v204_v59 = vadd.f32 %v347_v16, %v203_v57  ;;  %v236_v60 = vadd.f32 %v347_v16, %v235_v58  ;;  %v251_v1 = vmax.f32 %v201_v51, 0.0  ;;  %v259_v2 = vmax.f32 %v233_v52, 0.0 }
 0x102   :  { %v254_v63 = vmax.f32 %v212_v55, 0.0  ;;  %v262_v0 = vmax.f32 %v244_v56, 0.0 }
 0x103   :  { %v252_v3 = vmax.f32 %v204_v59, 0.0  ;;  %v260_v4 = vmax.f32 %v236_v60, 0.0 }
 0x104   :  { %v414_v5 = vpack.c.bf16 %v254_v63, %v253_v61  ;;  %v434_v6 = vpack.c.bf16 %v262_v0, %v261_v62 }
 0x105   :  { %v409_v7 = vpack.c.bf16 %v252_v3, %v251_v1  ;;  %v429_v8 = vpack.c.bf16 %v260_v4, %v259_v2 }
 0x106   :  { %438 = vst [vmem:[%s621_s3 + $0x18] sm:$0xff] %v414_v5   ;;  %442 = vst [vmem:[%s621_s3 + $0x38] sm:$0xff] %v434_v6  }
 0x107   :  { %437 = vst [vmem:[%s621_s3 + $0x10] sm:$0xff] %v409_v7   ;;  %441 = vst [vmem:[%s621_s3 + $0x30] sm:$0xff] %v429_v8  }

// kernel: quantized_resnet50_forward.59
= control target key start
LH: loop header
LB: loop body
LE: loop exit
PB: predicated region body
PF: predicated region fallthrough
CT: control target
= control target key end

     0   :  { %s602_s1 = inlined_call_operand.vmem [shape: bf16[128,128], index: 1, kind: input, shape index: {}]   ;;  %s603_s0 = inlined_call_operand.vmem [shape: bf16[128,128], index: 0, kind: input, shape index: {}]   ;;  %s604_s2 = inlined_call_operand.vmem [shape: f32[1,128], index: 2, kind: input, shape index: {}]   ;;  %s605_s3 = inlined_call_operand.vmem [shape: bf16[128,128], index: 3, kind: output, shape index: {}]  }
   0x1   :  { %v491_v0 = vld [vmem:[%s602_s1] sm:$0xff]   ;;  %v492_v1 = vld [vmem:[%s602_s1 + $0x8] sm:$0xff]   ;;  %v493_v2 = vld [vmem:[%s602_s1 + $0x10] sm:$0xff]  }
   0x2   :  { %443 = vmatprep.subr.bf16.mxu0 %v491_v0  ;;  %475 = vmatprep.subr.bf16.mxu1 %v491_v0  ;;  %v494_v3 = vld [vmem:[%s602_s1 + $0x18] sm:$0xff]   ;;  %v499_v4 = vld [vmem:[%s603_s0] sm:$0xff]   ;;  %v496_v7 = vld [vmem:[%s602_s1 + $0x28] sm:$0xff]  }
   0x3   :  { %444 = vmatpush3.bf16.msra.mxu0 %v491_v0  ;;  %483 = vmatpush3.bf16.msra.mxu1 %v491_v0  ;;  %v500_v5 = vld [vmem:[%s603_s0 + $0x20] sm:$0xff]   ;;  %v497_v8 = vld [vmem:[%s602_s1 + $0x30] sm:$0xff]   ;;  %v498_v9 = vld [vmem:[%s602_s1 + $0x38] sm:$0xff]  }
   0x4   :  { %445 = vmatprep.subr.bf16.mxu0 %v492_v1  ;;  %476 = vmatprep.subr.bf16.mxu1 %v492_v1  ;;  %v495_v6 = vld [vmem:[%s602_s1 + $0x20] sm:$0xff]   ;;  %v501_v10 = vld [vmem:[%s603_s0 + $0x8] sm:$0xff]   ;;  %v503_v12 = vld [vmem:[%s603_s0 + $0x10] sm:$0xff]  }
   0x5   :  { %459 = vmatprep.mubr.bf16.mxu0 %v499_v4  ;;  %467 = vmatprep.mubr.bf16.mxu1 %v500_v5  ;;  %v502_v11 = vld [vmem:[%s603_s0 + $0x28] sm:$0xff]   ;;  %v504_v13 = vld [vmem:[%s603_s0 + $0x30] sm:$0xff]   ;;  %v505_v14 = vld [vmem:[%s603_s0 + $0x18] sm:$0xff]  }
   0x6   :  { %v506_v15 = vld [vmem:[%s603_s0 + $0x38] sm:$0xff]   ;;  %v331_v17 = vld [vmem:[%s604_s2] ss:$0 sm:$0xff] }
   0x7   :  { %446 = vmatpush3.bf16.msra.mxu0 %v492_v1  ;;  %484 = vmatpush3.bf16.msra.mxu1 %v492_v1 }
   0x8   :  { %447 = vmatprep.subr.bf16.mxu0 %v493_v2  ;;  %477 = vmatprep.subr.bf16.mxu1 %v493_v2 }
   0xb   :  { %448 = vmatpush3.bf16.msra.mxu0 %v493_v2  ;;  %485 = vmatpush3.bf16.msra.mxu1 %v493_v2 }
   0xc   :  { %449 = vmatprep.subr.bf16.mxu0 %v494_v3  ;;  %478 = vmatprep.subr.bf16.mxu1 %v494_v3 }
   0xf   :  { %450 = vmatpush3.bf16.msra.mxu0 %v494_v3  ;;  %486 = vmatpush3.bf16.msra.mxu1 %v494_v3 }
  0x10   :  { %451 = vmatprep.subr.bf16.mxu0 %v495_v6  ;;  %479 = vmatprep.subr.bf16.mxu1 %v495_v6 }
  0x13   :  { %452 = vmatpush3.bf16.msra.mxu0 %v495_v6  ;;  %487 = vmatpush3.bf16.msra.mxu1 %v495_v6 }
  0x14   :  { %453 = vmatprep.subr.bf16.mxu0 %v496_v7  ;;  %480 = vmatprep.subr.bf16.mxu1 %v496_v7 }
  0x17   :  { %454 = vmatpush3.bf16.msra.mxu0 %v496_v7  ;;  %488 = vmatpush3.bf16.msra.mxu1 %v496_v7 }
  0x18   :  { %455 = vmatprep.subr.bf16.mxu0 %v497_v8  ;;  %481 = vmatprep.subr.bf16.mxu1 %v497_v8 }
  0x1b   :  { %456 = vmatpush3.bf16.msra.mxu0 %v497_v8  ;;  %489 = vmatpush3.bf16.msra.mxu1 %v497_v8 }
  0x1c   :  { %457 = vmatprep.subr.bf16.mxu0 %v498_v9  ;;  %482 = vmatprep.subr.bf16.mxu1 %v498_v9 }
  0x1f   :  { %458 = vmatpush3.bf16.msra.mxu0 %v498_v9  ;;  %490 = vmatpush3.bf16.msra.mxu1 %v498_v9 }
  0x22   :  { %460 = vmatmul.mubr.bf16.vlgmr.msra.gmra.mrb[0].mxu0 %v501_v10  ;;  %468 = vmatmul.mubr.bf16.vlgmr.msra.gmra.mrb[0].mxu1 %v502_v11 }
  0x23   :  { %463 = vmatprep.mubr.bf16.mxu0 %v503_v12  ;;  %471 = vmatprep.mubr.bf16.mxu1 %v504_v13 }
  0x2a   :  { %464 = vmatmul.mubr.bf16.gmra.mrb[4].mxu0 %v505_v14  ;;  %472 = vmatmul.mubr.bf16.gmra.mrb[4].mxu1 %v506_v15 }
  0xf5   :  { %v461_v16 = vpop.f32.mrb[0].mxu0  ;;  %v469_v18 = vpop.f32.mrb[0].mxu1 }
  0xf6   :  { %v184_v19 = vpop.f32.mrb[1].mxu0  ;;  %v216_v20 = vpop.f32.mrb[1].mxu1  ;;  %v193_v23 = vadd.f32 %v461_v16, %v331_v17  ;;  %v225_v24 = vadd.f32 %v469_v18, %v331_v17 }
  0xf7   :  { %v462_v21 = vpop.f32.mrb[2].mxu0  ;;  %v470_v22 = vpop.f32.mrb[2].mxu1  ;;  %v185_v29 = vadd.f32 %v331_v17, %v184_v19  ;;  %v217_v30 = vadd.f32 %v331_v17, %v216_v20 }
  0xf8   :  { %v196_v25 = vadd.f32 %v462_v21, %v331_v17  ;;  %v228_v26 = vadd.f32 %v470_v22, %v331_v17  ;;  %v187_v27 = vpop.f32.mrb[3].mxu0  ;;  %v219_v28 = vpop.f32.mrb[3].mxu1 }
  0xf9   :  { %v188_v31 = vadd.f32 %v331_v17, %v187_v27  ;;  %v220_v32 = vadd.f32 %v331_v17, %v219_v28 }
  0xfa   :  { %v388_v33 = vpack.c.bf16 %v196_v25, %v193_v23  ;;  %v408_v34 = vpack.c.bf16 %v228_v26, %v225_v24 }
  0xfb   :  { %v383_v35 = vpack.c.bf16 %v188_v31, %v185_v29  ;;  %v403_v36 = vpack.c.bf16 %v220_v32, %v217_v30 }
  0xfc   :  { %420 = vst [vmem:[%s605_s3 + $0x8] sm:$0xff] %v388_v33   ;;  %424 = vst [vmem:[%s605_s3 + $0x28] sm:$0xff] %v408_v34  }
  0xfd   :  { %384 = vst [vmem:[%s605_s3] sm:$0xff] %v383_v35   ;;  %423 = vst [vmem:[%s605_s3 + $0x20] sm:$0xff] %v403_v36   ;;  %v465_v37 = vpop.f32.mrb[4].mxu0  ;;  %v473_v38 = vpop.f32.mrb[4].mxu1 }
  0xfe   :  { %v200_v39 = vpop.f32.mrb[5].mxu0  ;;  %v232_v40 = vpop.f32.mrb[5].mxu1  ;;  %v209_v43 = vadd.f32 %v465_v37, %v331_v17  ;;  %v241_v44 = vadd.f32 %v473_v38, %v331_v17 }
  0xff   :  { %v466_v41 = vpop.f32.mrb[6].mxu0  ;;  %v474_v42 = vpop.f32.mrb[6].mxu1  ;;  %v201_v49 = vadd.f32 %v331_v17, %v200_v39  ;;  %v233_v50 = vadd.f32 %v331_v17, %v232_v40 }
 0x100   :  { %v212_v45 = vadd.f32 %v466_v41, %v331_v17  ;;  %v244_v46 = vadd.f32 %v474_v42, %v331_v17  ;;  %v203_v47 = vpop.f32.mrb[7].mxu0  ;;  %v235_v48 = vpop.f32.mrb[7].mxu1 }
 0x101   :  { %v204_v51 = vadd.f32 %v331_v17, %v203_v47  ;;  %v236_v52 = vadd.f32 %v331_v17, %v235_v48 }
 0x102   :  { %v398_v53 = vpack.c.bf16 %v212_v45, %v209_v43  ;;  %v418_v54 = vpack.c.bf16 %v244_v46, %v241_v44 }
 0x103   :  { %v393_v55 = vpack.c.bf16 %v204_v51, %v201_v49  ;;  %v413_v56 = vpack.c.bf16 %v236_v52, %v233_v50 }
 0x104   :  { %422 = vst [vmem:[%s605_s3 + $0x18] sm:$0xff] %v398_v53   ;;  %426 = vst [vmem:[%s605_s3 + $0x38] sm:$0xff] %v418_v54  }
 0x105   :  { %421 = vst [vmem:[%s605_s3 + $0x10] sm:$0xff] %v393_v55   ;;  %425 = vst [vmem:[%s605_s3 + $0x30] sm:$0xff] %v413_v56  }

// kernel: quantized_resnet50_forward.58
= control target key start
LH: loop header
LB: loop body
LE: loop exit
PB: predicated region body
PF: predicated region fallthrough
CT: control target
= control target key end

     0   :  { %vm116_vm0 = vsmask.f32 3328  ;;  %vm117_vm1 = vsmask.f32 7440  ;;  %vm1111_vm2 = vcmask 1042432   ;;  %vm1112_vm3 = vcmask 1046532   ;;  %s3594_s0 = inlined_call_operand.vmem [shape: bf16[2,18,18,128], index: 0, kind: input, shape index: {}]   ;;  %s3595_s1 = inlined_call_operand.vmem [shape: bf16[2,16,16,128], index: 1, kind: output, shape index: {}]  }
   0x1   :  { %v2342_v0 = vld [vmem:[%s3594_s0] sm:$0xf]  ;;  %v2347_v1 = vld [vmem:[%s3594_s0 + $0x4] sm:$0xf]  ;;  %v2352_v2 = vld [vmem:[%s3594_s0 + $0x8] sm:$0x1] }
   0x2   :  { %v2357_v3 = vld [vmem:[%s3594_s0 + $0xc] sm:$0xf]  ;;  %v2362_v4 = vld [vmem:[%s3594_s0 + $0x10] sm:$0xf]  ;;  %v120_v5 = vshrl.u32 %v2342_v0, 16  ;;  %v123_v6 = vshll.u32 %v2342_v0, 16  ;;  %vm2390_vm4 = vmor %vm116_vm0, %vm117_vm1 }
   0x3   :  { %v2369_v7 = vld [vmem:[%s3594_s0 + $0x14] sm:$0x1]  ;;  %v129_v8 = vshll.u32 %v2347_v1, 16  ;;  %v133_v9 = vshrl.u32 %v2347_v1, 16  ;;  %v139_v10 = vshll.u32 %v2352_v2, 16  ;;  %v144_v11 = vshrl.u32 %v2357_v3, 16  ;;  %vm2413_vm5 = vmor %vm1111_vm2, %vm1112_vm3 }
   0x4   :  { %v2378_v12 = vld [vmem:[%s3594_s0 + $0x18] sm:$0xf]  ;;  %v122_v13 = vrot.slane %v120_v5, 4  ;;  %v125_v14 = vrot.slane %v123_v6, 5  ;;  %v147_v15 = vshll.u32 %v2357_v3, 16  ;;  %v153_v16 = vshll.u32 %v2362_v4, 16 }
   0x5   :  { %v2385_v17 = vld [vmem:[%s3594_s0 + $0x1c] sm:$0xf]  ;;  %v131_v18 = vrot.slane %v129_v8, 5  ;;  %v135_v19 = vrot.slane %v133_v9, 4  ;;  %v141_v20 = vrot.slane %v139_v10, 5  ;;  %v146_v21 = vrot.slane %v144_v11, 4 }
   0x6   :  { %v126_v22 = vor.u32 %v125_v14, %v122_v13  ;;  %v149_v23 = vrot.slane %v147_v15, 5  ;;  %v155_v24 = vrot.slane %v153_v16, 5  ;;  %v157_v25 = vshrl.u32 %v2362_v4, 16  ;;  %v16_v31 = vld [vmem:[%s3594_s0 + $0x20] sm:$0x1] }
   0x7   :  { %v136_v27 = vor.u32 %v135_v19, %v131_v18  ;;  %v163_v28 = vshll.u32 %v2369_v7, 16  ;;  %v168_v29 = vshrl.u32 %v2378_v12, 16  ;;  %v171_v30 = vshll.u32 %v2378_v12, 16 }
   0x8   :  { %v127_v32 = vrot.slane %v126_v22, 4  ;;  %v150_v33 = vor.u32 %v149_v23, %v146_v21  ;;  %v159_v34 = vrot.slane %v157_v25, 4  ;;  %v177_v35 = vshll.u32 %v2385_v17, 16 }
   0x9   :  { %v137_v36 = vrot.slane %v136_v27, 4  ;;  %v165_v37 = vrot.slane %v163_v28, 5  ;;  %v170_v38 = vrot.slane %v168_v29, 4  ;;  %v173_v39 = vrot.slane %v171_v30, 5 }
   0xa   :  { %v132_v40 = vsel %vm2390_vm4, %v127_v32, %v131_v18  ;;  %v151_v41 = vrot.slane %v150_v33, 4  ;;  %v160_v42 = vor.u32 %v159_v34, %v155_v24  ;;  %v179_v43 = vrot.slane %v177_v35, 5  ;;  %v2440_v18 = vld [vmem:[%s3594_s0 + $0x24] sm:$0xf] }
   0xb   :  { %v142_v44 = vsel %vm2390_vm4, %v137_v36, %v141_v20  ;;  %v174_v45 = vor.u32 %v173_v39, %v170_v38  ;;  %v181_v46 = vshrl.u32 %v2385_v17, 16  ;;  %v187_v47 = vshll.u32 %v16_v31, 16 }
   0xc   :  { %v156_v48 = vsel %vm2390_vm4, %v151_v41, %v155_v24  ;;  %v161_v49 = vrot.slane %v160_v42, 4  ;;  %v951_v50 = vmax.bf16 %v132_v40, %v2342_v0  ;;  %v952_v51 = vmax.bf16 %v142_v44, %v2347_v1 }
   0xd   :  { %v175_v52 = vrot.slane %v174_v45, 4  ;;  %v183_v53 = vrot.slane %v181_v46, 4  ;;  %v189_v54 = vrot.slane %v187_v47, 5  ;;  %v953_v55 = vmax.bf16 %v156_v48, %v2357_v3 }
   0xe   :  { %v166_v57 = vsel %vm2390_vm4, %v161_v49, %v165_v37  ;;  %v2070_v58 = vrot.slane %v2342_v0, 9  ;;  %v1116_v59 = vrot.slane %v2347_v1, 5  ;;  %v1119_v60 = vrot.slane %v2352_v2, 5 }
   0xf   :  { %v180_v61 = vsel %vm2390_vm4, %v175_v52, %v179_v43  ;;  %v184_v62 = vor.u32 %v183_v53, %v179_v43  ;;  %v954_v63 = vmax.bf16 %v166_v57, %v2362_v4  ;;  %v2071_v5 = vrot.slane %v2357_v3, 9 }
  0x10   :  { %v955_v6 = vmax.bf16 %v180_v61, %v2378_v12  ;;  %v1117_v8 = vsel %vm2413_vm5, %v2070_v58, %v1116_v59  ;;  %v1118_v9 = vrot.slane %v1116_v59, 4  ;;  %v1123_v0 = vrot.slane %v2362_v4, 5 }
  0x11   :  { %v185_v10 = vrot.slane %v184_v62, 4  ;;  %v1126_v1 = vrot.slane %v2369_v7, 5  ;;  %v2072_v2 = vrot.slane %v2378_v12, 9  ;;  %v1130_v11 = vrot.slane %v2385_v17, 5 }
  0x12   :  { %v1120_v13 = vsel %vm2413_vm5, %v1118_v9, %v1119_v60  ;;  %v1124_v14 = vsel %vm2413_vm5, %v2071_v5, %v1123_v0  ;;  %v1125_v15 = vrot.slane %v1123_v0, 4  ;;  %v1133_v16 = vrot.slane %v16_v31, 5  ;;  %v2458_v31 = vld [vmem:[%s3594_s0 + $0x28] sm:$0xf] }
  0x13   :  { %v190_v7 = vsel %vm2390_vm4, %v185_v10, %v189_v54  ;;  %v2446_v19 = vsel %vm2413_vm5, %v2072_v2, %v1130_v11  ;;  %v1132_v20 = vrot.slane %v1130_v11, 4  ;;  %v1402_v21 = vmax.bf16 %v1117_v8, %v951_v50  ;;  %v2480_v8 = vld [vmem:[%s3594_s0 + $0x30] sm:$0xf] }
  0x14   :  { %v956_v22 = vmax.bf16 %v190_v7, %v2385_v17  ;;  %v1127_v23 = vsel %vm2413_vm5, %v1125_v15, %v1126_v1  ;;  %v1403_v24 = vmax.bf16 %v1120_v13, %v952_v51  ;;  %v1404_v25 = vmax.bf16 %v1124_v14, %v953_v55  ;;  %v2493_v15 = vld [vmem:[%s3594_s0 + $0x34] sm:$0xf] }
  0x15   :  { %v1134_v27 = vsel %vm2413_vm5, %v1132_v20, %v1133_v16  ;;  %v1405_v28 = vmax.bf16 %v1127_v23, %v954_v63  ;;  %v1406_v29 = vmax.bf16 %v2446_v19, %v955_v6  ;;  %v1466_v30 = vmax.bf16 %v1402_v21, %v2357_v3  ;;  %v19_v3 = vld [vmem:[%s3594_s0 + $0x2c] sm:$0x1] }
  0x16   :  { %v1407_v32 = vmax.bf16 %v1134_v27, %v956_v22  ;;  %v1467_v33 = vmax.bf16 %v1403_v24, %v2362_v4  ;;  %v1468_v34 = vmax.bf16 %v1404_v25, %v2378_v12  ;;  %v192_v35 = vshrl.u32 %v2440_v18, 16 }
  0x17   :  { %v1469_v36 = vmax.bf16 %v1405_v28, %v2385_v17  ;;  %v1470_v37 = vmax.bf16 %v1406_v29, %v2440_v18  ;;  %v1582_v38 = vmax.bf16 %v1466_v30, %v156_v48  ;;  %v195_v39 = vshll.u32 %v2440_v18, 16  ;;  %v22_v29 = vld [vmem:[%s3594_s0 + $0x38] sm:$0x1] }
  0x18   :  { %v1471_v40 = vmax.bf16 %v1407_v32, %v2458_v31  ;;  %v1583_v41 = vmax.bf16 %v1467_v33, %v166_v57  ;;  %v1584_v42 = vmax.bf16 %v1468_v34, %v180_v61  ;;  %v194_v4 = vrot.slane %v192_v35, 4 }
  0x19   :  { %v1585_v43 = vmax.bf16 %v1469_v36, %v190_v7  ;;  %v1670_v44 = vmax.bf16 %v1582_v38, %v1124_v14  ;;  %v197_v45 = vrot.slane %v195_v39, 5  ;;  %v201_v46 = vshll.u32 %v2458_v31, 16 }
  0x1a   :  { %v1671_v47 = vmax.bf16 %v1583_v41, %v1127_v23  ;;  %v1672_v49 = vmax.bf16 %v1584_v42, %v2446_v19  ;;  %v205_v48 = vshrl.u32 %v2458_v31, 16  ;;  %v211_v50 = vshll.u32 %v19_v3, 16 }
  0x1b   :  { %v1673_v51 = vmax.bf16 %v1585_v43, %v1134_v27  ;;  %v1734_v52 = vmax.bf16 %v1670_v44, %v2378_v12  ;;  %v198_v53 = vor.u32 %v197_v45, %v194_v4  ;;  %v203_v54 = vrot.slane %v201_v46, 5  ;;  %v2516_v4 = vld [vmem:[%s3594_s0 + $0x3c] sm:$0xf]  ;;  %v2521_v43 = vld [vmem:[%s3594_s0 + $0x40] sm:$0xf] }
  0x1c   :  { %v1735_v55 = vmax.bf16 %v1671_v47, %v2385_v17  ;;  %v207_v57 = vrot.slane %v205_v48, 4  ;;  %v213_v58 = vrot.slane %v211_v50, 5  ;;  %v2073_v59 = vrot.slane %v2440_v18, 9 }
  0x1d   :  { %v1850_v60 = vmax.bf16 %v1734_v52, %v180_v61  ;;  %v199_v62 = vrot.slane %v198_v53, 4  ;;  %v1137_v63 = vrot.slane %v2458_v31, 5  ;;  %v1140_v5 = vrot.slane %v19_v3, 5 }
  0x1e   :  { %v1851_v6 = vmax.bf16 %v1735_v55, %v190_v7  ;;  %v208_v12 = vor.u32 %v207_v57, %v203_v54  ;;  %v1736_v9 = vmax.bf16 %v1672_v49, %v2440_v18  ;;  %v1737_v17 = vmax.bf16 %v1673_v51, %v2458_v31 }
  0x1f   :  { %v1938_v0 = vmax.bf16 %v1850_v60, %v2446_v19  ;;  %v204_v61 = vsel %vm2390_vm4, %v199_v62, %v203_v54  ;;  %v1138_v10 = vsel %vm2413_vm5, %v2073_v59, %v1137_v63  ;;  %v1139_v1 = vrot.slane %v1137_v63, 4 }
  0x20   :  { %v1939_v2 = vmax.bf16 %v1851_v6, %v1134_v27  ;;  %v209_v11 = vrot.slane %v208_v12, 4  ;;  %v957_v13 = vmax.bf16 %v204_v61, %v2440_v18  ;;  %v1586_v14 = vmax.bf16 %v1470_v37, %v204_v61  ;;  %v25_v6 = vld [vmem:[%s3594_s0 + $0x44] sm:$0x1] }
  0x21   :  { %v1141_v16 = vsel %vm2413_vm5, %v1139_v1, %v1140_v5  ;;  %v1852_v7 = vmax.bf16 %v1736_v9, %v204_v61  ;;  %v216_v19 = vshrl.u32 %v2480_v8, 16  ;;  %v219_v20 = vshll.u32 %v2480_v8, 16 }
  0x22   :  { %v2266_v21 = vcombine.low %v1938_v0, %v1939_v2  ;;  %v214_v22 = vsel %vm2390_vm4, %v209_v11, %v213_v58  ;;  %v1408_v23 = vmax.bf16 %v1138_v10, %v957_v13  ;;  %v1674_v18 = vmax.bf16 %v1586_v14, %v1138_v10 }
  0x23   :  { %v958_v24 = vmax.bf16 %v214_v22, %v2458_v31  ;;  %v1587_v25 = vmax.bf16 %v1471_v40, %v214_v22  ;;  %v1853_v27 = vmax.bf16 %v1737_v17, %v214_v22  ;;  %v1940_v28 = vmax.bf16 %v1852_v7, %v1138_v10 }
  0x24   :  { %2110 = vst [vmem:[%s3595_s1] sm:$0xff] %v2266_v21   ;;  %v1472_v30 = vmax.bf16 %v1408_v23, %v2480_v8  ;;  %v218_v32 = vrot.slane %v216_v19, 4  ;;  %v221_v33 = vrot.slane %v219_v20, 5  ;;  %v225_v34 = vshll.u32 %v2493_v15, 16 }
  0x25   :  { %v1409_v35 = vmax.bf16 %v1141_v16, %v958_v24  ;;  %v1675_v36 = vmax.bf16 %v1587_v25, %v1141_v16  ;;  %v1941_v31 = vmax.bf16 %v1853_v27, %v1141_v16  ;;  %v229_v37 = vshrl.u32 %v2493_v15, 16 }
  0x26   :  { %v222_v38 = vor.u32 %v221_v33, %v218_v32  ;;  %v227_v3 = vrot.slane %v225_v34, 5  ;;  %v235_v39 = vshll.u32 %v22_v29, 16  ;;  %v2074_v40 = vrot.slane %v2480_v8, 9 }
  0x27   :  { %v1473_v41 = vmax.bf16 %v1409_v35, %v2493_v15  ;;  %v2267_v42 = vcombine.low %v1940_v28, %v1941_v31  ;;  %v231_v44 = vrot.slane %v229_v37, 4  ;;  %v1144_v45 = vrot.slane %v2493_v15, 5 }
  0x28   :  { %v223_v46 = vrot.slane %v222_v38, 4  ;;  %v237_v47 = vrot.slane %v235_v39, 5  ;;  %v1147_v49 = vrot.slane %v22_v29, 5  ;;  %v1738_v48 = vmax.bf16 %v1674_v18, %v2480_v8  ;;  %v2553_v29 = vld [vmem:[%s3594_s0 + $0x48] sm:$0xf] }
  0x29   :  { %2268 = vst [vmem:[%s3595_s1 + $0x8] sm:$0xff] %v2267_v42   ;;  %v232_v50 = vor.u32 %v231_v44, %v227_v3  ;;  %v1145_v51 = vsel %vm2413_vm5, %v2074_v40, %v1144_v45  ;;  %v1146_v52 = vrot.slane %v1144_v45, 4  ;;  %v1739_v53 = vmax.bf16 %v1675_v36, %v2493_v15  ;;  %v2568_v39 = vld [vmem:[%s3594_s0 + $0x4c] sm:$0xf] }
  0x2a   :  { %v228_v54 = vsel %vm2390_vm4, %v223_v46, %v227_v3  ;;  %v240_v55 = vshrl.u32 %v2516_v4, 16  ;;  %v243_v57 = vshll.u32 %v2516_v4, 16  ;;  %v249_v58 = vshll.u32 %v2521_v43, 16 }
  0x2b   :  { %v233_v59 = vrot.slane %v232_v50, 4  ;;  %v959_v60 = vmax.bf16 %v228_v54, %v2480_v8  ;;  %v1148_v62 = vsel %vm2413_vm5, %v1146_v52, %v1147_v49  ;;  %v1588_v63 = vmax.bf16 %v1472_v30, %v228_v54  ;;  %v28_v49 = vld [vmem:[%s3594_s0 + $0x50] sm:$0x1] }
  0x2c   :  { %v1854_v5 = vmax.bf16 %v1738_v48, %v228_v54  ;;  %v242_v12 = vrot.slane %v240_v55, 4  ;;  %v245_v9 = vrot.slane %v243_v57, 5  ;;  %v251_v17 = vrot.slane %v249_v58, 5 }
  0x2d   :  { %v238_v0 = vsel %vm2390_vm4, %v233_v59, %v237_v47  ;;  %v1410_v61 = vmax.bf16 %v1145_v51, %v959_v60  ;;  %v1676_v10 = vmax.bf16 %v1588_v63, %v1145_v51  ;;  %v253_v1 = vshrl.u32 %v2521_v43, 16  ;;  %v2587_v63 = vld [vmem:[%s3594_s0 + $0x54] sm:$0xf] }
  0x2e   :  { %v960_v8 = vmax.bf16 %v238_v0, %v2493_v15  ;;  %v1589_v2 = vmax.bf16 %v1473_v41, %v238_v0  ;;  %v1855_v11 = vmax.bf16 %v1739_v53, %v238_v0  ;;  %v1942_v13 = vmax.bf16 %v1854_v5, %v1145_v51 }
  0x2f   :  { %v1474_v14 = vmax.bf16 %v1410_v61, %v2516_v4  ;;  %v246_v16 = vor.u32 %v245_v9, %v242_v12  ;;  %v255_v7 = vrot.slane %v253_v1, 4  ;;  %v259_v19 = vshll.u32 %v25_v6, 16 }
  0x30   :  { %v1411_v20 = vmax.bf16 %v1148_v62, %v960_v8  ;;  %v1677_v21 = vmax.bf16 %v1589_v2, %v1148_v62  ;;  %v1943_v22 = vmax.bf16 %v1855_v11, %v1148_v62  ;;  %v2075_v23 = vrot.slane %v2516_v4, 9 }
  0x31   :  { %v247_v18 = vrot.slane %v246_v16, 4  ;;  %v256_v24 = vor.u32 %v255_v7, %v251_v17  ;;  %v261_v25 = vrot.slane %v259_v19, 5  ;;  %v1151_v27 = vrot.slane %v2521_v43, 5 }
  0x32   :  { %v1475_v15 = vmax.bf16 %v1411_v20, %v2521_v43  ;;  %v2269_v28 = vcombine.low %v1942_v13, %v1943_v22  ;;  %v1154_v30 = vrot.slane %v25_v6, 5  ;;  %v1740_v32 = vmax.bf16 %v1676_v10, %v2516_v4  ;;  %v2594_v10 = vld [vmem:[%s3594_s0 + $0x58] sm:$0xf] }
  0x33   :  { %v252_v33 = vsel %vm2390_vm4, %v247_v18, %v251_v17  ;;  %v257_v34 = vrot.slane %v256_v24, 4  ;;  %v1152_v35 = vsel %vm2413_vm5, %v2075_v23, %v1151_v27  ;;  %v1153_v36 = vrot.slane %v1151_v27, 4  ;;  %v31_v23 = vld [vmem:[%s3594_s0 + $0x5c] sm:$0x1] }
  0x34   :  { %2270 = vst [vmem:[%s3595_s1 + $0x10] sm:$0xff] %v2269_v28   ;;  %v961_v31 = vmax.bf16 %v252_v33, %v2516_v4  ;;  %v1590_v37 = vmax.bf16 %v1474_v14, %v252_v33  ;;  %v1741_v38 = vmax.bf16 %v1677_v21, %v2521_v43  ;;  %v1856_v3 = vmax.bf16 %v1740_v32, %v252_v33 }
  0x35   :  { %v262_v40 = vsel %vm2390_vm4, %v257_v34, %v261_v25  ;;  %v1155_v41 = vsel %vm2413_vm5, %v1153_v36, %v1154_v30  ;;  %v264_v42 = vshrl.u32 %v2553_v29, 16  ;;  %v267_v44 = vshll.u32 %v2553_v29, 16 }
  0x36   :  { %v962_v4 = vmax.bf16 %v262_v40, %v2521_v43  ;;  %v1412_v45 = vmax.bf16 %v1152_v35, %v961_v31  ;;  %v1591_v46 = vmax.bf16 %v1475_v15, %v262_v40  ;;  %v1678_v47 = vmax.bf16 %v1590_v37, %v1152_v35 }
  0x37   :  { %v1857_v48 = vmax.bf16 %v1741_v38, %v262_v40  ;;  %v1944_v50 = vmax.bf16 %v1856_v3, %v1152_v35  ;;  %v266_v51 = vrot.slane %v264_v42, 4  ;;  %v269_v52 = vrot.slane %v267_v44, 5 }
  0x38   :  { %v1413_v53 = vmax.bf16 %v1155_v41, %v962_v4  ;;  %v1476_v54 = vmax.bf16 %v1412_v45, %v2553_v29  ;;  %v1679_v55 = vmax.bf16 %v1591_v46, %v1155_v41  ;;  %v273_v57 = vshll.u32 %v2568_v39, 16  ;;  %v2623_v46 = vld [vmem:[%s3594_s0 + $0x60] sm:$0xf] }
  0x39   :  { %v1945_v58 = vmax.bf16 %v1857_v48, %v1155_v41  ;;  %v270_v59 = vor.u32 %v269_v52, %v266_v51  ;;  %v277_v43 = vshrl.u32 %v2568_v39, 16  ;;  %v283_v60 = vshll.u32 %v28_v49, 16 }
  0x3a   :  { %v1477_v62 = vmax.bf16 %v1413_v53, %v2568_v39  ;;  %v275_v5 = vrot.slane %v273_v57, 5  ;;  %v2076_v6 = vrot.slane %v2553_v29, 9  ;;  %v1158_v12 = vrot.slane %v2568_v39, 5  ;;  %v2631_v53 = vld [vmem:[%s3594_s0 + $0x64] sm:$0xf] }
  0x3b   :  { %v2271_v9 = vcombine.low %v1944_v50, %v1945_v58  ;;  %v271_v17 = vrot.slane %v270_v59, 4  ;;  %v279_v0 = vrot.slane %v277_v43, 4  ;;  %v285_v61 = vrot.slane %v283_v60, 5 }
  0x3c   :  { %v1159_v1 = vsel %vm2413_vm5, %v2076_v6, %v1158_v12  ;;  %v1160_v8 = vrot.slane %v1158_v12, 4  ;;  %v1161_v2 = vrot.slane %v28_v49, 5  ;;  %v1742_v11 = vmax.bf16 %v1678_v47, %v2553_v29 }
  0x3d   :  { %2272 = vst [vmem:[%s3595_s1 + $0x18] sm:$0xff] %v2271_v9   ;;  %v276_v13 = vsel %vm2390_vm4, %v271_v17, %v275_v5  ;;  %v280_v14 = vor.u32 %v279_v0, %v275_v5  ;;  %v1743_v16 = vmax.bf16 %v1679_v55, %v2568_v39  ;;  %v288_v7 = vshrl.u32 %v2587_v63, 16 }
  0x3e   :  { %v963_v19 = vmax.bf16 %v276_v13, %v2553_v29  ;;  %v1162_v20 = vsel %vm2413_vm5, %v1160_v8, %v1161_v2  ;;  %v1592_v21 = vmax.bf16 %v1476_v54, %v276_v13  ;;  %v1858_v22 = vmax.bf16 %v1742_v11, %v276_v13 }
  0x3f   :  { %v281_v18 = vrot.slane %v280_v14, 4  ;;  %v290_v24 = vrot.slane %v288_v7, 4  ;;  %v291_v25 = vshll.u32 %v2587_v63, 16  ;;  %v297_v27 = vshll.u32 %v2594_v10, 16 }
  0x40   :  { %v1414_v15 = vmax.bf16 %v1159_v1, %v963_v19  ;;  %v1680_v28 = vmax.bf16 %v1592_v21, %v1159_v1  ;;  %v1946_v30 = vmax.bf16 %v1858_v22, %v1159_v1  ;;  %v301_v29 = vshrl.u32 %v2594_v10, 16 }
  0x41   :  { %v286_v32 = vsel %vm2390_vm4, %v281_v18, %v285_v61  ;;  %v293_v33 = vrot.slane %v291_v25, 5  ;;  %v299_v34 = vrot.slane %v297_v27, 5  ;;  %v307_v35 = vshll.u32 %v31_v23, 16  ;;  %v2665_v27 = vld [vmem:[%s3594_s0 + $0x70] sm:$0xf] }
  0x42   :  { %v964_v36 = vmax.bf16 %v286_v32, %v2568_v39  ;;  %v1478_v31 = vmax.bf16 %v1414_v15, %v2587_v63  ;;  %v1593_v37 = vmax.bf16 %v1477_v62, %v286_v32  ;;  %v1859_v38 = vmax.bf16 %v1743_v16, %v286_v32 }
  0x43   :  { %v294_v3 = vor.u32 %v293_v33, %v290_v24  ;;  %v303_v40 = vrot.slane %v301_v29, 4  ;;  %v309_v41 = vrot.slane %v307_v35, 5  ;;  %v2077_v42 = vrot.slane %v2587_v63, 9 }
  0x44   :  { %v1415_v44 = vmax.bf16 %v1162_v20, %v964_v36  ;;  %v1681_v4 = vmax.bf16 %v1593_v37, %v1162_v20  ;;  %v1947_v45 = vmax.bf16 %v1859_v38, %v1162_v20  ;;  %v1165_v47 = vrot.slane %v2594_v10, 5 }
  0x45   :  { %v295_v39 = vrot.slane %v294_v3, 4  ;;  %v304_v49 = vor.u32 %v303_v40, %v299_v34  ;;  %v1168_v48 = vrot.slane %v31_v23, 5  ;;  %v1744_v50 = vmax.bf16 %v1680_v28, %v2587_v63 }
  0x46   :  { %v1479_v51 = vmax.bf16 %v1415_v44, %v2594_v10  ;;  %v2273_v52 = vcombine.low %v1946_v30, %v1947_v45  ;;  %v1166_v54 = vsel %vm2413_vm5, %v2077_v42, %v1165_v47  ;;  %v1167_v55 = vrot.slane %v1165_v47, 4 }
  0x47   :  { %v300_v57 = vsel %vm2390_vm4, %v295_v39, %v299_v34  ;;  %v305_v58 = vrot.slane %v304_v49, 4  ;;  %v1745_v59 = vmax.bf16 %v1681_v4, %v2594_v10  ;;  %v312_v43 = vshrl.u32 %v2623_v46, 16  ;;  %v37_v39 = vld [vmem:[%s3594_s0 + $0x74] sm:$0x1] }
  0x48   :  { %2274 = vst [vmem:[%s3595_s1 + $0x20] sm:$0xff] %v2273_v52   ;;  %v965_v60 = vmax.bf16 %v300_v57, %v2587_v63  ;;  %v1169_v62 = vsel %vm2413_vm5, %v1167_v55, %v1168_v48  ;;  %v1594_v5 = vmax.bf16 %v1478_v31, %v300_v57  ;;  %v1860_v6 = vmax.bf16 %v1744_v50, %v300_v57  ;;  %v34_v63 = vld [vmem:[%s3594_s0 + $0x68] sm:$0x1] }
  0x49   :  { %v310_v12 = vsel %vm2390_vm4, %v305_v58, %v309_v41  ;;  %v314_v9 = vrot.slane %v312_v43, 4  ;;  %v315_v17 = vshll.u32 %v2623_v46, 16  ;;  %v321_v0 = vshll.u32 %v2631_v53, 16 }
  0x4a   :  { %v966_v61 = vmax.bf16 %v310_v12, %v2594_v10  ;;  %v1416_v1 = vmax.bf16 %v1166_v54, %v965_v60  ;;  %v1595_v8 = vmax.bf16 %v1479_v51, %v310_v12  ;;  %v1682_v2 = vmax.bf16 %v1594_v5, %v1166_v54  ;;  %v2658_v10 = vld [vmem:[%s3594_s0 + $0x6c] sm:$0xf] }
  0x4b   :  { %v1861_v11 = vmax.bf16 %v1745_v59, %v310_v12  ;;  %v1948_v13 = vmax.bf16 %v1860_v6, %v1166_v54  ;;  %v317_v14 = vrot.slane %v315_v17, 5  ;;  %v323_v16 = vrot.slane %v321_v0, 5 }
  0x4c   :  { %v1417_v7 = vmax.bf16 %v1169_v62, %v966_v61  ;;  %v1480_v19 = vmax.bf16 %v1416_v1, %v2623_v46  ;;  %v1683_v20 = vmax.bf16 %v1595_v8, %v1169_v62  ;;  %v325_v21 = vshrl.u32 %v2631_v53, 16 }
  0x4d   :  { %v1949_v22 = vmax.bf16 %v1861_v11, %v1169_v62  ;;  %v318_v23 = vor.u32 %v317_v14, %v314_v9  ;;  %v331_v18 = vshll.u32 %v34_v63, 16  ;;  %v2078_v24 = vrot.slane %v2623_v46, 9 }
  0x4e   :  { %v1481_v25 = vmax.bf16 %v1417_v7, %v2631_v53  ;;  %v327_v15 = vrot.slane %v325_v21, 4  ;;  %v1172_v28 = vrot.slane %v2631_v53, 5  ;;  %v1175_v30 = vrot.slane %v34_v63, 5  ;;  %v2697_v63 = vld [vmem:[%s3594_s0 + $0x78] sm:$0xf] }
  0x4f   :  { %v2275_v29 = vcombine.low %v1948_v13, %v1949_v22  ;;  %v319_v32 = vrot.slane %v318_v23, 4  ;;  %v333_v33 = vrot.slane %v331_v18, 5  ;;  %v1746_v34 = vmax.bf16 %v1682_v2, %v2623_v46  ;;  %v2712_v18 = vld [vmem:[%s3594_s0 + $0x7c] sm:$0xf] }
  0x50   :  { %v328_v35 = vor.u32 %v327_v15, %v323_v16  ;;  %v1173_v36 = vsel %vm2413_vm5, %v2078_v24, %v1172_v28  ;;  %v1174_v31 = vrot.slane %v1172_v28, 4  ;;  %v1747_v37 = vmax.bf16 %v1683_v20, %v2631_v53 }
  0x51   :  { %2276 = vst [vmem:[%s3595_s1 + $0x28] sm:$0xff] %v2275_v29   ;;  %v324_v38 = vsel %vm2390_vm4, %v319_v32, %v323_v16  ;;  %v336_v3 = vshrl.u32 %v2658_v10, 16  ;;  %v339_v40 = vshll.u32 %v2658_v10, 16  ;;  %v345_v41 = vshll.u32 %v2665_v27, 16 }
  0x52   :  { %v329_v42 = vrot.slane %v328_v35, 4  ;;  %v967_v44 = vmax.bf16 %v324_v38, %v2623_v46  ;;  %v1176_v4 = vsel %vm2413_vm5, %v1174_v31, %v1175_v30  ;;  %v1596_v45 = vmax.bf16 %v1480_v19, %v324_v38 }
  0x53   :  { %v1862_v47 = vmax.bf16 %v1746_v34, %v324_v38  ;;  %v338_v49 = vrot.slane %v336_v3, 4  ;;  %v341_v48 = vrot.slane %v339_v40, 5  ;;  %v347_v50 = vrot.slane %v345_v41, 5 }
  0x54   :  { %v334_v51 = vsel %vm2390_vm4, %v329_v42, %v333_v33  ;;  %v1418_v52 = vmax.bf16 %v1173_v36, %v967_v44  ;;  %v1684_v54 = vmax.bf16 %v1596_v45, %v1173_v36  ;;  %v349_v55 = vshrl.u32 %v2665_v27, 16  ;;  %v40_v33 = vld [vmem:[%s3594_s0 + $0x80] sm:$0x1]  ;;  %v2731_v45 = vld [vmem:[%s3594_s0 + $0x84] sm:$0xf] }
  0x55   :  { %v968_v46 = vmax.bf16 %v334_v51, %v2631_v53  ;;  %v1597_v57 = vmax.bf16 %v1481_v25, %v334_v51  ;;  %v1863_v58 = vmax.bf16 %v1747_v37, %v334_v51  ;;  %v1950_v59 = vmax.bf16 %v1862_v47, %v1173_v36 }
  0x56   :  { %v1482_v43 = vmax.bf16 %v1418_v52, %v2658_v10  ;;  %v342_v60 = vor.u32 %v341_v48, %v338_v49  ;;  %v351_v62 = vrot.slane %v349_v55, 4  ;;  %v355_v5 = vshll.u32 %v37_v39, 16 }
  0x57   :  { %v1419_v6 = vmax.bf16 %v1176_v4, %v968_v46  ;;  %v1685_v12 = vmax.bf16 %v1597_v57, %v1176_v4  ;;  %v1951_v9 = vmax.bf16 %v1863_v58, %v1176_v4  ;;  %v2079_v17 = vrot.slane %v2658_v10, 9 }
  0x58   :  { %v343_v0 = vrot.slane %v342_v60, 4  ;;  %v352_v61 = vor.u32 %v351_v62, %v347_v50  ;;  %v357_v1 = vrot.slane %v355_v5, 5  ;;  %v1179_v8 = vrot.slane %v2665_v27, 5 }
  0x59   :  { %v1483_v53 = vmax.bf16 %v1419_v6, %v2665_v27  ;;  %v2277_v2 = vcombine.low %v1950_v59, %v1951_v9  ;;  %v1182_v11 = vrot.slane %v37_v39, 5  ;;  %v1748_v13 = vmax.bf16 %v1684_v54, %v2658_v10  ;;  %v2738_v54 = vld [vmem:[%s3594_s0 + $0x88] sm:$0xf] }
  0x5a   :  { %v348_v14 = vsel %vm2390_vm4, %v343_v0, %v347_v50  ;;  %v353_v16 = vrot.slane %v352_v61, 4  ;;  %v1180_v7 = vsel %vm2413_vm5, %v2079_v17, %v1179_v8  ;;  %v1181_v19 = vrot.slane %v1179_v8, 4  ;;  %v43_v17 = vld [vmem:[%s3594_s0 + $0x8c] sm:$0x1] }
  0x5b   :  { %2278 = vst [vmem:[%s3595_s1 + $0x30] sm:$0xff] %v2277_v2   ;;  %v969_v20 = vmax.bf16 %v348_v14, %v2658_v10  ;;  %v1598_v21 = vmax.bf16 %v1482_v43, %v348_v14  ;;  %v1749_v22 = vmax.bf16 %v1685_v12, %v2665_v27  ;;  %v1864_v23 = vmax.bf16 %v1748_v13, %v348_v14 }
  0x5c   :  { %v358_v24 = vsel %vm2390_vm4, %v353_v16, %v357_v1  ;;  %v1183_v25 = vsel %vm2413_vm5, %v1181_v19, %v1182_v11  ;;  %v360_v15 = vshrl.u32 %v2697_v63, 16  ;;  %v363_v28 = vshll.u32 %v2697_v63, 16 }
  0x5d   :  { %v970_v10 = vmax.bf16 %v358_v24, %v2665_v27  ;;  %v1420_v30 = vmax.bf16 %v1180_v7, %v969_v20  ;;  %v1599_v29 = vmax.bf16 %v1483_v53, %v358_v24  ;;  %v1686_v32 = vmax.bf16 %v1598_v21, %v1180_v7 }
  0x5e   :  { %v1865_v34 = vmax.bf16 %v1749_v22, %v358_v24  ;;  %v1952_v35 = vmax.bf16 %v1864_v23, %v1180_v7  ;;  %v362_v36 = vrot.slane %v360_v15, 4  ;;  %v365_v31 = vrot.slane %v363_v28, 5 }
  0x5f   :  { %v1421_v37 = vmax.bf16 %v1183_v25, %v970_v10  ;;  %v1484_v38 = vmax.bf16 %v1420_v30, %v2697_v63  ;;  %v1687_v3 = vmax.bf16 %v1599_v29, %v1183_v25  ;;  %v369_v40 = vshll.u32 %v2712_v18, 16  ;;  %v2767_v29 = vld [vmem:[%s3594_s0 + $0x90] sm:$0xf] }
  0x60   :  { %v1953_v41 = vmax.bf16 %v1865_v34, %v1183_v25  ;;  %v366_v42 = vor.u32 %v365_v31, %v362_v36  ;;  %v373_v27 = vshrl.u32 %v2712_v18, 16  ;;  %v379_v44 = vshll.u32 %v40_v33, 16 }
  0x61   :  { %v1485_v4 = vmax.bf16 %v1421_v37, %v2712_v18  ;;  %v371_v47 = vrot.slane %v369_v40, 5  ;;  %v2080_v39 = vrot.slane %v2697_v63, 9  ;;  %v1186_v49 = vrot.slane %v2712_v18, 5  ;;  %v2775_v37 = vld [vmem:[%s3594_s0 + $0x94] sm:$0xf] }
  0x62   :  { %v2279_v48 = vcombine.low %v1952_v35, %v1953_v41  ;;  %v367_v50 = vrot.slane %v366_v42, 4  ;;  %v375_v51 = vrot.slane %v373_v27, 4  ;;  %v381_v52 = vrot.slane %v379_v44, 5 }
  0x63   :  { %v1187_v55 = vsel %vm2413_vm5, %v2080_v39, %v1186_v49  ;;  %v1188_v46 = vrot.slane %v1186_v49, 4  ;;  %v1189_v57 = vrot.slane %v40_v33, 5  ;;  %v1750_v58 = vmax.bf16 %v1686_v32, %v2697_v63 }
  0x64   :  { %2280 = vst [vmem:[%s3595_s1 + $0x38] sm:$0xff] %v2279_v48   ;;  %v372_v59 = vsel %vm2390_vm4, %v367_v50, %v371_v47  ;;  %v376_v43 = vor.u32 %v375_v51, %v371_v47  ;;  %v1751_v60 = vmax.bf16 %v1687_v3, %v2712_v18  ;;  %v384_v62 = vshrl.u32 %v2731_v45, 16 }
  0x65   :  { %v971_v5 = vmax.bf16 %v372_v59, %v2697_v63  ;;  %v1190_v6 = vsel %vm2413_vm5, %v1188_v46, %v1189_v57  ;;  %v1600_v12 = vmax.bf16 %v1484_v38, %v372_v59  ;;  %v1866_v9 = vmax.bf16 %v1750_v58, %v372_v59 }
  0x66   :  { %v377_v0 = vrot.slane %v376_v43, 4  ;;  %v386_v61 = vrot.slane %v384_v62, 4  ;;  %v387_v1 = vshll.u32 %v2731_v45, 16  ;;  %v393_v8 = vshll.u32 %v2738_v54, 16 }
  0x67   :  { %v1422_v53 = vmax.bf16 %v1187_v55, %v971_v5  ;;  %v1688_v2 = vmax.bf16 %v1600_v12, %v1187_v55  ;;  %v1954_v11 = vmax.bf16 %v1866_v9, %v1187_v55  ;;  %v397_v63 = vshrl.u32 %v2738_v54, 16 }
  0x68   :  { %v382_v13 = vsel %vm2390_vm4, %v377_v0, %v381_v52  ;;  %v389_v14 = vrot.slane %v387_v1, 5  ;;  %v395_v16 = vrot.slane %v393_v8, 5  ;;  %v403_v7 = vshll.u32 %v43_v17, 16  ;;  %v2809_v8 = vld [vmem:[%s3594_s0 + $0xa0] sm:$0xf] }
  0x69   :  { %v972_v19 = vmax.bf16 %v382_v13, %v2712_v18  ;;  %v1486_v20 = vmax.bf16 %v1422_v53, %v2731_v45  ;;  %v1601_v21 = vmax.bf16 %v1485_v4, %v382_v13  ;;  %v1867_v22 = vmax.bf16 %v1751_v60, %v382_v13 }
  0x6a   :  { %v390_v23 = vor.u32 %v389_v14, %v386_v61  ;;  %v399_v24 = vrot.slane %v397_v63, 4  ;;  %v405_v25 = vrot.slane %v403_v7, 5  ;;  %v2081_v15 = vrot.slane %v2731_v45, 9 }
  0x6b   :  { %v1423_v28 = vmax.bf16 %v1190_v6, %v972_v19  ;;  %v1689_v10 = vmax.bf16 %v1601_v21, %v1190_v6  ;;  %v1955_v30 = vmax.bf16 %v1867_v22, %v1190_v6  ;;  %v1193_v32 = vrot.slane %v2738_v54, 5 }
  0x6c   :  { %v391_v18 = vrot.slane %v390_v23, 4  ;;  %v400_v33 = vor.u32 %v399_v24, %v395_v16  ;;  %v1196_v34 = vrot.slane %v43_v17, 5  ;;  %v1752_v35 = vmax.bf16 %v1688_v2, %v2731_v45 }
  0x6d   :  { %v1487_v36 = vmax.bf16 %v1423_v28, %v2738_v54  ;;  %v2281_v31 = vcombine.low %v1954_v11, %v1955_v30  ;;  %v1194_v38 = vsel %vm2413_vm5, %v2081_v15, %v1193_v32  ;;  %v1195_v3 = vrot.slane %v1193_v32, 4 }
  0x6e   :  { %v396_v40 = vsel %vm2390_vm4, %v391_v18, %v395_v16  ;;  %v401_v41 = vrot.slane %v400_v33, 4  ;;  %v1753_v42 = vmax.bf16 %v1689_v10, %v2738_v54  ;;  %v408_v27 = vshrl.u32 %v2767_v29, 16  ;;  %v49_v18 = vld [vmem:[%s3594_s0 + $0xa4] sm:$0x1] }
  0x6f   :  { %2282 = vst [vmem:[%s3595_s1 + $0x40] sm:$0xff] %v2281_v31   ;;  %v973_v44 = vmax.bf16 %v396_v40, %v2731_v45  ;;  %v1197_v4 = vsel %vm2413_vm5, %v1195_v3, %v1196_v34  ;;  %v1602_v47 = vmax.bf16 %v1486_v20, %v396_v40  ;;  %v1868_v39 = vmax.bf16 %v1752_v35, %v396_v40  ;;  %v46_v45 = vld [vmem:[%s3594_s0 + $0x98] sm:$0x1] }
  0x70   :  { %v406_v49 = vsel %vm2390_vm4, %v401_v41, %v405_v25  ;;  %v410_v48 = vrot.slane %v408_v27, 4  ;;  %v411_v50 = vshll.u32 %v2767_v29, 16  ;;  %v417_v51 = vshll.u32 %v2775_v37, 16 }
  0x71   :  { %v974_v52 = vmax.bf16 %v406_v49, %v2738_v54  ;;  %v1424_v55 = vmax.bf16 %v1194_v38, %v973_v44  ;;  %v1603_v46 = vmax.bf16 %v1487_v36, %v406_v49  ;;  %v1690_v57 = vmax.bf16 %v1602_v47, %v1194_v38  ;;  %v2802_v54 = vld [vmem:[%s3594_s0 + $0x9c] sm:$0xf] }
  0x72   :  { %v1869_v58 = vmax.bf16 %v1753_v42, %v406_v49  ;;  %v1956_v59 = vmax.bf16 %v1868_v39, %v1194_v38  ;;  %v413_v43 = vrot.slane %v411_v50, 5  ;;  %v419_v60 = vrot.slane %v417_v51, 5 }
  0x73   :  { %v1425_v62 = vmax.bf16 %v1197_v4, %v974_v52  ;;  %v1488_v5 = vmax.bf16 %v1424_v55, %v2767_v29  ;;  %v1691_v6 = vmax.bf16 %v1603_v46, %v1197_v4  ;;  %v421_v12 = vshrl.u32 %v2775_v37, 16 }
  0x74   :  { %v1957_v9 = vmax.bf16 %v1869_v58, %v1197_v4  ;;  %v414_v17 = vor.u32 %v413_v43, %v410_v48  ;;  %v427_v0 = vshll.u32 %v46_v45, 16  ;;  %v2082_v61 = vrot.slane %v2767_v29, 9 }
  0x75   :  { %v1489_v1 = vmax.bf16 %v1425_v62, %v2775_v37  ;;  %v423_v53 = vrot.slane %v421_v12, 4  ;;  %v1200_v2 = vrot.slane %v2775_v37, 5  ;;  %v1203_v11 = vrot.slane %v46_v45, 5  ;;  %v2841_v45 = vld [vmem:[%s3594_s0 + $0xa8] sm:$0xf] }
  0x76   :  { %v2283_v63 = vcombine.low %v1956_v59, %v1957_v9  ;;  %v415_v13 = vrot.slane %v414_v17, 4  ;;  %v429_v14 = vrot.slane %v427_v0, 5  ;;  %v1754_v16 = vmax.bf16 %v1690_v57, %v2767_v29  ;;  %v2856_v0 = vld [vmem:[%s3594_s0 + $0xac] sm:$0xf] }
  0x77   :  { %v424_v7 = vor.u32 %v423_v53, %v419_v60  ;;  %v1201_v19 = vsel %vm2413_vm5, %v2082_v61, %v1200_v2  ;;  %v1202_v20 = vrot.slane %v1200_v2, 4  ;;  %v1755_v21 = vmax.bf16 %v1691_v6, %v2775_v37 }
  0x78   :  { %2284 = vst [vmem:[%s3595_s1 + $0x48] sm:$0xff] %v2283_v63   ;;  %v420_v22 = vsel %vm2390_vm4, %v415_v13, %v419_v60  ;;  %v432_v23 = vshrl.u32 %v2802_v54, 16  ;;  %v435_v24 = vshll.u32 %v2802_v54, 16  ;;  %v441_v25 = vshll.u32 %v2809_v8, 16 }
  0x79   :  { %v425_v15 = vrot.slane %v424_v7, 4  ;;  %v975_v28 = vmax.bf16 %v420_v22, %v2767_v29  ;;  %v1204_v10 = vsel %vm2413_vm5, %v1202_v20, %v1203_v11  ;;  %v1604_v30 = vmax.bf16 %v1488_v5, %v420_v22 }
  0x7a   :  { %v1870_v32 = vmax.bf16 %v1754_v16, %v420_v22  ;;  %v434_v33 = vrot.slane %v432_v23, 4  ;;  %v437_v34 = vrot.slane %v435_v24, 5  ;;  %v443_v35 = vrot.slane %v441_v25, 5 }
  0x7b   :  { %v430_v36 = vsel %vm2390_vm4, %v425_v15, %v429_v14  ;;  %v1426_v31 = vmax.bf16 %v1201_v19, %v975_v28  ;;  %v1692_v38 = vmax.bf16 %v1604_v30, %v1201_v19  ;;  %v445_v3 = vshrl.u32 %v2809_v8, 16  ;;  %v52_v14 = vld [vmem:[%s3594_s0 + $0xb0] sm:$0x1]  ;;  %v2875_v30 = vld [vmem:[%s3594_s0 + $0xb4] sm:$0xf] }
  0x7c   :  { %v976_v29 = vmax.bf16 %v430_v36, %v2775_v37  ;;  %v1605_v40 = vmax.bf16 %v1489_v1, %v430_v36  ;;  %v1871_v41 = vmax.bf16 %v1755_v21, %v430_v36  ;;  %v1958_v42 = vmax.bf16 %v1870_v32, %v1201_v19 }
  0x7d   :  { %v1490_v27 = vmax.bf16 %v1426_v31, %v2802_v54  ;;  %v438_v44 = vor.u32 %v437_v34, %v434_v33  ;;  %v447_v4 = vrot.slane %v445_v3, 4  ;;  %v451_v47 = vshll.u32 %v49_v18, 16 }
  0x7e   :  { %v1427_v39 = vmax.bf16 %v1204_v10, %v976_v29  ;;  %v1693_v49 = vmax.bf16 %v1605_v40, %v1204_v10  ;;  %v1959_v48 = vmax.bf16 %v1871_v41, %v1204_v10  ;;  %v2083_v50 = vrot.slane %v2802_v54, 9 }
  0x7f   :  { %v439_v51 = vrot.slane %v438_v44, 4  ;;  %v448_v52 = vor.u32 %v447_v4, %v443_v35  ;;  %v453_v55 = vrot.slane %v451_v47, 5  ;;  %v1207_v46 = vrot.slane %v2809_v8, 5 }
  0x80   :  { %v1491_v37 = vmax.bf16 %v1427_v39, %v2809_v8  ;;  %v2285_v57 = vcombine.low %v1958_v42, %v1959_v48  ;;  %v1210_v58 = vrot.slane %v49_v18, 5  ;;  %v1756_v59 = vmax.bf16 %v1692_v38, %v2802_v54  ;;  %v2882_v38 = vld [vmem:[%s3594_s0 + $0xb8] sm:$0xf] }
  0x81   :  { %v444_v43 = vsel %vm2390_vm4, %v439_v51, %v443_v35  ;;  %v449_v60 = vrot.slane %v448_v52, 4  ;;  %v1208_v62 = vsel %vm2413_vm5, %v2083_v50, %v1207_v46  ;;  %v1209_v5 = vrot.slane %v1207_v46, 4  ;;  %v55_v50 = vld [vmem:[%s3594_s0 + $0xbc] sm:$0x1] }
  0x82   :  { %2286 = vst [vmem:[%s3595_s1 + $0x50] sm:$0xff] %v2285_v57   ;;  %v977_v6 = vmax.bf16 %v444_v43, %v2802_v54  ;;  %v1606_v12 = vmax.bf16 %v1490_v27, %v444_v43  ;;  %v1757_v9 = vmax.bf16 %v1693_v49, %v2809_v8  ;;  %v1872_v17 = vmax.bf16 %v1756_v59, %v444_v43 }
  0x83   :  { %v454_v61 = vsel %vm2390_vm4, %v449_v60, %v453_v55  ;;  %v1211_v1 = vsel %vm2413_vm5, %v1209_v5, %v1210_v58  ;;  %v456_v53 = vshrl.u32 %v2841_v45, 16  ;;  %v459_v2 = vshll.u32 %v2841_v45, 16 }
  0x84   :  { %v978_v54 = vmax.bf16 %v454_v61, %v2809_v8  ;;  %v1428_v11 = vmax.bf16 %v1208_v62, %v977_v6  ;;  %v1607_v63 = vmax.bf16 %v1491_v37, %v454_v61  ;;  %v1694_v13 = vmax.bf16 %v1606_v12, %v1208_v62 }
  0x85   :  { %v1873_v16 = vmax.bf16 %v1757_v9, %v454_v61  ;;  %v1960_v7 = vmax.bf16 %v1872_v17, %v1208_v62  ;;  %v458_v19 = vrot.slane %v456_v53, 4  ;;  %v461_v20 = vrot.slane %v459_v2, 5 }
  0x86   :  { %v1429_v21 = vmax.bf16 %v1211_v1, %v978_v54  ;;  %v1492_v22 = vmax.bf16 %v1428_v11, %v2841_v45  ;;  %v1695_v23 = vmax.bf16 %v1607_v63, %v1211_v1  ;;  %v465_v24 = vshll.u32 %v2856_v0, 16 }
  0x87   :  { %v1961_v25 = vmax.bf16 %v1873_v16, %v1211_v1  ;;  %v462_v15 = vor.u32 %v461_v20, %v458_v19  ;;  %v469_v8 = vshrl.u32 %v2856_v0, 16  ;;  %v475_v28 = vshll.u32 %v52_v14, 16 }
  0x88   :  { %v1493_v10 = vmax.bf16 %v1429_v21, %v2856_v0  ;;  %v467_v32 = vrot.slane %v465_v24, 5  ;;  %v2084_v18 = vrot.slane %v2841_v45, 9  ;;  %v1214_v33 = vrot.slane %v2856_v0, 5 }
  0x89   :  { %v2287_v34 = vcombine.low %v1960_v7, %v1961_v25  ;;  %v463_v35 = vrot.slane %v462_v15, 4  ;;  %v471_v36 = vrot.slane %v469_v8, 4  ;;  %v477_v31 = vrot.slane %v475_v28, 5 }
  0x8a   :  { %v1215_v3 = vsel %vm2413_vm5, %v2084_v18, %v1214_v33  ;;  %v1216_v29 = vrot.slane %v1214_v33, 4  ;;  %v1217_v40 = vrot.slane %v52_v14, 5  ;;  %v1758_v41 = vmax.bf16 %v1694_v13, %v2841_v45  ;;  %v56_v13 = vld [vmem:[%s3594_s0 + $0xc0] sm:$0xf] }
  0x8b   :  { %2288 = vst [vmem:[%s3595_s1 + $0x58] sm:$0xff] %v2287_v34   ;;  %v468_v42 = vsel %vm2390_vm4, %v463_v35, %v467_v32  ;;  %v472_v27 = vor.u32 %v471_v36, %v467_v32  ;;  %v1759_v44 = vmax.bf16 %v1695_v23, %v2856_v0  ;;  %v480_v4 = vshrl.u32 %v2875_v30, 16  ;;  %v2919_v23 = vld [vmem:[%s3594_s0 + $0xc4] sm:$0xf] }
  0x8c   :  { %v979_v47 = vmax.bf16 %v468_v42, %v2841_v45  ;;  %v1218_v39 = vsel %vm2413_vm5, %v1216_v29, %v1217_v40  ;;  %v1608_v49 = vmax.bf16 %v1492_v22, %v468_v42  ;;  %v1874_v48 = vmax.bf16 %v1758_v41, %v468_v42 }
  0x8d   :  { %v473_v51 = vrot.slane %v472_v27, 4  ;;  %v482_v52 = vrot.slane %v480_v4, 4  ;;  %v483_v55 = vshll.u32 %v2875_v30, 16  ;;  %v489_v46 = vshll.u32 %v2882_v38, 16 }
  0x8e   :  { %v1430_v37 = vmax.bf16 %v1215_v3, %v979_v47  ;;  %v1696_v57 = vmax.bf16 %v1608_v49, %v1215_v3  ;;  %v1962_v58 = vmax.bf16 %v1874_v48, %v1215_v3  ;;  %v493_v45 = vshrl.u32 %v2882_v38, 16 }
  0x8f   :  { %v478_v59 = vsel %vm2390_vm4, %v473_v51, %v477_v31  ;;  %v485_v43 = vrot.slane %v483_v55, 5  ;;  %v491_v60 = vrot.slane %v489_v46, 5  ;;  %v499_v62 = vshll.u32 %v55_v50, 16 }
  0x90   :  { %v980_v5 = vmax.bf16 %v478_v59, %v2856_v0  ;;  %v1494_v6 = vmax.bf16 %v1430_v37, %v2875_v30  ;;  %v1609_v12 = vmax.bf16 %v1493_v10, %v478_v59  ;;  %v1875_v9 = vmax.bf16 %v1759_v44, %v478_v59 }
  0x91   :  { %v486_v17 = vor.u32 %v485_v43, %v482_v52  ;;  %v495_v61 = vrot.slane %v493_v45, 4  ;;  %v501_v1 = vrot.slane %v499_v62, 5  ;;  %v2085_v53 = vrot.slane %v2875_v30, 9  ;;  %v59_v52 = vld [vmem:[%s3594_s0 + $0xcc] sm:$0xf] }
  0x92   :  { %v1431_v2 = vmax.bf16 %v1218_v39, %v980_v5  ;;  %v1697_v54 = vmax.bf16 %v1609_v12, %v1218_v39  ;;  %v1963_v11 = vmax.bf16 %v1875_v9, %v1218_v39  ;;  %v1221_v63 = vrot.slane %v2882_v38, 5 }
  0x93   :  { %v487_v14 = vrot.slane %v486_v17, 4  ;;  %v496_v0 = vor.u32 %v495_v61, %v491_v60  ;;  %v1224_v16 = vrot.slane %v55_v50, 5  ;;  %v1760_v7 = vmax.bf16 %v1696_v57, %v2875_v30  ;;  %v61_v17 = vld [vmem:[%s3594_s0 + $0xd4] sm:$0x1] }
  0x94   :  { %v1495_v19 = vmax.bf16 %v1431_v2, %v2882_v38  ;;  %v2289_v20 = vcombine.low %v1962_v58, %v1963_v11  ;;  %v1222_v21 = vsel %vm2413_vm5, %v2085_v53, %v1221_v63  ;;  %v1223_v22 = vrot.slane %v1221_v63, 4  ;;  %v60_v58 = vld [vmem:[%s3594_s0 + $0xd0] sm:$0xf] }
  0x95   :  { %v492_v24 = vsel %vm2390_vm4, %v487_v14, %v491_v60  ;;  %v497_v25 = vrot.slane %v496_v0, 4  ;;  %v1761_v15 = vmax.bf16 %v1697_v54, %v2882_v38  ;;  %v1531_v8 = vshrl.u32 %v56_v13, 16 }
  0x96   :  { %2290 = vst [vmem:[%s3595_s1 + $0x60] sm:$0xff] %v2289_v20   ;;  %v981_v28 = vmax.bf16 %v492_v24, %v2875_v30  ;;  %v1225_v10 = vsel %vm2413_vm5, %v1223_v22, %v1224_v16  ;;  %v1610_v32 = vmax.bf16 %v1494_v6, %v492_v24  ;;  %v1876_v18 = vmax.bf16 %v1760_v7, %v492_v24  ;;  %v58_v30 = vld [vmem:[%s3594_s0 + $0xc8] sm:$0x1] }
  0x97   :  { %v502_v33 = vsel %vm2390_vm4, %v497_v25, %v501_v1  ;;  %v1533_v34 = vrot.slane %v1531_v8, 4  ;;  %v1534_v35 = vshll.u32 %v56_v13, 16  ;;  %v1540_v36 = vshll.u32 %v2919_v23, 16 }
  0x98   :  { %v982_v31 = vmax.bf16 %v502_v33, %v2882_v38  ;;  %v1432_v3 = vmax.bf16 %v1222_v21, %v981_v28  ;;  %v1611_v29 = vmax.bf16 %v1495_v19, %v502_v33  ;;  %v1698_v40 = vmax.bf16 %v1610_v32, %v1222_v21 }
  0x99   :  { %v1877_v41 = vmax.bf16 %v1761_v15, %v502_v33  ;;  %v1964_v42 = vmax.bf16 %v1876_v18, %v1222_v21  ;;  %v1536_v27 = vrot.slane %v1534_v35, 5  ;;  %v1542_v44 = vrot.slane %v1540_v36, 5  ;;  %v2964_v15 = vld [vmem:[%s3594_s0 + $0xd8] sm:$0xf]  ;;  %v2969_v36 = vld [vmem:[%s3594_s0 + $0xdc] sm:$0xf] }
  0x9a   :  { %v1433_v4 = vmax.bf16 %v1225_v10, %v982_v31  ;;  %v1699_v47 = vmax.bf16 %v1611_v29, %v1225_v10  ;;  %v1496_v39 = vmax.bf16 %v1432_v3, %v56_v13  ;;  %v1544_v49 = vshrl.u32 %v2919_v23, 16 }
  0x9b   :  { %v1965_v48 = vmax.bf16 %v1877_v41, %v1225_v10  ;;  %v1537_v50 = vor.u32 %v1536_v27, %v1533_v34  ;;  %v1550_v51 = vshll.u32 %v58_v30, 16  ;;  %v2102_v38 = vrot.slane %v56_v13, 9 }
  0x9c   :  { %v1497_v55 = vmax.bf16 %v1433_v4, %v2919_v23  ;;  %v1546_v46 = vrot.slane %v1544_v49, 4  ;;  %v1654_v37 = vrot.slane %v2919_v23, 5  ;;  %v1657_v57 = vrot.slane %v58_v30, 5  ;;  %v2984_v4 = vld [vmem:[%s3594_s0 + $0xe4] sm:$0xf] }
  0x9d   :  { %v2291_v45 = vcombine.low %v1964_v42, %v1965_v48  ;;  %v1538_v59 = vrot.slane %v1537_v50, 4  ;;  %v1552_v43 = vrot.slane %v1550_v51, 5  ;;  %v1762_v60 = vmax.bf16 %v1698_v40, %v56_v13  ;;  %v2976_v40 = vld [vmem:[%s3594_s0 + $0xe0] sm:$0x1]  ;;  %v2997_v51 = vld [vmem:[%s3594_s0 + $0xe8] sm:$0xf] }
  0x9e   :  { %v1547_v62 = vor.u32 %v1546_v46, %v1542_v44  ;;  %v1655_v5 = vsel %vm2413_vm5, %v2102_v38, %v1654_v37  ;;  %v1656_v6 = vrot.slane %v1654_v37, 4  ;;  %v1763_v12 = vmax.bf16 %v1699_v47, %v2919_v23 }
  0x9f   :  { %2292 = vst [vmem:[%s3595_s1 + $0x68] sm:$0xff] %v2291_v45   ;;  %v1543_v9 = vsel %vm2390_vm4, %v1538_v59, %v1542_v44  ;;  %v1799_v61 = vshrl.u32 %v59_v52, 16  ;;  %v1802_v1 = vshll.u32 %v59_v52, 16  ;;  %v1808_v53 = vshll.u32 %v60_v58, 16  ;;  %v3011_v59 = vld [vmem:[%s3594_s0 + $0xf0] sm:$0xf] }
  0xa0   :  { %v1548_v2 = vrot.slane %v1547_v62, 4  ;;  %v1612_v54 = vmax.bf16 %v1543_v9, %v1496_v39  ;;  %v1658_v11 = vsel %vm2413_vm5, %v1656_v6, %v1657_v57  ;;  %v1878_v63 = vmax.bf16 %v1762_v60, %v1543_v9  ;;  %v3005_v57 = vld [vmem:[%s3594_s0 + $0xec] sm:$0x1] }
  0xa1   :  { %v1801_v13 = vrot.slane %v1799_v61, 4  ;;  %v1804_v14 = vrot.slane %v1802_v1, 5  ;;  %v1810_v0 = vrot.slane %v1808_v53, 5  ;;  %v1812_v16 = vshrl.u32 %v60_v58, 16  ;;  %v3018_v61 = vld [vmem:[%s3594_s0 + $0xf4] sm:$0xf] }
  0xa2   :  { %v1553_v7 = vsel %vm2390_vm4, %v1548_v2, %v1552_v43  ;;  %v1700_v19 = vmax.bf16 %v1655_v5, %v1612_v54  ;;  %v1966_v20 = vmax.bf16 %v1878_v63, %v1655_v5  ;;  %v1818_v21 = vshll.u32 %v61_v17, 16 }
  0xa3   :  { %v1613_v22 = vmax.bf16 %v1553_v7, %v1497_v55  ;;  %v1879_v23 = vmax.bf16 %v1763_v12, %v1553_v7  ;;  %v1805_v24 = vor.u32 %v1804_v14, %v1801_v13  ;;  %v1814_v25 = vrot.slane %v1812_v16, 4 }
  0xa4   :  { %v1764_v8 = vmax.bf16 %v1700_v19, %v59_v52  ;;  %v1820_v28 = vrot.slane %v1818_v21, 5  ;;  %v2104_v10 = vrot.slane %v59_v52, 9  ;;  %v1922_v32 = vrot.slane %v60_v58, 5 }
  0xa5   :  { %v1701_v18 = vmax.bf16 %v1658_v11, %v1613_v22  ;;  %v1967_v33 = vmax.bf16 %v1879_v23, %v1658_v11  ;;  %v1806_v34 = vrot.slane %v1805_v24, 4  ;;  %v1815_v35 = vor.u32 %v1814_v25, %v1810_v0 }
  0xa6   :  { %v1923_v31 = vsel %vm2413_vm5, %v2104_v10, %v1922_v32  ;;  %v1924_v3 = vrot.slane %v1922_v32, 4  ;;  %v1925_v29 = vrot.slane %v61_v17, 5  ;;  %v504_v30 = vshrl.u32 %v2964_v15, 16 }
  0xa7   :  { %v2293_v41 = vcombine.low %v1966_v20, %v1967_v33  ;;  %v1765_v42 = vmax.bf16 %v1701_v18, %v60_v58  ;;  %v1811_v27 = vsel %vm2390_vm4, %v1806_v34, %v1810_v0  ;;  %v1816_v44 = vrot.slane %v1815_v35, 4  ;;  %v70_v0 = vld [vmem:[%s3594_s0 + $0xf8] sm:$0x1] }
  0xa8   :  { %v1880_v47 = vmax.bf16 %v1811_v27, %v1764_v8  ;;  %v1926_v39 = vsel %vm2413_vm5, %v1924_v3, %v1925_v29  ;;  %v506_v49 = vrot.slane %v504_v30, 4  ;;  %v507_v48 = vshll.u32 %v2964_v15, 16 }
  0xa9   :  { %2294 = vst [vmem:[%s3595_s1 + $0x70] sm:$0xff] %v2293_v41   ;;  %v1821_v50 = vsel %vm2390_vm4, %v1816_v44, %v1820_v28  ;;  %v513_v38 = vshll.u32 %v2969_v36, 16  ;;  %v517_v52 = vshrl.u32 %v2969_v36, 16  ;;  %v523_v55 = vshll.u32 %v2976_v40, 16 }
  0xaa   :  { %v1881_v46 = vmax.bf16 %v1821_v50, %v1765_v42  ;;  %v1968_v37 = vmax.bf16 %v1923_v31, %v1880_v47  ;;  %v509_v58 = vrot.slane %v507_v48, 5  ;;  %v528_v45 = vshrl.u32 %v2984_v4, 16 }
  0xab   :  { %v515_v43 = vrot.slane %v513_v38, 5  ;;  %v519_v60 = vrot.slane %v517_v52, 4  ;;  %v525_v62 = vrot.slane %v523_v55, 5  ;;  %v531_v5 = vshll.u32 %v2984_v4, 16 }
  0xac   :  { %v1969_v6 = vmax.bf16 %v1926_v39, %v1881_v46  ;;  %v510_v12 = vor.u32 %v509_v58, %v506_v49  ;;  %v530_v9 = vrot.slane %v528_v45, 4  ;;  %v537_v17 = vshll.u32 %v2997_v51, 16 }
  0xad   :  { %v520_v1 = vor.u32 %v519_v60, %v515_v43  ;;  %v533_v53 = vrot.slane %v531_v5, 5  ;;  %v541_v2 = vshrl.u32 %v2997_v51, 16  ;;  %v547_v54 = vshll.u32 %v3005_v57, 16 }
  0xae   :  { %v2295_v11 = vcombine.low %v1968_v37, %v1969_v6  ;;  %v511_v63 = vrot.slane %v510_v12, 4  ;;  %v539_v13 = vrot.slane %v537_v17, 5  ;;  %v552_v14 = vshrl.u32 %v3011_v59, 16 }
  0xaf   :  { %v521_v16 = vrot.slane %v520_v1, 4  ;;  %v534_v7 = vor.u32 %v533_v53, %v530_v9  ;;  %v543_v19 = vrot.slane %v541_v2, 4  ;;  %v549_v20 = vrot.slane %v547_v54, 5 }
  0xb0   :  { %2296 = vst [vmem:[%s3595_s1 + $0x78] sm:$0xff] %v2295_v11   ;;  %v516_v21 = vsel %vm2390_vm4, %v511_v63, %v515_v43  ;;  %v554_v22 = vrot.slane %v552_v14, 4  ;;  %v555_v23 = vshll.u32 %v3011_v59, 16  ;;  %v561_v24 = vshll.u32 %v3018_v61, 16  ;;  %v3060_v43 = vld [vmem:[%s3594_s0 + $0xfc] sm:$0xf] }
  0xb1   :  { %v526_v25 = vsel %vm2390_vm4, %v521_v16, %v525_v62  ;;  %v535_v8 = vrot.slane %v534_v7, 4  ;;  %v544_v28 = vor.u32 %v543_v19, %v539_v13  ;;  %v565_v10 = vshrl.u32 %v3018_v61, 16  ;;  %v3078_v16 = vld [vmem:[%s3594_s0 + $0x100] sm:$0xf] }
  0xb2   :  { %v557_v32 = vrot.slane %v555_v23, 5  ;;  %v563_v18 = vrot.slane %v561_v24, 5  ;;  %v571_v33 = vshll.u32 %v70_v0, 16  ;;  %v983_v34 = vmax.bf16 %v516_v21, %v2964_v15 }
  0xb3   :  { %v540_v35 = vsel %vm2390_vm4, %v535_v8, %v539_v13  ;;  %v545_v31 = vrot.slane %v544_v28, 4  ;;  %v567_v3 = vrot.slane %v565_v10, 4  ;;  %v984_v29 = vmax.bf16 %v526_v25, %v2969_v36  ;;  %v73_v8 = vld [vmem:[%s3594_s0 + $0x104] sm:$0x1] }
  0xb4   :  { %v558_v30 = vor.u32 %v557_v32, %v554_v22  ;;  %v573_v41 = vrot.slane %v571_v33, 5  ;;  %v985_v42 = vmax.bf16 %v540_v35, %v2984_v4  ;;  %v2086_v27 = vrot.slane %v2964_v15, 9 }
  0xb5   :  { %v550_v44 = vsel %vm2390_vm4, %v545_v31, %v549_v20  ;;  %v568_v47 = vor.u32 %v567_v3, %v563_v18  ;;  %v1228_v39 = vrot.slane %v2969_v36, 5  ;;  %v1231_v49 = vrot.slane %v2976_v40, 5 }
  0xb6   :  { %v559_v48 = vrot.slane %v558_v30, 4  ;;  %v986_v50 = vmax.bf16 %v550_v44, %v2997_v51  ;;  %v2087_v38 = vrot.slane %v2984_v4, 9  ;;  %v1235_v52 = vrot.slane %v2997_v51, 5 }
  0xb7   :  { %v569_v55 = vrot.slane %v568_v47, 4  ;;  %v1229_v46 = vsel %vm2413_vm5, %v2086_v27, %v1228_v39  ;;  %v1230_v15 = vrot.slane %v1228_v39, 4  ;;  %v1238_v37 = vrot.slane %v3005_v57, 5 }
  0xb8   :  { %v564_v58 = vsel %vm2390_vm4, %v559_v48, %v563_v18  ;;  %v1236_v36 = vsel %vm2413_vm5, %v2087_v38, %v1235_v52  ;;  %v1237_v40 = vrot.slane %v1235_v52, 4  ;;  %v2088_v45 = vrot.slane %v3011_v59, 9 }
  0xb9   :  { %v574_v60 = vsel %vm2390_vm4, %v569_v55, %v573_v41  ;;  %v987_v62 = vmax.bf16 %v564_v58, %v3011_v59  ;;  %v1232_v57 = vsel %vm2413_vm5, %v1230_v15, %v1231_v49  ;;  %v1242_v5 = vrot.slane %v3018_v61, 5  ;;  %v3100_v55 = vld [vmem:[%s3594_s0 + $0x108] sm:$0xf] }
  0xba   :  { %v988_v6 = vmax.bf16 %v574_v60, %v3018_v61  ;;  %v1239_v12 = vsel %vm2413_vm5, %v1237_v40, %v1238_v37  ;;  %v1245_v9 = vrot.slane %v70_v0, 5  ;;  %v1434_v17 = vmax.bf16 %v1229_v46, %v983_v34 }
  0xbb   :  { %v1243_v1 = vsel %vm2413_vm5, %v2088_v45, %v1242_v5  ;;  %v1244_v53 = vrot.slane %v1242_v5, 4  ;;  %v1435_v2 = vmax.bf16 %v1232_v57, %v984_v29  ;;  %v1436_v54 = vmax.bf16 %v1236_v36, %v985_v42  ;;  %v3112_v57 = vld [vmem:[%s3594_s0 + $0x10c] sm:$0xf] }
  0xbc   :  { %v1437_v11 = vmax.bf16 %v1239_v12, %v986_v50  ;;  %v1438_v63 = vmax.bf16 %v1243_v1, %v987_v62  ;;  %v1498_v13 = vmax.bf16 %v1434_v17, %v2984_v4  ;;  %v576_v14 = vshrl.u32 %v3060_v43, 16 }
  0xbd   :  { %v1246_v0 = vsel %vm2413_vm5, %v1244_v53, %v1245_v9  ;;  %v1499_v7 = vmax.bf16 %v1435_v2, %v2997_v51  ;;  %v1500_v19 = vmax.bf16 %v1436_v54, %v3011_v59  ;;  %v579_v20 = vshll.u32 %v3060_v43, 16 }
  0xbe   :  { %v1439_v21 = vmax.bf16 %v1246_v0, %v988_v6  ;;  %v1501_v22 = vmax.bf16 %v1437_v11, %v3018_v61  ;;  %v1502_v4 = vmax.bf16 %v1438_v63, %v3060_v43  ;;  %v1614_v23 = vmax.bf16 %v1498_v13, %v540_v35  ;;  %v76_v13 = vld [vmem:[%s3594_s0 + $0x110] sm:$0x1] }
  0xbf   :  { %v1615_v24 = vmax.bf16 %v1499_v7, %v550_v44  ;;  %v1616_v25 = vmax.bf16 %v1500_v19, %v564_v58  ;;  %v578_v28 = vrot.slane %v576_v14, 4  ;;  %v581_v10 = vrot.slane %v579_v20, 5 }
  0xc0   :  { %v1503_v51 = vmax.bf16 %v1439_v21, %v3078_v16  ;;  %v1617_v32 = vmax.bf16 %v1501_v22, %v574_v60  ;;  %v1702_v18 = vmax.bf16 %v1614_v23, %v1236_v36  ;;  %v585_v33 = vshll.u32 %v3078_v16, 16 }
  0xc1   :  { %v1703_v34 = vmax.bf16 %v1615_v24, %v1239_v12  ;;  %v1704_v31 = vmax.bf16 %v1616_v25, %v1243_v1  ;;  %v582_v3 = vor.u32 %v581_v10, %v578_v28  ;;  %v589_v29 = vshrl.u32 %v3078_v16, 16  ;;  %v3135_v10 = vld [vmem:[%s3594_s0 + $0x114] sm:$0xf] }
  0xc2   :  { %v1705_v35 = vmax.bf16 %v1617_v32, %v1246_v0  ;;  %v1766_v30 = vmax.bf16 %v1702_v18, %v3011_v59  ;;  %v587_v41 = vrot.slane %v585_v33, 5  ;;  %v595_v42 = vshll.u32 %v73_v8, 16 }
  0xc3   :  { %v1767_v27 = vmax.bf16 %v1703_v34, %v3018_v61  ;;  %v583_v44 = vrot.slane %v582_v3, 4  ;;  %v591_v47 = vrot.slane %v589_v29, 4  ;;  %v2089_v39 = vrot.slane %v3060_v43, 9 }
  0xc4   :  { %v1882_v49 = vmax.bf16 %v1766_v30, %v564_v58  ;;  %v597_v48 = vrot.slane %v595_v42, 5  ;;  %v1249_v50 = vrot.slane %v3078_v16, 5  ;;  %v1252_v38 = vrot.slane %v73_v8, 5 }
  0xc5   :  { %v1883_v52 = vmax.bf16 %v1767_v27, %v574_v60  ;;  %v588_v59 = vsel %vm2390_vm4, %v583_v44, %v587_v41  ;;  %v592_v46 = vor.u32 %v591_v47, %v587_v41  ;;  %v1768_v61 = vmax.bf16 %v1704_v31, %v3060_v43 }
  0xc6   :  { %v1970_v15 = vmax.bf16 %v1882_v49, %v1243_v1  ;;  %v989_v37 = vmax.bf16 %v588_v59, %v3060_v43  ;;  %v1250_v58 = vsel %vm2413_vm5, %v2089_v39, %v1249_v50  ;;  %v1251_v36 = vrot.slane %v1249_v50, 4 }
  0xc7   :  { %v1971_v40 = vmax.bf16 %v1883_v52, %v1246_v0  ;;  %v593_v45 = vrot.slane %v592_v46, 4  ;;  %v1618_v60 = vmax.bf16 %v1502_v4, %v588_v59  ;;  %v1769_v62 = vmax.bf16 %v1705_v35, %v3078_v16  ;;  %v79_v52 = vld [vmem:[%s3594_s0 + $0x11c] sm:$0x1] }
  0xc8   :  { %v1253_v5 = vsel %vm2413_vm5, %v1251_v36, %v1252_v38  ;;  %v1440_v6 = vmax.bf16 %v1250_v58, %v989_v37  ;;  %v1884_v12 = vmax.bf16 %v1768_v61, %v588_v59  ;;  %v600_v43 = vshrl.u32 %v3100_v55, 16 }
  0xc9   :  { %v2297_v9 = vcombine.low %v1970_v15, %v1971_v40  ;;  %v598_v17 = vsel %vm2390_vm4, %v593_v45, %v597_v48  ;;  %v1706_v1 = vmax.bf16 %v1618_v60, %v1250_v58  ;;  %v603_v53 = vshll.u32 %v3100_v55, 16 }
  0xca   :  { %v990_v2 = vmax.bf16 %v598_v17, %v3078_v16  ;;  %v1504_v54 = vmax.bf16 %v1440_v6, %v3100_v55  ;;  %v1619_v11 = vmax.bf16 %v1503_v51, %v598_v17  ;;  %v1885_v63 = vmax.bf16 %v1769_v62, %v598_v17  ;;  %v3140_v51 = vld [vmem:[%s3594_s0 + $0x118] sm:$0xf] }
  0xcb   :  { %2298 = vst [vmem:[%s3595_s1 + $0x80] sm:$0xff] %v2297_v9   ;;  %v1972_v14 = vmax.bf16 %v1884_v12, %v1250_v58  ;;  %v602_v0 = vrot.slane %v600_v43, 4  ;;  %v605_v7 = vrot.slane %v603_v53, 5  ;;  %v609_v19 = vshll.u32 %v3112_v57, 16 }
  0xcc   :  { %v1441_v20 = vmax.bf16 %v1253_v5, %v990_v2  ;;  %v1707_v21 = vmax.bf16 %v1619_v11, %v1253_v5  ;;  %v1973_v16 = vmax.bf16 %v1885_v63, %v1253_v5  ;;  %v613_v22 = vshrl.u32 %v3112_v57, 16 }
  0xcd   :  { %v606_v4 = vor.u32 %v605_v7, %v602_v0  ;;  %v611_v23 = vrot.slane %v609_v19, 5  ;;  %v619_v24 = vshll.u32 %v76_v13, 16  ;;  %v2090_v25 = vrot.slane %v3100_v55, 9 }
  0xce   :  { %v1505_v8 = vmax.bf16 %v1441_v20, %v3112_v57  ;;  %v2299_v28 = vcombine.low %v1972_v14, %v1973_v16  ;;  %v615_v32 = vrot.slane %v613_v22, 4  ;;  %v1256_v18 = vrot.slane %v3112_v57, 5 }
  0xcf   :  { %v607_v33 = vrot.slane %v606_v4, 4  ;;  %v621_v34 = vrot.slane %v619_v24, 5  ;;  %v1259_v31 = vrot.slane %v76_v13, 5  ;;  %v1770_v3 = vmax.bf16 %v1706_v1, %v3100_v55  ;;  %v3172_v13 = vld [vmem:[%s3594_s0 + $0x120] sm:$0xf] }
  0xd0   :  { %2300 = vst [vmem:[%s3595_s1 + $0x88] sm:$0xff] %v2299_v28   ;;  %v616_v29 = vor.u32 %v615_v32, %v611_v23  ;;  %v1257_v35 = vsel %vm2413_vm5, %v2090_v25, %v1256_v18  ;;  %v1258_v30 = vrot.slane %v1256_v18, 4  ;;  %v1771_v41 = vmax.bf16 %v1707_v21, %v3112_v57  ;;  %v3187_v24 = vld [vmem:[%s3594_s0 + $0x124] sm:$0xf] }
  0xd1   :  { %v612_v42 = vsel %vm2390_vm4, %v607_v33, %v611_v23  ;;  %v624_v27 = vshrl.u32 %v3135_v10, 16  ;;  %v627_v44 = vshll.u32 %v3135_v10, 16  ;;  %v633_v47 = vshll.u32 %v3140_v51, 16 }
  0xd2   :  { %v617_v39 = vrot.slane %v616_v29, 4  ;;  %v991_v49 = vmax.bf16 %v612_v42, %v3100_v55  ;;  %v1260_v48 = vsel %vm2413_vm5, %v1258_v30, %v1259_v31  ;;  %v1620_v50 = vmax.bf16 %v1504_v54, %v612_v42  ;;  %v82_v31 = vld [vmem:[%s3594_s0 + $0x128] sm:$0x1] }
  0xd3   :  { %v1886_v38 = vmax.bf16 %v1770_v3, %v612_v42  ;;  %v626_v59 = vrot.slane %v624_v27, 4  ;;  %v629_v46 = vrot.slane %v627_v44, 5  ;;  %v635_v61 = vrot.slane %v633_v47, 5 }
  0xd4   :  { %v622_v15 = vsel %vm2390_vm4, %v617_v39, %v621_v34  ;;  %v1442_v37 = vmax.bf16 %v1257_v35, %v991_v49  ;;  %v1708_v58 = vmax.bf16 %v1620_v50, %v1257_v35  ;;  %v637_v36 = vshrl.u32 %v3140_v51, 16  ;;  %v3206_v50 = vld [vmem:[%s3594_s0 + $0x12c] sm:$0xf] }
  0xd5   :  { %v992_v55 = vmax.bf16 %v622_v15, %v3112_v57  ;;  %v1621_v40 = vmax.bf16 %v1505_v8, %v622_v15  ;;  %v1887_v45 = vmax.bf16 %v1771_v41, %v622_v15  ;;  %v1974_v60 = vmax.bf16 %v1886_v38, %v1257_v35 }
  0xd6   :  { %v1506_v62 = vmax.bf16 %v1442_v37, %v3135_v10  ;;  %v630_v5 = vor.u32 %v629_v46, %v626_v59  ;;  %v639_v6 = vrot.slane %v637_v36, 4  ;;  %v643_v12 = vshll.u32 %v79_v52, 16 }
  0xd7   :  { %v1443_v43 = vmax.bf16 %v1260_v48, %v992_v55  ;;  %v1709_v9 = vmax.bf16 %v1621_v40, %v1260_v48  ;;  %v1975_v17 = vmax.bf16 %v1887_v45, %v1260_v48  ;;  %v2091_v1 = vrot.slane %v3135_v10, 9 }
  0xd8   :  { %v631_v53 = vrot.slane %v630_v5, 4  ;;  %v640_v2 = vor.u32 %v639_v6, %v635_v61  ;;  %v645_v54 = vrot.slane %v643_v12, 5  ;;  %v1263_v11 = vrot.slane %v3140_v51, 5 }
  0xd9   :  { %v1507_v57 = vmax.bf16 %v1443_v43, %v3140_v51  ;;  %v2301_v63 = vcombine.low %v1974_v60, %v1975_v17  ;;  %v1266_v14 = vrot.slane %v79_v52, 5  ;;  %v1772_v0 = vmax.bf16 %v1708_v58, %v3135_v10  ;;  %v3213_v58 = vld [vmem:[%s3594_s0 + $0x130] sm:$0xf] }
  0xda   :  { %v636_v7 = vsel %vm2390_vm4, %v631_v53, %v635_v61  ;;  %v641_v19 = vrot.slane %v640_v2, 4  ;;  %v1264_v20 = vsel %vm2413_vm5, %v2091_v1, %v1263_v11  ;;  %v1265_v21 = vrot.slane %v1263_v11, 4  ;;  %v85_v1 = vld [vmem:[%s3594_s0 + $0x134] sm:$0x1] }
  0xdb   :  { %2302 = vst [vmem:[%s3595_s1 + $0x90] sm:$0xff] %v2301_v63   ;;  %v993_v16 = vmax.bf16 %v636_v7, %v3135_v10  ;;  %v1622_v22 = vmax.bf16 %v1506_v62, %v636_v7  ;;  %v1773_v4 = vmax.bf16 %v1709_v9, %v3140_v51  ;;  %v1888_v23 = vmax.bf16 %v1772_v0, %v636_v7 }
  0xdc   :  { %v646_v25 = vsel %vm2390_vm4, %v641_v19, %v645_v54  ;;  %v1267_v8 = vsel %vm2413_vm5, %v1265_v21, %v1266_v14  ;;  %v648_v28 = vshrl.u32 %v3172_v13, 16  ;;  %v651_v32 = vshll.u32 %v3172_v13, 16 }
  0xdd   :  { %v994_v10 = vmax.bf16 %v646_v25, %v3140_v51  ;;  %v1444_v18 = vmax.bf16 %v1264_v20, %v993_v16  ;;  %v1623_v33 = vmax.bf16 %v1507_v57, %v646_v25  ;;  %v1710_v34 = vmax.bf16 %v1622_v22, %v1264_v20 }
  0xde   :  { %v1889_v3 = vmax.bf16 %v1773_v4, %v646_v25  ;;  %v1976_v29 = vmax.bf16 %v1888_v23, %v1264_v20  ;;  %v650_v35 = vrot.slane %v648_v28, 4  ;;  %v653_v30 = vrot.slane %v651_v32, 5 }
  0xdf   :  { %v1445_v41 = vmax.bf16 %v1267_v8, %v994_v10  ;;  %v1508_v42 = vmax.bf16 %v1444_v18, %v3172_v13  ;;  %v1711_v27 = vmax.bf16 %v1623_v33, %v1267_v8  ;;  %v657_v44 = vshll.u32 %v3187_v24, 16  ;;  %v3242_v33 = vld [vmem:[%s3594_s0 + $0x138] sm:$0xf] }
  0xe0   :  { %v1977_v47 = vmax.bf16 %v1889_v3, %v1267_v8  ;;  %v654_v39 = vor.u32 %v653_v30, %v650_v35  ;;  %v661_v51 = vshrl.u32 %v3187_v24, 16  ;;  %v667_v49 = vshll.u32 %v82_v31, 16 }
  0xe1   :  { %v1509_v48 = vmax.bf16 %v1445_v41, %v3187_v24  ;;  %v659_v38 = vrot.slane %v657_v44, 5  ;;  %v2092_v52 = vrot.slane %v3172_v13, 9  ;;  %v1270_v59 = vrot.slane %v3187_v24, 5  ;;  %v3250_v41 = vld [vmem:[%s3594_s0 + $0x13c] sm:$0xf] }
  0xe2   :  { %v2303_v46 = vcombine.low %v1976_v29, %v1977_v47  ;;  %v655_v61 = vrot.slane %v654_v39, 4  ;;  %v663_v15 = vrot.slane %v661_v51, 4  ;;  %v669_v37 = vrot.slane %v667_v49, 5 }
  0xe3   :  { %v1271_v36 = vsel %vm2413_vm5, %v2092_v52, %v1270_v59  ;;  %v1272_v55 = vrot.slane %v1270_v59, 4  ;;  %v1273_v40 = vrot.slane %v82_v31, 5  ;;  %v1774_v45 = vmax.bf16 %v1710_v34, %v3172_v13 }
  0xe4   :  { %2304 = vst [vmem:[%s3595_s1 + $0x98] sm:$0xff] %v2303_v46   ;;  %v660_v60 = vsel %vm2390_vm4, %v655_v61, %v659_v38  ;;  %v664_v62 = vor.u32 %v663_v15, %v659_v38  ;;  %v1775_v5 = vmax.bf16 %v1711_v27, %v3187_v24  ;;  %v672_v6 = vshrl.u32 %v3206_v50, 16 }
  0xe5   :  { %v995_v12 = vmax.bf16 %v660_v60, %v3172_v13  ;;  %v1274_v43 = vsel %vm2413_vm5, %v1272_v55, %v1273_v40  ;;  %v1624_v9 = vmax.bf16 %v1508_v42, %v660_v60  ;;  %v1890_v17 = vmax.bf16 %v1774_v45, %v660_v60 }
  0xe6   :  { %v665_v53 = vrot.slane %v664_v62, 4  ;;  %v674_v2 = vrot.slane %v672_v6, 4  ;;  %v675_v54 = vshll.u32 %v3206_v50, 16  ;;  %v681_v11 = vshll.u32 %v3213_v58, 16 }
  0xe7   :  { %v1446_v57 = vmax.bf16 %v1271_v36, %v995_v12  ;;  %v1712_v63 = vmax.bf16 %v1624_v9, %v1271_v36  ;;  %v1978_v14 = vmax.bf16 %v1890_v17, %v1271_v36  ;;  %v685_v13 = vshrl.u32 %v3213_v58, 16 }
  0xe8   :  { %v670_v0 = vsel %vm2390_vm4, %v665_v53, %v669_v37  ;;  %v677_v7 = vrot.slane %v675_v54, 5  ;;  %v683_v19 = vrot.slane %v681_v11, 5  ;;  %v691_v20 = vshll.u32 %v85_v1, 16  ;;  %v3284_v11 = vld [vmem:[%s3594_s0 + $0x148] sm:$0xf] }
  0xe9   :  { %v996_v21 = vmax.bf16 %v670_v0, %v3187_v24  ;;  %v1510_v16 = vmax.bf16 %v1446_v57, %v3206_v50  ;;  %v1625_v22 = vmax.bf16 %v1509_v48, %v670_v0  ;;  %v1891_v4 = vmax.bf16 %v1775_v5, %v670_v0 }
  0xea   :  { %v678_v23 = vor.u32 %v677_v7, %v674_v2  ;;  %v687_v25 = vrot.slane %v685_v13, 4  ;;  %v693_v8 = vrot.slane %v691_v20, 5  ;;  %v2093_v28 = vrot.slane %v3206_v50, 9 }
  0xeb   :  { %v1447_v32 = vmax.bf16 %v1274_v43, %v996_v21  ;;  %v1713_v10 = vmax.bf16 %v1625_v22, %v1274_v43  ;;  %v1979_v18 = vmax.bf16 %v1891_v4, %v1274_v43  ;;  %v1277_v34 = vrot.slane %v3213_v58, 5 }
  0xec   :  { %v679_v24 = vrot.slane %v678_v23, 4  ;;  %v688_v31 = vor.u32 %v687_v25, %v683_v19  ;;  %v1280_v3 = vrot.slane %v85_v1, 5  ;;  %v1776_v29 = vmax.bf16 %v1712_v63, %v3206_v50 }
  0xed   :  { %v1511_v35 = vmax.bf16 %v1447_v32, %v3213_v58  ;;  %v2305_v30 = vcombine.low %v1978_v14, %v1979_v18  ;;  %v1278_v42 = vsel %vm2413_vm5, %v2093_v28, %v1277_v34  ;;  %v1279_v27 = vrot.slane %v1277_v34, 4 }
  0xee   :  { %v684_v44 = vsel %vm2390_vm4, %v679_v24, %v683_v19  ;;  %v689_v47 = vrot.slane %v688_v31, 4  ;;  %v1777_v39 = vmax.bf16 %v1713_v10, %v3213_v58  ;;  %v696_v51 = vshrl.u32 %v3242_v33, 16  ;;  %v91_v24 = vld [vmem:[%s3594_s0 + $0x14c] sm:$0x1] }
  0xef   :  { %2306 = vst [vmem:[%s3595_s1 + $0xa0] sm:$0xff] %v2305_v30   ;;  %v997_v49 = vmax.bf16 %v684_v44, %v3206_v50  ;;  %v1281_v48 = vsel %vm2413_vm5, %v1279_v27, %v1280_v3  ;;  %v1626_v38 = vmax.bf16 %v1510_v16, %v684_v44  ;;  %v1892_v52 = vmax.bf16 %v1776_v29, %v684_v44  ;;  %v88_v50 = vld [vmem:[%s3594_s0 + $0x140] sm:$0x1] }
  0xf0   :  { %v694_v59 = vsel %vm2390_vm4, %v689_v47, %v693_v8  ;;  %v698_v46 = vrot.slane %v696_v51, 4  ;;  %v699_v61 = vshll.u32 %v3242_v33, 16  ;;  %v705_v15 = vshll.u32 %v3250_v41, 16 }
  0xf1   :  { %v998_v37 = vmax.bf16 %v694_v59, %v3213_v58  ;;  %v1448_v36 = vmax.bf16 %v1278_v42, %v997_v49  ;;  %v1627_v55 = vmax.bf16 %v1511_v35, %v694_v59  ;;  %v1714_v40 = vmax.bf16 %v1626_v38, %v1278_v42  ;;  %v3277_v58 = vld [vmem:[%s3594_s0 + $0x144] sm:$0xf] }
  0xf2   :  { %v1893_v45 = vmax.bf16 %v1777_v39, %v694_v59  ;;  %v1980_v60 = vmax.bf16 %v1892_v52, %v1278_v42  ;;  %v701_v62 = vrot.slane %v699_v61, 5  ;;  %v707_v5 = vrot.slane %v705_v15, 5 }
  0xf3   :  { %v1449_v6 = vmax.bf16 %v1281_v48, %v998_v37  ;;  %v1512_v12 = vmax.bf16 %v1448_v36, %v3242_v33  ;;  %v1715_v43 = vmax.bf16 %v1627_v55, %v1281_v48  ;;  %v709_v9 = vshrl.u32 %v3250_v41, 16 }
  0xf4   :  { %v1981_v17 = vmax.bf16 %v1893_v45, %v1281_v48  ;;  %v702_v1 = vor.u32 %v701_v62, %v698_v46  ;;  %v715_v53 = vshll.u32 %v88_v50, 16  ;;  %v2094_v2 = vrot.slane %v3242_v33, 9 }
  0xf5   :  { %v1513_v54 = vmax.bf16 %v1449_v6, %v3250_v41  ;;  %v711_v57 = vrot.slane %v709_v9, 4  ;;  %v1284_v63 = vrot.slane %v3250_v41, 5  ;;  %v1287_v14 = vrot.slane %v88_v50, 5  ;;  %v3316_v50 = vld [vmem:[%s3594_s0 + $0x150] sm:$0xf] }
  0xf6   :  { %v2307_v13 = vcombine.low %v1980_v60, %v1981_v17  ;;  %v703_v0 = vrot.slane %v702_v1, 4  ;;  %v717_v7 = vrot.slane %v715_v53, 5  ;;  %v1778_v19 = vmax.bf16 %v1714_v40, %v3242_v33  ;;  %v3331_v53 = vld [vmem:[%s3594_s0 + $0x154] sm:$0xf] }
  0xf7   :  { %v712_v20 = vor.u32 %v711_v57, %v707_v5  ;;  %v1285_v21 = vsel %vm2413_vm5, %v2094_v2, %v1284_v63  ;;  %v1286_v16 = vrot.slane %v1284_v63, 4  ;;  %v1779_v22 = vmax.bf16 %v1715_v43, %v3250_v41 }
  0xf8   :  { %2308 = vst [vmem:[%s3595_s1 + $0xa8] sm:$0xff] %v2307_v13   ;;  %v708_v4 = vsel %vm2390_vm4, %v703_v0, %v707_v5  ;;  %v720_v23 = vshrl.u32 %v3277_v58, 16  ;;  %v723_v25 = vshll.u32 %v3277_v58, 16  ;;  %v729_v8 = vshll.u32 %v3284_v11, 16 }
  0xf9   :  { %v713_v28 = vrot.slane %v712_v20, 4  ;;  %v999_v32 = vmax.bf16 %v708_v4, %v3242_v33  ;;  %v1288_v10 = vsel %vm2413_vm5, %v1286_v16, %v1287_v14  ;;  %v1628_v18 = vmax.bf16 %v1512_v12, %v708_v4 }
  0xfa   :  { %v1894_v34 = vmax.bf16 %v1778_v19, %v708_v4  ;;  %v722_v31 = vrot.slane %v720_v23, 4  ;;  %v725_v3 = vrot.slane %v723_v25, 5  ;;  %v731_v29 = vrot.slane %v729_v8, 5 }
  0xfb   :  { %v718_v35 = vsel %vm2390_vm4, %v713_v28, %v717_v7  ;;  %v1450_v30 = vmax.bf16 %v1285_v21, %v999_v32  ;;  %v1716_v42 = vmax.bf16 %v1628_v18, %v1285_v21  ;;  %v733_v27 = vshrl.u32 %v3284_v11, 16  ;;  %v94_v7 = vld [vmem:[%s3594_s0 + $0x158] sm:$0x1]  ;;  %v3350_v18 = vld [vmem:[%s3594_s0 + $0x15c] sm:$0xf] }
  0xfc   :  { %v1000_v33 = vmax.bf16 %v718_v35, %v3250_v41  ;;  %v1629_v44 = vmax.bf16 %v1513_v54, %v718_v35  ;;  %v1895_v47 = vmax.bf16 %v1779_v22, %v718_v35  ;;  %v1982_v39 = vmax.bf16 %v1894_v34, %v1285_v21 }
  0xfd   :  { %v1514_v51 = vmax.bf16 %v1450_v30, %v3277_v58  ;;  %v726_v49 = vor.u32 %v725_v3, %v722_v31  ;;  %v735_v48 = vrot.slane %v733_v27, 4  ;;  %v739_v38 = vshll.u32 %v91_v24, 16 }
  0xfe   :  { %v1451_v52 = vmax.bf16 %v1288_v10, %v1000_v33  ;;  %v1717_v59 = vmax.bf16 %v1629_v44, %v1288_v10  ;;  %v1983_v46 = vmax.bf16 %v1895_v47, %v1288_v10  ;;  %v2095_v61 = vrot.slane %v3277_v58, 9 }
  0xff   :  { %v727_v15 = vrot.slane %v726_v49, 4  ;;  %v736_v37 = vor.u32 %v735_v48, %v731_v29  ;;  %v741_v36 = vrot.slane %v739_v38, 5  ;;  %v1291_v55 = vrot.slane %v3284_v11, 5 }
 0x100   :  { %v1515_v41 = vmax.bf16 %v1451_v52, %v3284_v11  ;;  %v2309_v40 = vcombine.low %v1982_v39, %v1983_v46  ;;  %v1294_v45 = vrot.slane %v91_v24, 5  ;;  %v1780_v60 = vmax.bf16 %v1716_v42, %v3277_v58  ;;  %v3357_v42 = vld [vmem:[%s3594_s0 + $0x160] sm:$0xf] }
 0x101   :  { %v732_v62 = vsel %vm2390_vm4, %v727_v15, %v731_v29  ;;  %v737_v5 = vrot.slane %v736_v37, 4  ;;  %v1292_v6 = vsel %vm2413_vm5, %v2095_v61, %v1291_v55  ;;  %v1293_v12 = vrot.slane %v1291_v55, 4  ;;  %v97_v61 = vld [vmem:[%s3594_s0 + $0x164] sm:$0x1] }
 0x102   :  { %2310 = vst [vmem:[%s3595_s1 + $0xb0] sm:$0xff] %v2309_v40   ;;  %v1001_v43 = vmax.bf16 %v732_v62, %v3277_v58  ;;  %v1630_v9 = vmax.bf16 %v1514_v51, %v732_v62  ;;  %v1781_v17 = vmax.bf16 %v1717_v59, %v3284_v11  ;;  %v1896_v1 = vmax.bf16 %v1780_v60, %v732_v62 }
 0x103   :  { %v742_v2 = vsel %vm2390_vm4, %v737_v5, %v741_v36  ;;  %v1295_v54 = vsel %vm2413_vm5, %v1293_v12, %v1294_v45  ;;  %v744_v57 = vshrl.u32 %v3316_v50, 16  ;;  %v747_v63 = vshll.u32 %v3316_v50, 16 }
 0x104   :  { %v1002_v58 = vmax.bf16 %v742_v2, %v3284_v11  ;;  %v1452_v14 = vmax.bf16 %v1292_v6, %v1001_v43  ;;  %v1631_v13 = vmax.bf16 %v1515_v41, %v742_v2  ;;  %v1718_v0 = vmax.bf16 %v1630_v9, %v1292_v6 }
 0x105   :  { %v1897_v19 = vmax.bf16 %v1781_v17, %v742_v2  ;;  %v1984_v20 = vmax.bf16 %v1896_v1, %v1292_v6  ;;  %v746_v21 = vrot.slane %v744_v57, 4  ;;  %v749_v16 = vrot.slane %v747_v63, 5 }
 0x106   :  { %v1453_v22 = vmax.bf16 %v1295_v54, %v1002_v58  ;;  %v1516_v4 = vmax.bf16 %v1452_v14, %v3316_v50  ;;  %v1719_v23 = vmax.bf16 %v1631_v13, %v1295_v54  ;;  %v753_v25 = vshll.u32 %v3331_v53, 16  ;;  %v3386_v13 = vld [vmem:[%s3594_s0 + $0x168] sm:$0xf] }
 0x107   :  { %v1985_v8 = vmax.bf16 %v1897_v19, %v1295_v54  ;;  %v750_v28 = vor.u32 %v749_v16, %v746_v21  ;;  %v757_v11 = vshrl.u32 %v3331_v53, 16  ;;  %v763_v32 = vshll.u32 %v94_v7, 16 }
 0x108   :  { %v1517_v10 = vmax.bf16 %v1453_v22, %v3331_v53  ;;  %v755_v34 = vrot.slane %v753_v25, 5  ;;  %v2096_v24 = vrot.slane %v3316_v50, 9  ;;  %v1298_v31 = vrot.slane %v3331_v53, 5  ;;  %v3394_v22 = vld [vmem:[%s3594_s0 + $0x16c] sm:$0xf] }
 0x109   :  { %v2311_v3 = vcombine.low %v1984_v20, %v1985_v8  ;;  %v751_v29 = vrot.slane %v750_v28, 4  ;;  %v759_v35 = vrot.slane %v757_v11, 4  ;;  %v765_v30 = vrot.slane %v763_v32, 5 }
 0x10a   :  { %v1299_v27 = vsel %vm2413_vm5, %v2096_v24, %v1298_v31  ;;  %v1300_v33 = vrot.slane %v1298_v31, 4  ;;  %v1301_v44 = vrot.slane %v94_v7, 5  ;;  %v1782_v47 = vmax.bf16 %v1718_v0, %v3316_v50 }
 0x10b   :  { %2312 = vst [vmem:[%s3595_s1 + $0xb8] sm:$0xff] %v2311_v3   ;;  %v756_v39 = vsel %vm2390_vm4, %v751_v29, %v755_v34  ;;  %v760_v51 = vor.u32 %v759_v35, %v755_v34  ;;  %v1783_v49 = vmax.bf16 %v1719_v23, %v3331_v53  ;;  %v768_v48 = vshrl.u32 %v3350_v18, 16 }
 0x10c   :  { %v1003_v38 = vmax.bf16 %v756_v39, %v3316_v50  ;;  %v1302_v52 = vsel %vm2413_vm5, %v1300_v33, %v1301_v44  ;;  %v1632_v59 = vmax.bf16 %v1516_v4, %v756_v39  ;;  %v1898_v46 = vmax.bf16 %v1782_v47, %v756_v39 }
 0x10d   :  { %v761_v15 = vrot.slane %v760_v51, 4  ;;  %v770_v37 = vrot.slane %v768_v48, 4  ;;  %v771_v36 = vshll.u32 %v3350_v18, 16  ;;  %v777_v55 = vshll.u32 %v3357_v42, 16 }
 0x10e   :  { %v1454_v41 = vmax.bf16 %v1299_v27, %v1003_v38  ;;  %v1720_v40 = vmax.bf16 %v1632_v59, %v1299_v27  ;;  %v1986_v45 = vmax.bf16 %v1898_v46, %v1299_v27  ;;  %v781_v50 = vshrl.u32 %v3357_v42, 16 }
 0x10f   :  { %v766_v60 = vsel %vm2390_vm4, %v761_v15, %v765_v30  ;;  %v773_v62 = vrot.slane %v771_v36, 5  ;;  %v779_v5 = vrot.slane %v777_v55, 5  ;;  %v787_v6 = vshll.u32 %v97_v61, 16  ;;  %v3428_v55 = vld [vmem:[%s3594_s0 + $0x178] sm:$0xf] }
 0x110   :  { %v1004_v12 = vmax.bf16 %v766_v60, %v3331_v53  ;;  %v1518_v43 = vmax.bf16 %v1454_v41, %v3350_v18  ;;  %v1633_v9 = vmax.bf16 %v1517_v10, %v766_v60  ;;  %v1899_v17 = vmax.bf16 %v1783_v49, %v766_v60 }
 0x111   :  { %v774_v1 = vor.u32 %v773_v62, %v770_v37  ;;  %v783_v2 = vrot.slane %v781_v50, 4  ;;  %v789_v54 = vrot.slane %v787_v6, 5  ;;  %v2097_v57 = vrot.slane %v3350_v18, 9 }
 0x112   :  { %v1455_v63 = vmax.bf16 %v1302_v52, %v1004_v12  ;;  %v1721_v58 = vmax.bf16 %v1633_v9, %v1302_v52  ;;  %v1987_v14 = vmax.bf16 %v1899_v17, %v1302_v52  ;;  %v1305_v0 = vrot.slane %v3357_v42, 5 }
 0x113   :  { %v775_v53 = vrot.slane %v774_v1, 4  ;;  %v784_v7 = vor.u32 %v783_v2, %v779_v5  ;;  %v1308_v19 = vrot.slane %v97_v61, 5  ;;  %v1784_v20 = vmax.bf16 %v1720_v40, %v3350_v18 }
 0x114   :  { %v1519_v21 = vmax.bf16 %v1455_v63, %v3357_v42  ;;  %v2313_v16 = vcombine.low %v1986_v45, %v1987_v14  ;;  %v1306_v4 = vsel %vm2413_vm5, %v2097_v57, %v1305_v0  ;;  %v1307_v23 = vrot.slane %v1305_v0, 4 }
 0x115   :  { %v780_v25 = vsel %vm2390_vm4, %v775_v53, %v779_v5  ;;  %v785_v8 = vrot.slane %v784_v7, 4  ;;  %v1785_v28 = vmax.bf16 %v1721_v58, %v3357_v42  ;;  %v792_v11 = vshrl.u32 %v3386_v13, 16  ;;  %v103_v53 = vld [vmem:[%s3594_s0 + $0x17c] sm:$0x1] }
 0x116   :  { %2314 = vst [vmem:[%s3595_s1 + $0xc0] sm:$0xff] %v2313_v16   ;;  %v1005_v32 = vmax.bf16 %v780_v25, %v3350_v18  ;;  %v1309_v10 = vsel %vm2413_vm5, %v1307_v23, %v1308_v19  ;;  %v1634_v34 = vmax.bf16 %v1518_v43, %v780_v25  ;;  %v1900_v24 = vmax.bf16 %v1784_v20, %v780_v25  ;;  %v100_v18 = vld [vmem:[%s3594_s0 + $0x170] sm:$0x1] }
 0x117   :  { %v790_v31 = vsel %vm2390_vm4, %v785_v8, %v789_v54  ;;  %v794_v3 = vrot.slane %v792_v11, 4  ;;  %v795_v29 = vshll.u32 %v3386_v13, 16  ;;  %v801_v35 = vshll.u32 %v3394_v22, 16 }
 0x118   :  { %v1006_v30 = vmax.bf16 %v790_v31, %v3357_v42  ;;  %v1456_v27 = vmax.bf16 %v1306_v4, %v1005_v32  ;;  %v1635_v33 = vmax.bf16 %v1519_v21, %v790_v31  ;;  %v1722_v44 = vmax.bf16 %v1634_v34, %v1306_v4  ;;  %v3421_v42 = vld [vmem:[%s3594_s0 + $0x174] sm:$0xf] }
 0x119   :  { %v1901_v47 = vmax.bf16 %v1785_v28, %v790_v31  ;;  %v1988_v39 = vmax.bf16 %v1900_v24, %v1306_v4  ;;  %v797_v51 = vrot.slane %v795_v29, 5  ;;  %v803_v49 = vrot.slane %v801_v35, 5 }
 0x11a   :  { %v1457_v48 = vmax.bf16 %v1309_v10, %v1006_v30  ;;  %v1520_v38 = vmax.bf16 %v1456_v27, %v3386_v13  ;;  %v1723_v52 = vmax.bf16 %v1635_v33, %v1309_v10  ;;  %v805_v59 = vshrl.u32 %v3394_v22, 16 }
 0x11b   :  { %v1989_v46 = vmax.bf16 %v1901_v47, %v1309_v10  ;;  %v798_v61 = vor.u32 %v797_v51, %v794_v3  ;;  %v811_v15 = vshll.u32 %v100_v18, 16  ;;  %v2098_v37 = vrot.slane %v3386_v13, 9 }
 0x11c   :  { %v1521_v36 = vmax.bf16 %v1457_v48, %v3394_v22  ;;  %v807_v41 = vrot.slane %v805_v59, 4  ;;  %v1312_v40 = vrot.slane %v3394_v22, 5  ;;  %v1315_v45 = vrot.slane %v100_v18, 5  ;;  %v3460_v18 = vld [vmem:[%s3594_s0 + $0x180] sm:$0xf] }
 0x11d   :  { %v2315_v50 = vcombine.low %v1988_v39, %v1989_v46  ;;  %v799_v60 = vrot.slane %v798_v61, 4  ;;  %v813_v62 = vrot.slane %v811_v15, 5  ;;  %v1786_v5 = vmax.bf16 %v1722_v44, %v3386_v13  ;;  %v3475_v15 = vld [vmem:[%s3594_s0 + $0x184] sm:$0xf] }
 0x11e   :  { %v808_v6 = vor.u32 %v807_v41, %v803_v49  ;;  %v1313_v12 = vsel %vm2413_vm5, %v2098_v37, %v1312_v40  ;;  %v1314_v43 = vrot.slane %v1312_v40, 4  ;;  %v1787_v9 = vmax.bf16 %v1723_v52, %v3394_v22 }
 0x11f   :  { %2316 = vst [vmem:[%s3595_s1 + $0xc8] sm:$0xff] %v2315_v50   ;;  %v804_v17 = vsel %vm2390_vm4, %v799_v60, %v803_v49  ;;  %v816_v1 = vshrl.u32 %v3421_v42, 16  ;;  %v819_v2 = vshll.u32 %v3421_v42, 16  ;;  %v825_v54 = vshll.u32 %v3428_v55, 16 }
 0x120   :  { %v809_v57 = vrot.slane %v808_v6, 4  ;;  %v1007_v63 = vmax.bf16 %v804_v17, %v3386_v13  ;;  %v1316_v58 = vsel %vm2413_vm5, %v1314_v43, %v1315_v45  ;;  %v1636_v14 = vmax.bf16 %v1520_v38, %v804_v17 }
 0x121   :  { %v1902_v0 = vmax.bf16 %v1786_v5, %v804_v17  ;;  %v818_v7 = vrot.slane %v816_v1, 4  ;;  %v821_v19 = vrot.slane %v819_v2, 5  ;;  %v827_v20 = vrot.slane %v825_v54, 5 }
 0x122   :  { %v814_v21 = vsel %vm2390_vm4, %v809_v57, %v813_v62  ;;  %v1458_v16 = vmax.bf16 %v1313_v12, %v1007_v63  ;;  %v1724_v4 = vmax.bf16 %v1636_v14, %v1313_v12  ;;  %v829_v23 = vshrl.u32 %v3428_v55, 16  ;;  %v106_v62 = vld [vmem:[%s3594_s0 + $0x188] sm:$0x1]  ;;  %v3494_v14 = vld [vmem:[%s3594_s0 + $0x18c] sm:$0xf] }
 0x123   :  { %v1008_v13 = vmax.bf16 %v814_v21, %v3394_v22  ;;  %v1637_v25 = vmax.bf16 %v1521_v36, %v814_v21  ;;  %v1903_v8 = vmax.bf16 %v1787_v9, %v814_v21  ;;  %v1990_v28 = vmax.bf16 %v1902_v0, %v1313_v12 }
 0x124   :  { %v1522_v11 = vmax.bf16 %v1458_v16, %v3421_v42  ;;  %v822_v32 = vor.u32 %v821_v19, %v818_v7  ;;  %v831_v10 = vrot.slane %v829_v23, 4  ;;  %v835_v34 = vshll.u32 %v103_v53, 16 }
 0x125   :  { %v1459_v24 = vmax.bf16 %v1316_v58, %v1008_v13  ;;  %v1725_v31 = vmax.bf16 %v1637_v25, %v1316_v58  ;;  %v1991_v3 = vmax.bf16 %v1903_v8, %v1316_v58  ;;  %v2099_v29 = vrot.slane %v3421_v42, 9 }
 0x126   :  { %v823_v35 = vrot.slane %v822_v32, 4  ;;  %v832_v30 = vor.u32 %v831_v10, %v827_v20  ;;  %v837_v27 = vrot.slane %v835_v34, 5  ;;  %v1319_v33 = vrot.slane %v3428_v55, 5 }
 0x127   :  { %v1523_v22 = vmax.bf16 %v1459_v24, %v3428_v55  ;;  %v2317_v44 = vcombine.low %v1990_v28, %v1991_v3  ;;  %v1322_v47 = vrot.slane %v103_v53, 5  ;;  %v1788_v39 = vmax.bf16 %v1724_v4, %v3421_v42  ;;  %v3501_v4 = vld [vmem:[%s3594_s0 + $0x190] sm:$0xf] }
 0x128   :  { %v828_v51 = vsel %vm2390_vm4, %v823_v35, %v827_v20  ;;  %v833_v49 = vrot.slane %v832_v30, 4  ;;  %v1320_v48 = vsel %vm2413_vm5, %v2099_v29, %v1319_v33  ;;  %v1321_v38 = vrot.slane %v1319_v33, 4  ;;  %v109_v29 = vld [vmem:[%s3594_s0 + $0x194] sm:$0x1] }
 0x129   :  { %2318 = vst [vmem:[%s3595_s1 + $0xd0] sm:$0xff] %v2317_v44   ;;  %v1009_v52 = vmax.bf16 %v828_v51, %v3421_v42  ;;  %v1638_v59 = vmax.bf16 %v1522_v11, %v828_v51  ;;  %v1789_v46 = vmax.bf16 %v1725_v31, %v3428_v55  ;;  %v1904_v61 = vmax.bf16 %v1788_v39, %v828_v51 }
 0x12a   :  { %v838_v37 = vsel %vm2390_vm4, %v833_v49, %v837_v27  ;;  %v1323_v36 = vsel %vm2413_vm5, %v1321_v38, %v1322_v47  ;;  %v840_v41 = vshrl.u32 %v3460_v18, 16  ;;  %v843_v40 = vshll.u32 %v3460_v18, 16 }
 0x12b   :  { %v1010_v42 = vmax.bf16 %v838_v37, %v3428_v55  ;;  %v1460_v45 = vmax.bf16 %v1320_v48, %v1009_v52  ;;  %v1639_v50 = vmax.bf16 %v1523_v22, %v838_v37  ;;  %v1726_v60 = vmax.bf16 %v1638_v59, %v1320_v48 }
 0x12c   :  { %v1905_v5 = vmax.bf16 %v1789_v46, %v838_v37  ;;  %v1992_v6 = vmax.bf16 %v1904_v61, %v1320_v48  ;;  %v842_v12 = vrot.slane %v840_v41, 4  ;;  %v845_v43 = vrot.slane %v843_v40, 5 }
 0x12d   :  { %v1461_v9 = vmax.bf16 %v1323_v36, %v1010_v42  ;;  %v1524_v17 = vmax.bf16 %v1460_v45, %v3460_v18  ;;  %v1727_v1 = vmax.bf16 %v1639_v50, %v1323_v36  ;;  %v849_v2 = vshll.u32 %v3475_v15, 16 }
 0x12e   :  { %v1993_v54 = vmax.bf16 %v1905_v5, %v1323_v36  ;;  %v846_v57 = vor.u32 %v845_v43, %v842_v12  ;;  %v853_v55 = vshrl.u32 %v3475_v15, 16  ;;  %v859_v63 = vshll.u32 %v106_v62, 16 }
 0x12f   :  { %v1525_v58 = vmax.bf16 %v1461_v9, %v3475_v15  ;;  %v851_v0 = vrot.slane %v849_v2, 5  ;;  %v2100_v53 = vrot.slane %v3460_v18, 9  ;;  %v1326_v7 = vrot.slane %v3475_v15, 5 }
 0x130   :  { %v2319_v19 = vcombine.low %v1992_v6, %v1993_v54  ;;  %v847_v20 = vrot.slane %v846_v57, 4  ;;  %v855_v21 = vrot.slane %v853_v55, 4  ;;  %v861_v16 = vrot.slane %v859_v63, 5 }
 0x131   :  { %v1327_v23 = vsel %vm2413_vm5, %v2100_v53, %v1326_v7  ;;  %v1328_v13 = vrot.slane %v1326_v7, 4  ;;  %v1329_v25 = vrot.slane %v106_v62, 5  ;;  %v1790_v8 = vmax.bf16 %v1726_v60, %v3460_v18  ;;  %v110_v60 = vld [vmem:[%s3594_s0 + $0x198] sm:$0xf] }
 0x132   :  { %2320 = vst [vmem:[%s3595_s1 + $0xd8] sm:$0xff] %v2319_v19   ;;  %v852_v28 = vsel %vm2390_vm4, %v847_v20, %v851_v0  ;;  %v856_v11 = vor.u32 %v855_v21, %v851_v0  ;;  %v1791_v32 = vmax.bf16 %v1727_v1, %v3475_v15  ;;  %v864_v10 = vshrl.u32 %v3494_v14, 16  ;;  %v3538_v1 = vld [vmem:[%s3594_s0 + $0x19c] sm:$0xf] }
 0x133   :  { %v1011_v34 = vmax.bf16 %v852_v28, %v3460_v18  ;;  %v1330_v24 = vsel %vm2413_vm5, %v1328_v13, %v1329_v25  ;;  %v1640_v31 = vmax.bf16 %v1524_v17, %v852_v28  ;;  %v1906_v3 = vmax.bf16 %v1790_v8, %v852_v28 }
 0x134   :  { %v857_v35 = vrot.slane %v856_v11, 4  ;;  %v866_v30 = vrot.slane %v864_v10, 4  ;;  %v867_v27 = vshll.u32 %v3494_v14, 16  ;;  %v873_v33 = vshll.u32 %v3501_v4, 16 }
 0x135   :  { %v1462_v22 = vmax.bf16 %v1327_v23, %v1011_v34  ;;  %v1728_v44 = vmax.bf16 %v1640_v31, %v1327_v23  ;;  %v1994_v47 = vmax.bf16 %v1906_v3, %v1327_v23  ;;  %v877_v18 = vshrl.u32 %v3501_v4, 16 }
 0x136   :  { %v862_v39 = vsel %vm2390_vm4, %v857_v35, %v861_v16  ;;  %v869_v51 = vrot.slane %v867_v27, 5  ;;  %v875_v49 = vrot.slane %v873_v33, 5  ;;  %v883_v48 = vshll.u32 %v109_v29, 16 }
 0x137   :  { %v1012_v38 = vmax.bf16 %v862_v39, %v3475_v15  ;;  %v1526_v52 = vmax.bf16 %v1462_v22, %v3494_v14  ;;  %v1641_v59 = vmax.bf16 %v1525_v58, %v862_v39  ;;  %v1907_v46 = vmax.bf16 %v1791_v32, %v862_v39 }
 0x138   :  { %v870_v61 = vor.u32 %v869_v51, %v866_v30  ;;  %v879_v37 = vrot.slane %v877_v18, 4  ;;  %v885_v36 = vrot.slane %v883_v48, 5  ;;  %v2101_v41 = vrot.slane %v3494_v14, 9  ;;  %v113_v30 = vld [vmem:[%s3594_s0 + $0x1a4] sm:$0xf] }
 0x139   :  { %v1463_v40 = vmax.bf16 %v1330_v24, %v1012_v38  ;;  %v1729_v42 = vmax.bf16 %v1641_v59, %v1330_v24  ;;  %v1995_v45 = vmax.bf16 %v1907_v46, %v1330_v24  ;;  %v1333_v50 = vrot.slane %v3501_v4, 5 }
 0x13a   :  { %v871_v62 = vrot.slane %v870_v61, 4  ;;  %v880_v15 = vor.u32 %v879_v37, %v875_v49  ;;  %v1336_v5 = vrot.slane %v109_v29, 5  ;;  %v1792_v6 = vmax.bf16 %v1728_v44, %v3494_v14  ;;  %v115_v61 = vld [vmem:[%s3594_s0 + $0x1ac] sm:$0x1] }
 0x13b   :  { %v1527_v12 = vmax.bf16 %v1463_v40, %v3501_v4  ;;  %v2321_v43 = vcombine.low %v1994_v47, %v1995_v45  ;;  %v1334_v9 = vsel %vm2413_vm5, %v2101_v41, %v1333_v50  ;;  %v1335_v17 = vrot.slane %v1333_v50, 4  ;;  %v114_v47 = vld [vmem:[%s3594_s0 + $0x1a8] sm:$0xf] }
 0x13c   :  { %v876_v2 = vsel %vm2390_vm4, %v871_v62, %v875_v49  ;;  %v881_v54 = vrot.slane %v880_v15, 4  ;;  %v1793_v57 = vmax.bf16 %v1729_v42, %v3501_v4  ;;  %v1555_v55 = vshrl.u32 %v110_v60, 16 }
 0x13d   :  { %2322 = vst [vmem:[%s3595_s1 + $0xe0] sm:$0xff] %v2321_v43   ;;  %v1013_v63 = vmax.bf16 %v876_v2, %v3494_v14  ;;  %v1337_v58 = vsel %vm2413_vm5, %v1335_v17, %v1336_v5  ;;  %v1642_v0 = vmax.bf16 %v1526_v52, %v876_v2  ;;  %v1908_v53 = vmax.bf16 %v1792_v6, %v876_v2  ;;  %v112_v14 = vld [vmem:[%s3594_s0 + $0x1a0] sm:$0x1] }
 0x13e   :  { %v886_v7 = vsel %vm2390_vm4, %v881_v54, %v885_v36  ;;  %v1557_v19 = vrot.slane %v1555_v55, 4  ;;  %v1558_v20 = vshll.u32 %v110_v60, 16  ;;  %v1564_v21 = vshll.u32 %v3538_v1, 16 }
 0x13f   :  { %v1014_v16 = vmax.bf16 %v886_v7, %v3501_v4  ;;  %v1464_v23 = vmax.bf16 %v1334_v9, %v1013_v63  ;;  %v1643_v13 = vmax.bf16 %v1527_v12, %v886_v7  ;;  %v1730_v25 = vmax.bf16 %v1642_v0, %v1334_v9 }
 0x140   :  { %v1909_v8 = vmax.bf16 %v1793_v57, %v886_v7  ;;  %v1996_v28 = vmax.bf16 %v1908_v53, %v1334_v9  ;;  %v1560_v11 = vrot.slane %v1558_v20, 5  ;;  %v1566_v32 = vrot.slane %v1564_v21, 5 }
 0x141   :  { %v1465_v10 = vmax.bf16 %v1337_v58, %v1014_v16  ;;  %v1731_v34 = vmax.bf16 %v1643_v13, %v1337_v58  ;;  %v1528_v24 = vmax.bf16 %v1464_v23, %v110_v60  ;;  %v1568_v31 = vshrl.u32 %v3538_v1, 16 }
 0x142   :  { %v1997_v3 = vmax.bf16 %v1909_v8, %v1337_v58  ;;  %v1561_v29 = vor.u32 %v1560_v11, %v1557_v19  ;;  %v1574_v35 = vshll.u32 %v112_v14, 16  ;;  %v2103_v4 = vrot.slane %v110_v60, 9 }
 0x143   :  { %v1529_v27 = vmax.bf16 %v1465_v10, %v3538_v1  ;;  %v1570_v33 = vrot.slane %v1568_v31, 4  ;;  %v1661_v22 = vrot.slane %v3538_v1, 5  ;;  %v1664_v44 = vrot.slane %v112_v14, 5 }
 0x144   :  { %v2323_v18 = vcombine.low %v1996_v28, %v1997_v3  ;;  %v1562_v39 = vrot.slane %v1561_v29, 4  ;;  %v1576_v51 = vrot.slane %v1574_v35, 5  ;;  %v1794_v49 = vmax.bf16 %v1730_v25, %v110_v60 }
 0x145   :  { %v1571_v48 = vor.u32 %v1570_v33, %v1566_v32  ;;  %v1662_v38 = vsel %vm2413_vm5, %v2103_v4, %v1661_v22  ;;  %v1663_v52 = vrot.slane %v1661_v22, 4  ;;  %v1795_v59 = vmax.bf16 %v1731_v34, %v3538_v1 }
 0x146   :  { %2324 = vst [vmem:[%s3595_s1 + $0xe8] sm:$0xff] %v2323_v18   ;;  %v1567_v46 = vsel %vm2390_vm4, %v1562_v39, %v1566_v32  ;;  %v1823_v37 = vshrl.u32 %v113_v30, 16  ;;  %v1826_v36 = vshll.u32 %v113_v30, 16  ;;  %v1832_v41 = vshll.u32 %v114_v47, 16 }
 0x147   :  { %v1572_v40 = vrot.slane %v1571_v48, 4  ;;  %v1644_v42 = vmax.bf16 %v1567_v46, %v1528_v24  ;;  %v1665_v45 = vsel %vm2413_vm5, %v1663_v52, %v1664_v44  ;;  %v1910_v50 = vmax.bf16 %v1794_v49, %v1567_v46 }
 0x148   :  { %v1825_v60 = vrot.slane %v1823_v37, 4  ;;  %v1828_v62 = vrot.slane %v1826_v36, 5  ;;  %v1834_v15 = vrot.slane %v1832_v41, 5  ;;  %v1836_v5 = vshrl.u32 %v114_v47, 16 }
 0x149   :  { %v1577_v6 = vsel %vm2390_vm4, %v1572_v40, %v1576_v51  ;;  %v1732_v12 = vmax.bf16 %v1662_v38, %v1644_v42  ;;  %v1998_v43 = vmax.bf16 %v1910_v50, %v1662_v38  ;;  %v1842_v9 = vshll.u32 %v115_v61, 16 }
 0x14a   :  { %v1645_v17 = vmax.bf16 %v1577_v6, %v1529_v27  ;;  %v1911_v1 = vmax.bf16 %v1795_v59, %v1577_v6  ;;  %v1829_v2 = vor.u32 %v1828_v62, %v1825_v60  ;;  %v1838_v54 = vrot.slane %v1836_v5, 4 }
 0x14b   :  { %v1796_v57 = vmax.bf16 %v1732_v12, %v113_v30  ;;  %v1844_v55 = vrot.slane %v1842_v9, 5  ;;  %v2105_v63 = vrot.slane %v113_v30, 9  ;;  %v1929_v58 = vrot.slane %v114_v47, 5 }
 0x14c   :  { %v1733_v0 = vmax.bf16 %v1665_v45, %v1645_v17  ;;  %v1999_v53 = vmax.bf16 %v1911_v1, %v1665_v45  ;;  %v1830_v7 = vrot.slane %v1829_v2, 4  ;;  %v1839_v19 = vor.u32 %v1838_v54, %v1834_v15 }
 0x14d   :  { %v1930_v20 = vsel %vm2413_vm5, %v2105_v63, %v1929_v58  ;;  %v1931_v21 = vrot.slane %v1929_v58, 4  ;;  %v1932_v16 = vrot.slane %v115_v61, 5 }
 0x14e   :  { %v2325_v23 = vcombine.low %v1998_v43, %v1999_v53  ;;  %v1797_v13 = vmax.bf16 %v1733_v0, %v114_v47  ;;  %v1835_v25 = vsel %vm2390_vm4, %v1830_v7, %v1834_v15  ;;  %v1840_v14 = vrot.slane %v1839_v19, 4 }
 0x14f   :  { %v1912_v8 = vmax.bf16 %v1835_v25, %v1796_v57  ;;  %v1933_v11 = vsel %vm2413_vm5, %v1931_v21, %v1932_v16 }
 0x150   :  { %2326 = vst [vmem:[%s3595_s1 + $0xf0] sm:$0xff] %v2325_v23   ;;  %v1845_v28 = vsel %vm2390_vm4, %v1840_v14, %v1844_v55 }
 0x151   :  { %v1913_v32 = vmax.bf16 %v1845_v28, %v1797_v13  ;;  %v2000_v10 = vmax.bf16 %v1930_v20, %v1912_v8 }
 0x153   :  { %v2001_v34 = vmax.bf16 %v1933_v11, %v1913_v32 }
 0x155   :  { %v2327_v24 = vcombine.low %v2000_v10, %v2001_v34 }
 0x157   :  { %2328 = vst [vmem:[%s3595_s1 + $0xf8] sm:$0xff] %v2327_v24  }

// kernel: quantized_resnet50_forward.62
= control target key start
LH: loop header
LB: loop body
LE: loop exit
PB: predicated region body
PF: predicated region fallthrough
CT: control target
= control target key end

     0   :  { %s771_s1 = inlined_call_operand.vmem [shape: bf16[128,128], index: 1, kind: input, shape index: {}]   ;;  %s772_s0 = inlined_call_operand.vmem [shape: bf16[128,128], index: 0, kind: input, shape index: {}]   ;;  %s773_s3 = inlined_call_operand.vmem [shape: bf16[128,128], index: 3, kind: input, shape index: {}]   ;;  %s774_s2 = inlined_call_operand.vmem [shape: f32[1,128], index: 2, kind: input, shape index: {}]   ;;  %s775_s4 = inlined_call_operand.vmem [shape: bf16[128,128], index: 4, kind: output, shape index: {}]  }
   0x1   :  { %v597_v0 = vld [vmem:[%s771_s1] sm:$0xff]   ;;  %v598_v1 = vld [vmem:[%s771_s1 + $0x8] sm:$0xff]   ;;  %v599_v2 = vld [vmem:[%s771_s1 + $0x10] sm:$0xff]  }
   0x2   :  { %549 = vmatprep.subr.bf16.mxu0 %v597_v0  ;;  %581 = vmatprep.subr.bf16.mxu1 %v597_v0  ;;  %v600_v3 = vld [vmem:[%s771_s1 + $0x18] sm:$0xff]   ;;  %v605_v4 = vld [vmem:[%s772_s0] sm:$0xff]   ;;  %v602_v7 = vld [vmem:[%s771_s1 + $0x28] sm:$0xff]  }
   0x3   :  { %550 = vmatpush3.bf16.msra.mxu0 %v597_v0  ;;  %589 = vmatpush3.bf16.msra.mxu1 %v597_v0  ;;  %v606_v5 = vld [vmem:[%s772_s0 + $0x20] sm:$0xff]   ;;  %v603_v8 = vld [vmem:[%s771_s1 + $0x30] sm:$0xff]   ;;  %v604_v9 = vld [vmem:[%s771_s1 + $0x38] sm:$0xff]  }
   0x4   :  { %551 = vmatprep.subr.bf16.mxu0 %v598_v1  ;;  %582 = vmatprep.subr.bf16.mxu1 %v598_v1  ;;  %v601_v6 = vld [vmem:[%s771_s1 + $0x20] sm:$0xff]   ;;  %v607_v10 = vld [vmem:[%s772_s0 + $0x8] sm:$0xff]   ;;  %v609_v12 = vld [vmem:[%s772_s0 + $0x10] sm:$0xff]  }
   0x5   :  { %565 = vmatprep.mubr.bf16.mxu0 %v605_v4  ;;  %573 = vmatprep.mubr.bf16.mxu1 %v606_v5  ;;  %v608_v11 = vld [vmem:[%s772_s0 + $0x28] sm:$0xff]   ;;  %v610_v13 = vld [vmem:[%s772_s0 + $0x30] sm:$0xff]   ;;  %v611_v14 = vld [vmem:[%s772_s0 + $0x18] sm:$0xff]  }
   0x6   :  { %v612_v15 = vld [vmem:[%s772_s0 + $0x38] sm:$0xff]   ;;  %v519_v16 = vld [vmem:[%s773_s3 + $0x8] sm:$0xff]   ;;  %v448_v18 = vld [vmem:[%s773_s3] sm:$0xff]  }
   0x7   :  { %552 = vmatpush3.bf16.msra.mxu0 %v598_v1  ;;  %590 = vmatpush3.bf16.msra.mxu1 %v598_v1  ;;  %v523_v17 = vld [vmem:[%s773_s3 + $0x28] sm:$0xff]   ;;  %v522_v19 = vld [vmem:[%s773_s3 + $0x20] sm:$0xff]   ;;  %v706_v21 = vld [vmem:[%s773_s3 + $0x18] sm:$0xff]   ;;  %v453_v23 = vunpack.c.l.bf16 %v519_v16  ;;  %v449_v25 = vunpack.c.l.bf16 %v448_v18  ;;  %v454_v31 = vunpack.c.h.bf16 %v519_v16  ;;  %v450_v33 = vunpack.c.h.bf16 %v448_v18 }
   0x8   :  { %553 = vmatprep.subr.bf16.mxu0 %v599_v2  ;;  %583 = vmatprep.subr.bf16.mxu1 %v599_v2  ;;  %v701_v20 = vld [vmem:[%s774_s2] ss:$0 sm:$0xff]  ;;  %v711_v22 = vld [vmem:[%s773_s3 + $0x38] sm:$0xff]   ;;  %v469_v24 = vunpack.c.l.bf16 %v523_v17  ;;  %v465_v26 = vunpack.c.l.bf16 %v522_v19  ;;  %v716_v27 = vld [vmem:[%s773_s3 + $0x10] sm:$0xff]   ;;  %v470_v32 = vunpack.c.h.bf16 %v523_v17  ;;  %v466_v34 = vunpack.c.h.bf16 %v522_v19 }
   0x9   :  { %v721_v28 = vld [vmem:[%s773_s3 + $0x30] sm:$0xff]   ;;  %v461_v39 = vunpack.c.l.bf16 %v706_v21  ;;  %v477_v40 = vunpack.c.l.bf16 %v711_v22  ;;  %v457_v45 = vunpack.c.l.bf16 %v716_v27  ;;  %v462_v59 = vunpack.c.h.bf16 %v706_v21 }
   0xa   :  { %v473_v46 = vunpack.c.l.bf16 %v721_v28  ;;  %v478_v60 = vunpack.c.h.bf16 %v711_v22  ;;  %v458_v63 = vunpack.c.h.bf16 %v716_v27  ;;  %v474_v0 = vunpack.c.h.bf16 %v721_v28 }
   0xb   :  { %554 = vmatpush3.bf16.msra.mxu0 %v599_v2  ;;  %591 = vmatpush3.bf16.msra.mxu1 %v599_v2 }
   0xc   :  { %555 = vmatprep.subr.bf16.mxu0 %v600_v3  ;;  %584 = vmatprep.subr.bf16.mxu1 %v600_v3 }
   0xf   :  { %556 = vmatpush3.bf16.msra.mxu0 %v600_v3  ;;  %592 = vmatpush3.bf16.msra.mxu1 %v600_v3 }
  0x10   :  { %557 = vmatprep.subr.bf16.mxu0 %v601_v6  ;;  %585 = vmatprep.subr.bf16.mxu1 %v601_v6 }
  0x13   :  { %558 = vmatpush3.bf16.msra.mxu0 %v601_v6  ;;  %593 = vmatpush3.bf16.msra.mxu1 %v601_v6 }
  0x14   :  { %559 = vmatprep.subr.bf16.mxu0 %v602_v7  ;;  %586 = vmatprep.subr.bf16.mxu1 %v602_v7 }
  0x17   :  { %560 = vmatpush3.bf16.msra.mxu0 %v602_v7  ;;  %594 = vmatpush3.bf16.msra.mxu1 %v602_v7 }
  0x18   :  { %561 = vmatprep.subr.bf16.mxu0 %v603_v8  ;;  %587 = vmatprep.subr.bf16.mxu1 %v603_v8 }
  0x1b   :  { %562 = vmatpush3.bf16.msra.mxu0 %v603_v8  ;;  %595 = vmatpush3.bf16.msra.mxu1 %v603_v8 }
  0x1c   :  { %563 = vmatprep.subr.bf16.mxu0 %v604_v9  ;;  %588 = vmatprep.subr.bf16.mxu1 %v604_v9 }
  0x1f   :  { %564 = vmatpush3.bf16.msra.mxu0 %v604_v9  ;;  %596 = vmatpush3.bf16.msra.mxu1 %v604_v9 }
  0x22   :  { %566 = vmatmul.mubr.bf16.vlgmr.msra.gmra.mrb[0].mxu0 %v607_v10  ;;  %574 = vmatmul.mubr.bf16.vlgmr.msra.gmra.mrb[0].mxu1 %v608_v11 }
  0x23   :  { %569 = vmatprep.mubr.bf16.mxu0 %v609_v12  ;;  %577 = vmatprep.mubr.bf16.mxu1 %v610_v13 }
  0x2a   :  { %570 = vmatmul.mubr.bf16.gmra.mrb[4].mxu0 %v611_v14  ;;  %578 = vmatmul.mubr.bf16.gmra.mrb[4].mxu1 %v612_v15 }
  0xf5   :  { %v567_v29 = vpop.f32.mrb[0].mxu0  ;;  %v575_v30 = vpop.f32.mrb[0].mxu1 }
  0xf6   :  { %v196_v35 = vadd.f32 %v567_v29, %v701_v20  ;;  %v228_v36 = vadd.f32 %v575_v30, %v701_v20  ;;  %v187_v37 = vpop.f32.mrb[1].mxu0  ;;  %v219_v38 = vpop.f32.mrb[1].mxu1 }
  0xf7   :  { %v188_v41 = vadd.f32 %v701_v20, %v187_v37  ;;  %v220_v42 = vadd.f32 %v701_v20, %v219_v38  ;;  %v568_v43 = vpop.f32.mrb[2].mxu0  ;;  %v576_v44 = vpop.f32.mrb[2].mxu1 }
  0xf8   :  { %v284_v47 = vadd.f32 %v453_v23, %v196_v35  ;;  %v292_v48 = vadd.f32 %v469_v24, %v228_v36  ;;  %v199_v49 = vadd.f32 %v568_v43, %v701_v20  ;;  %v231_v50 = vadd.f32 %v576_v44, %v701_v20  ;;  %v190_v51 = vpop.f32.mrb[3].mxu0  ;;  %v222_v52 = vpop.f32.mrb[3].mxu1 }
  0xf9   :  { %v282_v53 = vadd.f32 %v449_v25, %v188_v41  ;;  %v290_v54 = vadd.f32 %v465_v26, %v220_v42  ;;  %v191_v55 = vadd.f32 %v701_v20, %v190_v51  ;;  %v223_v56 = vadd.f32 %v701_v20, %v222_v52 }
  0xfa   :  { %v285_v57 = vadd.f32 %v454_v31, %v199_v49  ;;  %v293_v58 = vadd.f32 %v470_v32, %v231_v50  ;;  %v300_v1 = vmax.f32 %v284_v47, 0.0  ;;  %v308_v2 = vmax.f32 %v292_v48, 0.0 }
  0xfb   :  { %v283_v61 = vadd.f32 %v450_v33, %v191_v55  ;;  %v291_v62 = vadd.f32 %v466_v34, %v223_v56  ;;  %v298_v5 = vmax.f32 %v282_v53, 0.0  ;;  %v306_v6 = vmax.f32 %v290_v54, 0.0 }
  0xfc   :  { %v301_v3 = vmax.f32 %v285_v57, 0.0  ;;  %v309_v4 = vmax.f32 %v293_v58, 0.0 }
  0xfd   :  { %v299_v7 = vmax.f32 %v283_v61, 0.0  ;;  %v307_v8 = vmax.f32 %v291_v62, 0.0  ;;  %v571_v9 = vpop.f32.mrb[4].mxu0  ;;  %v579_v10 = vpop.f32.mrb[4].mxu1 }
  0xfe   :  { %v487_v11 = vpack.c.bf16 %v301_v3, %v300_v1  ;;  %v507_v12 = vpack.c.bf16 %v309_v4, %v308_v2  ;;  %v212_v13 = vadd.f32 %v571_v9, %v701_v20  ;;  %v244_v14 = vadd.f32 %v579_v10, %v701_v20  ;;  %v203_v15 = vpop.f32.mrb[5].mxu0  ;;  %v235_v16 = vpop.f32.mrb[5].mxu1 }
  0xff   :  { %v482_v17 = vpack.c.bf16 %v299_v7, %v298_v5  ;;  %v502_v18 = vpack.c.bf16 %v307_v8, %v306_v6  ;;  %v204_v19 = vadd.f32 %v701_v20, %v203_v15  ;;  %v236_v21 = vadd.f32 %v701_v20, %v235_v16  ;;  %v572_v22 = vpop.f32.mrb[6].mxu0  ;;  %v580_v23 = vpop.f32.mrb[6].mxu1 }
 0x100   :  { %526 = vst [vmem:[%s775_s4 + $0x8] sm:$0xff] %v487_v11   ;;  %530 = vst [vmem:[%s775_s4 + $0x28] sm:$0xff] %v507_v12   ;;  %v288_v24 = vadd.f32 %v461_v39, %v212_v13  ;;  %v296_v25 = vadd.f32 %v477_v40, %v244_v14  ;;  %v215_v26 = vadd.f32 %v572_v22, %v701_v20  ;;  %v206_v28 = vpop.f32.mrb[7].mxu0  ;;  %v238_v29 = vpop.f32.mrb[7].mxu1 }
 0x101   :  { %v247_v27 = vadd.f32 %v580_v23, %v701_v20  ;;  %483 = vst [vmem:[%s775_s4] sm:$0xff] %v482_v17   ;;  %529 = vst [vmem:[%s775_s4 + $0x20] sm:$0xff] %v502_v18   ;;  %v286_v30 = vadd.f32 %v457_v45, %v204_v19  ;;  %v294_v31 = vadd.f32 %v473_v46, %v236_v21 }
 0x102   :  { %v207_v32 = vadd.f32 %v701_v20, %v206_v28  ;;  %v239_v33 = vadd.f32 %v701_v20, %v238_v29  ;;  %v289_v34 = vadd.f32 %v462_v59, %v215_v26  ;;  %v304_v38 = vmax.f32 %v288_v24, 0.0 }
 0x103   :  { %v297_v35 = vadd.f32 %v478_v60, %v247_v27  ;;  %v312_v39 = vmax.f32 %v296_v25, 0.0  ;;  %v302_v42 = vmax.f32 %v286_v30, 0.0  ;;  %v310_v43 = vmax.f32 %v294_v31, 0.0 }
 0x104   :  { %v287_v36 = vadd.f32 %v458_v63, %v207_v32  ;;  %v295_v37 = vadd.f32 %v474_v0, %v239_v33  ;;  %v305_v40 = vmax.f32 %v289_v34, 0.0 }
 0x105   :  { %v313_v41 = vmax.f32 %v297_v35, 0.0 }
 0x106   :  { %v303_v44 = vmax.f32 %v287_v36, 0.0  ;;  %v311_v47 = vmax.f32 %v295_v37, 0.0  ;;  %v497_v48 = vpack.c.bf16 %v305_v40, %v304_v38 }
 0x107   :  { %v517_v49 = vpack.c.bf16 %v313_v41, %v312_v39 }
 0x108   :  { %v492_v45 = vpack.c.bf16 %v303_v44, %v302_v42  ;;  %v512_v46 = vpack.c.bf16 %v311_v47, %v310_v43  ;;  %528 = vst [vmem:[%s775_s4 + $0x18] sm:$0xff] %v497_v48  }
 0x109   :  { %532 = vst [vmem:[%s775_s4 + $0x38] sm:$0xff] %v517_v49  }
 0x10a   :  { %527 = vst [vmem:[%s775_s4 + $0x10] sm:$0xff] %v492_v45   ;;  %531 = vst [vmem:[%s775_s4 + $0x30] sm:$0xff] %v512_v46  }

// kernel: quantized_resnet50_forward.61
= control target key start
LH: loop header
LB: loop body
LE: loop exit
PB: predicated region body
PF: predicated region fallthrough
CT: control target
= control target key end

     0   :  { %s2926_s1 = inlined_call_operand.vmem [shape: bf16[1152,128], index: 1, kind: input, shape index: {}]   ;;  %s2927_s0 = inlined_call_operand.vmem [shape: bf16[128,1152], index: 0, kind: input, shape index: {}]   ;;  %s2928_s2 = inlined_call_operand.vmem [shape: f32[1,128], index: 2, kind: input, shape index: {}]   ;;  %s2929_s3 = inlined_call_operand.vmem [shape: bf16[128,128], index: 3, kind: output, shape index: {}]  }
   0x1   :  { %v2175_v0 = vld [vmem:[%s2926_s1 + $0x40] sm:$0xff]   ;;  %v2179_v4 = vld [vmem:[%s2926_s1 + $0x48] sm:$0xff]   ;;  %v2183_v8 = vld [vmem:[%s2926_s1 + $0x50] sm:$0xff]  }
   0x2   :  { %v2176_v1 = vld [vmem:[%s2926_s1 + $0xc0] sm:$0xff]   ;;  %1855 = vmatprep.subr.bf16.mxu0 %v2175_v0  ;;  %v2180_v5 = vld [vmem:[%s2926_s1 + $0xc8] sm:$0xff]   ;;  %v2184_v9 = vld [vmem:[%s2926_s1 + $0xd0] sm:$0xff]  }
   0x3   :  { %v2177_v2 = vld [vmem:[%s2926_s1] sm:$0xff]   ;;  %1919 = vmatprep.subr.bf16.mxu1 %v2176_v1  ;;  %v2181_v6 = vld [vmem:[%s2926_s1 + $0x8] sm:$0xff]   ;;  %v2185_v10 = vld [vmem:[%s2926_s1 + $0x10] sm:$0xff]  }
   0x4   :  { %v2178_v3 = vld [vmem:[%s2926_s1 + $0x80] sm:$0xff]   ;;  %1856 = vmatpush3.bf16.msra.mxu0 %v2177_v2  ;;  %v2182_v7 = vld [vmem:[%s2926_s1 + $0x88] sm:$0xff]   ;;  %v2186_v11 = vld [vmem:[%s2926_s1 + $0x90] sm:$0xff]  }
   0x5   :  { %1920 = vmatpush3.bf16.msra.mxu1 %v2178_v3  ;;  %1857 = vmatprep.subr.bf16.mxu0 %v2179_v4  ;;  %v2187_v12 = vld [vmem:[%s2926_s1 + $0x58] sm:$0xff]   ;;  %v2191_v16 = vld [vmem:[%s2926_s1 + $0x60] sm:$0xff]   ;;  %v2195_v20 = vld [vmem:[%s2926_s1 + $0x68] sm:$0xff]  }
   0x6   :  { %1921 = vmatprep.subr.bf16.mxu1 %v2180_v5  ;;  %v2188_v13 = vld [vmem:[%s2926_s1 + $0xd8] sm:$0xff]   ;;  %v2192_v17 = vld [vmem:[%s2926_s1 + $0xe0] sm:$0xff]   ;;  %v2196_v21 = vld [vmem:[%s2926_s1 + $0xe8] sm:$0xff]  }
   0x7   :  { %v2189_v14 = vld [vmem:[%s2926_s1 + $0x18] sm:$0xff]   ;;  %v2193_v18 = vld [vmem:[%s2926_s1 + $0x20] sm:$0xff]   ;;  %v2197_v22 = vld [vmem:[%s2926_s1 + $0x28] sm:$0xff]  }
   0x8   :  { %1858 = vmatpush3.bf16.msra.mxu0 %v2181_v6  ;;  %v2190_v15 = vld [vmem:[%s2926_s1 + $0x98] sm:$0xff]   ;;  %v2194_v19 = vld [vmem:[%s2926_s1 + $0xa0] sm:$0xff]   ;;  %v2198_v23 = vld [vmem:[%s2926_s1 + $0xa8] sm:$0xff]  }
   0x9   :  { %1922 = vmatpush3.bf16.msra.mxu1 %v2182_v7  ;;  %1859 = vmatprep.subr.bf16.mxu0 %v2183_v8  ;;  %v2199_v24 = vld [vmem:[%s2926_s1 + $0x70] sm:$0xff]   ;;  %v2203_v28 = vld [vmem:[%s2926_s1 + $0x78] sm:$0xff]   ;;  %v2207_v32 = vld [vmem:[%s2927_s0] ss:$36 sps:$4 sm:$0xff]  }
   0xa   :  { %1923 = vmatprep.subr.bf16.mxu1 %v2184_v9  ;;  %v2200_v25 = vld [vmem:[%s2926_s1 + $0xf0] sm:$0xff]   ;;  %v2204_v29 = vld [vmem:[%s2926_s1 + $0xf8] sm:$0xff]   ;;  %v2209_v33 = vld [vmem:[%s2927_s0 + $0x4] ss:$36 sps:$4 sm:$0xff]  }
   0xb   :  { %v2201_v26 = vld [vmem:[%s2926_s1 + $0x30] sm:$0xff]   ;;  %v2205_v30 = vld [vmem:[%s2926_s1 + $0x38] sm:$0xff]   ;;  %v2210_v34 = vld [vmem:[%s2927_s0 + $0x8] ss:$36 sps:$4 sm:$0xff]   ;;  %1078 = vmatprep.mubr.bf16.mxu0 %v2209_v33 }
   0xc   :  { %1860 = vmatpush3.bf16.msra.mxu0 %v2185_v10  ;;  %v2202_v27 = vld [vmem:[%s2926_s1 + $0xb0] sm:$0xff]   ;;  %v2206_v31 = vld [vmem:[%s2926_s1 + $0xb8] sm:$0xff]   ;;  %v2213_v36 = vld [vmem:[%s2926_s1 + $0x140] sm:$0xff]  }
   0xd   :  { %1924 = vmatpush3.bf16.msra.mxu1 %v2186_v11  ;;  %1861 = vmatprep.subr.bf16.mxu0 %v2187_v12  ;;  %v2212_v35 = vld [vmem:[%s2927_s0 + $0xc] ss:$36 sps:$4 sm:$0xff]   ;;  %v2214_v37 = vld [vmem:[%s2926_s1 + $0x1c0] sm:$0xff]   ;;  %v2219_v41 = vld [vmem:[%s2927_s0 + $0x54] ss:$36 sps:$4 sm:$0xff]  }
   0xe   :  { %1925 = vmatprep.subr.bf16.mxu1 %v2188_v13  ;;  %1175 = vmatprep.mubr.bf16.mxu1 %v2212_v35  ;;  %v2215_v38 = vld [vmem:[%s2926_s1 + $0x100] sm:$0xff]   ;;  %v2217_v40 = vld [vmem:[%s2927_s0 + $0x4c] ss:$36 sps:$4 sm:$0xff]   ;;  %v2227_v48 = vld [vmem:[%s2927_s0 + $0x94] ss:$36 sps:$4 sm:$0xff]  }
   0xf   :  { %v2216_v39 = vld [vmem:[%s2926_s1 + $0x180] sm:$0xff]   ;;  %v2221_v42 = vld [vmem:[%s2927_s0 + $0x48] ss:$36 sps:$4 sm:$0xff]   ;;  %v2222_v43 = vld [vmem:[%s2927_s0 + $0x50] ss:$36 sps:$4 sm:$0xff]  }
  0x10   :  { %1862 = vmatpush3.bf16.msra.mxu0 %v2189_v14  ;;  %v2223_v44 = vld [vmem:[%s2926_s1 + $0x148] sm:$0xff]   ;;  %v2229_v49 = vld [vmem:[%s2927_s0 + $0x9c] ss:$36 sps:$4 sm:$0xff]   ;;  %v2231_v50 = vld [vmem:[%s2927_s0 + $0x90] ss:$36 sps:$4 sm:$0xff]  }
  0x11   :  { %1926 = vmatpush3.bf16.msra.mxu1 %v2190_v15  ;;  %1863 = vmatprep.subr.bf16.mxu0 %v2191_v16  ;;  %v2224_v45 = vld [vmem:[%s2926_s1 + $0x1c8] sm:$0xff]   ;;  %v2232_v51 = vld [vmem:[%s2927_s0 + $0x98] ss:$36 sps:$4 sm:$0xff]   ;;  %v2233_v52 = vld [vmem:[%s2926_s1 + $0x150] sm:$0xff]  }
  0x12   :  { %1927 = vmatprep.subr.bf16.mxu1 %v2192_v17  ;;  %v2225_v46 = vld [vmem:[%s2926_s1 + $0x108] sm:$0xff]   ;;  %v2234_v53 = vld [vmem:[%s2926_s1 + $0x1d0] sm:$0xff]   ;;  %v2237_v56 = vld [vmem:[%s2927_s0 + $0xdc] ss:$36 sps:$4 sm:$0xff]  }
  0x13   :  { %v2226_v47 = vld [vmem:[%s2926_s1 + $0x188] sm:$0xff]   ;;  %v2235_v54 = vld [vmem:[%s2926_s1 + $0x110] sm:$0xff]   ;;  %v2241_v58 = vld [vmem:[%s2927_s0 + $0xd8] ss:$36 sps:$4 sm:$0xff]  }
  0x14   :  { %1864 = vmatpush3.bf16.msra.mxu0 %v2193_v18  ;;  %v2236_v55 = vld [vmem:[%s2926_s1 + $0x190] sm:$0xff]   ;;  %v2239_v57 = vld [vmem:[%s2927_s0 + $0xe4] ss:$36 sps:$4 sm:$0xff]   ;;  %v2243_v60 = vld [vmem:[%s2926_s1 + $0x158] sm:$0xff]  }
  0x15   :  { %1928 = vmatpush3.bf16.msra.mxu1 %v2194_v19  ;;  %1865 = vmatprep.subr.bf16.mxu0 %v2195_v20  ;;  %v2242_v59 = vld [vmem:[%s2927_s0 + $0xe0] ss:$36 sps:$4 sm:$0xff]   ;;  %v2244_v61 = vld [vmem:[%s2926_s1 + $0x1d8] sm:$0xff]   ;;  %v2249_v1 = vld [vmem:[%s2927_s0 + $0x12c] ss:$36 sps:$4 sm:$0xff]  }
  0x16   :  { %1929 = vmatprep.subr.bf16.mxu1 %v2196_v21  ;;  %v2245_v62 = vld [vmem:[%s2926_s1 + $0x118] sm:$0xff]   ;;  %v2247_v0 = vld [vmem:[%s2927_s0 + $0x124] ss:$36 sps:$4 sm:$0xff]   ;;  %v2257_v8 = vld [vmem:[%s2927_s0 + $0x16c] ss:$36 sps:$4 sm:$0xff]  }
  0x17   :  { %v2246_v63 = vld [vmem:[%s2926_s1 + $0x198] sm:$0xff]   ;;  %v2251_v2 = vld [vmem:[%s2927_s0 + $0x120] ss:$36 sps:$4 sm:$0xff]   ;;  %v2252_v4 = vld [vmem:[%s2927_s0 + $0x128] ss:$36 sps:$4 sm:$0xff]  }
  0x18   :  { %1866 = vmatpush3.bf16.msra.mxu0 %v2197_v22  ;;  %v2253_v3 = vld [vmem:[%s2926_s1 + $0x160] sm:$0xff]   ;;  %v2259_v9 = vld [vmem:[%s2927_s0 + $0x174] ss:$36 sps:$4 sm:$0xff]   ;;  %v2263_v10 = vld [vmem:[%s2926_s1 + $0x168] sm:$0xff]  }
  0x19   :  { %1930 = vmatpush3.bf16.msra.mxu1 %v2198_v23  ;;  %1867 = vmatprep.subr.bf16.mxu0 %v2199_v24  ;;  %v2254_v5 = vld [vmem:[%s2926_s1 + $0x1e0] sm:$0xff]   ;;  %v2264_v11 = vld [vmem:[%s2926_s1 + $0x1e8] sm:$0xff]   ;;  %v2262_v15 = vld [vmem:[%s2927_s0 + $0x170] ss:$36 sps:$4 sm:$0xff]  }
  0x1a   :  { %1931 = vmatprep.subr.bf16.mxu1 %v2200_v25  ;;  %v2255_v6 = vld [vmem:[%s2926_s1 + $0x120] sm:$0xff]   ;;  %v2261_v12 = vld [vmem:[%s2927_s0 + $0x168] ss:$36 sps:$4 sm:$0xff]   ;;  %v2267_v16 = vld [vmem:[%s2927_s0 + $0x1b4] ss:$36 sps:$4 sm:$0xff]  }
  0x1b   :  { %v2256_v7 = vld [vmem:[%s2926_s1 + $0x1a0] sm:$0xff]   ;;  %v2265_v13 = vld [vmem:[%s2926_s1 + $0x128] sm:$0xff]   ;;  %v2273_v18 = vld [vmem:[%s2926_s1 + $0x170] sm:$0xff]  }
  0x1c   :  { %1868 = vmatpush3.bf16.msra.mxu0 %v2201_v26  ;;  %v2266_v14 = vld [vmem:[%s2926_s1 + $0x1a8] sm:$0xff]   ;;  %v2269_v17 = vld [vmem:[%s2927_s0 + $0x1bc] ss:$36 sps:$4 sm:$0xff]   ;;  %v2274_v19 = vld [vmem:[%s2926_s1 + $0x1f0] sm:$0xff]  }
  0x1d   :  { %1932 = vmatpush3.bf16.msra.mxu1 %v2202_v27  ;;  %1869 = vmatprep.subr.bf16.mxu0 %v2203_v28  ;;  %v2275_v20 = vld [vmem:[%s2926_s1 + $0x130] sm:$0xff]   ;;  %v2272_v23 = vld [vmem:[%s2927_s0 + $0x1b8] ss:$36 sps:$4 sm:$0xff]   ;;  %v2279_v25 = vld [vmem:[%s2927_s0 + $0x204] ss:$36 sps:$4 sm:$0xff]  }
  0x1e   :  { %1933 = vmatprep.subr.bf16.mxu1 %v2204_v29  ;;  %v2276_v21 = vld [vmem:[%s2926_s1 + $0x1b0] sm:$0xff]   ;;  %v2277_v24 = vld [vmem:[%s2927_s0 + $0x1fc] ss:$36 sps:$4 sm:$0xff]  }
  0x1f   :  { %v2271_v22 = vld [vmem:[%s2927_s0 + $0x1b0] ss:$36 sps:$4 sm:$0xff]   ;;  %v2283_v26 = vld [vmem:[%s2926_s1 + $0x178] sm:$0xff]  }
  0x20   :  { %1870 = vmatpush3.bf16.msra.mxu0 %v2205_v30  ;;  %v2284_v27 = vld [vmem:[%s2926_s1 + $0x1f8] sm:$0xff]   ;;  %v2287_v35 = vld [vmem:[%s2927_s0 + $0x10] ss:$36 sps:$4 sm:$0xff]  }
  0x21   :  { %1934 = vmatpush3.bf16.msra.mxu1 %v2206_v31  ;;  %1983 = vmatprep.subr.bf16.mxu0 %v2213_v36  ;;  %v2285_v28 = vld [vmem:[%s2926_s1 + $0x138] sm:$0xff]   ;;  %v2282_v31 = vld [vmem:[%s2927_s0 + $0x200] ss:$36 sps:$4 sm:$0xff]  }
  0x22   :  { %2047 = vmatprep.subr.bf16.mxu1 %v2214_v37  ;;  %v2286_v29 = vld [vmem:[%s2926_s1 + $0x1b8] sm:$0xff]  }
  0x23   :  { %1079 = vmatmul.mubr.bf16.vlgmr.msra.gmra.mrb[0].mxu0 %v2207_v32  ;;  %v2281_v30 = vld [vmem:[%s2927_s0 + $0x1f8] ss:$36 sps:$4 sm:$0xff]   ;;  %v2293_v32 = vld [vmem:[%s2926_s1 + $0x200] sm:$0xff]  }
  0x24   :  { %1176 = vmatmul.mubr.bf16.vlgmr.msra.gmra.mrb[0].mxu1 %v2210_v34  ;;  %1984 = vmatpush3.bf16.msra.mxu0 %v2215_v38  ;;  %v2289_v33 = vld [vmem:[%s2927_s0 + $0x14] ss:$36 sps:$4 sm:$0xff]   ;;  %v2292_v34 = vld [vmem:[%s2927_s0 + $0x1c] ss:$36 sps:$4 sm:$0xff]   ;;  %v2296_v38 = vld [vmem:[%s2927_s0 + $0x64] ss:$36 sps:$4 sm:$0xff]  }
  0x25   :  { %2048 = vmatpush3.bf16.msra.mxu1 %v2216_v39  ;;  %1086 = vmatprep.mubr.bf16.mxu0 %v2217_v40  ;;  %v2290_v36 = vld [vmem:[%s2927_s0 + $0x18] ss:$36 sps:$4 sm:$0xff]   ;;  %v2300_v39 = vld [vmem:[%s2926_s1 + $0x208] sm:$0xff]   ;;  %v2307_v40 = vld [vmem:[%s2926_s1 + $0x210] sm:$0xff]  }
  0x26   :  { %1183 = vmatprep.mubr.bf16.mxu1 %v2219_v41  ;;  %1985 = vmatprep.subr.bf16.mxu0 %v2223_v44  ;;  %v2294_v37 = vld [vmem:[%s2927_s0 + $0x5c] ss:$36 sps:$4 sm:$0xff]   ;;  %v2303_v44 = vld [vmem:[%s2927_s0 + $0xac] ss:$36 sps:$4 sm:$0xff]  }
  0x27   :  { %2049 = vmatprep.subr.bf16.mxu1 %v2224_v45  ;;  %v2298_v41 = vld [vmem:[%s2927_s0 + $0x58] ss:$36 sps:$4 sm:$0xff]  }
  0x28   :  { %1986 = vmatpush3.bf16.msra.mxu0 %v2225_v46  ;;  %v2314_v45 = vld [vmem:[%s2926_s1 + $0x218] sm:$0xff]   ;;  %v2321_v46 = vld [vmem:[%s2926_s1 + $0x220] sm:$0xff]  }
  0x29   :  { %2050 = vmatpush3.bf16.msra.mxu1 %v2226_v47  ;;  %1987 = vmatprep.subr.bf16.mxu0 %v2233_v52  ;;  %v2305_v47 = vld [vmem:[%s2927_s0 + $0xa0] ss:$36 sps:$4 sm:$0xff]   ;;  %v2312_v52 = vld [vmem:[%s2927_s0 + $0xe8] ss:$36 sps:$4 sm:$0xff]  }
  0x2a   :  { %2051 = vmatprep.subr.bf16.mxu1 %v2234_v53  ;;  %v2335_v53 = vld [vmem:[%s2926_s1 + $0x230] sm:$0xff]  }
  0x2b   :  { %1087 = vmatmul.mubr.bf16.gmra.mrb[4].mxu0 %v2221_v42  ;;  %v2299_v42 = vld [vmem:[%s2927_s0 + $0x60] ss:$36 sps:$4 sm:$0xff]  }
  0x2c   :  { %1184 = vmatmul.mubr.bf16.gmra.mrb[4].mxu1 %v2222_v43  ;;  %1094 = vmatprep.mubr.bf16.mxu0 %v2227_v48  ;;  %v2301_v43 = vld [vmem:[%s2927_s0 + $0xa4] ss:$36 sps:$4 sm:$0xff]  }
  0x2d   :  { %1191 = vmatprep.mubr.bf16.mxu1 %v2229_v49  ;;  %1988 = vmatpush3.bf16.msra.mxu0 %v2235_v54  ;;  %v2306_v48 = vld [vmem:[%s2927_s0 + $0xa8] ss:$36 sps:$4 sm:$0xff]   ;;  %v2313_v54 = vld [vmem:[%s2927_s0 + $0xf0] ss:$36 sps:$4 sm:$0xff]  }
  0x2e   :  { %2052 = vmatpush3.bf16.msra.mxu1 %v2236_v55  ;;  %1989 = vmatprep.subr.bf16.mxu0 %v2243_v60  ;;  %v2308_v49 = vld [vmem:[%s2927_s0 + $0xec] ss:$36 sps:$4 sm:$0xff]   ;;  %v2315_v55 = vld [vmem:[%s2927_s0 + $0x134] ss:$36 sps:$4 sm:$0xff]   ;;  %v2322_v60 = vld [vmem:[%s2927_s0 + $0x17c] ss:$36 sps:$4 sm:$0xff]  }
  0x2f   :  { %2053 = vmatprep.subr.bf16.mxu1 %v2244_v61  ;;  %v2324_v61 = vld [vmem:[%s2927_s0 + $0x184] ss:$36 sps:$4 sm:$0xff]  }
  0x31   :  { %1990 = vmatpush3.bf16.msra.mxu0 %v2245_v62  ;;  %v2326_v62 = vld [vmem:[%s2927_s0 + $0x178] ss:$36 sps:$4 sm:$0xff]  }
  0x32   :  { %2054 = vmatpush3.bf16.msra.mxu1 %v2246_v63  ;;  %1991 = vmatprep.subr.bf16.mxu0 %v2253_v3  ;;  %v2327_v63 = vld [vmem:[%s2927_s0 + $0x180] ss:$36 sps:$4 sm:$0xff]   ;;  %v2334_v3 = vld [vmem:[%s2927_s0 + $0x1c8] ss:$36 sps:$4 sm:$0xff]  }
  0x33   :  { %1095 = vmatmul.mubr.bf16.gmra.mrb[8].mxu0 %v2231_v50  ;;  %2055 = vmatprep.subr.bf16.mxu1 %v2254_v5  ;;  %v2310_v50 = vld [vmem:[%s2927_s0 + $0xf4] ss:$36 sps:$4 sm:$0xff]  }
  0x34   :  { %1192 = vmatmul.mubr.bf16.gmra.mrb[8].mxu1 %v2232_v51  ;;  %1102 = vmatprep.mubr.bf16.mxu0 %v2237_v56  ;;  %v2328_v51 = vld [vmem:[%s2926_s1 + $0x228] sm:$0xff]   ;;  %v2317_v56 = vld [vmem:[%s2927_s0 + $0x13c] ss:$36 sps:$4 sm:$0xff]   ;;  %v2338_v5 = vld [vmem:[%s2927_s0 + $0x214] ss:$36 sps:$4 sm:$0xff]  }
  0x35   :  { %1199 = vmatprep.mubr.bf16.mxu1 %v2239_v57  ;;  %1992 = vmatpush3.bf16.msra.mxu0 %v2255_v6  ;;  %v2342_v57 = vld [vmem:[%s2926_s1 + $0x238] sm:$0xff]   ;;  %v2340_v6 = vld [vmem:[%s2927_s0 + $0x208] ss:$36 sps:$4 sm:$0xff]  }
  0x36   :  { %2056 = vmatpush3.bf16.msra.mxu1 %v2256_v7  ;;  %1993 = vmatprep.subr.bf16.mxu0 %v2263_v10  ;;  %v2341_v7 = vld [vmem:[%s2927_s0 + $0x210] ss:$36 sps:$4 sm:$0xff]   ;;  %v2345_v10 = vld [vmem:[%s2927_s0 + $0x68] ss:$36 sps:$4 sm:$0xff]  }
  0x37   :  { %2057 = vmatprep.subr.bf16.mxu1 %v2264_v11  ;;  %v2346_v11 = vld [vmem:[%s2927_s0 + $0x188] ss:$36 sps:$4 sm:$0xff]  }
  0x39   :  { %1994 = vmatpush3.bf16.msra.mxu0 %v2265_v13  ;;  %v2348_v13 = vld [vmem:[%s2927_s0 + $0x1d0] ss:$36 sps:$4 sm:$0xff]  }
  0x3a   :  { %2058 = vmatpush3.bf16.msra.mxu1 %v2266_v14  ;;  %1995 = vmatprep.subr.bf16.mxu0 %v2273_v18  ;;  %v2349_v14 = vld [vmem:[%s2927_s0 + $0xf8] ss:$36 sps:$4 sm:$0xff]   ;;  %v2806_v18 = vld [vmem:[%s2928_s2] ss:$0 sm:$0xff] }
  0x3b   :  { %1103 = vmatmul.mubr.bf16.gmra.mrb[12].mxu0 %v2241_v58  ;;  %2059 = vmatprep.subr.bf16.mxu1 %v2274_v19  ;;  %v2319_v58 = vld [vmem:[%s2927_s0 + $0x130] ss:$36 sps:$4 sm:$0xff]  }
  0x3c   :  { %1200 = vmatmul.mubr.bf16.gmra.mrb[12].mxu1 %v2242_v59  ;;  %1110 = vmatprep.mubr.bf16.mxu0 %v2247_v0  ;;  %v2320_v59 = vld [vmem:[%s2927_s0 + $0x138] ss:$36 sps:$4 sm:$0xff]   ;;  %v2329_v0 = vld [vmem:[%s2927_s0 + $0x1c4] ss:$36 sps:$4 sm:$0xff]  }
  0x3d   :  { %1207 = vmatprep.mubr.bf16.mxu1 %v2249_v1  ;;  %1996 = vmatpush3.bf16.msra.mxu0 %v2275_v20  ;;  %v2331_v1 = vld [vmem:[%s2927_s0 + $0x1cc] ss:$36 sps:$4 sm:$0xff]  }
  0x3e   :  { %2060 = vmatpush3.bf16.msra.mxu1 %v2276_v21  ;;  %1997 = vmatprep.subr.bf16.mxu0 %v2283_v26 }
  0x3f   :  { %2061 = vmatprep.subr.bf16.mxu1 %v2284_v27 }
  0x41   :  { %1998 = vmatpush3.bf16.msra.mxu0 %v2285_v28 }
  0x42   :  { %2062 = vmatpush3.bf16.msra.mxu1 %v2286_v29  ;;  %2127 = vmatprep.subr.bf16.mxu0 %v2293_v32 }
  0x43   :  { %1111 = vmatmul.mubr.bf16.gmra.mrb[16].mxu0 %v2251_v2  ;;  %2159 = vmatprep.subr.bf16.mxu1 %v2293_v32  ;;  %v2333_v2 = vld [vmem:[%s2927_s0 + $0x1c0] ss:$36 sps:$4 sm:$0xff]  }
  0x44   :  { %1208 = vmatmul.mubr.bf16.gmra.mrb[16].mxu1 %v2252_v4  ;;  %1118 = vmatprep.mubr.bf16.mxu0 %v2257_v8  ;;  %v2336_v4 = vld [vmem:[%s2927_s0 + $0x20c] ss:$36 sps:$4 sm:$0xff]   ;;  %v2343_v8 = vld [vmem:[%s2927_s0 + $0x20] ss:$36 sps:$4 sm:$0xff]  }
  0x45   :  { %1215 = vmatprep.mubr.bf16.mxu1 %v2259_v9  ;;  %v2344_v9 = vld [vmem:[%s2927_s0 + $0x140] ss:$36 sps:$4 sm:$0xff]  }
  0x4b   :  { %1119 = vmatmul.mubr.bf16.gmra.mrb[20].mxu0 %v2261_v12  ;;  %v2347_v12 = vld [vmem:[%s2927_s0 + $0xb0] ss:$36 sps:$4 sm:$0xff]  }
  0x4c   :  { %1216 = vmatmul.mubr.bf16.gmra.mrb[20].mxu1 %v2262_v15  ;;  %1126 = vmatprep.mubr.bf16.mxu0 %v2267_v16  ;;  %v2350_v15 = vld [vmem:[%s2927_s0 + $0x218] ss:$36 sps:$4 sm:$0xff]  }
  0x4d   :  { %1223 = vmatprep.mubr.bf16.mxu1 %v2269_v17 }
  0x53   :  { %1127 = vmatmul.mubr.bf16.gmra.mrb[24].mxu0 %v2271_v22 }
  0x54   :  { %1224 = vmatmul.mubr.bf16.gmra.mrb[24].mxu1 %v2272_v23  ;;  %1134 = vmatprep.mubr.bf16.mxu0 %v2277_v24 }
  0x55   :  { %1231 = vmatprep.mubr.bf16.mxu1 %v2279_v25 }
  0x5b   :  { %1135 = vmatmul.mubr.bf16.gmra.mrb[28].mxu0 %v2281_v30 }
  0x5c   :  { %1232 = vmatmul.mubr.bf16.gmra.mrb[28].mxu1 %v2282_v31  ;;  %1272 = vmatprep.mubr.bf16.mxu0 %v2289_v33 }
  0x5d   :  { %1369 = vmatprep.mubr.bf16.mxu1 %v2292_v34 }
  0x63   :  { %1273 = vmatmul.mubr.bf16.vlgmr.msra.gmra.mrb[32].mxu0 %v2287_v35 }
  0x64   :  { %1370 = vmatmul.mubr.bf16.vlgmr.msra.gmra.mrb[32].mxu1 %v2290_v36  ;;  %2128 = vmatpush3.bf16.msra.mxu0 %v2293_v32 }
  0x65   :  { %2167 = vmatpush3.bf16.msra.mxu1 %v2293_v32  ;;  %1280 = vmatprep.mubr.bf16.mxu0 %v2294_v37 }
  0x66   :  { %1377 = vmatprep.mubr.bf16.mxu1 %v2296_v38  ;;  %2129 = vmatprep.subr.bf16.mxu0 %v2300_v39 }
  0x67   :  { %2160 = vmatprep.subr.bf16.mxu1 %v2300_v39 }
  0x68   :  { %2130 = vmatpush3.bf16.msra.mxu0 %v2300_v39 }
  0x69   :  { %2168 = vmatpush3.bf16.msra.mxu1 %v2300_v39  ;;  %2131 = vmatprep.subr.bf16.mxu0 %v2307_v40 }
  0x6a   :  { %2161 = vmatprep.subr.bf16.mxu1 %v2307_v40 }
  0x6b   :  { %1281 = vmatmul.mubr.bf16.gmra.mrb[36].mxu0 %v2298_v41 }
  0x6c   :  { %1378 = vmatmul.mubr.bf16.gmra.mrb[36].mxu1 %v2299_v42  ;;  %1288 = vmatprep.mubr.bf16.mxu0 %v2301_v43 }
  0x6d   :  { %1385 = vmatprep.mubr.bf16.mxu1 %v2303_v44  ;;  %2132 = vmatpush3.bf16.msra.mxu0 %v2307_v40 }
  0x6e   :  { %2169 = vmatpush3.bf16.msra.mxu1 %v2307_v40  ;;  %2133 = vmatprep.subr.bf16.mxu0 %v2314_v45 }
  0x6f   :  { %2162 = vmatprep.subr.bf16.mxu1 %v2314_v45 }
  0x71   :  { %2134 = vmatpush3.bf16.msra.mxu0 %v2314_v45 }
  0x72   :  { %2170 = vmatpush3.bf16.msra.mxu1 %v2314_v45  ;;  %2135 = vmatprep.subr.bf16.mxu0 %v2321_v46 }
  0x73   :  { %1289 = vmatmul.mubr.bf16.gmra.mrb[40].mxu0 %v2305_v47  ;;  %2163 = vmatprep.subr.bf16.mxu1 %v2321_v46 }
  0x74   :  { %1386 = vmatmul.mubr.bf16.gmra.mrb[40].mxu1 %v2306_v48  ;;  %1296 = vmatprep.mubr.bf16.mxu0 %v2308_v49 }
  0x75   :  { %1393 = vmatprep.mubr.bf16.mxu1 %v2310_v50  ;;  %2136 = vmatpush3.bf16.msra.mxu0 %v2321_v46 }
  0x76   :  { %2171 = vmatpush3.bf16.msra.mxu1 %v2321_v46  ;;  %2137 = vmatprep.subr.bf16.mxu0 %v2328_v51 }
  0x77   :  { %2164 = vmatprep.subr.bf16.mxu1 %v2328_v51 }
  0x79   :  { %2138 = vmatpush3.bf16.msra.mxu0 %v2328_v51 }
  0x7a   :  { %2172 = vmatpush3.bf16.msra.mxu1 %v2328_v51  ;;  %2139 = vmatprep.subr.bf16.mxu0 %v2335_v53 }
  0x7b   :  { %1297 = vmatmul.mubr.bf16.gmra.mrb[44].mxu0 %v2312_v52  ;;  %2165 = vmatprep.subr.bf16.mxu1 %v2335_v53 }
  0x7c   :  { %1394 = vmatmul.mubr.bf16.gmra.mrb[44].mxu1 %v2313_v54  ;;  %1304 = vmatprep.mubr.bf16.mxu0 %v2315_v55 }
  0x7d   :  { %1401 = vmatprep.mubr.bf16.mxu1 %v2317_v56  ;;  %2140 = vmatpush3.bf16.msra.mxu0 %v2335_v53 }
  0x7e   :  { %2173 = vmatpush3.bf16.msra.mxu1 %v2335_v53  ;;  %2141 = vmatprep.subr.bf16.mxu0 %v2342_v57 }
  0x7f   :  { %2166 = vmatprep.subr.bf16.mxu1 %v2342_v57 }
  0x81   :  { %2142 = vmatpush3.bf16.msra.mxu0 %v2342_v57 }
  0x82   :  { %2174 = vmatpush3.bf16.msra.mxu1 %v2342_v57 }
  0x83   :  { %1305 = vmatmul.mubr.bf16.gmra.mrb[48].mxu0 %v2319_v58 }
  0x84   :  { %1402 = vmatmul.mubr.bf16.gmra.mrb[48].mxu1 %v2320_v59  ;;  %1312 = vmatprep.mubr.bf16.mxu0 %v2322_v60 }
  0x85   :  { %1409 = vmatprep.mubr.bf16.mxu1 %v2324_v61 }
  0x8b   :  { %1313 = vmatmul.mubr.bf16.gmra.mrb[52].mxu0 %v2326_v62 }
  0x8c   :  { %1410 = vmatmul.mubr.bf16.gmra.mrb[52].mxu1 %v2327_v63  ;;  %1320 = vmatprep.mubr.bf16.mxu0 %v2329_v0 }
  0x8d   :  { %1417 = vmatprep.mubr.bf16.mxu1 %v2331_v1 }
  0x93   :  { %1321 = vmatmul.mubr.bf16.gmra.mrb[56].mxu0 %v2333_v2 }
  0x94   :  { %1418 = vmatmul.mubr.bf16.gmra.mrb[56].mxu1 %v2334_v3  ;;  %1328 = vmatprep.mubr.bf16.mxu0 %v2336_v4 }
  0x95   :  { %1425 = vmatprep.mubr.bf16.mxu1 %v2338_v5 }
  0x9b   :  { %1329 = vmatmul.mubr.bf16.gmra.mrb[60].mxu0 %v2340_v6 }
  0x9c   :  { %1426 = vmatmul.mubr.bf16.gmra.mrb[60].mxu1 %v2341_v7  ;;  %2143 = vmatprep.mubr.bf16.mxu0 %v2343_v8 }
  0x9d   :  { %2151 = vmatprep.mubr.bf16.mxu1 %v2344_v9 }
  0xa3   :  { %2144 = vmatmul.mubr.bf16.vlgmr.msra.gmra.mrb[64].mxu0 %v2345_v10 }
  0xa4   :  { %2152 = vmatmul.mubr.bf16.vlgmr.msra.gmra.mrb[64].mxu1 %v2346_v11  ;;  %2147 = vmatprep.mubr.bf16.mxu0 %v2347_v12 }
  0xa5   :  { %2155 = vmatprep.mubr.bf16.mxu1 %v2348_v13 }
  0xab   :  { %2148 = vmatmul.mubr.bf16.gmra.mrb[68].mxu0 %v2349_v14 }
  0xac   :  { %2156 = vmatmul.mubr.bf16.gmra.mrb[68].mxu1 %v2350_v15 }
  0xf6   :  { %v1871_v16 = vpop.f32.mrb[0].mxu0 }
  0xf7   :  { %v1935_v17 = vpop.f32.mrb[0].mxu1  ;;  %v1872_v19 = vpop.f32.mrb[1].mxu0 }
  0xf8   :  { %v1873_v20 = vadd.f32 %v1872_v19, %v1871_v16  ;;  %v1936_v21 = vpop.f32.mrb[1].mxu1  ;;  %v1874_v22 = vpop.f32.mrb[2].mxu0 }
  0xf9   :  { %v1937_v23 = vadd.f32 %v1936_v21, %v1935_v17  ;;  %v1938_v24 = vpop.f32.mrb[2].mxu1  ;;  %v1875_v25 = vpop.f32.mrb[3].mxu0 }
  0xfa   :  { %v1081_v26 = vadd.f32 %v1873_v20, %v2806_v18  ;;  %v1876_v27 = vadd.f32 %v1875_v25, %v1874_v22  ;;  %v1939_v28 = vpop.f32.mrb[3].mxu1 }
  0xfb   :  { %v1940_v29 = vadd.f32 %v1939_v28, %v1938_v24 }
  0xfc   :  { %v2809_v30 = vadd.f32 %v1937_v23, %v1081_v26  ;;  %v1084_v31 = vadd.f32 %v1876_v27, %v2806_v18 }
  0xfe   :  { %v2812_v32 = vadd.f32 %v1940_v29, %v1084_v31  ;;  %v1877_v33 = vpop.f32.mrb[4].mxu0 }
  0xff   :  { %v1941_v34 = vpop.f32.mrb[4].mxu1  ;;  %v1878_v35 = vpop.f32.mrb[5].mxu0 }
 0x100   :  { %v1879_v36 = vadd.f32 %v1878_v35, %v1877_v33  ;;  %v1942_v37 = vpop.f32.mrb[5].mxu1  ;;  %v1880_v38 = vpop.f32.mrb[6].mxu0 }
 0x101   :  { %v1943_v39 = vadd.f32 %v1942_v37, %v1941_v34  ;;  %v1944_v40 = vpop.f32.mrb[6].mxu1  ;;  %v1881_v41 = vpop.f32.mrb[7].mxu0 }
 0x102   :  { %v1089_v42 = vadd.f32 %v1879_v36, %v2806_v18  ;;  %v1882_v43 = vadd.f32 %v1881_v41, %v1880_v38  ;;  %v1945_v44 = vpop.f32.mrb[7].mxu1 }
 0x103   :  { %v1946_v45 = vadd.f32 %v1945_v44, %v1944_v40 }
 0x104   :  { %v2815_v46 = vadd.f32 %v1943_v39, %v1089_v42  ;;  %v1092_v47 = vadd.f32 %v1882_v43, %v2806_v18 }
 0x106   :  { %v2818_v48 = vadd.f32 %v1946_v45, %v1092_v47  ;;  %v1883_v49 = vpop.f32.mrb[8].mxu0 }
 0x107   :  { %v1947_v50 = vpop.f32.mrb[8].mxu1  ;;  %v1884_v51 = vpop.f32.mrb[9].mxu0 }
 0x108   :  { %v1885_v52 = vadd.f32 %v1884_v51, %v1883_v49  ;;  %v1948_v53 = vpop.f32.mrb[9].mxu1  ;;  %v1886_v54 = vpop.f32.mrb[10].mxu0 }
 0x109   :  { %v1949_v55 = vadd.f32 %v1948_v53, %v1947_v50  ;;  %v1950_v56 = vpop.f32.mrb[10].mxu1  ;;  %v1887_v57 = vpop.f32.mrb[11].mxu0 }
 0x10a   :  { %v1097_v58 = vadd.f32 %v1885_v52, %v2806_v18  ;;  %v1888_v59 = vadd.f32 %v1887_v57, %v1886_v54  ;;  %v1951_v60 = vpop.f32.mrb[11].mxu1 }
 0x10b   :  { %v1952_v61 = vadd.f32 %v1951_v60, %v1950_v56 }
 0x10c   :  { %v2821_v62 = vadd.f32 %v1949_v55, %v1097_v58  ;;  %v1100_v63 = vadd.f32 %v1888_v59, %v2806_v18 }
 0x10e   :  { %v2824_v0 = vadd.f32 %v1952_v61, %v1100_v63  ;;  %v1889_v1 = vpop.f32.mrb[12].mxu0 }
 0x10f   :  { %v1953_v2 = vpop.f32.mrb[12].mxu1  ;;  %v1890_v3 = vpop.f32.mrb[13].mxu0 }
 0x110   :  { %v1891_v4 = vadd.f32 %v1890_v3, %v1889_v1  ;;  %v1954_v5 = vpop.f32.mrb[13].mxu1  ;;  %v1892_v6 = vpop.f32.mrb[14].mxu0 }
 0x111   :  { %v1955_v7 = vadd.f32 %v1954_v5, %v1953_v2  ;;  %v1956_v8 = vpop.f32.mrb[14].mxu1  ;;  %v1893_v9 = vpop.f32.mrb[15].mxu0 }
 0x112   :  { %v1105_v10 = vadd.f32 %v1891_v4, %v2806_v18  ;;  %v1894_v11 = vadd.f32 %v1893_v9, %v1892_v6  ;;  %v1957_v12 = vpop.f32.mrb[15].mxu1 }
 0x113   :  { %v1958_v13 = vadd.f32 %v1957_v12, %v1956_v8 }
 0x114   :  { %v2827_v14 = vadd.f32 %v1955_v7, %v1105_v10  ;;  %v1108_v15 = vadd.f32 %v1894_v11, %v2806_v18 }
 0x116   :  { %v2830_v16 = vadd.f32 %v1958_v13, %v1108_v15  ;;  %v1895_v17 = vpop.f32.mrb[16].mxu0 }
 0x117   :  { %v1959_v19 = vpop.f32.mrb[16].mxu1  ;;  %v1896_v20 = vpop.f32.mrb[17].mxu0 }
 0x118   :  { %v1897_v21 = vadd.f32 %v1896_v20, %v1895_v17  ;;  %v1960_v22 = vpop.f32.mrb[17].mxu1  ;;  %v1898_v23 = vpop.f32.mrb[18].mxu0 }
 0x119   :  { %v1961_v24 = vadd.f32 %v1960_v22, %v1959_v19  ;;  %v1962_v25 = vpop.f32.mrb[18].mxu1  ;;  %v1899_v26 = vpop.f32.mrb[19].mxu0 }
 0x11a   :  { %v1113_v27 = vadd.f32 %v1897_v21, %v2806_v18  ;;  %v1900_v28 = vadd.f32 %v1899_v26, %v1898_v23  ;;  %v1963_v29 = vpop.f32.mrb[19].mxu1 }
 0x11b   :  { %v1964_v31 = vadd.f32 %v1963_v29, %v1962_v25 }
 0x11c   :  { %v2833_v33 = vadd.f32 %v1961_v24, %v1113_v27  ;;  %v1116_v34 = vadd.f32 %v1900_v28, %v2806_v18 }
 0x11e   :  { %v2836_v35 = vadd.f32 %v1964_v31, %v1116_v34  ;;  %v1901_v36 = vpop.f32.mrb[20].mxu0 }
 0x11f   :  { %v1965_v37 = vpop.f32.mrb[20].mxu1  ;;  %v1902_v38 = vpop.f32.mrb[21].mxu0 }
 0x120   :  { %v1903_v39 = vadd.f32 %v1902_v38, %v1901_v36  ;;  %v1966_v40 = vpop.f32.mrb[21].mxu1  ;;  %v1904_v41 = vpop.f32.mrb[22].mxu0 }
 0x121   :  { %v1967_v42 = vadd.f32 %v1966_v40, %v1965_v37  ;;  %v1968_v43 = vpop.f32.mrb[22].mxu1  ;;  %v1905_v44 = vpop.f32.mrb[23].mxu0 }
 0x122   :  { %v1121_v45 = vadd.f32 %v1903_v39, %v2806_v18  ;;  %v1906_v47 = vadd.f32 %v1905_v44, %v1904_v41  ;;  %v1969_v49 = vpop.f32.mrb[23].mxu1 }
 0x123   :  { %v1970_v50 = vadd.f32 %v1969_v49, %v1968_v43 }
 0x124   :  { %v2839_v51 = vadd.f32 %v1967_v42, %v1121_v45  ;;  %v1124_v52 = vadd.f32 %v1906_v47, %v2806_v18 }
 0x126   :  { %v2842_v53 = vadd.f32 %v1970_v50, %v1124_v52  ;;  %v1907_v54 = vpop.f32.mrb[24].mxu0 }
 0x127   :  { %v1971_v55 = vpop.f32.mrb[24].mxu1  ;;  %v1908_v56 = vpop.f32.mrb[25].mxu0 }
 0x128   :  { %v1909_v57 = vadd.f32 %v1908_v56, %v1907_v54  ;;  %v1972_v58 = vpop.f32.mrb[25].mxu1  ;;  %v1910_v59 = vpop.f32.mrb[26].mxu0 }
 0x129   :  { %v1973_v60 = vadd.f32 %v1972_v58, %v1971_v55  ;;  %v1974_v61 = vpop.f32.mrb[26].mxu1  ;;  %v1911_v63 = vpop.f32.mrb[27].mxu0 }
 0x12a   :  { %v1129_v1 = vadd.f32 %v1909_v57, %v2806_v18  ;;  %v1912_v2 = vadd.f32 %v1911_v63, %v1910_v59  ;;  %v1975_v3 = vpop.f32.mrb[27].mxu1 }
 0x12b   :  { %v1976_v4 = vadd.f32 %v1975_v3, %v1974_v61 }
 0x12c   :  { %v2845_v5 = vadd.f32 %v1973_v60, %v1129_v1  ;;  %v1132_v6 = vadd.f32 %v1912_v2, %v2806_v18 }
 0x12e   :  { %v2848_v7 = vadd.f32 %v1976_v4, %v1132_v6  ;;  %v1913_v8 = vpop.f32.mrb[28].mxu0 }
 0x12f   :  { %v1977_v9 = vpop.f32.mrb[28].mxu1  ;;  %v1914_v10 = vpop.f32.mrb[29].mxu0 }
 0x130   :  { %v1915_v11 = vadd.f32 %v1914_v10, %v1913_v8  ;;  %v1978_v12 = vpop.f32.mrb[29].mxu1  ;;  %v1916_v13 = vpop.f32.mrb[30].mxu0 }
 0x131   :  { %v1979_v15 = vadd.f32 %v1978_v12, %v1977_v9  ;;  %v1980_v17 = vpop.f32.mrb[30].mxu1  ;;  %v1917_v19 = vpop.f32.mrb[31].mxu0 }
 0x132   :  { %v1137_v20 = vadd.f32 %v1915_v11, %v2806_v18  ;;  %v1918_v21 = vadd.f32 %v1917_v19, %v1916_v13  ;;  %v1981_v22 = vpop.f32.mrb[31].mxu1 }
 0x133   :  { %v1982_v23 = vadd.f32 %v1981_v22, %v1980_v17 }
 0x134   :  { %v2851_v24 = vadd.f32 %v1979_v15, %v1137_v20  ;;  %v1140_v25 = vadd.f32 %v1918_v21, %v2806_v18 }
 0x136   :  { %v2854_v26 = vadd.f32 %v1982_v23, %v1140_v25  ;;  %v1999_v27 = vpop.f32.mrb[32].mxu0 }
 0x137   :  { %v2063_v28 = vpop.f32.mrb[32].mxu1  ;;  %v2000_v29 = vpop.f32.mrb[33].mxu0 }
 0x138   :  { %v2001_v31 = vadd.f32 %v2000_v29, %v1999_v27  ;;  %v2064_v34 = vpop.f32.mrb[33].mxu1  ;;  %v2002_v36 = vpop.f32.mrb[34].mxu0 }
 0x139   :  { %v2065_v37 = vadd.f32 %v2064_v34, %v2063_v28  ;;  %v2066_v38 = vpop.f32.mrb[34].mxu1  ;;  %v2003_v39 = vpop.f32.mrb[35].mxu0 }
 0x13a   :  { %v1275_v40 = vadd.f32 %v2001_v31, %v2809_v30  ;;  %v2004_v41 = vadd.f32 %v2003_v39, %v2002_v36  ;;  %v2067_v42 = vpop.f32.mrb[35].mxu1 }
 0x13b   :  { %v2068_v43 = vadd.f32 %v2067_v42, %v2066_v38 }
 0x13c   :  { %v1278_v44 = vadd.f32 %v2004_v41, %v2812_v32  ;;  %v2858_v45 = vadd.f32 %v2065_v37, %v1275_v40 }
 0x13e   :  { %v2005_v18 = vpop.f32.mrb[36].mxu0  ;;  %v2860_v47 = vadd.f32 %v2068_v43, %v1278_v44 }
 0x13f   :  { %v2069_v49 = vpop.f32.mrb[36].mxu1  ;;  %v2006_v50 = vpop.f32.mrb[37].mxu0 }
 0x140   :  { %v2007_v52 = vadd.f32 %v2006_v50, %v2005_v18  ;;  %v2070_v54 = vpop.f32.mrb[37].mxu1  ;;  %v2008_v55 = vpop.f32.mrb[38].mxu0 }
 0x141   :  { %v2071_v56 = vadd.f32 %v2070_v54, %v2069_v49  ;;  %v2072_v57 = vpop.f32.mrb[38].mxu1  ;;  %v2009_v58 = vpop.f32.mrb[39].mxu0 }
 0x142   :  { %v1283_v30 = vadd.f32 %v2007_v52, %v2815_v46  ;;  %v2010_v59 = vadd.f32 %v2009_v58, %v2008_v55  ;;  %v2073_v60 = vpop.f32.mrb[39].mxu1 }
 0x143   :  { %v2074_v61 = vadd.f32 %v2073_v60, %v2072_v57 }
 0x144   :  { %v1286_v32 = vadd.f32 %v2010_v59, %v2818_v48  ;;  %v2864_v63 = vadd.f32 %v2071_v56, %v1283_v30 }
 0x146   :  { %v2011_v1 = vpop.f32.mrb[40].mxu0  ;;  %v2866_v2 = vadd.f32 %v2074_v61, %v1286_v32 }
 0x147   :  { %v2075_v3 = vpop.f32.mrb[40].mxu1  ;;  %v2012_v4 = vpop.f32.mrb[41].mxu0 }
 0x148   :  { %v2013_v6 = vadd.f32 %v2012_v4, %v2011_v1  ;;  %v2076_v8 = vpop.f32.mrb[41].mxu1  ;;  %v2014_v9 = vpop.f32.mrb[42].mxu0 }
 0x149   :  { %v2077_v10 = vadd.f32 %v2076_v8, %v2075_v3  ;;  %v2078_v11 = vpop.f32.mrb[42].mxu1  ;;  %v2015_v12 = vpop.f32.mrb[43].mxu0 }
 0x14a   :  { %v1291_v46 = vadd.f32 %v2013_v6, %v2821_v62  ;;  %v2016_v13 = vadd.f32 %v2015_v12, %v2014_v9  ;;  %v2079_v15 = vpop.f32.mrb[43].mxu1 }
 0x14b   :  { %v2080_v17 = vadd.f32 %v2079_v15, %v2078_v11 }
 0x14c   :  { %v1294_v48 = vadd.f32 %v2016_v13, %v2824_v0  ;;  %v2870_v19 = vadd.f32 %v2077_v10, %v1291_v46 }
 0x14e   :  { %v2017_v20 = vpop.f32.mrb[44].mxu0  ;;  %v2872_v21 = vadd.f32 %v2080_v17, %v1294_v48 }
 0x14f   :  { %v2081_v22 = vpop.f32.mrb[44].mxu1  ;;  %v2018_v23 = vpop.f32.mrb[45].mxu0 }
 0x150   :  { %v2019_v25 = vadd.f32 %v2018_v23, %v2017_v20  ;;  %v2082_v27 = vpop.f32.mrb[45].mxu1  ;;  %v2020_v28 = vpop.f32.mrb[46].mxu0 }
 0x151   :  { %v2083_v29 = vadd.f32 %v2082_v27, %v2081_v22  ;;  %v2084_v31 = vpop.f32.mrb[46].mxu1  ;;  %v2021_v34 = vpop.f32.mrb[47].mxu0 }
 0x152   :  { %v1299_v62 = vadd.f32 %v2019_v25, %v2827_v14  ;;  %v2022_v36 = vadd.f32 %v2021_v34, %v2020_v28  ;;  %v2085_v37 = vpop.f32.mrb[47].mxu1 }
 0x153   :  { %v2086_v38 = vadd.f32 %v2085_v37, %v2084_v31 }
 0x154   :  { %v1302_v0 = vadd.f32 %v2022_v36, %v2830_v16  ;;  %v2876_v39 = vadd.f32 %v2083_v29, %v1299_v62 }
 0x156   :  { %v2023_v40 = vpop.f32.mrb[48].mxu0  ;;  %v2878_v41 = vadd.f32 %v2086_v38, %v1302_v0 }
 0x157   :  { %v2087_v42 = vpop.f32.mrb[48].mxu1  ;;  %v2024_v43 = vpop.f32.mrb[49].mxu0 }
 0x158   :  { %v2025_v44 = vadd.f32 %v2024_v43, %v2023_v40  ;;  %v2088_v18 = vpop.f32.mrb[49].mxu1  ;;  %v2026_v49 = vpop.f32.mrb[50].mxu0 }
 0x159   :  { %v2089_v50 = vadd.f32 %v2088_v18, %v2087_v42  ;;  %v2090_v52 = vpop.f32.mrb[50].mxu1  ;;  %v2027_v54 = vpop.f32.mrb[51].mxu0 }
 0x15a   :  { %v1307_v14 = vadd.f32 %v2025_v44, %v2833_v33  ;;  %v2028_v55 = vadd.f32 %v2027_v54, %v2026_v49  ;;  %v2091_v56 = vpop.f32.mrb[51].mxu1 }
 0x15b   :  { %v2092_v57 = vadd.f32 %v2091_v56, %v2090_v52 }
 0x15c   :  { %v1310_v16 = vadd.f32 %v2028_v55, %v2836_v35  ;;  %v1404_v58 = vadd.f32 %v2089_v50, %v1307_v14 }
 0x15e   :  { %v2029_v30 = vpop.f32.mrb[52].mxu0  ;;  %v2882_v59 = vadd.f32 %v2092_v57, %v1310_v16 }
 0x15f   :  { %v2093_v60 = vpop.f32.mrb[52].mxu1  ;;  %v2030_v61 = vpop.f32.mrb[53].mxu0 }
 0x160   :  { %v2031_v32 = vadd.f32 %v2030_v61, %v2029_v30  ;;  %v2094_v1 = vpop.f32.mrb[53].mxu1  ;;  %v2032_v3 = vpop.f32.mrb[54].mxu0 }
 0x161   :  { %v2095_v4 = vadd.f32 %v2094_v1, %v2093_v60  ;;  %v2096_v6 = vpop.f32.mrb[54].mxu1  ;;  %v2033_v8 = vpop.f32.mrb[55].mxu0 }
 0x162   :  { %v1315_v9 = vadd.f32 %v2031_v32, %v2839_v51  ;;  %v2034_v33 = vadd.f32 %v2033_v8, %v2032_v3  ;;  %v2097_v10 = vpop.f32.mrb[55].mxu1 }
 0x163   :  { %v2098_v11 = vadd.f32 %v2097_v10, %v2096_v6 }
 0x164   :  { %v1318_v12 = vadd.f32 %v2034_v33, %v2842_v53  ;;  %v1412_v35 = vadd.f32 %v2095_v4, %v1315_v9 }
 0x166   :  { %v2035_v46 = vpop.f32.mrb[56].mxu0  ;;  %v1415_v13 = vadd.f32 %v2098_v11, %v1318_v12 }
 0x167   :  { %v2099_v15 = vpop.f32.mrb[56].mxu1  ;;  %v2036_v17 = vpop.f32.mrb[57].mxu0 }
 0x168   :  { %v2037_v48 = vadd.f32 %v2036_v17, %v2035_v46  ;;  %v2100_v20 = vpop.f32.mrb[57].mxu1  ;;  %v2038_v22 = vpop.f32.mrb[58].mxu0 }
 0x169   :  { %v2101_v23 = vadd.f32 %v2100_v20, %v2099_v15  ;;  %v2102_v25 = vpop.f32.mrb[58].mxu1  ;;  %v2039_v27 = vpop.f32.mrb[59].mxu0 }
 0x16a   :  { %v1323_v28 = vadd.f32 %v2037_v48, %v2845_v5  ;;  %v2040_v29 = vadd.f32 %v2039_v27, %v2038_v22  ;;  %v2103_v51 = vpop.f32.mrb[59].mxu1 }
 0x16b   :  { %v2104_v31 = vadd.f32 %v2103_v51, %v2102_v25 }
 0x16c   :  { %v1326_v34 = vadd.f32 %v2040_v29, %v2848_v7  ;;  %v1420_v62 = vadd.f32 %v2101_v23, %v1323_v28 }
 0x16e   :  { %v2041_v53 = vpop.f32.mrb[60].mxu0  ;;  %v2888_v36 = vadd.f32 %v2104_v31, %v1326_v34 }
 0x16f   :  { %v2105_v37 = vpop.f32.mrb[60].mxu1  ;;  %v2042_v38 = vpop.f32.mrb[61].mxu0 }
 0x170   :  { %v2043_v0 = vadd.f32 %v2042_v38, %v2041_v53  ;;  %v2106_v40 = vpop.f32.mrb[61].mxu1  ;;  %v2044_v42 = vpop.f32.mrb[62].mxu0 }
 0x171   :  { %v2107_v43 = vadd.f32 %v2106_v40, %v2105_v37  ;;  %v2108_v44 = vpop.f32.mrb[62].mxu1  ;;  %v2045_v18 = vpop.f32.mrb[63].mxu0 }
 0x172   :  { %v1331_v49 = vadd.f32 %v2043_v0, %v2851_v24  ;;  %v2046_v5 = vadd.f32 %v2045_v18, %v2044_v42  ;;  %v2109_v50 = vpop.f32.mrb[63].mxu1 }
 0x173   :  { %v2110_v52 = vadd.f32 %v2109_v50, %v2108_v44 }
 0x174   :  { %v1334_v54 = vadd.f32 %v2046_v5, %v2854_v26  ;;  %v1428_v7 = vadd.f32 %v2107_v43, %v1331_v49 }
 0x176   :  { %v2145_v14 = vpop.f32.mrb[64].mxu0  ;;  %v1431_v55 = vadd.f32 %v2110_v52, %v1334_v54 }
 0x177   :  { %v1477_v56 = vadd.f32 %v2145_v14, %v2864_v63  ;;  %v2153_v57 = vpop.f32.mrb[64].mxu1  ;;  %v1468_v16 = vpop.f32.mrb[65].mxu0 }
 0x178   :  { %v1509_v30 = vadd.f32 %v2153_v57, %v1412_v35  ;;  %v1469_v60 = vadd.f32 %v1468_v16, %v2858_v45  ;;  %v1500_v61 = vpop.f32.mrb[65].mxu1  ;;  %v2146_v32 = vpop.f32.mrb[66].mxu0 }
 0x179   :  { %v1501_v1 = vadd.f32 %v1500_v61, %v1404_v58  ;;  %v1480_v24 = vadd.f32 %v2146_v32, %v2866_v2  ;;  %v2154_v3 = vpop.f32.mrb[66].mxu1  ;;  %v1471_v4 = vpop.f32.mrb[67].mxu0  ;;  %v1533_v9 = vmax.f32 %v1477_v56, 0.0 }
 0x17a   :  { %v1512_v6 = vadd.f32 %v2154_v3, %v1415_v13  ;;  %v1472_v26 = vadd.f32 %v1471_v4, %v2860_v47  ;;  %v1503_v8 = vpop.f32.mrb[67].mxu1  ;;  %v1541_v10 = vmax.f32 %v1509_v30, 0.0  ;;  %v1531_v11 = vmax.f32 %v1469_v60, 0.0 }
 0x17b   :  { %v1534_v33 = vmax.f32 %v1480_v24, 0.0  ;;  %v1504_v63 = vadd.f32 %v1503_v8, %v2882_v59  ;;  %v1539_v45 = vmax.f32 %v1501_v1, 0.0 }
 0x17c   :  { %v1542_v12 = vmax.f32 %v1512_v6, 0.0  ;;  %v1532_v35 = vmax.f32 %v1472_v26, 0.0 }
 0x17d   :  { %v1816_v46 = vpack.c.bf16 %v1534_v33, %v1533_v9  ;;  %v1540_v15 = vmax.f32 %v1504_v63, 0.0 }
 0x17e   :  { %v1836_v58 = vpack.c.bf16 %v1542_v12, %v1541_v10  ;;  %v1811_v17 = vpack.c.bf16 %v1532_v35, %v1531_v11  ;;  %v2149_v2 = vpop.f32.mrb[68].mxu0 }
 0x17f   :  { %1848 = vst [vmem:[%s2929_s3 + $0x8] sm:$0xff] %v1816_v46   ;;  %v1831_v47 = vpack.c.bf16 %v1540_v15, %v1539_v45  ;;  %v1493_v13 = vadd.f32 %v2149_v2, %v2876_v39  ;;  %v2157_v48 = vpop.f32.mrb[68].mxu1  ;;  %v1484_v20 = vpop.f32.mrb[69].mxu0 }
 0x180   :  { %1852 = vst [vmem:[%s2929_s3 + $0x28] sm:$0xff] %v1836_v58   ;;  %1812 = vst [vmem:[%s2929_s3] sm:$0xff] %v1811_v17   ;;  %v1525_v59 = vadd.f32 %v2157_v48, %v1428_v7  ;;  %v1485_v22 = vadd.f32 %v1484_v20, %v2870_v19  ;;  %v1516_v23 = vpop.f32.mrb[69].mxu1  ;;  %v2150_v25 = vpop.f32.mrb[70].mxu0 }
 0x181   :  { %1851 = vst [vmem:[%s2929_s3 + $0x20] sm:$0xff] %v1831_v47   ;;  %v1517_v39 = vadd.f32 %v1516_v23, %v1420_v62  ;;  %v1496_v27 = vadd.f32 %v2150_v25, %v2878_v41  ;;  %v2158_v28 = vpop.f32.mrb[70].mxu1  ;;  %v1487_v29 = vpop.f32.mrb[71].mxu0  ;;  %v1537_v53 = vmax.f32 %v1493_v13, 0.0 }
 0x182   :  { %v1528_v51 = vadd.f32 %v2158_v28, %v1431_v55  ;;  %v1488_v31 = vadd.f32 %v1487_v29, %v2872_v21  ;;  %v1519_v34 = vpop.f32.mrb[71].mxu1  ;;  %v1545_v19 = vmax.f32 %v1525_v59, 0.0  ;;  %v1535_v0 = vmax.f32 %v1485_v22, 0.0 }
 0x183   :  { %v1538_v37 = vmax.f32 %v1496_v27, 0.0  ;;  %v1520_v38 = vadd.f32 %v1519_v34, %v2888_v36  ;;  %v1543_v43 = vmax.f32 %v1517_v39, 0.0 }
 0x184   :  { %v1546_v40 = vmax.f32 %v1528_v51, 0.0  ;;  %v1536_v42 = vmax.f32 %v1488_v31, 0.0 }
 0x185   :  { %v1826_v44 = vpack.c.bf16 %v1538_v37, %v1537_v53  ;;  %v1544_v18 = vmax.f32 %v1520_v38, 0.0 }
 0x186   :  { %v1846_v62 = vpack.c.bf16 %v1546_v40, %v1545_v19  ;;  %v1821_v49 = vpack.c.bf16 %v1536_v42, %v1535_v0 }
 0x187   :  { %1850 = vst [vmem:[%s2929_s3 + $0x18] sm:$0xff] %v1826_v44   ;;  %v1841_v41 = vpack.c.bf16 %v1544_v18, %v1543_v43 }
 0x188   :  { %1854 = vst [vmem:[%s2929_s3 + $0x38] sm:$0xff] %v1846_v62   ;;  %1849 = vst [vmem:[%s2929_s3 + $0x10] sm:$0xff] %v1821_v49  }
 0x189   :  { %1853 = vst [vmem:[%s2929_s3 + $0x30] sm:$0xff] %v1841_v41  }

// kernel: quantized_resnet50_forward.73
= control target key start
LH: loop header
LB: loop body
LE: loop exit
PB: predicated region body
PF: predicated region fallthrough
CT: control target
= control target key end

     0   :  { %s308_s1 = inlined_call_operand.vmem [shape: bf16[128,128], index: 1, kind: input, shape index: {}]   ;;  %s309_s0 = inlined_call_operand.vmem [shape: bf16[32,128], index: 0, kind: input, shape index: {}]   ;;  %s310_s2 = inlined_call_operand.vmem [shape: f32[1,128], index: 2, kind: input, shape index: {}]   ;;  %s311_s3 = inlined_call_operand.vmem [shape: bf16[32,128], index: 3, kind: output, shape index: {}]  }
   0x1   :  { %v239_v0 = vld [vmem:[%s308_s1] sm:$0xff]   ;;  %v240_v1 = vld [vmem:[%s308_s1 + $0x8] sm:$0xff]   ;;  %v241_v2 = vld [vmem:[%s308_s1 + $0x10] sm:$0xff]  }
   0x2   :  { %219 = vmatprep.subr.bf16.mxu0 %v239_v0  ;;  %v242_v3 = vld [vmem:[%s308_s1 + $0x18] sm:$0xff]   ;;  %v247_v4 = vld [vmem:[%s309_s0] sm:$0xff]   ;;  %v244_v6 = vld [vmem:[%s308_s1 + $0x28] sm:$0xff]  }
   0x3   :  { %220 = vmatpush3.bf16.msra.mxu0 %v239_v0  ;;  %235 = vmatprep.mubr.bf16.mxu0 %v247_v4  ;;  %v243_v5 = vld [vmem:[%s308_s1 + $0x20] sm:$0xff]   ;;  %v245_v7 = vld [vmem:[%s308_s1 + $0x30] sm:$0xff]   ;;  %v246_v8 = vld [vmem:[%s308_s1 + $0x38] sm:$0xff]  }
   0x4   :  { %221 = vmatprep.subr.bf16.mxu0 %v240_v1  ;;  %v248_v9 = vld [vmem:[%s309_s0 + $0x8] sm:$0xff]   ;;  %v179_v10 = vld [vmem:[%s310_s2] ss:$0 sm:$0xff] }
   0x7   :  { %222 = vmatpush3.bf16.msra.mxu0 %v240_v1 }
   0x8   :  { %223 = vmatprep.subr.bf16.mxu0 %v241_v2 }
   0xb   :  { %224 = vmatpush3.bf16.msra.mxu0 %v241_v2 }
   0xc   :  { %225 = vmatprep.subr.bf16.mxu0 %v242_v3 }
   0xf   :  { %226 = vmatpush3.bf16.msra.mxu0 %v242_v3 }
  0x10   :  { %227 = vmatprep.subr.bf16.mxu0 %v243_v5 }
  0x13   :  { %228 = vmatpush3.bf16.msra.mxu0 %v243_v5 }
  0x14   :  { %229 = vmatprep.subr.bf16.mxu0 %v244_v6 }
  0x17   :  { %230 = vmatpush3.bf16.msra.mxu0 %v244_v6 }
  0x18   :  { %231 = vmatprep.subr.bf16.mxu0 %v245_v7 }
  0x1b   :  { %232 = vmatpush3.bf16.msra.mxu0 %v245_v7 }
  0x1c   :  { %233 = vmatprep.subr.bf16.mxu0 %v246_v8 }
  0x1f   :  { %234 = vmatpush3.bf16.msra.mxu0 %v246_v8 }
  0x22   :  { %236 = vmatmul.mubr.bf16.vlgmr.msra.gmra.mrb[0].mxu0 %v248_v9 }
  0xf5   :  { %v237_v11 = vpop.f32.mrb[0].mxu0 }
  0xf6   :  { %v145_v12 = vadd.f32 %v237_v11, %v179_v10  ;;  %v136_v13 = vpop.f32.mrb[1].mxu0 }
  0xf7   :  { %v137_v14 = vadd.f32 %v179_v10, %v136_v13  ;;  %v238_v15 = vpop.f32.mrb[2].mxu0 }
  0xf8   :  { %v148_v16 = vadd.f32 %v238_v15, %v179_v10  ;;  %v139_v17 = vpop.f32.mrb[3].mxu0  ;;  %v153_v19 = vmax.f32 %v145_v12, 0.0 }
  0xf9   :  { %v140_v18 = vadd.f32 %v179_v10, %v139_v17  ;;  %v151_v21 = vmax.f32 %v137_v14, 0.0 }
  0xfa   :  { %v154_v20 = vmax.f32 %v148_v16, 0.0 }
  0xfb   :  { %v152_v22 = vmax.f32 %v140_v18, 0.0 }
  0xfc   :  { %v206_v23 = vpack.c.bf16 %v154_v20, %v153_v19 }
  0xfd   :  { %v201_v24 = vpack.c.bf16 %v152_v22, %v151_v21 }
  0xfe   :  { %208 = vst [vmem:[%s311_s3 + $0x8] sm:$0xff] %v206_v23  }
  0xff   :  { %202 = vst [vmem:[%s311_s3] sm:$0xff] %v201_v24  }

// kernel: quantized_resnet50_forward.72
= control target key start
LH: loop header
LB: loop body
LE: loop exit
PB: predicated region body
PF: predicated region fallthrough
CT: control target
= control target key end

     0   :  { %s343_s1 = inlined_call_operand.vmem [shape: bf16[128,128], index: 1, kind: input, shape index: {}]   ;;  %s344_s0 = inlined_call_operand.vmem [shape: bf16[32,128], index: 0, kind: input, shape index: {}]   ;;  %s345_s3 = inlined_call_operand.vmem [shape: bf16[32,128], index: 3, kind: input, shape index: {}]   ;;  %s346_s2 = inlined_call_operand.vmem [shape: f32[1,128], index: 2, kind: input, shape index: {}]   ;;  %s347_s4 = inlined_call_operand.vmem [shape: bf16[32,128], index: 4, kind: output, shape index: {}]  }
   0x1   :  { %v263_v0 = vld [vmem:[%s343_s1] sm:$0xff]   ;;  %v264_v1 = vld [vmem:[%s343_s1 + $0x8] sm:$0xff]   ;;  %v265_v2 = vld [vmem:[%s343_s1 + $0x10] sm:$0xff]  }
   0x2   :  { %243 = vmatprep.subr.bf16.mxu0 %v263_v0  ;;  %v266_v3 = vld [vmem:[%s343_s1 + $0x18] sm:$0xff]   ;;  %v271_v4 = vld [vmem:[%s344_s0] sm:$0xff]   ;;  %v268_v6 = vld [vmem:[%s343_s1 + $0x28] sm:$0xff]  }
   0x3   :  { %244 = vmatpush3.bf16.msra.mxu0 %v263_v0  ;;  %259 = vmatprep.mubr.bf16.mxu0 %v271_v4  ;;  %v267_v5 = vld [vmem:[%s343_s1 + $0x20] sm:$0xff]   ;;  %v269_v7 = vld [vmem:[%s343_s1 + $0x30] sm:$0xff]   ;;  %v270_v8 = vld [vmem:[%s343_s1 + $0x38] sm:$0xff]  }
   0x4   :  { %245 = vmatprep.subr.bf16.mxu0 %v264_v1  ;;  %v272_v9 = vld [vmem:[%s344_s0 + $0x8] sm:$0xff]   ;;  %v214_v11 = vld [vmem:[%s345_s3] sm:$0xff]  }
   0x5   :  { %v231_v10 = vld [vmem:[%s345_s3 + $0x8] sm:$0xff]   ;;  %v194_v12 = vld [vmem:[%s346_s2] ss:$0 sm:$0xff]  ;;  %v215_v15 = vunpack.c.l.bf16 %v214_v11  ;;  %v216_v21 = vunpack.c.h.bf16 %v214_v11 }
   0x6   :  { %v219_v13 = vunpack.c.l.bf16 %v231_v10  ;;  %v220_v18 = vunpack.c.h.bf16 %v231_v10 }
   0x7   :  { %246 = vmatpush3.bf16.msra.mxu0 %v264_v1 }
   0x8   :  { %247 = vmatprep.subr.bf16.mxu0 %v265_v2 }
   0xb   :  { %248 = vmatpush3.bf16.msra.mxu0 %v265_v2 }
   0xc   :  { %249 = vmatprep.subr.bf16.mxu0 %v266_v3 }
   0xf   :  { %250 = vmatpush3.bf16.msra.mxu0 %v266_v3 }
  0x10   :  { %251 = vmatprep.subr.bf16.mxu0 %v267_v5 }
  0x13   :  { %252 = vmatpush3.bf16.msra.mxu0 %v267_v5 }
  0x14   :  { %253 = vmatprep.subr.bf16.mxu0 %v268_v6 }
  0x17   :  { %254 = vmatpush3.bf16.msra.mxu0 %v268_v6 }
  0x18   :  { %255 = vmatprep.subr.bf16.mxu0 %v269_v7 }
  0x1b   :  { %256 = vmatpush3.bf16.msra.mxu0 %v269_v7 }
  0x1c   :  { %257 = vmatprep.subr.bf16.mxu0 %v270_v8 }
  0x1f   :  { %258 = vmatpush3.bf16.msra.mxu0 %v270_v8 }
  0x22   :  { %260 = vmatmul.mubr.bf16.vlgmr.msra.gmra.mrb[0].mxu0 %v272_v9 }
  0xf5   :  { %v261_v14 = vpop.f32.mrb[0].mxu0 }
  0xf6   :  { %v148_v16 = vadd.f32 %v261_v14, %v194_v12  ;;  %v139_v17 = vpop.f32.mrb[1].mxu0 }
  0xf7   :  { %v140_v19 = vadd.f32 %v194_v12, %v139_v17  ;;  %v262_v20 = vpop.f32.mrb[2].mxu0 }
  0xf8   :  { %v164_v22 = vadd.f32 %v219_v13, %v148_v16  ;;  %v151_v23 = vadd.f32 %v262_v20, %v194_v12  ;;  %v142_v24 = vpop.f32.mrb[3].mxu0 }
  0xf9   :  { %v162_v25 = vadd.f32 %v215_v15, %v140_v19  ;;  %v143_v26 = vadd.f32 %v194_v12, %v142_v24 }
  0xfa   :  { %v165_v27 = vadd.f32 %v220_v18, %v151_v23  ;;  %v168_v29 = vmax.f32 %v164_v22, 0.0 }
  0xfb   :  { %v163_v28 = vadd.f32 %v216_v21, %v143_v26  ;;  %v166_v31 = vmax.f32 %v162_v25, 0.0 }
  0xfc   :  { %v169_v30 = vmax.f32 %v165_v27, 0.0 }
  0xfd   :  { %v167_v32 = vmax.f32 %v163_v28, 0.0 }
  0xfe   :  { %v229_v33 = vpack.c.bf16 %v169_v30, %v168_v29 }
  0xff   :  { %v224_v34 = vpack.c.bf16 %v167_v32, %v166_v31 }
 0x100   :  { %232 = vst [vmem:[%s347_s4 + $0x8] sm:$0xff] %v229_v33  }
 0x101   :  { %225 = vst [vmem:[%s347_s4] sm:$0xff] %v224_v34  }

// kernel: quantized_resnet50_forward.69
= control target key start
LH: loop header
LB: loop body
LE: loop exit
PB: predicated region body
PF: predicated region fallthrough
CT: control target
= control target key end

     0   :  { %s304_s1 = inlined_call_operand.vmem [shape: bf16[128,128], index: 1, kind: input, shape index: {}]   ;;  %s305_s0 = inlined_call_operand.vmem [shape: bf16[32,128], index: 0, kind: input, shape index: {}]   ;;  %s306_s2 = inlined_call_operand.vmem [shape: f32[1,128], index: 2, kind: input, shape index: {}]   ;;  %s307_s3 = inlined_call_operand.vmem [shape: bf16[32,128], index: 3, kind: output, shape index: {}]  }
   0x1   :  { %v235_v0 = vld [vmem:[%s304_s1] sm:$0xff]   ;;  %v236_v1 = vld [vmem:[%s304_s1 + $0x8] sm:$0xff]   ;;  %v237_v2 = vld [vmem:[%s304_s1 + $0x10] sm:$0xff]  }
   0x2   :  { %215 = vmatprep.subr.bf16.mxu0 %v235_v0  ;;  %v238_v3 = vld [vmem:[%s304_s1 + $0x18] sm:$0xff]   ;;  %v243_v4 = vld [vmem:[%s305_s0] sm:$0xff]   ;;  %v240_v6 = vld [vmem:[%s304_s1 + $0x28] sm:$0xff]  }
   0x3   :  { %216 = vmatpush3.bf16.msra.mxu0 %v235_v0  ;;  %231 = vmatprep.mubr.bf16.mxu0 %v243_v4  ;;  %v239_v5 = vld [vmem:[%s304_s1 + $0x20] sm:$0xff]   ;;  %v241_v7 = vld [vmem:[%s304_s1 + $0x30] sm:$0xff]   ;;  %v242_v8 = vld [vmem:[%s304_s1 + $0x38] sm:$0xff]  }
   0x4   :  { %217 = vmatprep.subr.bf16.mxu0 %v236_v1  ;;  %v244_v9 = vld [vmem:[%s305_s0 + $0x8] sm:$0xff]   ;;  %v175_v11 = vld [vmem:[%s306_s2] ss:$0 sm:$0xff] }
   0x7   :  { %218 = vmatpush3.bf16.msra.mxu0 %v236_v1 }
   0x8   :  { %219 = vmatprep.subr.bf16.mxu0 %v237_v2 }
   0xb   :  { %220 = vmatpush3.bf16.msra.mxu0 %v237_v2 }
   0xc   :  { %221 = vmatprep.subr.bf16.mxu0 %v238_v3 }
   0xf   :  { %222 = vmatpush3.bf16.msra.mxu0 %v238_v3 }
  0x10   :  { %223 = vmatprep.subr.bf16.mxu0 %v239_v5 }
  0x13   :  { %224 = vmatpush3.bf16.msra.mxu0 %v239_v5 }
  0x14   :  { %225 = vmatprep.subr.bf16.mxu0 %v240_v6 }
  0x17   :  { %226 = vmatpush3.bf16.msra.mxu0 %v240_v6 }
  0x18   :  { %227 = vmatprep.subr.bf16.mxu0 %v241_v7 }
  0x1b   :  { %228 = vmatpush3.bf16.msra.mxu0 %v241_v7 }
  0x1c   :  { %229 = vmatprep.subr.bf16.mxu0 %v242_v8 }
  0x1f   :  { %230 = vmatpush3.bf16.msra.mxu0 %v242_v8 }
  0x22   :  { %232 = vmatmul.mubr.bf16.vlgmr.msra.gmra.mrb[0].mxu0 %v244_v9 }
  0xf5   :  { %v233_v10 = vpop.f32.mrb[0].mxu0 }
  0xf6   :  { %v136_v12 = vpop.f32.mrb[1].mxu0  ;;  %v145_v14 = vadd.f32 %v233_v10, %v175_v11 }
  0xf7   :  { %v234_v13 = vpop.f32.mrb[2].mxu0  ;;  %v137_v17 = vadd.f32 %v175_v11, %v136_v12 }
  0xf8   :  { %v148_v15 = vadd.f32 %v234_v13, %v175_v11  ;;  %v139_v16 = vpop.f32.mrb[3].mxu0 }
  0xf9   :  { %v140_v18 = vadd.f32 %v175_v11, %v139_v16 }
  0xfa   :  { %v202_v19 = vpack.c.bf16 %v148_v15, %v145_v14 }
  0xfb   :  { %v197_v20 = vpack.c.bf16 %v140_v18, %v137_v17 }
  0xfc   :  { %204 = vst [vmem:[%s307_s3 + $0x8] sm:$0xff] %v202_v19  }
  0xfd   :  { %198 = vst [vmem:[%s307_s3] sm:$0xff] %v197_v20  }

// kernel: quantized_resnet50_forward.71
= control target key start
LH: loop header
LB: loop body
LE: loop exit
PB: predicated region body
PF: predicated region fallthrough
CT: control target
= control target key end

     0   :  { %s1632_s1 = inlined_call_operand.vmem [shape: bf16[1152,128], index: 1, kind: input, shape index: {}]   ;;  %s1633_s0 = inlined_call_operand.vmem [shape: bf16[32,1152], index: 0, kind: input, shape index: {}]   ;;  %s1634_s2 = inlined_call_operand.vmem [shape: f32[1,128], index: 2, kind: input, shape index: {}]   ;;  %s1635_s3 = inlined_call_operand.vmem [shape: bf16[32,128], index: 3, kind: output, shape index: {}]  }
   0x1   :  { %v1235_v0 = vld [vmem:[%s1632_s1 + $0x40] sm:$0xff]   ;;  %v1239_v4 = vld [vmem:[%s1632_s1 + $0x48] sm:$0xff]   ;;  %v1243_v8 = vld [vmem:[%s1632_s1 + $0x50] sm:$0xff]  }
   0x2   :  { %v1236_v1 = vld [vmem:[%s1632_s1] sm:$0xff]   ;;  %1093 = vmatprep.subr.bf16.mxu0 %v1235_v0  ;;  %v1240_v5 = vld [vmem:[%s1632_s1 + $0x8] sm:$0xff]   ;;  %v1244_v9 = vld [vmem:[%s1632_s1 + $0x10] sm:$0xff]  }
   0x3   :  { %v1237_v2 = vld [vmem:[%s1632_s1 + $0xc0] sm:$0xff]   ;;  %1094 = vmatpush3.bf16.msra.mxu0 %v1236_v1  ;;  %v1241_v6 = vld [vmem:[%s1632_s1 + $0xc8] sm:$0xff]   ;;  %v1245_v10 = vld [vmem:[%s1632_s1 + $0xd0] sm:$0xff]  }
   0x4   :  { %v1238_v3 = vld [vmem:[%s1632_s1 + $0x80] sm:$0xff]   ;;  %1121 = vmatprep.subr.bf16.mxu1 %v1237_v2  ;;  %1095 = vmatprep.subr.bf16.mxu0 %v1239_v4  ;;  %v1242_v7 = vld [vmem:[%s1632_s1 + $0x88] sm:$0xff]   ;;  %v1246_v11 = vld [vmem:[%s1632_s1 + $0x90] sm:$0xff]  }
   0x5   :  { %1122 = vmatpush3.bf16.msra.mxu1 %v1238_v3  ;;  %v1247_v12 = vld [vmem:[%s1632_s1 + $0x58] sm:$0xff]   ;;  %v1251_v16 = vld [vmem:[%s1632_s1 + $0x60] sm:$0xff]   ;;  %v1255_v20 = vld [vmem:[%s1632_s1 + $0x68] sm:$0xff]  }
   0x6   :  { %1123 = vmatprep.subr.bf16.mxu1 %v1241_v6  ;;  %v1248_v13 = vld [vmem:[%s1632_s1 + $0x18] sm:$0xff]   ;;  %v1252_v17 = vld [vmem:[%s1632_s1 + $0x20] sm:$0xff]   ;;  %v1256_v21 = vld [vmem:[%s1632_s1 + $0x28] sm:$0xff]  }
   0x7   :  { %1096 = vmatpush3.bf16.msra.mxu0 %v1240_v5  ;;  %v1249_v14 = vld [vmem:[%s1632_s1 + $0xd8] sm:$0xff]   ;;  %v1253_v18 = vld [vmem:[%s1632_s1 + $0xe0] sm:$0xff]   ;;  %v1257_v22 = vld [vmem:[%s1632_s1 + $0xe8] sm:$0xff]  }
   0x8   :  { %1097 = vmatprep.subr.bf16.mxu0 %v1243_v8  ;;  %v1250_v15 = vld [vmem:[%s1632_s1 + $0x98] sm:$0xff]   ;;  %v1254_v19 = vld [vmem:[%s1632_s1 + $0xa0] sm:$0xff]   ;;  %v1258_v23 = vld [vmem:[%s1632_s1 + $0xa8] sm:$0xff]  }
   0x9   :  { %1124 = vmatpush3.bf16.msra.mxu1 %v1242_v7  ;;  %v1259_v24 = vld [vmem:[%s1632_s1 + $0x70] sm:$0xff]   ;;  %v1263_v28 = vld [vmem:[%s1632_s1 + $0x78] sm:$0xff]   ;;  %v1266_v31 = vld [vmem:[%s1633_s0] ss:$36 sps:$4 sm:$0xff]  }
   0xa   :  { %1125 = vmatprep.subr.bf16.mxu1 %v1245_v10  ;;  %v1260_v25 = vld [vmem:[%s1632_s1 + $0x30] sm:$0xff]   ;;  %v1264_v29 = vld [vmem:[%s1632_s1 + $0x38] sm:$0xff]   ;;  %v1268_v32 = vld [vmem:[%s1633_s0 + $0x4] ss:$36 sps:$4 sm:$0xff]  }
   0xb   :  { %1098 = vmatpush3.bf16.msra.mxu0 %v1244_v9  ;;  %v1261_v26 = vld [vmem:[%s1632_s1 + $0xf0] sm:$0xff]   ;;  %v1265_v30 = vld [vmem:[%s1632_s1 + $0xf8] sm:$0xff]   ;;  %742 = vmatprep.mubr.bf16.mxu0 %v1268_v32  ;;  %v1270_v34 = vld [vmem:[%s1632_s1 + $0x140] sm:$0xff]  }
   0xc   :  { %1099 = vmatprep.subr.bf16.mxu0 %v1247_v12  ;;  %v1262_v27 = vld [vmem:[%s1632_s1 + $0xb0] sm:$0xff]   ;;  %v1269_v33 = vld [vmem:[%s1632_s1 + $0xb8] sm:$0xff]   ;;  %v1271_v35 = vld [vmem:[%s1633_s0 + $0x8] ss:$36 sps:$4 sm:$0xff]  }
   0xd   :  { %1126 = vmatpush3.bf16.msra.mxu1 %v1246_v11  ;;  %v1273_v36 = vld [vmem:[%s1633_s0 + $0xc] ss:$36 sps:$4 sm:$0xff]   ;;  %v1274_v37 = vld [vmem:[%s1632_s1 + $0x100] sm:$0xff]   ;;  %v1285_v48 = vld [vmem:[%s1632_s1 + $0x158] sm:$0xff]  }
   0xe   :  { %1127 = vmatprep.subr.bf16.mxu1 %v1249_v14  ;;  %791 = vmatprep.mubr.bf16.mxu1 %v1273_v36  ;;  %v1275_v38 = vld [vmem:[%s1632_s1 + $0x1c0] sm:$0xff]   ;;  %v1277_v40 = vld [vmem:[%s1632_s1 + $0x148] sm:$0xff]   ;;  %v1281_v44 = vld [vmem:[%s1632_s1 + $0x150] sm:$0xff]  }
   0xf   :  { %1100 = vmatpush3.bf16.msra.mxu0 %v1248_v13  ;;  %v1276_v39 = vld [vmem:[%s1632_s1 + $0x180] sm:$0xff]   ;;  %v1278_v41 = vld [vmem:[%s1632_s1 + $0x108] sm:$0xff]   ;;  %v1282_v45 = vld [vmem:[%s1632_s1 + $0x110] sm:$0xff]  }
  0x10   :  { %1101 = vmatprep.subr.bf16.mxu0 %v1251_v16  ;;  %v1279_v42 = vld [vmem:[%s1632_s1 + $0x1c8] sm:$0xff]   ;;  %v1283_v46 = vld [vmem:[%s1632_s1 + $0x1d0] sm:$0xff]   ;;  %v1286_v49 = vld [vmem:[%s1632_s1 + $0x118] sm:$0xff]  }
  0x11   :  { %1128 = vmatpush3.bf16.msra.mxu1 %v1250_v15  ;;  %v1280_v43 = vld [vmem:[%s1632_s1 + $0x188] sm:$0xff]   ;;  %v1284_v47 = vld [vmem:[%s1632_s1 + $0x190] sm:$0xff]   ;;  %v1287_v50 = vld [vmem:[%s1632_s1 + $0x1d8] sm:$0xff]  }
  0x12   :  { %1129 = vmatprep.subr.bf16.mxu1 %v1253_v18  ;;  %v1288_v51 = vld [vmem:[%s1632_s1 + $0x198] sm:$0xff]   ;;  %v1289_v52 = vld [vmem:[%s1632_s1 + $0x160] sm:$0xff]   ;;  %v1293_v56 = vld [vmem:[%s1632_s1 + $0x168] sm:$0xff]  }
  0x13   :  { %1102 = vmatpush3.bf16.msra.mxu0 %v1252_v17  ;;  %v1290_v53 = vld [vmem:[%s1632_s1 + $0x120] sm:$0xff]   ;;  %v1294_v57 = vld [vmem:[%s1633_s0 + $0x4c] ss:$36 sps:$4 sm:$0xff]   ;;  %v1299_v61 = vld [vmem:[%s1633_s0 + $0x54] ss:$36 sps:$4 sm:$0xff]  }
  0x14   :  { %1103 = vmatprep.subr.bf16.mxu0 %v1255_v20  ;;  %v1291_v54 = vld [vmem:[%s1632_s1 + $0x1e0] sm:$0xff]   ;;  %v1296_v58 = vld [vmem:[%s1632_s1 + $0x128] sm:$0xff]   ;;  %v1302_v63 = vld [vmem:[%s1633_s0 + $0x50] ss:$36 sps:$4 sm:$0xff]  }
  0x15   :  { %1130 = vmatpush3.bf16.msra.mxu1 %v1254_v19  ;;  %v1292_v55 = vld [vmem:[%s1632_s1 + $0x1a0] sm:$0xff]   ;;  %v1297_v59 = vld [vmem:[%s1633_s0 + $0x48] ss:$36 sps:$4 sm:$0xff]   ;;  %v1303_v0 = vld [vmem:[%s1632_s1 + $0x170] sm:$0xff]  }
  0x16   :  { %1131 = vmatprep.subr.bf16.mxu1 %v1257_v22  ;;  %v1298_v60 = vld [vmem:[%s1632_s1 + $0x1e8] sm:$0xff]   ;;  %v1304_v1 = vld [vmem:[%s1632_s1 + $0x130] sm:$0xff]   ;;  %v1307_v4 = vld [vmem:[%s1632_s1 + $0x178] sm:$0xff]  }
  0x17   :  { %1104 = vmatpush3.bf16.msra.mxu0 %v1256_v21  ;;  %v1301_v62 = vld [vmem:[%s1632_s1 + $0x1a8] sm:$0xff]   ;;  %v1305_v2 = vld [vmem:[%s1632_s1 + $0x1f0] sm:$0xff]   ;;  %v1308_v5 = vld [vmem:[%s1632_s1 + $0x138] sm:$0xff]  }
  0x18   :  { %1105 = vmatprep.subr.bf16.mxu0 %v1259_v24  ;;  %v1306_v3 = vld [vmem:[%s1632_s1 + $0x1b0] sm:$0xff]   ;;  %v1309_v6 = vld [vmem:[%s1632_s1 + $0x1f8] sm:$0xff]   ;;  %v1314_v10 = vld [vmem:[%s1632_s1 + $0x200] sm:$0xff]  }
  0x19   :  { %1132 = vmatpush3.bf16.msra.mxu1 %v1258_v23  ;;  %v1310_v7 = vld [vmem:[%s1633_s0 + $0x10] ss:$36 sps:$4 sm:$0xff]   ;;  %v1313_v9 = vld [vmem:[%s1632_s1 + $0x1b8] sm:$0xff]   ;;  %v1318_v13 = vld [vmem:[%s1632_s1 + $0x208] sm:$0xff]  }
  0x1a   :  { %1133 = vmatprep.subr.bf16.mxu1 %v1261_v26  ;;  %v1312_v8 = vld [vmem:[%s1633_s0 + $0x14] ss:$36 sps:$4 sm:$0xff]   ;;  %v1317_v12 = vld [vmem:[%s1633_s0 + $0x1c] ss:$36 sps:$4 sm:$0xff]   ;;  %v1323_v17 = vld [vmem:[%s1633_s0 + $0x64] ss:$36 sps:$4 sm:$0xff]  }
  0x1b   :  { %1106 = vmatpush3.bf16.msra.mxu0 %v1260_v25  ;;  %v1315_v11 = vld [vmem:[%s1633_s0 + $0x18] ss:$36 sps:$4 sm:$0xff]   ;;  %v1322_v16 = vld [vmem:[%s1632_s1 + $0x210] sm:$0xff]   ;;  %v1325_v18 = vld [vmem:[%s1633_s0 + $0x60] ss:$36 sps:$4 sm:$0xff]  }
  0x1c   :  { %1107 = vmatprep.subr.bf16.mxu0 %v1263_v28  ;;  %v1319_v14 = vld [vmem:[%s1633_s0 + $0x5c] ss:$36 sps:$4 sm:$0xff]   ;;  %v1328_v22 = vld [vmem:[%s1632_s1 + $0x228] sm:$0xff]   ;;  %v1329_v23 = vld [vmem:[%s1632_s1 + $0x230] sm:$0xff]  }
  0x1d   :  { %1134 = vmatpush3.bf16.msra.mxu1 %v1262_v27  ;;  %v1321_v15 = vld [vmem:[%s1633_s0 + $0x58] ss:$36 sps:$4 sm:$0xff]   ;;  %v1327_v20 = vld [vmem:[%s1632_s1 + $0x220] sm:$0xff]   ;;  %v1332_v25 = vld [vmem:[%s1633_s0 + $0x68] ss:$36 sps:$4 sm:$0xff]  }
  0x1e   :  { %1135 = vmatprep.subr.bf16.mxu1 %v1265_v30  ;;  %v1326_v19 = vld [vmem:[%s1632_s1 + $0x218] sm:$0xff]   ;;  %v1331_v21 = vld [vmem:[%s1633_s0 + $0x20] ss:$36 sps:$4 sm:$0xff]  }
  0x1f   :  { %1108 = vmatpush3.bf16.msra.mxu0 %v1264_v29  ;;  %v1330_v24 = vld [vmem:[%s1632_s1 + $0x238] sm:$0xff]   ;;  %v983_v27 = vld [vmem:[%s1634_s2] ss:$0 sm:$0xff] }
  0x20   :  { %1149 = vmatprep.subr.bf16.mxu0 %v1270_v34 }
  0x21   :  { %1136 = vmatpush3.bf16.msra.mxu1 %v1269_v33 }
  0x22   :  { %743 = vmatmul.mubr.bf16.vlgmr.msra.gmra.mrb[0].mxu0 %v1266_v31  ;;  %1177 = vmatprep.subr.bf16.mxu1 %v1275_v38 }
  0x23   :  { %1150 = vmatpush3.bf16.msra.mxu0 %v1274_v37  ;;  %750 = vmatprep.mubr.bf16.mxu0 %v1294_v57 }
  0x24   :  { %792 = vmatmul.mubr.bf16.vlgmr.msra.gmra.mrb[0].mxu1 %v1271_v35  ;;  %1151 = vmatprep.subr.bf16.mxu0 %v1277_v40 }
  0x25   :  { %1178 = vmatpush3.bf16.msra.mxu1 %v1276_v39  ;;  %799 = vmatprep.mubr.bf16.mxu1 %v1299_v61 }
  0x26   :  { %1179 = vmatprep.subr.bf16.mxu1 %v1279_v42 }
  0x27   :  { %1152 = vmatpush3.bf16.msra.mxu0 %v1278_v41 }
  0x28   :  { %1153 = vmatprep.subr.bf16.mxu0 %v1281_v44 }
  0x29   :  { %1180 = vmatpush3.bf16.msra.mxu1 %v1280_v43 }
  0x2a   :  { %1181 = vmatprep.subr.bf16.mxu1 %v1283_v46  ;;  %751 = vmatmul.mubr.bf16.gmra.mrb[4].mxu0 %v1297_v59 }
  0x2b   :  { %1154 = vmatpush3.bf16.msra.mxu0 %v1282_v45  ;;  %840 = vmatprep.mubr.bf16.mxu0 %v1312_v8 }
  0x2c   :  { %1155 = vmatprep.subr.bf16.mxu0 %v1285_v48  ;;  %800 = vmatmul.mubr.bf16.gmra.mrb[4].mxu1 %v1302_v63 }
  0x2d   :  { %1182 = vmatpush3.bf16.msra.mxu1 %v1284_v47  ;;  %889 = vmatprep.mubr.bf16.mxu1 %v1317_v12 }
  0x2e   :  { %1183 = vmatprep.subr.bf16.mxu1 %v1287_v50 }
  0x2f   :  { %1156 = vmatpush3.bf16.msra.mxu0 %v1286_v49 }
  0x30   :  { %1157 = vmatprep.subr.bf16.mxu0 %v1289_v52 }
  0x31   :  { %1184 = vmatpush3.bf16.msra.mxu1 %v1288_v51 }
  0x32   :  { %1185 = vmatprep.subr.bf16.mxu1 %v1291_v54 }
  0x33   :  { %1158 = vmatpush3.bf16.msra.mxu0 %v1290_v53 }
  0x34   :  { %1159 = vmatprep.subr.bf16.mxu0 %v1293_v56 }
  0x35   :  { %1186 = vmatpush3.bf16.msra.mxu1 %v1292_v55 }
  0x36   :  { %1187 = vmatprep.subr.bf16.mxu1 %v1298_v60 }
  0x37   :  { %1160 = vmatpush3.bf16.msra.mxu0 %v1296_v58 }
  0x38   :  { %1161 = vmatprep.subr.bf16.mxu0 %v1303_v0 }
  0x39   :  { %1188 = vmatpush3.bf16.msra.mxu1 %v1301_v62 }
  0x3a   :  { %1189 = vmatprep.subr.bf16.mxu1 %v1305_v2 }
  0x3b   :  { %1162 = vmatpush3.bf16.msra.mxu0 %v1304_v1 }
  0x3c   :  { %1163 = vmatprep.subr.bf16.mxu0 %v1307_v4 }
  0x3d   :  { %1190 = vmatpush3.bf16.msra.mxu1 %v1306_v3 }
  0x3e   :  { %1191 = vmatprep.subr.bf16.mxu1 %v1309_v6 }
  0x3f   :  { %1164 = vmatpush3.bf16.msra.mxu0 %v1308_v5 }
  0x40   :  { %1215 = vmatprep.subr.bf16.mxu0 %v1314_v10 }
  0x41   :  { %1192 = vmatpush3.bf16.msra.mxu1 %v1313_v9 }
  0x42   :  { %841 = vmatmul.mubr.bf16.vlgmr.msra.gmra.mrb[8].mxu0 %v1310_v7 }
  0x43   :  { %1216 = vmatpush3.bf16.msra.mxu0 %v1314_v10  ;;  %848 = vmatprep.mubr.bf16.mxu0 %v1319_v14 }
  0x44   :  { %890 = vmatmul.mubr.bf16.vlgmr.msra.gmra.mrb[8].mxu1 %v1315_v11  ;;  %1217 = vmatprep.subr.bf16.mxu0 %v1318_v13 }
  0x45   :  { %897 = vmatprep.mubr.bf16.mxu1 %v1323_v17 }
  0x47   :  { %1218 = vmatpush3.bf16.msra.mxu0 %v1318_v13 }
  0x48   :  { %1219 = vmatprep.subr.bf16.mxu0 %v1322_v16 }
  0x4a   :  { %849 = vmatmul.mubr.bf16.gmra.mrb[12].mxu0 %v1321_v15 }
  0x4b   :  { %1220 = vmatpush3.bf16.msra.mxu0 %v1322_v16  ;;  %1231 = vmatprep.mubr.bf16.mxu0 %v1331_v21 }
  0x4c   :  { %898 = vmatmul.mubr.bf16.gmra.mrb[12].mxu1 %v1325_v18  ;;  %1221 = vmatprep.subr.bf16.mxu0 %v1326_v19 }
  0x4f   :  { %1222 = vmatpush3.bf16.msra.mxu0 %v1326_v19 }
  0x50   :  { %1223 = vmatprep.subr.bf16.mxu0 %v1327_v20 }
  0x53   :  { %1224 = vmatpush3.bf16.msra.mxu0 %v1327_v20 }
  0x54   :  { %1225 = vmatprep.subr.bf16.mxu0 %v1328_v22 }
  0x57   :  { %1226 = vmatpush3.bf16.msra.mxu0 %v1328_v22 }
  0x58   :  { %1227 = vmatprep.subr.bf16.mxu0 %v1329_v23 }
  0x5b   :  { %1228 = vmatpush3.bf16.msra.mxu0 %v1329_v23 }
  0x5c   :  { %1229 = vmatprep.subr.bf16.mxu0 %v1330_v24 }
  0x5f   :  { %1230 = vmatpush3.bf16.msra.mxu0 %v1330_v24 }
  0x62   :  { %1232 = vmatmul.mubr.bf16.vlgmr.msra.gmra.mrb[16].mxu0 %v1332_v25 }
  0xf5   :  { %v1109_v26 = vpop.f32.mrb[0].mxu0 }
  0xf6   :  { %v1110_v28 = vpop.f32.mrb[1].mxu0 }
  0xf7   :  { %v1111_v29 = vadd.f32 %v1110_v28, %v1109_v26  ;;  %v1112_v30 = vpop.f32.mrb[2].mxu0  ;;  %v1137_v31 = vpop.f32.mrb[0].mxu1 }
  0xf8   :  { %v1113_v32 = vpop.f32.mrb[3].mxu0  ;;  %v1138_v35 = vpop.f32.mrb[1].mxu1 }
  0xf9   :  { %v745_v33 = vadd.f32 %v1111_v29, %v983_v27  ;;  %v1114_v34 = vadd.f32 %v1113_v32, %v1112_v30  ;;  %v1139_v36 = vadd.f32 %v1138_v35, %v1137_v31  ;;  %v1140_v37 = vpop.f32.mrb[2].mxu1 }
  0xfa   :  { %v1141_v39 = vpop.f32.mrb[3].mxu1 }
  0xfb   :  { %v748_v38 = vadd.f32 %v1114_v34, %v983_v27  ;;  %v794_v40 = vadd.f32 %v1139_v36, %v745_v33  ;;  %v1142_v41 = vadd.f32 %v1141_v39, %v1140_v37 }
  0xfd   :  { %v797_v42 = vadd.f32 %v1142_v41, %v748_v38  ;;  %v1115_v43 = vpop.f32.mrb[4].mxu0 }
  0xfe   :  { %v1116_v44 = vpop.f32.mrb[5].mxu0 }
  0xff   :  { %v1117_v45 = vadd.f32 %v1116_v44, %v1115_v43  ;;  %v1118_v46 = vpop.f32.mrb[6].mxu0  ;;  %v1143_v47 = vpop.f32.mrb[4].mxu1 }
 0x100   :  { %v1119_v48 = vpop.f32.mrb[7].mxu0  ;;  %v1144_v51 = vpop.f32.mrb[5].mxu1 }
 0x101   :  { %v753_v49 = vadd.f32 %v1117_v45, %v983_v27  ;;  %v1120_v50 = vadd.f32 %v1119_v48, %v1118_v46  ;;  %v1145_v52 = vadd.f32 %v1144_v51, %v1143_v47  ;;  %v1146_v53 = vpop.f32.mrb[6].mxu1 }
 0x102   :  { %v1147_v55 = vpop.f32.mrb[7].mxu1 }
 0x103   :  { %v756_v54 = vadd.f32 %v1120_v50, %v983_v27  ;;  %v802_v56 = vadd.f32 %v1145_v52, %v753_v49  ;;  %v1148_v57 = vadd.f32 %v1147_v55, %v1146_v53 }
 0x105   :  { %v805_v58 = vadd.f32 %v1148_v57, %v756_v54 }
 0x115   :  { %v1165_v59 = vpop.f32.mrb[8].mxu0 }
 0x116   :  { %v1166_v60 = vpop.f32.mrb[9].mxu0 }
 0x117   :  { %v1167_v61 = vadd.f32 %v1166_v60, %v1165_v59  ;;  %v1168_v62 = vpop.f32.mrb[10].mxu0  ;;  %v1193_v63 = vpop.f32.mrb[8].mxu1 }
 0x118   :  { %v1169_v0 = vpop.f32.mrb[11].mxu0  ;;  %v1194_v3 = vpop.f32.mrb[9].mxu1 }
 0x119   :  { %v843_v1 = vadd.f32 %v1167_v61, %v794_v40  ;;  %v1170_v2 = vadd.f32 %v1169_v0, %v1168_v62  ;;  %v1195_v4 = vadd.f32 %v1194_v3, %v1193_v63  ;;  %v1196_v5 = vpop.f32.mrb[10].mxu1 }
 0x11a   :  { %v1197_v7 = vpop.f32.mrb[11].mxu1 }
 0x11b   :  { %v846_v6 = vadd.f32 %v1170_v2, %v797_v42  ;;  %v1198_v8 = vadd.f32 %v1197_v7, %v1196_v5  ;;  %v892_v9 = vadd.f32 %v1195_v4, %v843_v1 }
 0x11d   :  { %v1171_v10 = vpop.f32.mrb[12].mxu0  ;;  %v895_v12 = vadd.f32 %v1198_v8, %v846_v6 }
 0x11e   :  { %v1172_v11 = vpop.f32.mrb[13].mxu0 }
 0x11f   :  { %v1173_v13 = vadd.f32 %v1172_v11, %v1171_v10  ;;  %v1174_v14 = vpop.f32.mrb[14].mxu0  ;;  %v1199_v15 = vpop.f32.mrb[12].mxu1 }
 0x120   :  { %v1175_v16 = vpop.f32.mrb[15].mxu0  ;;  %v1200_v19 = vpop.f32.mrb[13].mxu1 }
 0x121   :  { %v851_v17 = vadd.f32 %v1173_v13, %v802_v56  ;;  %v1176_v18 = vadd.f32 %v1175_v16, %v1174_v14  ;;  %v1201_v20 = vadd.f32 %v1200_v19, %v1199_v15  ;;  %v1202_v21 = vpop.f32.mrb[14].mxu1 }
 0x122   :  { %v1203_v23 = vpop.f32.mrb[15].mxu1 }
 0x123   :  { %v854_v22 = vadd.f32 %v1176_v18, %v805_v58  ;;  %v1204_v24 = vadd.f32 %v1203_v23, %v1202_v21  ;;  %v900_v25 = vadd.f32 %v1201_v20, %v851_v17 }
 0x125   :  { %v903_v26 = vadd.f32 %v1204_v24, %v854_v22 }
 0x135   :  { %v1233_v27 = vpop.f32.mrb[16].mxu0 }
 0x136   :  { %v949_v28 = vadd.f32 %v1233_v27, %v900_v25  ;;  %v940_v29 = vpop.f32.mrb[17].mxu0 }
 0x137   :  { %v941_v30 = vadd.f32 %v940_v29, %v892_v9  ;;  %v1234_v31 = vpop.f32.mrb[18].mxu0 }
 0x138   :  { %v952_v32 = vadd.f32 %v1234_v31, %v903_v26  ;;  %v943_v33 = vpop.f32.mrb[19].mxu0  ;;  %v957_v35 = vmax.f32 %v949_v28, 0.0 }
 0x139   :  { %v944_v34 = vadd.f32 %v943_v33, %v895_v12  ;;  %v955_v37 = vmax.f32 %v941_v30, 0.0 }
 0x13a   :  { %v958_v36 = vmax.f32 %v952_v32, 0.0 }
 0x13b   :  { %v956_v38 = vmax.f32 %v944_v34, 0.0 }
 0x13c   :  { %v1090_v39 = vpack.c.bf16 %v958_v36, %v957_v35 }
 0x13d   :  { %v1085_v40 = vpack.c.bf16 %v956_v38, %v955_v37 }
 0x13e   :  { %1092 = vst [vmem:[%s1635_s3 + $0x8] sm:$0xff] %v1090_v39  }
 0x13f   :  { %1086 = vst [vmem:[%s1635_s3] sm:$0xff] %v1085_v40  }

// kernel: quantized_resnet50_forward.82
= control target key start
LH: loop header
LB: loop body
LE: loop exit
PB: predicated region body
PF: predicated region fallthrough
CT: control target
= control target key end

     0   :  { %s708_s12 = smov 0   ;;  %s710_s13 = smov 0   ;;  %s798_s0 = inlined_call_operand.vmem [shape: bf16[8,128], index: 0, kind: input, shape index: {}]   ;;  %s799_s1 = inlined_call_operand.vmem [shape: bf16[128,256], index: 1, kind: input, shape index: {}]   ;;  %s800_s2 = inlined_call_operand.vmem [shape: f32[1,256], index: 2, kind: input, shape index: {}]   ;;  %s801_s3 = inlined_call_operand.vmem [shape: bf16[8,256], index: 3, kind: output, shape index: {}]  }
   0x1   :  { %s712_s14 = smov 0   ;;  %s714_s15 = smov 0  }
   0x2   :  { %s716_s16 = smov 0  }
   0x3 LB: > { %s22_s17 = sadd.s32 1, %s680_s15  ;;  %p65_p1 = scmp.ne.s32.totalorder %s672_s13, %s668_s12  ;;  %s684_s16 = sphi %s716_s16, %s13_s16   ;;  %s680_s15 = sphi %s714_s15, %s805_s15   ;;  %s676_s14 = sphi %s712_s14, %s804_s14   ;;  %s672_s13 = sphi %s710_s13, %s803_s13   ;;  %s668_s12 = sphi %s708_s12, %s802_s12  }
   0x4   : > { %p23_p0 = scmp.ge.s32.totalorder %s22_s17, 2  ;;  %p66_p2 = scmp.eq.s32.totalorder %s684_s16, 0 }
   0x5   : > { %s58_s19 = sadd.s32 1, %s672_s13  ;;  %p550_p5 = scmp.ge.s32.totalorder %s684_s16, 2 }
   0x6   : > { %s807_s17 = smov (%p23_p0, %s22_s17), 0  ;;  %p67_p3 = por %p66_p2, %p65_p1 }
   0x7   : > { %s55_s18 = ssub.s32 %s680_s15, %s807_s17  ;;  %152 = sbr.rel (%p550_p5) target bundleno = 28 (0x1c), region = 20 }
   0x8   : > { %p56_p4 = scmp.eq.s32.totalorder %s55_s18, 0 }
   0xa   : > { %s743_s20 = scalar_select %p56_p4, %s672_s13, %s58_s19  }
   0xe   : > { %155 = sbr.rel (!%p67_p3) target bundleno = 28 (0x1c), region = 24  ;;  %s157_s21 = sand.u32 (%p67_p3), 1, %s672_s13  }
   0xf   : > { %s552_s22 = sshll.u32 (%p67_p3), %s680_s15, 2  ;;  %s551_s23 = sshll.u32 (%p67_p3), %s157_s21, 6 }
  0x10   : > { %s751_s26 = scalar_lea.vmem (%p67_p3), %s799_s1, %s552_s22  ;;  %s159_s27 = scalar_lea.vmem (%p67_p3), [#allocation2], %s551_s23 }
  0x11   : > { %v177_v0 = vld [vmem:[%s751_s26] sm:$0xf] (%p67_p3)  ;;  %v179_v1 = vld [vmem:[%s751_s26 + $0x8] sm:$0xf] (%p67_p3)  ;;  %v181_v2 = vld [vmem:[%s751_s26 + $0x10] sm:$0xf] (%p67_p3) }
  0x12   : > { %178 = vst [vmem:[%s159_s27] sm:$0xf] (%p67_p3), %v177_v0  ;;  %180 = vst [vmem:[%s159_s27 + $0x4] sm:$0xf] (%p67_p3), %v179_v1  ;;  %v183_v3 = vld [vmem:[%s751_s26 + $0x18] sm:$0xf] (%p67_p3) }
  0x13   : > { %v185_v4 = vld [vmem:[%s751_s26 + $0x20] sm:$0xf] (%p67_p3)  ;;  %182 = vst [vmem:[%s159_s27 + $0x8] sm:$0xf] (%p67_p3), %v181_v2  ;;  %184 = vst [vmem:[%s159_s27 + $0xc] sm:$0xf] (%p67_p3), %v183_v3 }
  0x14   : > { %186 = vst [vmem:[%s159_s27 + $0x10] sm:$0xf] (%p67_p3), %v185_v4  ;;  %v187_v5 = vld [vmem:[%s751_s26 + $0x28] sm:$0xf] (%p67_p3)  ;;  %v189_v6 = vld [vmem:[%s751_s26 + $0x30] sm:$0xf] (%p67_p3) }
  0x15   : > { %v191_v7 = vld [vmem:[%s751_s26 + $0x38] sm:$0xf]  ;;  %188 = vst [vmem:[%s159_s27 + $0x14] sm:$0xf] %v187_v5  ;;  %190 = vst [vmem:[%s159_s27 + $0x18] sm:$0xf] %v189_v6 }
  0x16   : > { %192 = vst [vmem:[%s159_s27 + $0x1c] sm:$0xf] %v191_v7  ;;  %v193_v8 = vld [vmem:[%s751_s26 + $0x40] sm:$0xf]  ;;  %v195_v9 = vld [vmem:[%s751_s26 + $0x48] sm:$0xf] }
  0x17   : > { %v197_v10 = vld [vmem:[%s751_s26 + $0x50] sm:$0xf]  ;;  %194 = vst [vmem:[%s159_s27 + $0x20] sm:$0xf] %v193_v8  ;;  %196 = vst [vmem:[%s159_s27 + $0x24] sm:$0xf] %v195_v9 }
  0x18   : > { %198 = vst [vmem:[%s159_s27 + $0x28] sm:$0xf] %v197_v10  ;;  %v199_v11 = vld [vmem:[%s751_s26 + $0x58] sm:$0xf]  ;;  %v201_v12 = vld [vmem:[%s751_s26 + $0x60] sm:$0xf] }
  0x19   : > { %v203_v13 = vld [vmem:[%s751_s26 + $0x68] sm:$0xf]  ;;  %200 = vst [vmem:[%s159_s27 + $0x2c] sm:$0xf] %v199_v11  ;;  %202 = vst [vmem:[%s159_s27 + $0x30] sm:$0xf] %v201_v12 }
  0x1a   : > { %204 = vst [vmem:[%s159_s27 + $0x34] sm:$0xf] %v203_v13  ;;  %v205_v14 = vld [vmem:[%s751_s26 + $0x70] sm:$0xf]  ;;  %v207_v15 = vld [vmem:[%s751_s26 + $0x78] sm:$0xf] }
  0x1b   : > { %206 = vst [vmem:[%s159_s27 + $0x38] sm:$0xf] %v205_v14  ;;  %208 = vst [vmem:[%s159_s27 + $0x3c] sm:$0xf] %v207_v15 }
  0x1c PF: > { %p553_p6 = scmp.ge.s32.totalorder %s684_s16, 1  ;;  %p268_p7 = scmp.lt.s32.totalorder %s684_s16, 3 }
  0x1e   : > { %p269_p8 = pnand %p553_p6, %p268_p7 }
  0x1f   : > { %s275_s28 = sand.u32 (!%p269_p8), 1, %s668_s12   ;;  %v686_v16 = vmov (!%p269_p8), 0.0   ;;  %vm687_vm0 = vmmov (!%p269_p8), 0   ;;  %v324_v25 = vld [vmem:[%s798_s0] sm:$0xf] (!%p269_p8)  ;;  %p312_p9 = scmp.lt.s32.totalorder (!%p269_p8), %s676_s14, 1 }
  0x20   : > { %272 = sbr.rel (%p269_p8) target bundleno = 283 (0x11b), region = 69  ;;  %576 = vmatprep.subr.bf16.mxu0 (!%p269_p8), %v686_v16  ;;  %s554_s29 = sshll.u32 (!%p269_p8), %s275_s28, 6  ;;  %592 = vmatprep.mubr.msk.bf16.mxu0 (!%p269_p8), %vm687_vm0, %v686_v16 }
  0x21   : > { %s277_s30 = scalar_lea.vmem (!%p269_p8), [#allocation2], %s554_s29 }
  0x22   : > { %v638_v17 = vld [vmem:[%s277_s30] sm:$0xff] (!%p269_p8)   ;;  %v639_v18 = vld [vmem:[%s277_s30 + $0x8] sm:$0xff] (!%p269_p8)   ;;  %v640_v19 = vld [vmem:[%s277_s30 + $0x10] sm:$0xff] (!%p269_p8)  }
  0x23   : > { %577 = vmatpush3.bf16.msra.mxu0 (!%p269_p8), %v638_v17  ;;  %v641_v20 = vld [vmem:[%s277_s30 + $0x18] sm:$0xff] (!%p269_p8)   ;;  %v642_v21 = vld [vmem:[%s277_s30 + $0x20] sm:$0xff] (!%p269_p8)   ;;  %v643_v22 = vld [vmem:[%s277_s30 + $0x28] sm:$0xff] (!%p269_p8)  }
  0x24   : > { %578 = vmatprep.subr.bf16.mxu0 (!%p269_p8), %v686_v16  ;;  %v644_v23 = vld [vmem:[%s277_s30 + $0x30] sm:$0xff] (!%p269_p8)   ;;  %v645_v24 = vld [vmem:[%s277_s30 + $0x38] sm:$0xff] (!%p269_p8)  }
  0x27   : > { %579 = vmatpush3.bf16.msra.mxu0 %v639_v18  ;;  %s809_s14 = smov (!%p312_p9, %s676_s14), 1 }
  0x28   : > { %580 = vmatprep.subr.bf16.mxu0 %v686_v16  ;;  %s314_s8 = scalar_lea.vmem %s800_s2, %s809_s14  ;;  %s555_s9 = sshll.u32 %s809_s14, 2 }
  0x29   : > { %v556_v26 = vld [vmem:[%s314_s8] ss:$0 sm:$0xff]  ;;  %s322_s12 = scalar_lea.vmem %s801_s3, %s555_s9 }
  0x2b   : > { %581 = vmatpush3.bf16.msra.mxu0 %v640_v19 }
  0x2c   : > { %582 = vmatprep.subr.bf16.mxu0 %v686_v16 }
  0x2f   : > { %583 = vmatpush3.bf16.msra.mxu0 %v641_v20 }
  0x30   : > { %584 = vmatprep.subr.bf16.mxu0 %v686_v16 }
  0x33   : > { %585 = vmatpush3.bf16.msra.mxu0 %v642_v21 }
  0x34   : > { %586 = vmatprep.subr.bf16.mxu0 %v686_v16 }
  0x37   : > { %587 = vmatpush3.bf16.msra.mxu0 %v643_v22 }
  0x38   : > { %588 = vmatprep.subr.bf16.mxu0 %v686_v16 }
  0x3b   : > { %589 = vmatpush3.bf16.msra.mxu0 %v644_v23 }
  0x3c   : > { %590 = vmatprep.subr.bf16.mxu0 %v686_v16 }
  0x3f   : > { %591 = vmatpush3.bf16.msra.mxu0 %v645_v24 }
  0x42   : > { %593 = vmatmul.mubr.bf16.vlgmr.msra.gmra.mrb[0].mxu0 %v324_v25 }
 0x115   : > { %v430_v27 = vpop.f32.mrb[0].mxu0 }
 0x116   : > { %v431_v28 = vadd.f32 %v556_v26, %v430_v27  ;;  %v594_v29 = vpop.f32.mrb[1].mxu0 }
 0x117   : > { %v433_v30 = vpop.f32.mrb[2].mxu0 }
 0x118   : > { %v436_v31 = vpack.c.bf16 %v431_v28, %v431_v28  ;;  %v595_v32 = vpop.f32.mrb[3].mxu0 }
 0x11a   : > { %437 = vst [vmem:[%s322_s12] sm:$0xf] %v436_v31 }
 0x11b PF: > { %s13_s16 = sadd.s32 1, %s684_s16   ;;  %s802_s12 = smov %s672_s13 }
 0x11c   : > { %p10_p10 = scmp.ge.s32.totalorder %s13_s16, 4   ;;  %s803_s13 = smov %s743_s20 }
 0x11d   : > { %s804_s14 = smov %s680_s15  ;;  %s805_s15 = smov %s807_s17 }
 0x11e   :  { %12 = sbr.rel (!%p10_p10) target bundleno = 3 (0x3), region = 114 }

// kernel: quantized_resnet50_forward.86
= control target key start
LH: loop header
LB: loop body
LE: loop exit
PB: predicated region body
PF: predicated region fallthrough
CT: control target
= control target key end

     0   :  { %s341_s1 = inlined_call_operand.vmem [shape: bf16[256,128], index: 1, kind: input, shape index: {}]   ;;  %s342_s0 = inlined_call_operand.vmem [shape: bf16[8,256], index: 0, kind: input, shape index: {}]   ;;  %s343_s2 = inlined_call_operand.vmem [shape: f32[1,128], index: 2, kind: input, shape index: {}]   ;;  %s344_s3 = inlined_call_operand.vmem [shape: bf16[8,128], index: 3, kind: output, shape index: {}]  }
   0x1   :  { %v246_v0 = vld [vmem:[%s341_s1 + $0x40] sm:$0xff]   ;;  %v248_v2 = vld [vmem:[%s341_s1 + $0x48] sm:$0xff]   ;;  %v250_v4 = vld [vmem:[%s341_s1 + $0x50] sm:$0xff]  }
   0x2   :  { %v247_v1 = vld [vmem:[%s341_s1] sm:$0xff]   ;;  %224 = vmatprep.subr.bf16.mxu0 %v246_v0  ;;  %v249_v3 = vld [vmem:[%s341_s1 + $0x8] sm:$0xff]   ;;  %v251_v5 = vld [vmem:[%s341_s1 + $0x10] sm:$0xff]  }
   0x3   :  { %225 = vmatpush3.bf16.msra.mxu0 %v247_v1  ;;  %v252_v6 = vld [vmem:[%s341_s1 + $0x58] sm:$0xff]   ;;  %v254_v8 = vld [vmem:[%s341_s1 + $0x60] sm:$0xff]   ;;  %v256_v10 = vld [vmem:[%s341_s1 + $0x68] sm:$0xff]  }
   0x4   :  { %226 = vmatprep.subr.bf16.mxu0 %v248_v2  ;;  %v253_v7 = vld [vmem:[%s341_s1 + $0x18] sm:$0xff]   ;;  %v255_v9 = vld [vmem:[%s341_s1 + $0x20] sm:$0xff]   ;;  %v257_v13 = vld [vmem:[%s341_s1 + $0x28] sm:$0xff]  }
   0x5   :  { %v15_v11 = vld [vmem:[%s342_s0] sm:$0xff]  ;;  %v258_v14 = vld [vmem:[%s341_s1 + $0x70] sm:$0xff]   ;;  %v260_v16 = vld [vmem:[%s341_s1 + $0x78] sm:$0xff]  }
   0x6   :  { %v207_v12 = vcombine.high %v15_v11, %v15_v11  ;;  %v259_v15 = vld [vmem:[%s341_s1 + $0x30] sm:$0xff]   ;;  %v261_v17 = vld [vmem:[%s341_s1 + $0x38] sm:$0xff]   ;;  %v206_v18 = vcombine.low %v15_v11, %v15_v11  ;;  %v205_v20 = vld [vmem:[%s343_s2] ss:$0 sm:$0xff] }
   0x7   :  { %227 = vmatpush3.bf16.msra.mxu0 %v249_v3 }
   0x8   :  { %228 = vmatprep.subr.bf16.mxu0 %v250_v4  ;;  %190 = vmatprep.mubr.bf16.mxu0 %v207_v12 }
   0xb   :  { %229 = vmatpush3.bf16.msra.mxu0 %v251_v5 }
   0xc   :  { %230 = vmatprep.subr.bf16.mxu0 %v252_v6 }
   0xf   :  { %231 = vmatpush3.bf16.msra.mxu0 %v253_v7 }
  0x10   :  { %232 = vmatprep.subr.bf16.mxu0 %v254_v8 }
  0x13   :  { %233 = vmatpush3.bf16.msra.mxu0 %v255_v9 }
  0x14   :  { %234 = vmatprep.subr.bf16.mxu0 %v256_v10 }
  0x17   :  { %235 = vmatpush3.bf16.msra.mxu0 %v257_v13 }
  0x18   :  { %236 = vmatprep.subr.bf16.mxu0 %v258_v14 }
  0x1b   :  { %237 = vmatpush3.bf16.msra.mxu0 %v259_v15 }
  0x1c   :  { %238 = vmatprep.subr.bf16.mxu0 %v260_v16 }
  0x1f   :  { %239 = vmatpush3.bf16.msra.mxu0 %v261_v17 }
  0x22   :  { %191 = vmatmul.mubr.bf16.vlgmr.msra.gmra.mrb[0].mxu0 %v206_v18 }
  0xf5   :  { %v240_v19 = vpop.f32.mrb[0].mxu0 }
  0xf6   :  { %v241_v21 = vpop.f32.mrb[1].mxu0 }
  0xf7   :  { %v242_v22 = vadd.f32 %v241_v21, %v240_v19  ;;  %v243_v23 = vpop.f32.mrb[2].mxu0 }
  0xf8   :  { %v244_v24 = vpop.f32.mrb[3].mxu0 }
  0xf9   :  { %v193_v25 = vadd.f32 %v242_v22, %v205_v20 }
  0xfb   :  { %v198_v26 = vmax.f32 %v193_v25, 0.0 }
  0xfd   :  { %v199_v27 = vpack.c.bf16 %v198_v26, %v198_v26 }
  0xff   :  { %200 = vst [vmem:[%s344_s3] sm:$0xf] %v199_v27 }

// kernel: quantized_resnet50_forward.85
= control target key start
LH: loop header
LB: loop body
LE: loop exit
PB: predicated region body
PF: predicated region fallthrough
CT: control target
= control target key end

     0   :  { %s794_s15 = smov 0   ;;  %s796_s16 = smov 0   ;;  %s887_s0 = inlined_call_operand.vmem [shape: bf16[8,128], index: 0, kind: input, shape index: {}]   ;;  %s888_s1 = inlined_call_operand.vmem [shape: bf16[128,256], index: 1, kind: input, shape index: {}]   ;;  %s889_s2 = inlined_call_operand.vmem [shape: f32[1,256], index: 2, kind: input, shape index: {}]   ;;  %s890_s3 = inlined_call_operand.vmem [shape: bf16[8,256], index: 3, kind: input, shape index: {}]   ;;  %s891_s4 = inlined_call_operand.vmem [shape: bf16[8,256], index: 4, kind: output, shape index: {}]  }
   0x1   :  { %s798_s17 = smov 0   ;;  %s800_s18 = smov 0  }
   0x2   :  { %s802_s19 = smov 0  }
   0x3 LB: > { %s23_s20 = sadd.s32 1, %s761_s18  ;;  %p66_p1 = scmp.ne.s32.totalorder %s753_s16, %s749_s15  ;;  %s765_s19 = sphi %s802_s19, %s14_s19   ;;  %s761_s18 = sphi %s800_s18, %s895_s18   ;;  %s757_s17 = sphi %s798_s17, %s894_s17   ;;  %s753_s16 = sphi %s796_s16, %s893_s16   ;;  %s749_s15 = sphi %s794_s15, %s892_s15  }
   0x4   : > { %p24_p0 = scmp.ge.s32.totalorder %s23_s20, 2  ;;  %p67_p2 = scmp.eq.s32.totalorder %s765_s19, 0 }
   0x5   : > { %s59_s22 = sadd.s32 1, %s753_s16  ;;  %p630_p5 = scmp.ge.s32.totalorder %s765_s19, 2 }
   0x6   : > { %s897_s20 = smov (%p24_p0, %s23_s20), 0  ;;  %p68_p3 = por %p67_p2, %p66_p1 }
   0x7   : > { %s56_s21 = ssub.s32 %s761_s18, %s897_s20  ;;  %181 = sbr.rel (%p630_p5) target bundleno = 28 (0x1c), region = 20 }
   0x8   : > { %p57_p4 = scmp.eq.s32.totalorder %s56_s21, 0 }
   0xa   : > { %s829_s23 = scalar_select %p57_p4, %s753_s16, %s59_s22  }
   0xe   : > { %184 = sbr.rel (!%p68_p3) target bundleno = 28 (0x1c), region = 24  ;;  %s186_s24 = sand.u32 (%p68_p3), 1, %s753_s16  }
   0xf   : > { %s632_s25 = sshll.u32 (%p68_p3), %s761_s18, 2  ;;  %s631_s26 = sshll.u32 (%p68_p3), %s186_s24, 6 }
  0x10   : > { %s837_s29 = scalar_lea.vmem (%p68_p3), %s888_s1, %s632_s25  ;;  %s188_s30 = scalar_lea.vmem (%p68_p3), [#allocation2], %s631_s26 }
  0x11   : > { %v206_v0 = vld [vmem:[%s837_s29] sm:$0xf] (%p68_p3)  ;;  %v208_v1 = vld [vmem:[%s837_s29 + $0x8] sm:$0xf] (%p68_p3)  ;;  %v210_v2 = vld [vmem:[%s837_s29 + $0x10] sm:$0xf] (%p68_p3) }
  0x12   : > { %207 = vst [vmem:[%s188_s30] sm:$0xf] (%p68_p3), %v206_v0  ;;  %209 = vst [vmem:[%s188_s30 + $0x4] sm:$0xf] (%p68_p3), %v208_v1  ;;  %v212_v3 = vld [vmem:[%s837_s29 + $0x18] sm:$0xf] (%p68_p3) }
  0x13   : > { %v214_v4 = vld [vmem:[%s837_s29 + $0x20] sm:$0xf] (%p68_p3)  ;;  %211 = vst [vmem:[%s188_s30 + $0x8] sm:$0xf] (%p68_p3), %v210_v2  ;;  %213 = vst [vmem:[%s188_s30 + $0xc] sm:$0xf] (%p68_p3), %v212_v3 }
  0x14   : > { %215 = vst [vmem:[%s188_s30 + $0x10] sm:$0xf] (%p68_p3), %v214_v4  ;;  %v216_v5 = vld [vmem:[%s837_s29 + $0x28] sm:$0xf] (%p68_p3)  ;;  %v218_v6 = vld [vmem:[%s837_s29 + $0x30] sm:$0xf] (%p68_p3) }
  0x15   : > { %v220_v7 = vld [vmem:[%s837_s29 + $0x38] sm:$0xf]  ;;  %217 = vst [vmem:[%s188_s30 + $0x14] sm:$0xf] %v216_v5  ;;  %219 = vst [vmem:[%s188_s30 + $0x18] sm:$0xf] %v218_v6 }
  0x16   : > { %221 = vst [vmem:[%s188_s30 + $0x1c] sm:$0xf] %v220_v7  ;;  %v222_v8 = vld [vmem:[%s837_s29 + $0x40] sm:$0xf]  ;;  %v224_v9 = vld [vmem:[%s837_s29 + $0x48] sm:$0xf] }
  0x17   : > { %v226_v10 = vld [vmem:[%s837_s29 + $0x50] sm:$0xf]  ;;  %223 = vst [vmem:[%s188_s30 + $0x20] sm:$0xf] %v222_v8  ;;  %225 = vst [vmem:[%s188_s30 + $0x24] sm:$0xf] %v224_v9 }
  0x18   : > { %227 = vst [vmem:[%s188_s30 + $0x28] sm:$0xf] %v226_v10  ;;  %v228_v11 = vld [vmem:[%s837_s29 + $0x58] sm:$0xf]  ;;  %v230_v12 = vld [vmem:[%s837_s29 + $0x60] sm:$0xf] }
  0x19   : > { %v232_v13 = vld [vmem:[%s837_s29 + $0x68] sm:$0xf]  ;;  %229 = vst [vmem:[%s188_s30 + $0x2c] sm:$0xf] %v228_v11  ;;  %231 = vst [vmem:[%s188_s30 + $0x30] sm:$0xf] %v230_v12 }
  0x1a   : > { %233 = vst [vmem:[%s188_s30 + $0x34] sm:$0xf] %v232_v13  ;;  %v234_v14 = vld [vmem:[%s837_s29 + $0x70] sm:$0xf]  ;;  %v236_v15 = vld [vmem:[%s837_s29 + $0x78] sm:$0xf] }
  0x1b   : > { %235 = vst [vmem:[%s188_s30 + $0x38] sm:$0xf] %v234_v14  ;;  %237 = vst [vmem:[%s188_s30 + $0x3c] sm:$0xf] %v236_v15 }
  0x1c PF: > { %p633_p6 = scmp.ge.s32.totalorder %s765_s19, 1  ;;  %p308_p7 = scmp.lt.s32.totalorder %s765_s19, 3 }
  0x1e   : > { %p309_p8 = pnand %p633_p6, %p308_p7 }
  0x1f   : > { %s315_s5 = sand.u32 (!%p309_p8), 1, %s749_s15   ;;  %v767_v16 = vmov (!%p309_p8), 0.0   ;;  %vm768_vm0 = vmmov (!%p309_p8), 0   ;;  %v382_v25 = vld [vmem:[%s887_s0] sm:$0xf] (!%p309_p8)  ;;  %p362_p9 = scmp.lt.s32.totalorder (!%p309_p8), %s757_s17, 1 }
  0x20   : > { %312 = sbr.rel (%p309_p8) target bundleno = 287 (0x11f), region = 73  ;;  %657 = vmatprep.subr.bf16.mxu0 (!%p309_p8), %v767_v16  ;;  %s634_s6 = sshll.u32 (!%p309_p8), %s315_s5, 6  ;;  %673 = vmatprep.mubr.msk.bf16.mxu0 (!%p309_p8), %vm768_vm0, %v767_v16 }
  0x21   : > { %s317_s7 = scalar_lea.vmem (!%p309_p8), [#allocation2], %s634_s6 }
  0x22   : > { %v719_v17 = vld [vmem:[%s317_s7] sm:$0xff] (!%p309_p8)   ;;  %v720_v18 = vld [vmem:[%s317_s7 + $0x8] sm:$0xff] (!%p309_p8)   ;;  %v721_v19 = vld [vmem:[%s317_s7 + $0x10] sm:$0xff] (!%p309_p8)  }
  0x23   : > { %658 = vmatpush3.bf16.msra.mxu0 (!%p309_p8), %v719_v17  ;;  %v722_v20 = vld [vmem:[%s317_s7 + $0x18] sm:$0xff] (!%p309_p8)   ;;  %v723_v21 = vld [vmem:[%s317_s7 + $0x20] sm:$0xff] (!%p309_p8)   ;;  %v724_v22 = vld [vmem:[%s317_s7 + $0x28] sm:$0xff] (!%p309_p8)  }
  0x24   : > { %659 = vmatprep.subr.bf16.mxu0 (!%p309_p8), %v767_v16  ;;  %v725_v23 = vld [vmem:[%s317_s7 + $0x30] sm:$0xff] (!%p309_p8)   ;;  %v726_v24 = vld [vmem:[%s317_s7 + $0x38] sm:$0xff] (!%p309_p8)  }
  0x27   : > { %660 = vmatpush3.bf16.msra.mxu0 %v720_v18  ;;  %s899_s17 = smov (!%p362_p9, %s757_s17), 1 }
  0x28   : > { %661 = vmatprep.subr.bf16.mxu0 %v767_v16  ;;  %s635_s10 = sshll.u32 %s899_s17, 2  ;;  %s364_s21 = scalar_lea.vmem %s889_s2, %s899_s17 }
  0x29   : > { %s372_s13 = scalar_lea.vmem %s890_s3, %s635_s10  ;;  %v637_v27 = vld [vmem:[%s364_s21] ss:$0 sm:$0xff]  ;;  %s380_s25 = scalar_lea.vmem %s891_s4, %s635_s10 }
  0x2a   : > { %v494_v26 = vld [vmem:[%s372_s13] sm:$0xf] }
  0x2b   : > { %662 = vmatpush3.bf16.msra.mxu0 %v721_v19  ;;  %v495_v28 = vunpack.c.l.bf16 %v494_v26 }
  0x2c   : > { %663 = vmatprep.subr.bf16.mxu0 %v767_v16 }
  0x2f   : > { %664 = vmatpush3.bf16.msra.mxu0 %v722_v20 }
  0x30   : > { %665 = vmatprep.subr.bf16.mxu0 %v767_v16 }
  0x33   : > { %666 = vmatpush3.bf16.msra.mxu0 %v723_v21 }
  0x34   : > { %667 = vmatprep.subr.bf16.mxu0 %v767_v16 }
  0x37   : > { %668 = vmatpush3.bf16.msra.mxu0 %v724_v22 }
  0x38   : > { %669 = vmatprep.subr.bf16.mxu0 %v767_v16 }
  0x3b   : > { %670 = vmatpush3.bf16.msra.mxu0 %v725_v23 }
  0x3c   : > { %671 = vmatprep.subr.bf16.mxu0 %v767_v16 }
  0x3f   : > { %672 = vmatpush3.bf16.msra.mxu0 %v726_v24 }
  0x42   : > { %674 = vmatmul.mubr.bf16.vlgmr.msra.gmra.mrb[0].mxu0 %v382_v25 }
 0x115   : > { %v488_v29 = vpop.f32.mrb[0].mxu0 }
 0x116   : > { %v489_v30 = vadd.f32 %v637_v27, %v488_v29  ;;  %v675_v31 = vpop.f32.mrb[1].mxu0 }
 0x117   : > { %v491_v32 = vpop.f32.mrb[2].mxu0 }
 0x118   : > { %v496_v33 = vadd.f32 %v495_v28, %v489_v30  ;;  %v676_v34 = vpop.f32.mrb[3].mxu0 }
 0x11a   : > { %v497_v35 = vmax.f32 %v496_v33, 0.0 }
 0x11c   : > { %v498_v36 = vpack.c.bf16 %v497_v35, %v497_v35 }
 0x11e   : > { %499 = vst [vmem:[%s380_s25] sm:$0xf] %v498_v36 }
 0x11f PF: > { %s14_s19 = sadd.s32 1, %s765_s19   ;;  %s892_s15 = smov %s753_s16 }
 0x120   : > { %p11_p10 = scmp.ge.s32.totalorder %s14_s19, 4   ;;  %s893_s16 = smov %s829_s23 }
 0x121   : > { %s894_s17 = smov %s761_s18  ;;  %s895_s18 = smov %s897_s20 }
 0x122   :  { %13 = sbr.rel (!%p11_p10) target bundleno = 3 (0x3), region = 121 }

// kernel: quantized_resnet50_forward.84
= control target key start
LH: loop header
LB: loop body
LE: loop exit
PB: predicated region body
PF: predicated region fallthrough
CT: control target
= control target key end

     0   :  { %vm1125_vm0 = vmmov 0   ;;  %s1383_s1 = inlined_call_operand.vmem [shape: bf16[1152,128], index: 1, kind: input, shape index: {}]   ;;  %s1384_s0 = inlined_call_operand.vmem [shape: bf16[8,1152], index: 0, kind: input, shape index: {}]   ;;  %s1385_s2 = inlined_call_operand.vmem [shape: f32[1,128], index: 2, kind: input, shape index: {}]   ;;  %s1386_s3 = inlined_call_operand.vmem [shape: bf16[8,128], index: 3, kind: output, shape index: {}]  }
   0x1   :  { %v1043_v0 = vld [vmem:[%s1383_s1 + $0x40] sm:$0xff]   ;;  %v1047_v4 = vld [vmem:[%s1383_s1 + $0x48] sm:$0xff]   ;;  %v1051_v8 = vld [vmem:[%s1383_s1 + $0x50] sm:$0xff]  }
   0x2   :  { %v1044_v1 = vld [vmem:[%s1383_s1] sm:$0xff]   ;;  %924 = vmatprep.subr.bf16.mxu0 %v1043_v0  ;;  %v1048_v5 = vld [vmem:[%s1383_s1 + $0x8] sm:$0xff]   ;;  %v1052_v9 = vld [vmem:[%s1383_s1 + $0x10] sm:$0xff]  }
   0x3   :  { %v1045_v2 = vld [vmem:[%s1383_s1 + $0xc0] sm:$0xff]   ;;  %925 = vmatpush3.bf16.msra.mxu0 %v1044_v1  ;;  %v1049_v6 = vld [vmem:[%s1383_s1 + $0xc8] sm:$0xff]   ;;  %v1053_v10 = vld [vmem:[%s1383_s1 + $0xd0] sm:$0xff]  }
   0x4   :  { %v1046_v3 = vld [vmem:[%s1383_s1 + $0x80] sm:$0xff]   ;;  %946 = vmatprep.subr.bf16.mxu1 %v1045_v2  ;;  %926 = vmatprep.subr.bf16.mxu0 %v1047_v4  ;;  %v1050_v7 = vld [vmem:[%s1383_s1 + $0x88] sm:$0xff]   ;;  %v1054_v11 = vld [vmem:[%s1383_s1 + $0x90] sm:$0xff]  }
   0x5   :  { %947 = vmatpush3.bf16.msra.mxu1 %v1046_v3  ;;  %v1055_v12 = vld [vmem:[%s1383_s1 + $0x58] sm:$0xff]   ;;  %v1059_v16 = vld [vmem:[%s1383_s1 + $0x60] sm:$0xff]   ;;  %v1063_v20 = vld [vmem:[%s1383_s1 + $0x68] sm:$0xff]  }
   0x6   :  { %948 = vmatprep.subr.bf16.mxu1 %v1049_v6  ;;  %v1056_v13 = vld [vmem:[%s1383_s1 + $0x18] sm:$0xff]   ;;  %v1060_v17 = vld [vmem:[%s1383_s1 + $0x20] sm:$0xff]   ;;  %v1064_v21 = vld [vmem:[%s1383_s1 + $0x28] sm:$0xff]  }
   0x7   :  { %927 = vmatpush3.bf16.msra.mxu0 %v1048_v5  ;;  %v1057_v14 = vld [vmem:[%s1383_s1 + $0xd8] sm:$0xff]   ;;  %v1061_v18 = vld [vmem:[%s1383_s1 + $0xe0] sm:$0xff]   ;;  %v1065_v22 = vld [vmem:[%s1383_s1 + $0xe8] sm:$0xff]  }
   0x8   :  { %928 = vmatprep.subr.bf16.mxu0 %v1051_v8  ;;  %v1058_v15 = vld [vmem:[%s1383_s1 + $0x98] sm:$0xff]   ;;  %v1062_v19 = vld [vmem:[%s1383_s1 + $0xa0] sm:$0xff]   ;;  %v1066_v23 = vld [vmem:[%s1383_s1 + $0xa8] sm:$0xff]  }
   0x9   :  { %949 = vmatpush3.bf16.msra.mxu1 %v1050_v7  ;;  %v1067_v24 = vld [vmem:[%s1383_s1 + $0x70] sm:$0xff]   ;;  %v1071_v28 = vld [vmem:[%s1383_s1 + $0x78] sm:$0xff]   ;;  %v15_v31 = vld [vmem:[%s1384_s0] sm:$0xff] }
   0xa   :  { %950 = vmatprep.subr.bf16.mxu1 %v1053_v10  ;;  %v1068_v25 = vld [vmem:[%s1383_s1 + $0x30] sm:$0xff]   ;;  %v1072_v29 = vld [vmem:[%s1383_s1 + $0x38] sm:$0xff]   ;;  %v843_v32 = vcombine.low %v15_v31, %v15_v31  ;;  %v844_v33 = vcombine.high %v15_v31, %v15_v31  ;;  %v1077_v35 = vld [vmem:[%s1383_s1 + $0x140] sm:$0xff]  }
   0xb   :  { %929 = vmatpush3.bf16.msra.mxu0 %v1052_v9  ;;  %v1069_v26 = vld [vmem:[%s1383_s1 + $0xf0] sm:$0xff]   ;;  %v1073_v30 = vld [vmem:[%s1383_s1 + $0xf8] sm:$0xff]   ;;  %v16_v36 = vld [vmem:[%s1384_s0 + $0x8] sm:$0xff]  ;;  %v1124_v9 = vmov 0.0  }
   0xc   :  { %930 = vmatprep.subr.bf16.mxu0 %v1055_v12  ;;  %v1070_v27 = vld [vmem:[%s1383_s1 + $0xb0] sm:$0xff]   ;;  %v1076_v34 = vld [vmem:[%s1383_s1 + $0xb8] sm:$0xff]   ;;  %667 = vmatprep.mubr.bf16.mxu0 %v844_v33  ;;  %v845_v37 = vcombine.low %v16_v36, %v16_v36  ;;  %v846_v38 = vcombine.high %v16_v36, %v16_v36  ;;  %v1080_v39 = vld [vmem:[%s1383_s1 + $0x100] sm:$0xff]  }
   0xd   :  { %951 = vmatpush3.bf16.msra.mxu1 %v1054_v11  ;;  %v1081_v40 = vld [vmem:[%s1383_s1 + $0x1c0] sm:$0xff]   ;;  %v1083_v42 = vld [vmem:[%s1383_s1 + $0x148] sm:$0xff]   ;;  %v1087_v46 = vld [vmem:[%s1383_s1 + $0x150] sm:$0xff]  }
   0xe   :  { %952 = vmatprep.subr.bf16.mxu1 %v1057_v14  ;;  %707 = vmatprep.mubr.bf16.mxu1 %v846_v38  ;;  %v1082_v41 = vld [vmem:[%s1383_s1 + $0x180] sm:$0xff]   ;;  %v1084_v43 = vld [vmem:[%s1383_s1 + $0x108] sm:$0xff]   ;;  %v1088_v47 = vld [vmem:[%s1383_s1 + $0x110] sm:$0xff]  }
   0xf   :  { %931 = vmatpush3.bf16.msra.mxu0 %v1056_v13  ;;  %v1085_v44 = vld [vmem:[%s1383_s1 + $0x1c8] sm:$0xff]   ;;  %v1089_v48 = vld [vmem:[%s1383_s1 + $0x1d0] sm:$0xff]   ;;  %v1091_v50 = vld [vmem:[%s1383_s1 + $0x158] sm:$0xff]  }
  0x10   :  { %932 = vmatprep.subr.bf16.mxu0 %v1059_v16  ;;  %v1086_v45 = vld [vmem:[%s1383_s1 + $0x188] sm:$0xff]   ;;  %v1090_v49 = vld [vmem:[%s1383_s1 + $0x190] sm:$0xff]   ;;  %v1092_v51 = vld [vmem:[%s1383_s1 + $0x118] sm:$0xff]  }
  0x11   :  { %953 = vmatpush3.bf16.msra.mxu1 %v1058_v15  ;;  %v1093_v52 = vld [vmem:[%s1383_s1 + $0x1d8] sm:$0xff]   ;;  %v1095_v54 = vld [vmem:[%s1383_s1 + $0x160] sm:$0xff]   ;;  %v1099_v58 = vld [vmem:[%s1383_s1 + $0x168] sm:$0xff]  }
  0x12   :  { %954 = vmatprep.subr.bf16.mxu1 %v1061_v18  ;;  %v1094_v53 = vld [vmem:[%s1383_s1 + $0x198] sm:$0xff]   ;;  %v1096_v55 = vld [vmem:[%s1383_s1 + $0x120] sm:$0xff]   ;;  %v1100_v59 = vld [vmem:[%s1383_s1 + $0x128] sm:$0xff]  }
  0x13   :  { %933 = vmatpush3.bf16.msra.mxu0 %v1060_v17  ;;  %v1097_v56 = vld [vmem:[%s1383_s1 + $0x1e0] sm:$0xff]   ;;  %v1101_v60 = vld [vmem:[%s1383_s1 + $0x1e8] sm:$0xff]   ;;  %v1103_v62 = vld [vmem:[%s1383_s1 + $0x170] sm:$0xff]  }
  0x14   :  { %934 = vmatprep.subr.bf16.mxu0 %v1063_v20  ;;  %v1098_v57 = vld [vmem:[%s1383_s1 + $0x1a0] sm:$0xff]   ;;  %v1102_v61 = vld [vmem:[%s1383_s1 + $0x1a8] sm:$0xff]   ;;  %v1104_v63 = vld [vmem:[%s1383_s1 + $0x130] sm:$0xff]  }
  0x15   :  { %955 = vmatpush3.bf16.msra.mxu1 %v1062_v19  ;;  %v1105_v0 = vld [vmem:[%s1383_s1 + $0x1f0] sm:$0xff]   ;;  %v1107_v2 = vld [vmem:[%s1383_s1 + $0x178] sm:$0xff]   ;;  %v1115_v13 = vld [vmem:[%s1383_s1 + $0x200] sm:$0xff]  }
  0x16   :  { %956 = vmatprep.subr.bf16.mxu1 %v1065_v22  ;;  %v1106_v1 = vld [vmem:[%s1383_s1 + $0x1b0] sm:$0xff]   ;;  %v1108_v3 = vld [vmem:[%s1383_s1 + $0x138] sm:$0xff]   ;;  %v1116_v14 = vld [vmem:[%s1383_s1 + $0x208] sm:$0xff]  }
  0x17   :  { %935 = vmatpush3.bf16.msra.mxu0 %v1064_v21  ;;  %v1109_v4 = vld [vmem:[%s1383_s1 + $0x1f8] sm:$0xff]   ;;  %v17_v5 = vld [vmem:[%s1384_s0 + $0x10] sm:$0xff]  ;;  %v1119_v17 = vld [vmem:[%s1383_s1 + $0x220] sm:$0xff]  }
  0x18   :  { %936 = vmatprep.subr.bf16.mxu0 %v1067_v24  ;;  %v847_v6 = vcombine.low %v17_v5, %v17_v5  ;;  %v848_v7 = vcombine.high %v17_v5, %v17_v5  ;;  %v1112_v8 = vld [vmem:[%s1383_s1 + $0x1b8] sm:$0xff]   ;;  %v1117_v15 = vld [vmem:[%s1383_s1 + $0x210] sm:$0xff]   ;;  %v1120_v18 = vld [vmem:[%s1383_s1 + $0x228] sm:$0xff]  }
  0x19   :  { %957 = vmatpush3.bf16.msra.mxu1 %v1066_v23  ;;  %v18_v10 = vld [vmem:[%s1384_s0 + $0x18] sm:$0xff]  ;;  %v1121_v19 = vld [vmem:[%s1383_s1 + $0x230] sm:$0xff]   ;;  %v1123_v21 = vld [vmem:[%s1384_s0 + $0x20] ss:$0 sps:$4 sm:$0xff]  }
  0x1a   :  { %958 = vmatprep.subr.bf16.mxu1 %v1069_v26  ;;  %v849_v11 = vcombine.low %v18_v10, %v18_v10  ;;  %v850_v12 = vcombine.high %v18_v10, %v18_v10  ;;  %v1118_v16 = vld [vmem:[%s1383_s1 + $0x218] sm:$0xff]   ;;  %v842_v23 = vld [vmem:[%s1385_s2] ss:$0 sm:$0xff] }
  0x1b   :  { %937 = vmatpush3.bf16.msra.mxu0 %v1068_v25  ;;  %v1122_v20 = vld [vmem:[%s1383_s1 + $0x238] sm:$0xff]  }
  0x1c   :  { %938 = vmatprep.subr.bf16.mxu0 %v1071_v28 }
  0x1d   :  { %959 = vmatpush3.bf16.msra.mxu1 %v1070_v27 }
  0x1e   :  { %960 = vmatprep.subr.bf16.mxu1 %v1073_v30 }
  0x1f   :  { %939 = vmatpush3.bf16.msra.mxu0 %v1072_v29 }
  0x20   :  { %968 = vmatprep.subr.bf16.mxu0 %v1077_v35 }
  0x21   :  { %961 = vmatpush3.bf16.msra.mxu1 %v1076_v34 }
  0x22   :  { %668 = vmatmul.mubr.bf16.vlgmr.msra.gmra.mrb[0].mxu0 %v843_v32  ;;  %990 = vmatprep.subr.bf16.mxu1 %v1081_v40 }
  0x23   :  { %969 = vmatpush3.bf16.msra.mxu0 %v1080_v39  ;;  %747 = vmatprep.mubr.bf16.mxu0 %v848_v7 }
  0x24   :  { %708 = vmatmul.mubr.bf16.vlgmr.msra.gmra.mrb[0].mxu1 %v845_v37  ;;  %970 = vmatprep.subr.bf16.mxu0 %v1083_v42 }
  0x25   :  { %991 = vmatpush3.bf16.msra.mxu1 %v1082_v41  ;;  %787 = vmatprep.mubr.bf16.mxu1 %v850_v12 }
  0x26   :  { %992 = vmatprep.subr.bf16.mxu1 %v1085_v44 }
  0x27   :  { %971 = vmatpush3.bf16.msra.mxu0 %v1084_v43 }
  0x28   :  { %972 = vmatprep.subr.bf16.mxu0 %v1087_v46 }
  0x29   :  { %993 = vmatpush3.bf16.msra.mxu1 %v1086_v45 }
  0x2a   :  { %994 = vmatprep.subr.bf16.mxu1 %v1089_v48 }
  0x2b   :  { %973 = vmatpush3.bf16.msra.mxu0 %v1088_v47 }
  0x2c   :  { %974 = vmatprep.subr.bf16.mxu0 %v1091_v50 }
  0x2d   :  { %995 = vmatpush3.bf16.msra.mxu1 %v1090_v49 }
  0x2e   :  { %996 = vmatprep.subr.bf16.mxu1 %v1093_v52 }
  0x2f   :  { %975 = vmatpush3.bf16.msra.mxu0 %v1092_v51 }
  0x30   :  { %976 = vmatprep.subr.bf16.mxu0 %v1095_v54 }
  0x31   :  { %997 = vmatpush3.bf16.msra.mxu1 %v1094_v53 }
  0x32   :  { %998 = vmatprep.subr.bf16.mxu1 %v1097_v56 }
  0x33   :  { %977 = vmatpush3.bf16.msra.mxu0 %v1096_v55 }
  0x34   :  { %978 = vmatprep.subr.bf16.mxu0 %v1099_v58 }
  0x35   :  { %999 = vmatpush3.bf16.msra.mxu1 %v1098_v57 }
  0x36   :  { %1000 = vmatprep.subr.bf16.mxu1 %v1101_v60 }
  0x37   :  { %979 = vmatpush3.bf16.msra.mxu0 %v1100_v59 }
  0x38   :  { %980 = vmatprep.subr.bf16.mxu0 %v1103_v62 }
  0x39   :  { %1001 = vmatpush3.bf16.msra.mxu1 %v1102_v61 }
  0x3a   :  { %1002 = vmatprep.subr.bf16.mxu1 %v1105_v0 }
  0x3b   :  { %981 = vmatpush3.bf16.msra.mxu0 %v1104_v63 }
  0x3c   :  { %982 = vmatprep.subr.bf16.mxu0 %v1107_v2 }
  0x3d   :  { %1003 = vmatpush3.bf16.msra.mxu1 %v1106_v1 }
  0x3e   :  { %1004 = vmatprep.subr.bf16.mxu1 %v1109_v4 }
  0x3f   :  { %983 = vmatpush3.bf16.msra.mxu0 %v1108_v3 }
  0x40   :  { %1021 = vmatprep.subr.bf16.mxu0 %v1124_v9 }
  0x41   :  { %1005 = vmatpush3.bf16.msra.mxu1 %v1112_v8 }
  0x42   :  { %748 = vmatmul.mubr.bf16.vlgmr.msra.gmra.mrb[4].mxu0 %v847_v6 }
  0x43   :  { %1022 = vmatpush3.bf16.msra.mxu0 %v1115_v13  ;;  %1037 = vmatprep.mubr.msk.bf16.mxu0 %vm1125_vm0, %v1124_v9 }
  0x44   :  { %788 = vmatmul.mubr.bf16.vlgmr.msra.gmra.mrb[4].mxu1 %v849_v11  ;;  %1023 = vmatprep.subr.bf16.mxu0 %v1124_v9 }
  0x47   :  { %1024 = vmatpush3.bf16.msra.mxu0 %v1116_v14 }
  0x48   :  { %1025 = vmatprep.subr.bf16.mxu0 %v1124_v9 }
  0x4b   :  { %1026 = vmatpush3.bf16.msra.mxu0 %v1117_v15 }
  0x4c   :  { %1027 = vmatprep.subr.bf16.mxu0 %v1124_v9 }
  0x4f   :  { %1028 = vmatpush3.bf16.msra.mxu0 %v1118_v16 }
  0x50   :  { %1029 = vmatprep.subr.bf16.mxu0 %v1124_v9 }
  0x53   :  { %1030 = vmatpush3.bf16.msra.mxu0 %v1119_v17 }
  0x54   :  { %1031 = vmatprep.subr.bf16.mxu0 %v1124_v9 }
  0x57   :  { %1032 = vmatpush3.bf16.msra.mxu0 %v1120_v18 }
  0x58   :  { %1033 = vmatprep.subr.bf16.mxu0 %v1124_v9 }
  0x5b   :  { %1034 = vmatpush3.bf16.msra.mxu0 %v1121_v19 }
  0x5c   :  { %1035 = vmatprep.subr.bf16.mxu0 %v1124_v9 }
  0x5f   :  { %1036 = vmatpush3.bf16.msra.mxu0 %v1122_v20 }
  0x62   :  { %1038 = vmatmul.mubr.bf16.vlgmr.msra.gmra.mrb[8].mxu0 %v1123_v21 }
  0xf5   :  { %v940_v22 = vpop.f32.mrb[0].mxu0 }
  0xf6   :  { %v941_v24 = vpop.f32.mrb[1].mxu0 }
  0xf7   :  { %v942_v25 = vadd.f32 %v941_v24, %v940_v22  ;;  %v943_v26 = vpop.f32.mrb[2].mxu0  ;;  %v962_v27 = vpop.f32.mrb[0].mxu1 }
  0xf8   :  { %v944_v28 = vpop.f32.mrb[3].mxu0  ;;  %v963_v29 = vpop.f32.mrb[1].mxu1 }
  0xf9   :  { %v670_v30 = vadd.f32 %v942_v25, %v842_v23  ;;  %v964_v31 = vadd.f32 %v963_v29, %v962_v27  ;;  %v965_v32 = vpop.f32.mrb[2].mxu1 }
  0xfa   :  { %v966_v33 = vpop.f32.mrb[3].mxu1 }
  0xfb   :  { %v710_v34 = vadd.f32 %v964_v31, %v670_v30 }
 0x115   :  { %v984_v35 = vpop.f32.mrb[4].mxu0 }
 0x116   :  { %v985_v36 = vpop.f32.mrb[5].mxu0 }
 0x117   :  { %v986_v37 = vadd.f32 %v985_v36, %v984_v35  ;;  %v987_v38 = vpop.f32.mrb[6].mxu0  ;;  %v1006_v39 = vpop.f32.mrb[4].mxu1 }
 0x118   :  { %v988_v40 = vpop.f32.mrb[7].mxu0  ;;  %v1007_v41 = vpop.f32.mrb[5].mxu1 }
 0x119   :  { %v750_v42 = vadd.f32 %v986_v37, %v710_v34  ;;  %v1008_v43 = vadd.f32 %v1007_v41, %v1006_v39  ;;  %v1009_v44 = vpop.f32.mrb[6].mxu1 }
 0x11a   :  { %v1010_v45 = vpop.f32.mrb[7].mxu1 }
 0x11b   :  { %v790_v46 = vadd.f32 %v1008_v43, %v750_v42 }
 0x135   :  { %v829_v47 = vpop.f32.mrb[8].mxu0 }
 0x136   :  { %v830_v48 = vadd.f32 %v829_v47, %v790_v46  ;;  %v1039_v49 = vpop.f32.mrb[9].mxu0 }
 0x137   :  { %v832_v50 = vpop.f32.mrb[10].mxu0 }
 0x138   :  { %v835_v51 = vmax.f32 %v830_v48, 0.0  ;;  %v1040_v52 = vpop.f32.mrb[11].mxu0 }
 0x13a   :  { %v836_v53 = vpack.c.bf16 %v835_v51, %v835_v51 }
 0x13c   :  { %837 = vst [vmem:[%s1386_s3] sm:$0xf] %v836_v53 }

// kernel: quantized_resnet50_forward.104
= control target key start
LH: loop header
LB: loop body
LE: loop exit
PB: predicated region body
PF: predicated region fallthrough
CT: control target
= control target key end

     0   :  { %s794_s15 = smov 0   ;;  %s796_s16 = smov 0   ;;  %s887_s0 = inlined_call_operand.vmem [shape: bf16[8,128], index: 0, kind: input, shape index: {}]   ;;  %s888_s1 = inlined_call_operand.vmem [shape: bf16[128,512], index: 1, kind: input, shape index: {}]   ;;  %s889_s2 = inlined_call_operand.vmem [shape: f32[1,512], index: 2, kind: input, shape index: {}]   ;;  %s890_s3 = inlined_call_operand.vmem [shape: bf16[8,512], index: 3, kind: input, shape index: {}]   ;;  %s891_s4 = inlined_call_operand.vmem [shape: bf16[8,512], index: 4, kind: output, shape index: {}]  }
   0x1   :  { %s798_s17 = smov 0   ;;  %s800_s18 = smov 0  }
   0x2   :  { %s802_s19 = smov 0  }
   0x3 LB: > { %s23_s20 = sadd.s32 1, %s761_s18  ;;  %p66_p1 = scmp.ne.s32.totalorder %s753_s16, %s749_s15  ;;  %s765_s19 = sphi %s802_s19, %s14_s19   ;;  %s761_s18 = sphi %s800_s18, %s895_s18   ;;  %s757_s17 = sphi %s798_s17, %s894_s17   ;;  %s753_s16 = sphi %s796_s16, %s893_s16   ;;  %s749_s15 = sphi %s794_s15, %s892_s15  }
   0x4   : > { %p24_p0 = scmp.ge.s32.totalorder %s23_s20, 4  ;;  %p67_p2 = scmp.eq.s32.totalorder %s765_s19, 0 }
   0x5   : > { %s59_s22 = sadd.s32 1, %s753_s16  ;;  %p630_p5 = scmp.ge.s32.totalorder %s765_s19, 4 }
   0x6   : > { %s897_s20 = smov (%p24_p0, %s23_s20), 0  ;;  %p68_p3 = por %p67_p2, %p66_p1 }
   0x7   : > { %s56_s21 = ssub.s32 %s761_s18, %s897_s20  ;;  %181 = sbr.rel (%p630_p5) target bundleno = 29 (0x1d), region = 20 }
   0x8   : > { %p57_p4 = scmp.eq.s32.totalorder %s56_s21, 0 }
   0xa   : > { %s829_s23 = scalar_select %p57_p4, %s753_s16, %s59_s22  }
   0xe   : > { %184 = sbr.rel (!%p68_p3) target bundleno = 29 (0x1d), region = 24  ;;  %s186_s24 = sand.u32 (%p68_p3), 1, %s753_s16  }
   0xf   : > { %s632_s25 = sshll.u32 (%p68_p3), %s761_s18, 2  ;;  %s631_s26 = sshll.u32 (%p68_p3), %s186_s24, 6 }
  0x10   : > { %s837_s29 = scalar_lea.vmem (%p68_p3), %s888_s1, %s632_s25  ;;  %s188_s30 = scalar_lea.vmem (%p68_p3), [#allocation2], %s631_s26 }
  0x11   : > { %v206_v0 = vld [vmem:[%s837_s29] sm:$0xf] (%p68_p3)  ;;  %v208_v1 = vld [vmem:[%s837_s29 + $0x10] sm:$0xf] (%p68_p3) }
  0x12   : > { %207 = vst [vmem:[%s188_s30] sm:$0xf] (%p68_p3), %v206_v0  ;;  %209 = vst [vmem:[%s188_s30 + $0x4] sm:$0xf] (%p68_p3), %v208_v1  ;;  %v210_v2 = vld [vmem:[%s837_s29 + $0x20] sm:$0xf] (%p68_p3) }
  0x13   : > { %v212_v3 = vld [vmem:[%s837_s29 + $0x30] sm:$0xf] (%p68_p3)  ;;  %v214_v4 = vld [vmem:[%s837_s29 + $0x40] sm:$0xf] (%p68_p3)  ;;  %211 = vst [vmem:[%s188_s30 + $0x8] sm:$0xf] (%p68_p3), %v210_v2 }
  0x14   : > { %213 = vst [vmem:[%s188_s30 + $0xc] sm:$0xf] (%p68_p3), %v212_v3  ;;  %215 = vst [vmem:[%s188_s30 + $0x10] sm:$0xf] (%p68_p3), %v214_v4  ;;  %v216_v5 = vld [vmem:[%s837_s29 + $0x50] sm:$0xf] (%p68_p3) }
  0x15   : > { %v218_v6 = vld [vmem:[%s837_s29 + $0x60] sm:$0xf]  ;;  %v220_v7 = vld [vmem:[%s837_s29 + $0x70] sm:$0xf]  ;;  %217 = vst [vmem:[%s188_s30 + $0x14] sm:$0xf] %v216_v5 }
  0x16   : > { %219 = vst [vmem:[%s188_s30 + $0x18] sm:$0xf] %v218_v6  ;;  %221 = vst [vmem:[%s188_s30 + $0x1c] sm:$0xf] %v220_v7  ;;  %v222_v8 = vld [vmem:[%s837_s29 + $0x80] sm:$0xf] }
  0x17   : > { %v224_v9 = vld [vmem:[%s837_s29 + $0x90] sm:$0xf]  ;;  %v226_v10 = vld [vmem:[%s837_s29 + $0xa0] sm:$0xf]  ;;  %223 = vst [vmem:[%s188_s30 + $0x20] sm:$0xf] %v222_v8 }
  0x18   : > { %225 = vst [vmem:[%s188_s30 + $0x24] sm:$0xf] %v224_v9  ;;  %227 = vst [vmem:[%s188_s30 + $0x28] sm:$0xf] %v226_v10  ;;  %v228_v11 = vld [vmem:[%s837_s29 + $0xb0] sm:$0xf] }
  0x19   : > { %v230_v12 = vld [vmem:[%s837_s29 + $0xc0] sm:$0xf]  ;;  %v232_v13 = vld [vmem:[%s837_s29 + $0xd0] sm:$0xf]  ;;  %229 = vst [vmem:[%s188_s30 + $0x2c] sm:$0xf] %v228_v11 }
  0x1a   : > { %231 = vst [vmem:[%s188_s30 + $0x30] sm:$0xf] %v230_v12  ;;  %233 = vst [vmem:[%s188_s30 + $0x34] sm:$0xf] %v232_v13  ;;  %v234_v14 = vld [vmem:[%s837_s29 + $0xe0] sm:$0xf] }
  0x1b   : > { %v236_v15 = vld [vmem:[%s837_s29 + $0xf0] sm:$0xf]  ;;  %235 = vst [vmem:[%s188_s30 + $0x38] sm:$0xf] %v234_v14 }
  0x1c   : > { %237 = vst [vmem:[%s188_s30 + $0x3c] sm:$0xf] %v236_v15 }
  0x1d PF: > { %p633_p6 = scmp.ge.s32.totalorder %s765_s19, 1  ;;  %p308_p7 = scmp.lt.s32.totalorder %s765_s19, 5 }
  0x1f   : > { %p309_p8 = pnand %p633_p6, %p308_p7 }
  0x20   : > { %s315_s5 = sand.u32 (!%p309_p8), 1, %s749_s15   ;;  %v767_v16 = vmov (!%p309_p8), 0.0   ;;  %vm768_vm0 = vmmov (!%p309_p8), 0   ;;  %v382_v25 = vld [vmem:[%s887_s0] sm:$0xf] (!%p309_p8)  ;;  %p362_p9 = scmp.lt.s32.totalorder (!%p309_p8), %s757_s17, 3 }
  0x21   : > { %312 = sbr.rel (%p309_p8) target bundleno = 288 (0x120), region = 73  ;;  %657 = vmatprep.subr.bf16.mxu0 (!%p309_p8), %v767_v16  ;;  %s634_s6 = sshll.u32 (!%p309_p8), %s315_s5, 6  ;;  %673 = vmatprep.mubr.msk.bf16.mxu0 (!%p309_p8), %vm768_vm0, %v767_v16 }
  0x22   : > { %s317_s7 = scalar_lea.vmem (!%p309_p8), [#allocation2], %s634_s6 }
  0x23   : > { %v719_v17 = vld [vmem:[%s317_s7] sm:$0xff] (!%p309_p8)   ;;  %v720_v18 = vld [vmem:[%s317_s7 + $0x8] sm:$0xff] (!%p309_p8)   ;;  %v721_v19 = vld [vmem:[%s317_s7 + $0x10] sm:$0xff] (!%p309_p8)  }
  0x24   : > { %658 = vmatpush3.bf16.msra.mxu0 (!%p309_p8), %v719_v17  ;;  %v722_v20 = vld [vmem:[%s317_s7 + $0x18] sm:$0xff] (!%p309_p8)   ;;  %v723_v21 = vld [vmem:[%s317_s7 + $0x20] sm:$0xff] (!%p309_p8)   ;;  %v724_v22 = vld [vmem:[%s317_s7 + $0x28] sm:$0xff] (!%p309_p8)  }
  0x25   : > { %659 = vmatprep.subr.bf16.mxu0 (!%p309_p8), %v767_v16  ;;  %v725_v23 = vld [vmem:[%s317_s7 + $0x30] sm:$0xff] (!%p309_p8)   ;;  %v726_v24 = vld [vmem:[%s317_s7 + $0x38] sm:$0xff] (!%p309_p8)  }
  0x28   : > { %660 = vmatpush3.bf16.msra.mxu0 %v720_v18  ;;  %s899_s17 = smov (!%p362_p9, %s757_s17), 3 }
  0x29   : > { %661 = vmatprep.subr.bf16.mxu0 %v767_v16  ;;  %s635_s10 = sshll.u32 %s899_s17, 2  ;;  %s364_s21 = scalar_lea.vmem %s889_s2, %s899_s17 }
  0x2a   : > { %s372_s13 = scalar_lea.vmem %s890_s3, %s635_s10  ;;  %v637_v27 = vld [vmem:[%s364_s21] ss:$0 sm:$0xff]  ;;  %s380_s25 = scalar_lea.vmem %s891_s4, %s635_s10 }
  0x2b   : > { %v494_v26 = vld [vmem:[%s372_s13] sm:$0xf] }
  0x2c   : > { %662 = vmatpush3.bf16.msra.mxu0 %v721_v19  ;;  %v495_v28 = vunpack.c.l.bf16 %v494_v26 }
  0x2d   : > { %663 = vmatprep.subr.bf16.mxu0 %v767_v16 }
  0x30   : > { %664 = vmatpush3.bf16.msra.mxu0 %v722_v20 }
  0x31   : > { %665 = vmatprep.subr.bf16.mxu0 %v767_v16 }
  0x34   : > { %666 = vmatpush3.bf16.msra.mxu0 %v723_v21 }
  0x35   : > { %667 = vmatprep.subr.bf16.mxu0 %v767_v16 }
  0x38   : > { %668 = vmatpush3.bf16.msra.mxu0 %v724_v22 }
  0x39   : > { %669 = vmatprep.subr.bf16.mxu0 %v767_v16 }
  0x3c   : > { %670 = vmatpush3.bf16.msra.mxu0 %v725_v23 }
  0x3d   : > { %671 = vmatprep.subr.bf16.mxu0 %v767_v16 }
  0x40   : > { %672 = vmatpush3.bf16.msra.mxu0 %v726_v24 }
  0x43   : > { %674 = vmatmul.mubr.bf16.vlgmr.msra.gmra.mrb[0].mxu0 %v382_v25 }
 0x116   : > { %v488_v29 = vpop.f32.mrb[0].mxu0 }
 0x117   : > { %v489_v30 = vadd.f32 %v637_v27, %v488_v29  ;;  %v675_v31 = vpop.f32.mrb[1].mxu0 }
 0x118   : > { %v491_v32 = vpop.f32.mrb[2].mxu0 }
 0x119   : > { %v496_v33 = vadd.f32 %v495_v28, %v489_v30  ;;  %v676_v34 = vpop.f32.mrb[3].mxu0 }
 0x11b   : > { %v497_v35 = vmax.f32 %v496_v33, 0.0 }
 0x11d   : > { %v498_v36 = vpack.c.bf16 %v497_v35, %v497_v35 }
 0x11f   : > { %499 = vst [vmem:[%s380_s25] sm:$0xf] %v498_v36 }
 0x120 PF: > { %s14_s19 = sadd.s32 1, %s765_s19   ;;  %s892_s15 = smov %s753_s16 }
 0x121   : > { %p11_p10 = scmp.ge.s32.totalorder %s14_s19, 6   ;;  %s893_s16 = smov %s829_s23 }
 0x122   : > { %s894_s17 = smov %s761_s18  ;;  %s895_s18 = smov %s897_s20 }
 0x123   :  { %13 = sbr.rel (!%p11_p10) target bundleno = 3 (0x3), region = 121 }

// kernel: quantized_resnet50_forward.101
= control target key start
LH: loop header
LB: loop body
LE: loop exit
PB: predicated region body
PF: predicated region fallthrough
CT: control target
= control target key end

     0   :  { %s855_s12 = smov 0   ;;  %s857_s13 = smov 0   ;;  %s1013_s0 = inlined_call_operand.vmem [shape: bf16[8,256], index: 0, kind: input, shape index: {}]   ;;  %s1014_s1 = inlined_call_operand.vmem [shape: bf16[256,512], index: 1, kind: input, shape index: {}]   ;;  %s1015_s2 = inlined_call_operand.vmem [shape: f32[1,512], index: 2, kind: input, shape index: {}]   ;;  %s1016_s3 = inlined_call_operand.vmem [shape: bf16[8,512], index: 3, kind: output, shape index: {}]  }
   0x1   :  { %s859_s14 = smov 0   ;;  %s861_s15 = smov 0  }
   0x2   :  { %s863_s16 = smov 0  }
   0x3 LB: > { %s22_s17 = sadd.s32 1, %s829_s15  ;;  %p65_p1 = scmp.ne.s32.totalorder %s821_s13, %s817_s12  ;;  %s833_s16 = sphi %s863_s16, %s13_s16   ;;  %s829_s15 = sphi %s861_s15, %s1020_s15   ;;  %s825_s14 = sphi %s859_s14, %s1019_s14   ;;  %s821_s13 = sphi %s857_s13, %s1018_s13   ;;  %s817_s12 = sphi %s855_s12, %s1017_s12  }
   0x4   : > { %p23_p0 = scmp.ge.s32.totalorder %s22_s17, 4  ;;  %p66_p2 = scmp.eq.s32.totalorder %s833_s16, 0 }
   0x5   : > { %s58_s19 = sadd.s32 1, %s821_s13  ;;  %p688_p5 = scmp.ge.s32.totalorder %s833_s16, 4 }
   0x6   : > { %s1022_s17 = smov (%p23_p0, %s22_s17), 0  ;;  %p67_p3 = por %p66_p2, %p65_p1 }
   0x7   : > { %s55_s18 = ssub.s32 %s829_s15, %s1022_s17  ;;  %153 = sbr.rel (%p688_p5) target bundleno = 39 (0x27), region = 20 }
   0x8   : > { %p56_p4 = scmp.eq.s32.totalorder %s55_s18, 0 }
   0xa   : > { %s890_s20 = scalar_select %p56_p4, %s821_s13, %s58_s19  }
   0xe   : > { %156 = sbr.rel (!%p67_p3) target bundleno = 39 (0x27), region = 24  ;;  %s158_s21 = sand.u32 (%p67_p3), 1, %s821_s13  }
   0xf   : > { %s690_s22 = sshll.u32 (%p67_p3), %s829_s15, 2  ;;  %s689_s23 = sshll.u32 (%p67_p3), %s158_s21, 7 }
  0x10   : > { %s898_s26 = scalar_lea.vmem (%p67_p3), %s1014_s1, %s690_s22  ;;  %s902_s27 = scalar_lea.vmem (%p67_p3), [#allocation2], %s689_s23 }
  0x11   : > { %v178_v0 = vld [vmem:[%s898_s26] sm:$0xf] (%p67_p3)  ;;  %v180_v1 = vld [vmem:[%s898_s26 + $0x10] sm:$0xf] (%p67_p3) }
  0x12   : > { %179 = vst [vmem:[%s902_s27] sm:$0xf] (%p67_p3), %v178_v0  ;;  %181 = vst [vmem:[%s902_s27 + $0x4] sm:$0xf] (%p67_p3), %v180_v1  ;;  %v182_v2 = vld [vmem:[%s898_s26 + $0x20] sm:$0xf] (%p67_p3) }
  0x13   : > { %v184_v3 = vld [vmem:[%s898_s26 + $0x30] sm:$0xf] (%p67_p3)  ;;  %v186_v4 = vld [vmem:[%s898_s26 + $0x40] sm:$0xf] (%p67_p3)  ;;  %183 = vst [vmem:[%s902_s27 + $0x8] sm:$0xf] (%p67_p3), %v182_v2 }
  0x14   : > { %185 = vst [vmem:[%s902_s27 + $0xc] sm:$0xf] (%p67_p3), %v184_v3  ;;  %187 = vst [vmem:[%s902_s27 + $0x10] sm:$0xf] (%p67_p3), %v186_v4  ;;  %v188_v5 = vld [vmem:[%s898_s26 + $0x50] sm:$0xf] (%p67_p3) }
  0x15   : > { %v190_v6 = vld [vmem:[%s898_s26 + $0x60] sm:$0xf]  ;;  %v192_v7 = vld [vmem:[%s898_s26 + $0x70] sm:$0xf]  ;;  %189 = vst [vmem:[%s902_s27 + $0x14] sm:$0xf] %v188_v5 }
  0x16   : > { %191 = vst [vmem:[%s902_s27 + $0x18] sm:$0xf] %v190_v6  ;;  %193 = vst [vmem:[%s902_s27 + $0x1c] sm:$0xf] %v192_v7  ;;  %v194_v8 = vld [vmem:[%s898_s26 + $0x80] sm:$0xf] }
  0x17   : > { %v196_v9 = vld [vmem:[%s898_s26 + $0x90] sm:$0xf]  ;;  %v198_v10 = vld [vmem:[%s898_s26 + $0xa0] sm:$0xf]  ;;  %195 = vst [vmem:[%s902_s27 + $0x20] sm:$0xf] %v194_v8 }
  0x18   : > { %197 = vst [vmem:[%s902_s27 + $0x24] sm:$0xf] %v196_v9  ;;  %199 = vst [vmem:[%s902_s27 + $0x28] sm:$0xf] %v198_v10  ;;  %v200_v11 = vld [vmem:[%s898_s26 + $0xb0] sm:$0xf] }
  0x19   : > { %v202_v12 = vld [vmem:[%s898_s26 + $0xc0] sm:$0xf]  ;;  %v204_v13 = vld [vmem:[%s898_s26 + $0xd0] sm:$0xf]  ;;  %201 = vst [vmem:[%s902_s27 + $0x2c] sm:$0xf] %v200_v11 }
  0x1a   : > { %203 = vst [vmem:[%s902_s27 + $0x30] sm:$0xf] %v202_v12  ;;  %205 = vst [vmem:[%s902_s27 + $0x34] sm:$0xf] %v204_v13  ;;  %v206_v14 = vld [vmem:[%s898_s26 + $0xe0] sm:$0xf] }
  0x1b   : > { %v208_v15 = vld [vmem:[%s898_s26 + $0xf0] sm:$0xf]  ;;  %v210_v16 = vld [vmem:[%s898_s26 + $0x100] sm:$0xf]  ;;  %207 = vst [vmem:[%s902_s27 + $0x38] sm:$0xf] %v206_v14 }
  0x1c   : > { %209 = vst [vmem:[%s902_s27 + $0x3c] sm:$0xf] %v208_v15  ;;  %211 = vst [vmem:[%s902_s27 + $0x40] sm:$0xf] %v210_v16  ;;  %v212_v17 = vld [vmem:[%s898_s26 + $0x110] sm:$0xf] }
  0x1d   : > { %v214_v18 = vld [vmem:[%s898_s26 + $0x120] sm:$0xf]  ;;  %v216_v19 = vld [vmem:[%s898_s26 + $0x130] sm:$0xf]  ;;  %213 = vst [vmem:[%s902_s27 + $0x44] sm:$0xf] %v212_v17 }
  0x1e   : > { %215 = vst [vmem:[%s902_s27 + $0x48] sm:$0xf] %v214_v18  ;;  %217 = vst [vmem:[%s902_s27 + $0x4c] sm:$0xf] %v216_v19  ;;  %v218_v20 = vld [vmem:[%s898_s26 + $0x140] sm:$0xf] }
  0x1f   : > { %v220_v21 = vld [vmem:[%s898_s26 + $0x150] sm:$0xf]  ;;  %v222_v22 = vld [vmem:[%s898_s26 + $0x160] sm:$0xf]  ;;  %219 = vst [vmem:[%s902_s27 + $0x50] sm:$0xf] %v218_v20 }
  0x20   : > { %221 = vst [vmem:[%s902_s27 + $0x54] sm:$0xf] %v220_v21  ;;  %223 = vst [vmem:[%s902_s27 + $0x58] sm:$0xf] %v222_v22  ;;  %v224_v23 = vld [vmem:[%s898_s26 + $0x170] sm:$0xf] }
  0x21   : > { %v226_v24 = vld [vmem:[%s898_s26 + $0x180] sm:$0xf]  ;;  %v228_v25 = vld [vmem:[%s898_s26 + $0x190] sm:$0xf]  ;;  %225 = vst [vmem:[%s902_s27 + $0x5c] sm:$0xf] %v224_v23 }
  0x22   : > { %227 = vst [vmem:[%s902_s27 + $0x60] sm:$0xf] %v226_v24  ;;  %229 = vst [vmem:[%s902_s27 + $0x64] sm:$0xf] %v228_v25  ;;  %v230_v26 = vld [vmem:[%s898_s26 + $0x1a0] sm:$0xf] }
  0x23   : > { %v232_v27 = vld [vmem:[%s898_s26 + $0x1b0] sm:$0xf]  ;;  %v234_v28 = vld [vmem:[%s898_s26 + $0x1c0] sm:$0xf]  ;;  %231 = vst [vmem:[%s902_s27 + $0x68] sm:$0xf] %v230_v26 }
  0x24   : > { %233 = vst [vmem:[%s902_s27 + $0x6c] sm:$0xf] %v232_v27  ;;  %235 = vst [vmem:[%s902_s27 + $0x70] sm:$0xf] %v234_v28  ;;  %v236_v29 = vld [vmem:[%s898_s26 + $0x1d0] sm:$0xf] }
  0x25   : > { %v238_v30 = vld [vmem:[%s898_s26 + $0x1e0] sm:$0xf]  ;;  %v240_v31 = vld [vmem:[%s898_s26 + $0x1f0] sm:$0xf]  ;;  %237 = vst [vmem:[%s902_s27 + $0x74] sm:$0xf] %v236_v29 }
  0x26   : > { %239 = vst [vmem:[%s902_s27 + $0x78] sm:$0xf] %v238_v30  ;;  %241 = vst [vmem:[%s902_s27 + $0x7c] sm:$0xf] %v240_v31 }
  0x27 PF: > { %p691_p6 = scmp.ge.s32.totalorder %s833_s16, 1  ;;  %p333_p7 = scmp.lt.s32.totalorder %s833_s16, 5 }
  0x29   : > { %p334_p8 = pnand %p691_p6, %p333_p7 }
  0x2a   : > { %s340_s28 = sand.u32 (!%p334_p8), 1, %s817_s12   ;;  %v391_v32 = vld [vmem:[%s1013_s0] sm:$0xff] (!%p334_p8)  ;;  %p379_p9 = scmp.lt.s32.totalorder (!%p334_p8), %s825_s14, 3 }
  0x2b   : > { %337 = sbr.rel (%p334_p8) target bundleno = 298 (0x12a), region = 69  ;;  %s692_s4 = sshll.u32 (!%p334_p8), %s340_s28, 7  ;;  %v696_v33 = vcombine.high (!%p334_p8), %v391_v32, %v391_v32  ;;  %v695_v50 = vcombine.low (!%p334_p8), %v391_v32, %v391_v32 }
  0x2c   : > { %s972_s5 = scalar_lea.vmem (!%p334_p8), [#allocation2], %s692_s4 }
  0x2d   : > { %v777_v34 = vld [vmem:[%s972_s5 + $0x40] sm:$0xff] (!%p334_p8)   ;;  %566 = vmatprep.mubr.bf16.mxu0 (!%p334_p8), %v696_v33  ;;  %v779_v36 = vld [vmem:[%s972_s5 + $0x48] sm:$0xff] (!%p334_p8)   ;;  %v781_v38 = vld [vmem:[%s972_s5 + $0x50] sm:$0xff] (!%p334_p8)  }
  0x2e   : > { %v778_v35 = vld [vmem:[%s972_s5] sm:$0xff] (!%p334_p8)   ;;  %715 = vmatprep.subr.bf16.mxu0 (!%p334_p8), %v777_v34  ;;  %v780_v37 = vld [vmem:[%s972_s5 + $0x8] sm:$0xff] (!%p334_p8)   ;;  %v782_v39 = vld [vmem:[%s972_s5 + $0x10] sm:$0xff] (!%p334_p8)  }
  0x2f   : > { %716 = vmatpush3.bf16.msra.mxu0 (!%p334_p8), %v778_v35  ;;  %v783_v40 = vld [vmem:[%s972_s5 + $0x58] sm:$0xff] (!%p334_p8)   ;;  %v785_v42 = vld [vmem:[%s972_s5 + $0x60] sm:$0xff] (!%p334_p8)   ;;  %v787_v44 = vld [vmem:[%s972_s5 + $0x68] sm:$0xff] (!%p334_p8)  }
  0x30   : > { %717 = vmatprep.subr.bf16.mxu0 (!%p334_p8), %v779_v36  ;;  %v784_v41 = vld [vmem:[%s972_s5 + $0x18] sm:$0xff] (!%p334_p8)   ;;  %v786_v43 = vld [vmem:[%s972_s5 + $0x20] sm:$0xff] (!%p334_p8)   ;;  %v788_v45 = vld [vmem:[%s972_s5 + $0x28] sm:$0xff] (!%p334_p8)  }
  0x31   : > { %v789_v46 = vld [vmem:[%s972_s5 + $0x70] sm:$0xff] (!%p334_p8)   ;;  %v791_v48 = vld [vmem:[%s972_s5 + $0x78] sm:$0xff] (!%p334_p8)  }
  0x32   : > { %v790_v47 = vld [vmem:[%s972_s5 + $0x30] sm:$0xff]   ;;  %v792_v49 = vld [vmem:[%s972_s5 + $0x38] sm:$0xff]   ;;  %s1024_s14 = smov (!%p379_p9, %s825_s14), 3 }
  0x33   : > { %718 = vmatpush3.bf16.msra.mxu0 %v780_v37  ;;  %s381_s8 = scalar_lea.vmem %s1015_s2, %s1024_s14  ;;  %s693_s9 = sshll.u32 %s1024_s14, 2 }
  0x34   : > { %719 = vmatprep.subr.bf16.mxu0 %v781_v38  ;;  %v694_v52 = vld [vmem:[%s381_s8] ss:$0 sm:$0xff]  ;;  %s389_s12 = scalar_lea.vmem %s1016_s3, %s693_s9 }
  0x37   : > { %720 = vmatpush3.bf16.msra.mxu0 %v782_v39 }
  0x38   : > { %721 = vmatprep.subr.bf16.mxu0 %v783_v40 }
  0x3b   : > { %722 = vmatpush3.bf16.msra.mxu0 %v784_v41 }
  0x3c   : > { %723 = vmatprep.subr.bf16.mxu0 %v785_v42 }
  0x3f   : > { %724 = vmatpush3.bf16.msra.mxu0 %v786_v43 }
  0x40   : > { %725 = vmatprep.subr.bf16.mxu0 %v787_v44 }
  0x43   : > { %726 = vmatpush3.bf16.msra.mxu0 %v788_v45 }
  0x44   : > { %727 = vmatprep.subr.bf16.mxu0 %v789_v46 }
  0x47   : > { %728 = vmatpush3.bf16.msra.mxu0 %v790_v47 }
  0x48   : > { %729 = vmatprep.subr.bf16.mxu0 %v791_v48 }
  0x4b   : > { %730 = vmatpush3.bf16.msra.mxu0 %v792_v49 }
  0x4e   : > { %567 = vmatmul.mubr.bf16.vlgmr.msra.gmra.mrb[0].mxu0 %v695_v50 }
 0x121   : > { %v731_v51 = vpop.f32.mrb[0].mxu0 }
 0x122   : > { %v732_v53 = vpop.f32.mrb[1].mxu0 }
 0x123   : > { %v733_v54 = vadd.f32 %v732_v53, %v731_v51  ;;  %v734_v55 = vpop.f32.mrb[2].mxu0 }
 0x124   : > { %v735_v56 = vpop.f32.mrb[3].mxu0 }
 0x125   : > { %v569_v57 = vadd.f32 %v733_v54, %v694_v52 }
 0x127   : > { %v574_v58 = vpack.c.bf16 %v569_v57, %v569_v57 }
 0x129   : > { %575 = vst [vmem:[%s389_s12] sm:$0xf] %v574_v58 }
 0x12a PF: > { %s13_s16 = sadd.s32 1, %s833_s16   ;;  %s1017_s12 = smov %s821_s13 }
 0x12b   : > { %p10_p10 = scmp.ge.s32.totalorder %s13_s16, 6   ;;  %s1018_s13 = smov %s890_s20 }
 0x12c   : > { %s1019_s14 = smov %s829_s15  ;;  %s1020_s15 = smov %s1022_s17 }
 0x12d   :  { %12 = sbr.rel (!%p10_p10) target bundleno = 3 (0x3), region = 114 }

// kernel: quantized_resnet50_forward.105
= control target key start
LH: loop header
LB: loop body
LE: loop exit
PB: predicated region body
PF: predicated region fallthrough
CT: control target
= control target key end

     0   :  { %s626_s1 = inlined_call_operand.vmem [shape: bf16[512,128], index: 1, kind: input, shape index: {}]   ;;  %s627_s0 = inlined_call_operand.vmem [shape: bf16[8,512], index: 0, kind: input, shape index: {}]   ;;  %s628_s2 = inlined_call_operand.vmem [shape: f32[1,128], index: 2, kind: input, shape index: {}]   ;;  %s629_s3 = inlined_call_operand.vmem [shape: bf16[8,128], index: 3, kind: output, shape index: {}]  }
   0x1   :  { %v462_v0 = vld [vmem:[%s626_s1 + $0x40] sm:$0xff]   ;;  %v466_v4 = vld [vmem:[%s626_s1 + $0x48] sm:$0xff]   ;;  %v470_v8 = vld [vmem:[%s626_s1 + $0x50] sm:$0xff]  }
   0x2   :  { %v463_v1 = vld [vmem:[%s626_s1 + $0xc0] sm:$0xff]   ;;  %418 = vmatprep.subr.bf16.mxu0 %v462_v0  ;;  %v467_v5 = vld [vmem:[%s626_s1 + $0xc8] sm:$0xff]   ;;  %v471_v9 = vld [vmem:[%s626_s1 + $0xd0] sm:$0xff]  }
   0x3   :  { %v464_v2 = vld [vmem:[%s626_s1] sm:$0xff]   ;;  %440 = vmatprep.subr.bf16.mxu1 %v463_v1  ;;  %v468_v6 = vld [vmem:[%s626_s1 + $0x8] sm:$0xff]   ;;  %v472_v10 = vld [vmem:[%s626_s1 + $0x10] sm:$0xff]  }
   0x4   :  { %v465_v3 = vld [vmem:[%s626_s1 + $0x80] sm:$0xff]   ;;  %419 = vmatpush3.bf16.msra.mxu0 %v464_v2  ;;  %v469_v7 = vld [vmem:[%s626_s1 + $0x88] sm:$0xff]   ;;  %v473_v11 = vld [vmem:[%s626_s1 + $0x90] sm:$0xff]  }
   0x5   :  { %441 = vmatpush3.bf16.msra.mxu1 %v465_v3  ;;  %420 = vmatprep.subr.bf16.mxu0 %v466_v4  ;;  %v474_v12 = vld [vmem:[%s626_s1 + $0x58] sm:$0xff]   ;;  %v478_v16 = vld [vmem:[%s626_s1 + $0x60] sm:$0xff]   ;;  %v482_v20 = vld [vmem:[%s626_s1 + $0x68] sm:$0xff]  }
   0x6   :  { %442 = vmatprep.subr.bf16.mxu1 %v467_v5  ;;  %v475_v13 = vld [vmem:[%s626_s1 + $0xd8] sm:$0xff]   ;;  %v479_v17 = vld [vmem:[%s626_s1 + $0xe0] sm:$0xff]   ;;  %v483_v21 = vld [vmem:[%s626_s1 + $0xe8] sm:$0xff]  }
   0x7   :  { %v476_v14 = vld [vmem:[%s626_s1 + $0x18] sm:$0xff]   ;;  %v480_v18 = vld [vmem:[%s626_s1 + $0x20] sm:$0xff]   ;;  %v484_v22 = vld [vmem:[%s626_s1 + $0x28] sm:$0xff]  }
   0x8   :  { %421 = vmatpush3.bf16.msra.mxu0 %v468_v6  ;;  %v477_v15 = vld [vmem:[%s626_s1 + $0x98] sm:$0xff]   ;;  %v481_v19 = vld [vmem:[%s626_s1 + $0xa0] sm:$0xff]   ;;  %v485_v23 = vld [vmem:[%s626_s1 + $0xa8] sm:$0xff]  }
   0x9   :  { %443 = vmatpush3.bf16.msra.mxu1 %v469_v7  ;;  %422 = vmatprep.subr.bf16.mxu0 %v470_v8  ;;  %v486_v24 = vld [vmem:[%s626_s1 + $0x70] sm:$0xff]   ;;  %v490_v28 = vld [vmem:[%s626_s1 + $0x78] sm:$0xff]   ;;  %v15_v32 = vld [vmem:[%s627_s0] sm:$0xff] }
   0xa   :  { %444 = vmatprep.subr.bf16.mxu1 %v471_v9  ;;  %v487_v25 = vld [vmem:[%s626_s1 + $0xf0] sm:$0xff]   ;;  %v491_v29 = vld [vmem:[%s626_s1 + $0xf8] sm:$0xff]   ;;  %v16_v33 = vld [vmem:[%s627_s0 + $0x8] sm:$0xff]  ;;  %v382_v34 = vcombine.low %v15_v32, %v15_v32  ;;  %v383_v35 = vcombine.high %v15_v32, %v15_v32 }
   0xb   :  { %v488_v26 = vld [vmem:[%s626_s1 + $0x30] sm:$0xff]   ;;  %v492_v30 = vld [vmem:[%s626_s1 + $0x38] sm:$0xff]   ;;  %v384_v36 = vcombine.low %v16_v33, %v16_v33  ;;  %v385_v37 = vcombine.high %v16_v33, %v16_v33  ;;  %v381_v40 = vld [vmem:[%s628_s2] ss:$0 sm:$0xff] }
   0xc   :  { %423 = vmatpush3.bf16.msra.mxu0 %v472_v10  ;;  %v489_v27 = vld [vmem:[%s626_s1 + $0xb0] sm:$0xff]   ;;  %v493_v31 = vld [vmem:[%s626_s1 + $0xb8] sm:$0xff]   ;;  %326 = vmatprep.mubr.bf16.mxu0 %v383_v35 }
   0xd   :  { %445 = vmatpush3.bf16.msra.mxu1 %v473_v11  ;;  %424 = vmatprep.subr.bf16.mxu0 %v474_v12 }
   0xe   :  { %446 = vmatprep.subr.bf16.mxu1 %v475_v13  ;;  %366 = vmatprep.mubr.bf16.mxu1 %v385_v37 }
  0x10   :  { %425 = vmatpush3.bf16.msra.mxu0 %v476_v14 }
  0x11   :  { %447 = vmatpush3.bf16.msra.mxu1 %v477_v15  ;;  %426 = vmatprep.subr.bf16.mxu0 %v478_v16 }
  0x12   :  { %448 = vmatprep.subr.bf16.mxu1 %v479_v17 }
  0x14   :  { %427 = vmatpush3.bf16.msra.mxu0 %v480_v18 }
  0x15   :  { %449 = vmatpush3.bf16.msra.mxu1 %v481_v19  ;;  %428 = vmatprep.subr.bf16.mxu0 %v482_v20 }
  0x16   :  { %450 = vmatprep.subr.bf16.mxu1 %v483_v21 }
  0x18   :  { %429 = vmatpush3.bf16.msra.mxu0 %v484_v22 }
  0x19   :  { %451 = vmatpush3.bf16.msra.mxu1 %v485_v23  ;;  %430 = vmatprep.subr.bf16.mxu0 %v486_v24 }
  0x1a   :  { %452 = vmatprep.subr.bf16.mxu1 %v487_v25 }
  0x1c   :  { %431 = vmatpush3.bf16.msra.mxu0 %v488_v26 }
  0x1d   :  { %453 = vmatpush3.bf16.msra.mxu1 %v489_v27  ;;  %432 = vmatprep.subr.bf16.mxu0 %v490_v28 }
  0x1e   :  { %454 = vmatprep.subr.bf16.mxu1 %v491_v29 }
  0x20   :  { %433 = vmatpush3.bf16.msra.mxu0 %v492_v30 }
  0x21   :  { %455 = vmatpush3.bf16.msra.mxu1 %v493_v31 }
  0x23   :  { %327 = vmatmul.mubr.bf16.vlgmr.msra.gmra.mrb[0].mxu0 %v382_v34 }
  0x24   :  { %367 = vmatmul.mubr.bf16.vlgmr.msra.gmra.mrb[0].mxu1 %v384_v36 }
  0xf6   :  { %v434_v38 = vpop.f32.mrb[0].mxu0 }
  0xf7   :  { %v456_v39 = vpop.f32.mrb[0].mxu1  ;;  %v435_v41 = vpop.f32.mrb[1].mxu0 }
  0xf8   :  { %v457_v42 = vpop.f32.mrb[1].mxu1  ;;  %v436_v43 = vadd.f32 %v435_v41, %v434_v38  ;;  %v437_v45 = vpop.f32.mrb[2].mxu0 }
  0xf9   :  { %v458_v44 = vadd.f32 %v457_v42, %v456_v39  ;;  %v459_v46 = vpop.f32.mrb[2].mxu1  ;;  %v438_v47 = vpop.f32.mrb[3].mxu0 }
  0xfa   :  { %v460_v48 = vpop.f32.mrb[3].mxu1  ;;  %v329_v49 = vadd.f32 %v436_v43, %v381_v40 }
  0xfc   :  { %v369_v50 = vadd.f32 %v458_v44, %v329_v49 }
  0xfe   :  { %v374_v51 = vmax.f32 %v369_v50, 0.0 }
 0x100   :  { %v375_v52 = vpack.c.bf16 %v374_v51, %v374_v51 }
 0x102   :  { %376 = vst [vmem:[%s629_s3] sm:$0xf] %v375_v52 }

// kernel: quantized_resnet50_forward.111
= control target key start
LH: loop header
LB: loop body
LE: loop exit
PB: predicated region body
PF: predicated region fallthrough
CT: control target
= control target key end

     0   :  { %v24_v23 = vlaneseq  ;;  %s740_s0 = inlined_call_operand.vmem [shape: bf16[2,1,512], index: 0, kind: input, shape index: {}]   ;;  %s741_s1 = inlined_call_operand.vmem [shape: bf16[512,128], index: 1, kind: input, shape index: {}]   ;;  %s742_s2 = inlined_call_operand.vmem [shape: f32[1,128], index: 2, kind: input, shape index: {}]   ;;  %s743_s3 = inlined_call_operand.hbm [shape: f32[2,128], index: 3, kind: output, shape index: {}]  }
   0x1   :  { %v545_v0 = vld [vmem:[%s741_s1 + $0x40] sm:$0xff]   ;;  %v549_v4 = vld [vmem:[%s741_s1 + $0x48] sm:$0xff]   ;;  %v553_v8 = vld [vmem:[%s741_s1 + $0x50] sm:$0xff]  }
   0x2   :  { %v546_v1 = vld [vmem:[%s741_s1 + $0xc0] sm:$0xff]   ;;  %500 = vmatprep.subr.bf16.mxu0 %v545_v0  ;;  %v550_v5 = vld [vmem:[%s741_s1 + $0xc8] sm:$0xff]   ;;  %v554_v9 = vld [vmem:[%s741_s1 + $0xd0] sm:$0xff]   ;;  %v25_v28 = vshrl.u32 %v24_v23, 7 }
   0x3   :  { %v547_v2 = vld [vmem:[%s741_s1] sm:$0xff]   ;;  %522 = vmatprep.subr.bf16.mxu1 %v546_v1  ;;  %v551_v6 = vld [vmem:[%s741_s1 + $0x8] sm:$0xff]   ;;  %v555_v10 = vld [vmem:[%s741_s1 + $0x10] sm:$0xff]  }
   0x4   :  { %v548_v3 = vld [vmem:[%s741_s1 + $0x80] sm:$0xff]   ;;  %501 = vmatpush3.bf16.msra.mxu0 %v547_v2  ;;  %v552_v7 = vld [vmem:[%s741_s1 + $0x88] sm:$0xff]   ;;  %v556_v11 = vld [vmem:[%s741_s1 + $0x90] sm:$0xff]   ;;  %v30_v33 = vsub.s32 2, %v25_v28  ;;  %v38_v35 = vsub.s32 6, %v25_v28  ;;  %v26_v37 = vsub.s32 0, %v25_v28 }
   0x5   :  { %523 = vmatpush3.bf16.msra.mxu1 %v548_v3  ;;  %502 = vmatprep.subr.bf16.mxu0 %v549_v4  ;;  %v557_v12 = vld [vmem:[%s741_s1 + $0x58] sm:$0xff]   ;;  %v561_v16 = vld [vmem:[%s741_s1 + $0x60] sm:$0xff]   ;;  %v565_v20 = vld [vmem:[%s741_s1 + $0x68] sm:$0xff]   ;;  %v34_v38 = vsub.s32 4, %v25_v28 }
   0x6   :  { %524 = vmatprep.subr.bf16.mxu1 %v550_v5  ;;  %v558_v13 = vld [vmem:[%s741_s1 + $0xd8] sm:$0xff]   ;;  %v562_v17 = vld [vmem:[%s741_s1 + $0xe0] sm:$0xff]   ;;  %v566_v21 = vld [vmem:[%s741_s1 + $0xe8] sm:$0xff]  }
   0x7   :  { %v559_v14 = vld [vmem:[%s741_s1 + $0x18] sm:$0xff]   ;;  %v563_v18 = vld [vmem:[%s741_s1 + $0x20] sm:$0xff]   ;;  %v567_v22 = vld [vmem:[%s741_s1 + $0x28] sm:$0xff]  }
   0x8   :  { %503 = vmatpush3.bf16.msra.mxu0 %v551_v6  ;;  %v560_v15 = vld [vmem:[%s741_s1 + $0x98] sm:$0xff]   ;;  %v564_v19 = vld [vmem:[%s741_s1 + $0xa0] sm:$0xff]   ;;  %v568_v24 = vld [vmem:[%s741_s1 + $0xa8] sm:$0xff]  }
   0x9   :  { %525 = vmatpush3.bf16.msra.mxu1 %v552_v7  ;;  %504 = vmatprep.subr.bf16.mxu0 %v553_v8  ;;  %v569_v25 = vld [vmem:[%s741_s1 + $0x70] sm:$0xff]   ;;  %v573_v30 = vld [vmem:[%s741_s1 + $0x78] sm:$0xff]   ;;  %v497_v36 = vld [vmem:[%s740_s0] sm:$0xff]  }
   0xa   :  { %526 = vmatprep.subr.bf16.mxu1 %v554_v9  ;;  %v570_v26 = vld [vmem:[%s741_s1 + $0xf0] sm:$0xff]   ;;  %v574_v31 = vld [vmem:[%s741_s1 + $0xf8] sm:$0xff]  }
   0xb   :  { %v571_v27 = vld [vmem:[%s741_s1 + $0x30] sm:$0xff]   ;;  %v575_v32 = vld [vmem:[%s741_s1 + $0x38] sm:$0xff]  }
   0xc   :  { %505 = vmatpush3.bf16.msra.mxu0 %v555_v10  ;;  %v572_v29 = vld [vmem:[%s741_s1 + $0xb0] sm:$0xff]   ;;  %v576_v34 = vld [vmem:[%s741_s1 + $0xb8] sm:$0xff]  }
   0xd   :  { %527 = vmatpush3.bf16.msra.mxu1 %v556_v11  ;;  %506 = vmatprep.subr.bf16.mxu0 %v557_v12 }
   0xe   :  { %528 = vmatprep.subr.bf16.mxu1 %v558_v13 }
  0x10   :  { %507 = vmatpush3.bf16.msra.mxu0 %v559_v14 }
  0x11   :  { %529 = vmatpush3.bf16.msra.mxu1 %v560_v15  ;;  %508 = vmatprep.subr.bf16.mxu0 %v561_v16 }
  0x12   :  { %530 = vmatprep.subr.bf16.mxu1 %v562_v17 }
  0x14   :  { %509 = vmatpush3.bf16.msra.mxu0 %v563_v18 }
  0x15   :  { %531 = vmatpush3.bf16.msra.mxu1 %v564_v19  ;;  %510 = vmatprep.subr.bf16.mxu0 %v565_v20 }
  0x16   :  { %532 = vmatprep.subr.bf16.mxu1 %v566_v21 }
  0x18   :  { %511 = vmatpush3.bf16.msra.mxu0 %v567_v22 }
  0x19   :  { %533 = vmatpush3.bf16.msra.mxu1 %v568_v24  ;;  %512 = vmatprep.subr.bf16.mxu0 %v569_v25 }
  0x1a   :  { %534 = vmatprep.subr.bf16.mxu1 %v570_v26 }
  0x1c   :  { %513 = vmatpush3.bf16.msra.mxu0 %v571_v27 }
  0x1d   :  { %535 = vmatpush3.bf16.msra.mxu1 %v572_v29  ;;  %514 = vmatprep.subr.bf16.mxu0 %v573_v30 }
  0x1e   :  { %536 = vmatprep.subr.bf16.mxu1 %v574_v31 }
  0x20   :  { %515 = vmatpush3.bf16.msra.mxu0 %v575_v32 }
  0x21   :  { %8 = vsyncpa [#allocation3], 0  ;;  %537 = vmatpush3.bf16.msra.mxu1 %v576_v34  ;;  %v498_v39 = vunpack.c.l.bf16 %v497_v36  ;;  %v499_v40 = vunpack.c.h.bf16 %v497_v36  ;;  %vm160_vm0 = vcmask 1041409   ;;  %v463_v15 = vld [vmem:[%s742_s2] ss:$0 sm:$0xff]  ;;  %s601_s24 = smov [#allocation2]  }
  0x22   :  { %s455_s25 = sshll.u32 %s601_s24, 4  ;;  %s456_s25 = int_to_ptr.vmem [resolvable:$true] %s455_s25 }
  0x23   :  { %v31_v41 = vrot.slane %v498_v39, %v30_v33  ;;  %v47_v42 = vrot.slane %v499_v40, %v30_v33  ;;  %v39_v43 = vrot.slane %v498_v39, %v38_v35  ;;  %v55_v44 = vrot.slane %v499_v40, %v38_v35  ;;  %s577_s26 = scalar_lea.vmem %s456_s25, 32  ;;  %p582_p1 = scmp.lt.s32.totalorder %s456_s25, %s456_s25 }
  0x24   :  { %v27_v45 = vrot.slane %v498_v39, %v26_v37  ;;  %v43_v46 = vrot.slane %v499_v40, %v26_v37  ;;  %v35_v47 = vrot.slane %v498_v39, %v34_v38  ;;  %v51_v48 = vrot.slane %v499_v40, %v34_v38  ;;  %p578_p0 = scmp.ne.s32.totalorder %s456_s25, %s577_s26  ;;  %p583_p2 = scmp.lt.s32.totalorder %s577_s26, %s577_s26 }
  0x25   :  { %v65_v49 = vpack.c.bf16 %v31_v41, %v31_v41  ;;  %v69_v50 = vpack.c.bf16 %v47_v42, %v47_v42  ;;  %v67_v51 = vpack.c.bf16 %v39_v43, %v39_v43  ;;  %v71_v52 = vpack.c.bf16 %v55_v44, %v55_v44 }
  0x26   :  { %v64_v53 = vpack.c.bf16 %v27_v45, %v27_v45  ;;  %v68_v54 = vpack.c.bf16 %v43_v46, %v43_v46  ;;  %v66_v55 = vpack.c.bf16 %v35_v47, %v35_v47  ;;  %v70_v56 = vpack.c.bf16 %v51_v48, %v51_v48  ;;  %p584_p3 = por %p583_p2, %p582_p1 }
  0x27   :  { %v152_v57 = vunpack.c.l.b16 %v65_v49  ;;  %v156_v58 = vunpack.c.l.b16 %v69_v50  ;;  %v154_v59 = vunpack.c.l.b16 %v67_v51  ;;  %v158_v60 = vunpack.c.l.b16 %v71_v52 }
  0x28   :  { %v151_v61 = vunpack.c.l.b16 %v64_v53  ;;  %v155_v62 = vunpack.c.l.b16 %v68_v54  ;;  %v153_v63 = vunpack.c.l.b16 %v66_v55  ;;  %v157_v0 = vunpack.c.l.b16 %v70_v56  ;;  %p585_p4 = pnand %p584_p3, %p578_p0 }
  0x29   :  { %v162_v1 = vrot.slane %v156_v58, 7  ;;  %v166_v2 = vrot.slane %v158_v60, 7 }
  0x2a   :  { %v159_v3 = vrot.slane %v155_v62, 7  ;;  %v164_v4 = vrot.slane %v157_v0, 7 }
  0x2b   :  { %v163_v5 = vsel %vm160_vm0, %v162_v1, %v152_v57  ;;  %v167_v6 = vsel %vm160_vm0, %v166_v2, %v154_v59 }
  0x2c   :  { %v169_v7 = vpack.c.b16 %v163_v5, %v163_v5  ;;  %v171_v8 = vpack.c.b16 %v167_v6, %v167_v6  ;;  %v161_v9 = vsel %vm160_vm0, %v159_v3, %v151_v61  ;;  %v165_v10 = vsel %vm160_vm0, %v164_v4, %v153_v63 }
  0x2d   :  { %v168_v11 = vpack.c.b16 %v161_v9, %v161_v9  ;;  %v170_v12 = vpack.c.b16 %v165_v10, %v165_v10 }
  0x2e   :  { %400 = vmatprep.mubr.bf16.mxu0 %v169_v7  ;;  %440 = vmatprep.mubr.bf16.mxu1 %v171_v8 }
  0x2f   :  { %401 = vmatmul.mubr.bf16.vlgmr.msra.gmra.mrb[0].mxu0 %v168_v11  ;;  %441 = vmatmul.mubr.bf16.vlgmr.msra.gmra.mrb[0].mxu1 %v170_v12 }
 0x102   :  { %v516_v13 = vpop.f32.mrb[0].mxu0  ;;  %v538_v14 = vpop.f32.mrb[0].mxu1 }
 0x103   :  { %v517_v16 = vpop.f32.mrb[1].mxu0  ;;  %v539_v17 = vpop.f32.mrb[1].mxu1 }
 0x104   :  { %v518_v18 = vadd.f32 %v517_v16, %v516_v13  ;;  %v540_v19 = vadd.f32 %v539_v17, %v538_v14  ;;  %v519_v20 = vpop.f32.mrb[2].mxu0  ;;  %v541_v21 = vpop.f32.mrb[2].mxu1 }
 0x105   :  { %v520_v22 = vpop.f32.mrb[3].mxu0  ;;  %v542_v23 = vpop.f32.mrb[3].mxu1 }
 0x106   :  { %v403_v24 = vadd.f32 %v518_v18, %v463_v15 }
 0x108   :  { %v443_v25 = vadd.f32 %v540_v19, %v403_v24 }
 0x10a   :  { %448 = vst [vmem:[#allocation2] sm:$0x3] %v443_v25 }
 0x10b   :  { %588 = shalt.err (!%p585_p4)
}
 0x10c   :  { %s589_s28 = scalar_lea.hbm %s743_s3, 32 }
 0x10d   :  { %p590_p5 = scmp.ne.s32.totalorder %s743_s3, %s589_s28  ;;  %p593_p6 = scmp.lt.u32.totalorder %s589_s28, %s743_s3 }
 0x10f   :  { %p595_p7 = pnand %p593_p6, %p590_p5 }
 0x111   :  { %598 = shalt.err (!%p595_p7)
}
 0x112   :  { %458 = dma.vmem_to_hbm [thread:$0]  %s456_s25, 32, %s743_s3, [#allocation3]  }
 0x113   :  { %599 = dma.done.wait [#allocation3], 32  }
 0x114   :  { %600 = vsyncadd [#allocation3], 4294967264 }
 0x115   :  { %462 = vsyncpa [#allocation3], 1 }

</bundles_post_ra>
